<compile_context>
chip_gen: v6e
topology: v6e:2x2x1
jax: 0.10.0
libtpu: 0.0.40
codegen_flags: <defaults>
</compile_context>

<pallas_src>
import numpy as np
import jax
import jax.numpy as jnp
from jax import lax
from jax.experimental import pallas as pl
from jax.experimental.pallas import tpu as pltpu


IMG = 14                                    # images are 14x14 (Linear(800,50) => conv3 out 5x5x32)
KS = 4                                      # all convs are 4x4, stride 1, valid
TAPS = [(dh, dw) for dh in range(KS) for dw in range(KS)]
TR = 128                                    # row tile for the conv stack
MAX_OFF = (KS - 1) * IMG + (KS - 1)         # 45: largest flattened tap offset
NPIX = IMG * IMG                            # 196
O3 = IMG - 3 * (KS - 1)                     # 5: conv3 spatial output size


def _round_up(v, m):
    return ((v + m - 1) // m) * m


# ----------------------------------------------------------------------------
# Fused kernel factory (closes over static sizes)
# ----------------------------------------------------------------------------
def _make_kernel(n_pairs, r1, r2, r3):
    b2n = 2 * n_pairs                       # images per call (both branches stacked)
    q = O3 * O3 * b2n                       # gathered conv3 rows (25 per image)

    def kernel(x_ref, w1_ref, b1_ref, w2_ref, b2_ref, w3_ref, b3_ref,
               g_ref, wf1_ref, bf1_ref, wf2_ref, bf2_ref, wf3_ref, bf3_ref,
               wc1a_ref, wc1b_ref, bc1_ref, wc2_ref, bc2_ref,
               wc3_ref, bc3_ref, wc4_ref, bc4_ref,
               cmp_ref, dig_ref,
               a1_ref, a2_ref, a3_ref):

        # ---------------- conv1 (Cin=1): 16-tap VPU multiply-accumulate ------
        def conv1_tile(t, carry):
            base = pl.multiple_of(t * TR, TR)
            acc = jnp.zeros((TR, 16), jnp.float32)
            for ti, (dh, dw) in enumerate(TAPS):
                sl = x_ref[pl.ds(base + dh * IMG + dw, TR), :]        # (TR, 1)
                acc = acc + sl * w1_ref[pl.ds(ti, 1), :]              # (TR, 16)
            a1_ref[pl.ds(base, TR), :] = jnp.maximum(acc + b1_ref[...], 0.0)
            return carry

        lax.fori_loop(0, r1 // TR, conv1_tile, 0)

        # ---------------- conv2 / conv3: 16-tap MXU matmul accumulate --------
        def conv_tile(in_ref, out_ref, w_ref, b_ref, cout):
            def body(t, carry):
                base = pl.multiple_of(t * TR, TR)
                acc = jnp.zeros((TR, cout), jnp.float32)
                for ti, (dh, dw) in enumerate(TAPS):
                    sl = in_ref[pl.ds(base + dh * IMG + dw, TR), :]
                    acc = acc + jnp.dot(sl, w_ref[ti],
                                        preferred_element_type=jnp.float32)
                out_ref[pl.ds(base, TR), :] = jnp.maximum(acc + b_ref[...], 0.0)
                return carry
            return body

        lax.fori_loop(0, r2 // TR, conv_tile(a1_ref, a2_ref, w2_ref, b2_ref, 32), 0)
        lax.fori_loop(0, r3 // TR, conv_tile(a2_ref, a3_ref, w3_ref, b3_ref, 32), 0)

        # ---------------- gather valid conv3 rows (one-hot matmul) ------------
        # v[p*b2n + b, :] = conv3 output of image b at spatial position p
        v = jnp.zeros((q, 32), jnp.float32)
        for k in range(r3 // TR):
            v = v + jnp.dot(g_ref[:, pl.ds(k * TR, TR)],
                            a3_ref[pl.ds(k * TR, TR), :],
                            preferred_element_type=jnp.float32)

        # ---------------- digit FC stack, both branches stacked ---------------
        h = jnp.zeros((b2n, 50), jnp.float32)
        for p in range(O3 * O3):
            h = h + jnp.dot(v[p * b2n:(p + 1) * b2n, :], wf1_ref[p],
                            preferred_element_type=jnp.float32)
        h = jnp.maximum(h + bf1_ref[...], 0.0)
        h = jnp.maximum(jnp.dot(h, wf2_ref[...],
                                preferred_element_type=jnp.float32) + bf2_ref[...], 0.0)
        d = jnp.dot(h, wf3_ref[...],
                    preferred_element_type=jnp.float32) + bf3_ref[...]     # (2N, 10)
        dig_ref[...] = d                                                   # stacked [dig1; dig2]

        # ---------------- comparison MLP --------------------------------------
        r1v = jnp.maximum(d[:n_pairs, :], 0.0)        # relu(dig1)
        r2v = jnp.maximum(d[n_pairs:, :], 0.0)        # relu(dig2)
        z = jnp.maximum(
            jnp.dot(r1v, wc1a_ref[...], preferred_element_type=jnp.float32)
            + jnp.dot(r2v, wc1b_ref[...], preferred_element_type=jnp.float32)
            + bc1_ref[...], 0.0)
        z = jnp.maximum(jnp.dot(z, wc2_ref[...],
                                preferred_element_type=jnp.float32) + bc2_ref[...], 0.0)
        z = jnp.maximum(jnp.dot(z, wc3_ref[...],
                                preferred_element_type=jnp.float32) + bc3_ref[...], 0.0)
        cmp_ref[...] = jnp.dot(z, wc4_ref[...],
                               preferred_element_type=jnp.float32) + bc4_ref[...]

    return kernel


# ----------------------------------------------------------------------------
# Forward wrapper (mirrors AuxLossCnn.forward): returns (score (N,1), aux (2N,10))
# ----------------------------------------------------------------------------
def forward(x, params):
    (w1, b1, w2, b2, w3, b3, wf1, bf1, wf2, bf2, wf3, bf3,
     wc1, bc1, wc2, bc2, wc3, bc3, wc4, bc4) = params

    n_pairs = x.shape[0]
    assert x.shape[2] == IMG and x.shape[3] == IMG
    b2n = 2 * n_pairs

    # Row extents of the "full-width" flattened activations (multiples of TR so
    # every conv layer is covered by whole 128-row tiles; extra rows are harmless
    # finite garbage that is never selected downstream).
    last_valid = (b2n - 1) * NPIX + (O3 - 1) * IMG + (O3 - 1)
    r3 = _round_up(last_valid + 1, TR)
    r2 = _round_up(r3 + MAX_OFF, TR)
    r1 = _round_up(r2 + MAX_OFF, TR)
    r0 = max(_round_up(r1 + MAX_OFF, 8), b2n * NPIX)

    # Input: [all branch-0 images ; all branch-1 images], flattened (b, h, w) rows.
    imgs = jnp.transpose(x.reshape(n_pairs, 2, IMG, IMG), (1, 0, 2, 3))
    x2d = imgs.reshape(b2n * NPIX, 1)
    x2d = jnp.pad(x2d, ((0, r0 - b2n * NPIX), (0, 0)))

    # Conv weights (KH, KW, Cin, Cout) -> (tap, Cin, Cout); conv1 collapses Cin=1.
    w1m = w1.reshape(KS * KS, 16)
    w2t = w2.reshape(KS * KS, 16, 32)
    w3t = w3.reshape(KS * KS, 32, 32)

    # One-hot gather matrix: row (p*2N + b) selects flattened conv3 row of image b
    # at spatial position p = h5*5 + w5 (constant; folded at compile time).
    p_rows = (np.arange(O3)[:, None] * IMG + np.arange(O3)[None, :]).reshape(-1)
    rows = (p_rows[:, None] + np.arange(b2n)[None, :] * NPIX).reshape(-1)
    g_np = np.zeros((O3 * O3 * b2n, r3), np.float32)
    g_np[np.arange(rows.size), rows] = 1.0
    g = jnp.asarray(g_np)

    # Linear(800, 50): torch flatten index is c*25 + h5*5 + w5 -> regroup per tap.
    wf1t = wf1.reshape(32, O3, O3, 50).transpose(1, 2, 0, 3).reshape(O3 * O3, 32, 50)

    kernel = _make_kernel(n_pairs, r1, r2, r3)
    cmp_out, dig = pl.pallas_call(
        kernel,
        out_shape=(jax.ShapeDtypeStruct((n_pairs, 1), jnp.float32),
                   jax.ShapeDtypeStruct((b2n, 10), jnp.float32)),
        in_specs=[pl.BlockSpec(memory_space=pltpu.MemorySpace.VMEM)] * 23,
        out_specs=(pl.BlockSpec(memory_space=pltpu.MemorySpace.VMEM),
                   pl.BlockSpec(memory_space=pltpu.MemorySpace.VMEM)),
        scratch_shapes=[pltpu.VMEM((r1, 16), jnp.float32),
                        pltpu.VMEM((r2, 32), jnp.float32),
                        pltpu.VMEM((r3, 32), jnp.float32)],
    )(x2d, w1m, b1.reshape(1, -1), w2t, b2.reshape(1, -1), w3t, b3.reshape(1, -1),
      g, wf1t, bf1.reshape(1, -1), wf2, bf2.reshape(1, -1), wf3, bf3.reshape(1, -1),
      wc1[:10], wc1[10:], bc1.reshape(1, -1), wc2, bc2.reshape(1, -1),
      wc3, bc3.reshape(1, -1), wc4, bc4.reshape(1, -1))

    # torch: x_aux = cat([dig1, dig2], axis=1).view(-1, 10)
    x_aux = jnp.concatenate([dig[:n_pairs], dig[n_pairs:]], axis=1).reshape(b2n, 10)
    return cmp_out, x_aux


# ----------------------------------------------------------------------------
# Deterministic synthetic parameters (shapes from AuxLossCnn.__init__)
# ----------------------------------------------------------------------------
def init_params(key):
    keys = iter(jax.random.split(key, 20))

    def wgt(shape, fan_in):
        return jax.random.normal(next(keys), shape, jnp.float32) * (fan_in ** -0.5)

    def bias(shape):
        return jax.random.normal(next(keys), shape, jnp.float32) * 0.05

    return (
        wgt((4, 4, 1, 16), 16), bias((16,)),      # Conv2d(1, 16, 4)
        wgt((4, 4, 16, 32), 256), bias((32,)),    # Conv2d(16, 32, 4)
        wgt((4, 4, 32, 32), 512), bias((32,)),    # Conv2d(32, 32, 4)
        wgt((800, 50), 800), bias((50,)),         # Linear(800, 50)
        wgt((50, 50), 50), bias((50,)),           # Linear(50, 50)
        wgt((50, 10), 50), bias((10,)),           # Linear(50, 10)
        wgt((20, 50), 20), bias((50,)),           # Linear(20, 50)
        wgt((50, 50), 50), bias((50,)),           # Linear(50, 50)
        wgt((50, 50), 50), bias((50,)),           # Linear(50, 50)
        wgt((50, 1), 50), bias((1,)),             # Linear(50, 1)
    )


# ----------------------------------------------------------------------------
# Pure-JAX reference (mirrors the PyTorch module exactly)
# ----------------------------------------------------------------------------
def reference_forward(x, params):
    (w1, b1, w2, b2, w3, b3, wf1, bf1, wf2, bf2, wf3, bf3,
     wc1, bc1, wc2, bc2, wc3, bc3, wc4, bc4) = params
    n_pairs = x.shape[0]
    xi = x.reshape(n_pairs, 2, 1, IMG, IMG)

    def conv(a, w, b):  # NCHW input, HWIO weight, valid, stride 1
        o = lax.conv_general_dilated(a, w, (1, 1), "VALID",
                                     dimension_numbers=("NCHW", "HWIO", "NCHW"))
        return jax.nn.relu(o + b[None, :, None, None])

    def digit_model(a):
        h = conv(a, w1, b1)
        h = conv(h, w2, b2)
        h = conv(h, w3, b3)                    # (N, 32, 5, 5)
        h = h.reshape(n_pairs, 800)            # Flatten in (C, H, W) order
        h = jax.nn.relu(h @ wf1 + bf1)
        h = jax.nn.relu(h @ wf2 + bf2)
        return h @ wf3 + bf3

    with jax.default_matmul_precision("highest"):
        d1, d2 = digit_model(xi[:, 0]), digit_model(xi[:, 1])
        cat = jnp.concatenate([d1, d2], axis=1)
        x_aux = cat.reshape(-1, 10)
        z = jax.nn.relu(cat)
        z = jax.nn.relu(z @ wc1 + bc1)
        z = jax.nn.relu(z @ wc2 + bc2)
        z = jax.nn.relu(z @ wc3 + bc3)
        return z @ wc4 + bc4, x_aux


if __name__ == "__main__":
    key = jax.random.PRNGKey(0)
    kx, kp = jax.random.split(key)
    N = 2
    x = jax.random.normal(kx, (N, 2, IMG, IMG), jnp.float32)   # N pairs of 14x14 digits
    params = init_params(kp)

    out, aux = jax.jit(forward)(x, params)
    out = jax.block_until_ready(out)
    aux = jax.block_until_ready(aux)

    ref_out, ref_aux = reference_forward(x, params)
    assert out.shape == (N, 1) and aux.shape == (2 * N, 10)
    assert jnp.allclose(out, ref_out, rtol=2e-2, atol=2e-2)
    assert jnp.allclose(aux, ref_aux, rtol=2e-2, atol=2e-2)
    print("KERNEL_OK")
</pallas_src>

<mosaic_0001>
module attributes {stable_mosaic.version = 11 : i64} {
  func.func @kernel(%arg0: memref<1072x1xf32, #tpu.memory_space<vmem>>, %arg1: memref<16x16xf32, #tpu.memory_space<vmem>>, %arg2: memref<1x16xf32, #tpu.memory_space<vmem>>, %arg3: memref<16x16x32xf32, #tpu.memory_space<vmem>>, %arg4: memref<1x32xf32, #tpu.memory_space<vmem>>, %arg5: memref<16x32x32xf32, #tpu.memory_space<vmem>>, %arg6: memref<1x32xf32, #tpu.memory_space<vmem>>, %arg7: memref<100x768xf32, #tpu.memory_space<vmem>>, %arg8: memref<25x32x50xf32, #tpu.memory_space<vmem>>, %arg9: memref<1x50xf32, #tpu.memory_space<vmem>>, %arg10: memref<50x50xf32, #tpu.memory_space<vmem>>, %arg11: memref<1x50xf32, #tpu.memory_space<vmem>>, %arg12: memref<50x10xf32, #tpu.memory_space<vmem>>, %arg13: memref<1x10xf32, #tpu.memory_space<vmem>>, %arg14: memref<10x50xf32, #tpu.memory_space<vmem>>, %arg15: memref<10x50xf32, #tpu.memory_space<vmem>>, %arg16: memref<1x50xf32, #tpu.memory_space<vmem>>, %arg17: memref<50x50xf32, #tpu.memory_space<vmem>>, %arg18: memref<1x50xf32, #tpu.memory_space<vmem>>, %arg19: memref<50x50xf32, #tpu.memory_space<vmem>>, %arg20: memref<1x50xf32, #tpu.memory_space<vmem>>, %arg21: memref<50x1xf32, #tpu.memory_space<vmem>>, %arg22: memref<1x1xf32, #tpu.memory_space<vmem>>, %arg23: memref<2x1xf32, #tpu.memory_space<vmem>>, %arg24: memref<4x10xf32, #tpu.memory_space<vmem>>, %arg25: memref<1024x16xf32, #tpu.memory_space<vmem>>, %arg26: memref<896x32xf32, #tpu.memory_space<vmem>>, %arg27: memref<768x32xf32, #tpu.memory_space<vmem>>) attributes {dimension_semantics = [], scalar_prefetch = 0 : i64, scratch_operands = 3 : i64, tpu.core_type = #tpu.core_type<tc>} {
    %c0_i32 = arith.constant 0 : i32
    %c8_i32 = arith.constant 8 : i32
    %0 = arith.addi %c0_i32, %c8_i32 : i32
    %c1_i32 = arith.constant 1 : i32
    scf.for %arg28 = %c0_i32 to %0 step %c1_i32  : i32 {
      %c128_i32 = arith.constant 128 : i32
      %208 = arith.muli %arg28, %c128_i32 : i32
      %209 = tpu.assume_multiple %208, 128 : i32
      %cst_154 = arith.constant 0.000000e+00 : f32
      %210 = vector.broadcast %cst_154 : f32 to vector<128x16xf32>
      %c0_i32_155 = arith.constant 0 : i32
      %211 = arith.addi %209, %c0_i32_155 : i32
      %c0_i32_156 = arith.constant 0 : i32
      %212 = arith.addi %211, %c0_i32_156 : i32
      %213 = arith.index_cast %212 : i32 to index
      %c0_157 = arith.constant 0 : index
      %214 = vector.load %arg0[%213, %c0_157] : memref<1072x1xf32, #tpu.memory_space<vmem>>, vector<128x1xf32>
      %c0_158 = arith.constant 0 : index
      %c0_159 = arith.constant 0 : index
      %215 = vector.load %arg1[%c0_158, %c0_159] : memref<16x16xf32, #tpu.memory_space<vmem>>, vector<1x16xf32>
      %216 = vector.broadcast %214 : vector<128x1xf32> to vector<128x16xf32>
      %217 = vector.broadcast %215 : vector<1x16xf32> to vector<128x16xf32>
      %218 = arith.mulf %216, %217 : vector<128x16xf32>
      %219 = arith.addf %210, %218 : vector<128x16xf32>
      %c0_i32_160 = arith.constant 0 : i32
      %220 = arith.addi %209, %c0_i32_160 : i32
      %c1_i32_161 = arith.constant 1 : i32
      %221 = arith.addi %220, %c1_i32_161 : i32
      %222 = arith.index_cast %221 : i32 to index
      %c0_162 = arith.constant 0 : index
      %223 = vector.load %arg0[%222, %c0_162] : memref<1072x1xf32, #tpu.memory_space<vmem>>, vector<128x1xf32>
      %c1_163 = arith.constant 1 : index
      %c0_164 = arith.constant 0 : index
      %224 = vector.load %arg1[%c1_163, %c0_164] : memref<16x16xf32, #tpu.memory_space<vmem>>, vector<1x16xf32>
      %225 = vector.broadcast %223 : vector<128x1xf32> to vector<128x16xf32>
      %226 = vector.broadcast %224 : vector<1x16xf32> to vector<128x16xf32>
      %227 = arith.mulf %225, %226 : vector<128x16xf32>
      %228 = arith.addf %219, %227 : vector<128x16xf32>
      %c0_i32_165 = arith.constant 0 : i32
      %229 = arith.addi %209, %c0_i32_165 : i32
      %c2_i32 = arith.constant 2 : i32
      %230 = arith.addi %229, %c2_i32 : i32
      %231 = arith.index_cast %230 : i32 to index
      %c0_166 = arith.constant 0 : index
      %232 = vector.load %arg0[%231, %c0_166] : memref<1072x1xf32, #tpu.memory_space<vmem>>, vector<128x1xf32>
      %c2_167 = arith.constant 2 : index
      %c0_168 = arith.constant 0 : index
      %233 = vector.load %arg1[%c2_167, %c0_168] : memref<16x16xf32, #tpu.memory_space<vmem>>, vector<1x16xf32>
      %234 = vector.broadcast %232 : vector<128x1xf32> to vector<128x16xf32>
      %235 = vector.broadcast %233 : vector<1x16xf32> to vector<128x16xf32>
      %236 = arith.mulf %234, %235 : vector<128x16xf32>
      %237 = arith.addf %228, %236 : vector<128x16xf32>
      %c0_i32_169 = arith.constant 0 : i32
      %238 = arith.addi %209, %c0_i32_169 : i32
      %c3_i32 = arith.constant 3 : i32
      %239 = arith.addi %238, %c3_i32 : i32
      %240 = arith.index_cast %239 : i32 to index
      %c0_170 = arith.constant 0 : index
      %241 = vector.load %arg0[%240, %c0_170] : memref<1072x1xf32, #tpu.memory_space<vmem>>, vector<128x1xf32>
      %c3_171 = arith.constant 3 : index
      %c0_172 = arith.constant 0 : index
      %242 = vector.load %arg1[%c3_171, %c0_172] : memref<16x16xf32, #tpu.memory_space<vmem>>, vector<1x16xf32>
      %243 = vector.broadcast %241 : vector<128x1xf32> to vector<128x16xf32>
      %244 = vector.broadcast %242 : vector<1x16xf32> to vector<128x16xf32>
      %245 = arith.mulf %243, %244 : vector<128x16xf32>
      %246 = arith.addf %237, %245 : vector<128x16xf32>
      %c14_i32 = arith.constant 14 : i32
      %247 = arith.addi %209, %c14_i32 : i32
      %c0_i32_173 = arith.constant 0 : i32
      %248 = arith.addi %247, %c0_i32_173 : i32
      %249 = arith.index_cast %248 : i32 to index
      %c0_174 = arith.constant 0 : index
      %250 = vector.load %arg0[%249, %c0_174] : memref<1072x1xf32, #tpu.memory_space<vmem>>, vector<128x1xf32>
      %c4_175 = arith.constant 4 : index
      %c0_176 = arith.constant 0 : index
      %251 = vector.load %arg1[%c4_175, %c0_176] : memref<16x16xf32, #tpu.memory_space<vmem>>, vector<1x16xf32>
      %252 = vector.broadcast %250 : vector<128x1xf32> to vector<128x16xf32>
      %253 = vector.broadcast %251 : vector<1x16xf32> to vector<128x16xf32>
      %254 = arith.mulf %252, %253 : vector<128x16xf32>
      %255 = arith.addf %246, %254 : vector<128x16xf32>
      %c14_i32_177 = arith.constant 14 : i32
      %256 = arith.addi %209, %c14_i32_177 : i32
      %c1_i32_178 = arith.constant 1 : i32
      %257 = arith.addi %256, %c1_i32_178 : i32
      %258 = arith.index_cast %257 : i32 to index
      %c0_179 = arith.constant 0 : index
      %259 = vector.load %arg0[%258, %c0_179] : memref<1072x1xf32, #tpu.memory_space<vmem>>, vector<128x1xf32>
      %c5_180 = arith.constant 5 : index
      %c0_181 = arith.constant 0 : index
      %260 = vector.load %arg1[%c5_180, %c0_181] : memref<16x16xf32, #tpu.memory_space<vmem>>, vector<1x16xf32>
      %261 = vector.broadcast %259 : vector<128x1xf32> to vector<128x16xf32>
      %262 = vector.broadcast %260 : vector<1x16xf32> to vector<128x16xf32>
      %263 = arith.mulf %261, %262 : vector<128x16xf32>
      %264 = arith.addf %255, %263 : vector<128x16xf32>
      %c14_i32_182 = arith.constant 14 : i32
      %265 = arith.addi %209, %c14_i32_182 : i32
      %c2_i32_183 = arith.constant 2 : i32
      %266 = arith.addi %265, %c2_i32_183 : i32
      %267 = arith.index_cast %266 : i32 to index
      %c0_184 = arith.constant 0 : index
      %268 = vector.load %arg0[%267, %c0_184] : memref<1072x1xf32, #tpu.memory_space<vmem>>, vector<128x1xf32>
      %c6_185 = arith.constant 6 : index
      %c0_186 = arith.constant 0 : index
      %269 = vector.load %arg1[%c6_185, %c0_186] : memref<16x16xf32, #tpu.memory_space<vmem>>, vector<1x16xf32>
      %270 = vector.broadcast %268 : vector<128x1xf32> to vector<128x16xf32>
      %271 = vector.broadcast %269 : vector<1x16xf32> to vector<128x16xf32>
      %272 = arith.mulf %270, %271 : vector<128x16xf32>
      %273 = arith.addf %264, %272 : vector<128x16xf32>
      %c14_i32_187 = arith.constant 14 : i32
      %274 = arith.addi %209, %c14_i32_187 : i32
      %c3_i32_188 = arith.constant 3 : i32
      %275 = arith.addi %274, %c3_i32_188 : i32
      %276 = arith.index_cast %275 : i32 to index
      %c0_189 = arith.constant 0 : index
      %277 = vector.load %arg0[%276, %c0_189] : memref<1072x1xf32, #tpu.memory_space<vmem>>, vector<128x1xf32>
      %c7_190 = arith.constant 7 : index
      %c0_191 = arith.constant 0 : index
      %278 = vector.load %arg1[%c7_190, %c0_191] : memref<16x16xf32, #tpu.memory_space<vmem>>, vector<1x16xf32>
      %279 = vector.broadcast %277 : vector<128x1xf32> to vector<128x16xf32>
      %280 = vector.broadcast %278 : vector<1x16xf32> to vector<128x16xf32>
      %281 = arith.mulf %279, %280 : vector<128x16xf32>
      %282 = arith.addf %273, %281 : vector<128x16xf32>
      %c28_i32 = arith.constant 28 : i32
      %283 = arith.addi %209, %c28_i32 : i32
      %c0_i32_192 = arith.constant 0 : i32
      %284 = arith.addi %283, %c0_i32_192 : i32
      %285 = arith.index_cast %284 : i32 to index
      %c0_193 = arith.constant 0 : index
      %286 = vector.load %arg0[%285, %c0_193] : memref<1072x1xf32, #tpu.memory_space<vmem>>, vector<128x1xf32>
      %c8_194 = arith.constant 8 : index
      %c0_195 = arith.constant 0 : index
      %287 = vector.load %arg1[%c8_194, %c0_195] : memref<16x16xf32, #tpu.memory_space<vmem>>, vector<1x16xf32>
      %288 = vector.broadcast %286 : vector<128x1xf32> to vector<128x16xf32>
      %289 = vector.broadcast %287 : vector<1x16xf32> to vector<128x16xf32>
      %290 = arith.mulf %288, %289 : vector<128x16xf32>
      %291 = arith.addf %282, %290 : vector<128x16xf32>
      %c28_i32_196 = arith.constant 28 : i32
      %292 = arith.addi %209, %c28_i32_196 : i32
      %c1_i32_197 = arith.constant 1 : i32
      %293 = arith.addi %292, %c1_i32_197 : i32
      %294 = arith.index_cast %293 : i32 to index
      %c0_198 = arith.constant 0 : index
      %295 = vector.load %arg0[%294, %c0_198] : memref<1072x1xf32, #tpu.memory_space<vmem>>, vector<128x1xf32>
      %c9_199 = arith.constant 9 : index
      %c0_200 = arith.constant 0 : index
      %296 = vector.load %arg1[%c9_199, %c0_200] : memref<16x16xf32, #tpu.memory_space<vmem>>, vector<1x16xf32>
      %297 = vector.broadcast %295 : vector<128x1xf32> to vector<128x16xf32>
      %298 = vector.broadcast %296 : vector<1x16xf32> to vector<128x16xf32>
      %299 = arith.mulf %297, %298 : vector<128x16xf32>
      %300 = arith.addf %291, %299 : vector<128x16xf32>
      %c28_i32_201 = arith.constant 28 : i32
      %301 = arith.addi %209, %c28_i32_201 : i32
      %c2_i32_202 = arith.constant 2 : i32
      %302 = arith.addi %301, %c2_i32_202 : i32
      %303 = arith.index_cast %302 : i32 to index
      %c0_203 = arith.constant 0 : index
      %304 = vector.load %arg0[%303, %c0_203] : memref<1072x1xf32, #tpu.memory_space<vmem>>, vector<128x1xf32>
      %c10_204 = arith.constant 10 : index
      %c0_205 = arith.constant 0 : index
      %305 = vector.load %arg1[%c10_204, %c0_205] : memref<16x16xf32, #tpu.memory_space<vmem>>, vector<1x16xf32>
      %306 = vector.broadcast %304 : vector<128x1xf32> to vector<128x16xf32>
      %307 = vector.broadcast %305 : vector<1x16xf32> to vector<128x16xf32>
      %308 = arith.mulf %306, %307 : vector<128x16xf32>
      %309 = arith.addf %300, %308 : vector<128x16xf32>
      %c28_i32_206 = arith.constant 28 : i32
      %310 = arith.addi %209, %c28_i32_206 : i32
      %c3_i32_207 = arith.constant 3 : i32
      %311 = arith.addi %310, %c3_i32_207 : i32
      %312 = arith.index_cast %311 : i32 to index
      %c0_208 = arith.constant 0 : index
      %313 = vector.load %arg0[%312, %c0_208] : memref<1072x1xf32, #tpu.memory_space<vmem>>, vector<128x1xf32>
      %c11_209 = arith.constant 11 : index
      %c0_210 = arith.constant 0 : index
      %314 = vector.load %arg1[%c11_209, %c0_210] : memref<16x16xf32, #tpu.memory_space<vmem>>, vector<1x16xf32>
      %315 = vector.broadcast %313 : vector<128x1xf32> to vector<128x16xf32>
      %316 = vector.broadcast %314 : vector<1x16xf32> to vector<128x16xf32>
      %317 = arith.mulf %315, %316 : vector<128x16xf32>
      %318 = arith.addf %309, %317 : vector<128x16xf32>
      %c42_i32 = arith.constant 42 : i32
      %319 = arith.addi %209, %c42_i32 : i32
      %c0_i32_211 = arith.constant 0 : i32
      %320 = arith.addi %319, %c0_i32_211 : i32
      %321 = arith.index_cast %320 : i32 to index
      %c0_212 = arith.constant 0 : index
      %322 = vector.load %arg0[%321, %c0_212] : memref<1072x1xf32, #tpu.memory_space<vmem>>, vector<128x1xf32>
      %c12_213 = arith.constant 12 : index
      %c0_214 = arith.constant 0 : index
      %323 = vector.load %arg1[%c12_213, %c0_214] : memref<16x16xf32, #tpu.memory_space<vmem>>, vector<1x16xf32>
      %324 = vector.broadcast %322 : vector<128x1xf32> to vector<128x16xf32>
      %325 = vector.broadcast %323 : vector<1x16xf32> to vector<128x16xf32>
      %326 = arith.mulf %324, %325 : vector<128x16xf32>
      %327 = arith.addf %318, %326 : vector<128x16xf32>
      %c42_i32_215 = arith.constant 42 : i32
      %328 = arith.addi %209, %c42_i32_215 : i32
      %c1_i32_216 = arith.constant 1 : i32
      %329 = arith.addi %328, %c1_i32_216 : i32
      %330 = arith.index_cast %329 : i32 to index
      %c0_217 = arith.constant 0 : index
      %331 = vector.load %arg0[%330, %c0_217] : memref<1072x1xf32, #tpu.memory_space<vmem>>, vector<128x1xf32>
      %c13_218 = arith.constant 13 : index
      %c0_219 = arith.constant 0 : index
      %332 = vector.load %arg1[%c13_218, %c0_219] : memref<16x16xf32, #tpu.memory_space<vmem>>, vector<1x16xf32>
      %333 = vector.broadcast %331 : vector<128x1xf32> to vector<128x16xf32>
      %334 = vector.broadcast %332 : vector<1x16xf32> to vector<128x16xf32>
      %335 = arith.mulf %333, %334 : vector<128x16xf32>
      %336 = arith.addf %327, %335 : vector<128x16xf32>
      %c42_i32_220 = arith.constant 42 : i32
      %337 = arith.addi %209, %c42_i32_220 : i32
      %c2_i32_221 = arith.constant 2 : i32
      %338 = arith.addi %337, %c2_i32_221 : i32
      %339 = arith.index_cast %338 : i32 to index
      %c0_222 = arith.constant 0 : index
      %340 = vector.load %arg0[%339, %c0_222] : memref<1072x1xf32, #tpu.memory_space<vmem>>, vector<128x1xf32>
      %c14_223 = arith.constant 14 : index
      %c0_224 = arith.constant 0 : index
      %341 = vector.load %arg1[%c14_223, %c0_224] : memref<16x16xf32, #tpu.memory_space<vmem>>, vector<1x16xf32>
      %342 = vector.broadcast %340 : vector<128x1xf32> to vector<128x16xf32>
      %343 = vector.broadcast %341 : vector<1x16xf32> to vector<128x16xf32>
      %344 = arith.mulf %342, %343 : vector<128x16xf32>
      %345 = arith.addf %336, %344 : vector<128x16xf32>
      %c42_i32_225 = arith.constant 42 : i32
      %346 = arith.addi %209, %c42_i32_225 : i32
      %c3_i32_226 = arith.constant 3 : i32
      %347 = arith.addi %346, %c3_i32_226 : i32
      %348 = arith.index_cast %347 : i32 to index
      %c0_227 = arith.constant 0 : index
      %349 = vector.load %arg0[%348, %c0_227] : memref<1072x1xf32, #tpu.memory_space<vmem>>, vector<128x1xf32>
      %c15_228 = arith.constant 15 : index
      %c0_229 = arith.constant 0 : index
      %350 = vector.load %arg1[%c15_228, %c0_229] : memref<16x16xf32, #tpu.memory_space<vmem>>, vector<1x16xf32>
      %351 = vector.broadcast %349 : vector<128x1xf32> to vector<128x16xf32>
      %352 = vector.broadcast %350 : vector<1x16xf32> to vector<128x16xf32>
      %353 = arith.mulf %351, %352 : vector<128x16xf32>
      %354 = arith.addf %345, %353 : vector<128x16xf32>
      %c0_230 = arith.constant 0 : index
      %c0_231 = arith.constant 0 : index
      %355 = vector.load %arg2[%c0_230, %c0_231] : memref<1x16xf32, #tpu.memory_space<vmem>>, vector<1x16xf32>
      %356 = vector.broadcast %355 : vector<1x16xf32> to vector<128x16xf32>
      %357 = arith.addf %354, %356 : vector<128x16xf32>
      %cst_232 = arith.constant 0.000000e+00 : f32
      %358 = vector.broadcast %cst_232 : f32 to vector<128x16xf32>
      %359 = arith.maximumf %357, %358 : vector<128x16xf32>
      %360 = arith.index_cast %209 : i32 to index
      %c0_233 = arith.constant 0 : index
      %361 = vector.load %arg25[%360, %c0_233] : memref<1024x16xf32, #tpu.memory_space<vmem>>, vector<128x16xf32>
      tpu.vector_store %arg25[%360, %c0_233], %359 {strides = array<i32>} : memref<1024x16xf32, #tpu.memory_space<vmem>>, vector<128x16xf32>,
    }
    %c8_i32_0 = arith.constant 8 : i32
    %c0_i32_1 = arith.constant 0 : i32
    %c7_i32 = arith.constant 7 : i32
    %1 = arith.addi %c0_i32_1, %c7_i32 : i32
    %c1_i32_2 = arith.constant 1 : i32
    scf.for %arg28 = %c0_i32_1 to %1 step %c1_i32_2  : i32 {
      %c128_i32 = arith.constant 128 : i32
      %208 = arith.muli %arg28, %c128_i32 : i32
      %209 = tpu.assume_multiple %208, 128 : i32
      %cst_154 = arith.constant 0.000000e+00 : f32
      %210 = vector.broadcast %cst_154 : f32 to vector<128x32xf32>
      %c0_i32_155 = arith.constant 0 : i32
      %211 = arith.addi %209, %c0_i32_155 : i32
      %c0_i32_156 = arith.constant 0 : i32
      %212 = arith.addi %211, %c0_i32_156 : i32
      %213 = arith.index_cast %212 : i32 to index
      %c0_157 = arith.constant 0 : index
      %214 = vector.load %arg25[%213, %c0_157] : memref<1024x16xf32, #tpu.memory_space<vmem>>, vector<128x16xf32>
      %c0_158 = arith.constant 0 : index
      %c0_159 = arith.constant 0 : index
      %c0_160 = arith.constant 0 : index
      %215 = vector.load %arg3[%c0_158, %c0_159, %c0_160] : memref<16x16x32xf32, #tpu.memory_space<vmem>>, vector<1x16x32xf32>
      %216 = vector.shape_cast %215 : vector<1x16x32xf32> to vector<16x32xf32>
      %cst_161 = arith.constant dense<0.000000e+00> : vector<128x32xf32>
      %217 = tpu.matmul %214, %216, %cst_161 {dimension_numbers = #tpu.dot_dimension_numbers<[1], [0], [0], [1], [0, 0, 1, 1], [], []>} : vector<128x16xf32>, vector<16x32xf32>, vector<128x32xf32> -> vector<128x32xf32>
      %218 = arith.addf %210, %217 : vector<128x32xf32>
      %c0_i32_162 = arith.constant 0 : i32
      %219 = arith.addi %209, %c0_i32_162 : i32
      %c1_i32_163 = arith.constant 1 : i32
      %220 = arith.addi %219, %c1_i32_163 : i32
      %221 = arith.index_cast %220 : i32 to index
      %c0_164 = arith.constant 0 : index
      %222 = vector.load %arg25[%221, %c0_164] : memref<1024x16xf32, #tpu.memory_space<vmem>>, vector<128x16xf32>
      %c1_165 = arith.constant 1 : index
      %c0_166 = arith.constant 0 : index
      %c0_167 = arith.constant 0 : index
      %223 = vector.load %arg3[%c1_165, %c0_166, %c0_167] : memref<16x16x32xf32, #tpu.memory_space<vmem>>, vector<1x16x32xf32>
      %224 = vector.shape_cast %223 : vector<1x16x32xf32> to vector<16x32xf32>
      %cst_168 = arith.constant dense<0.000000e+00> : vector<128x32xf32>
      %225 = tpu.matmul %222, %224, %cst_168 {dimension_numbers = #tpu.dot_dimension_numbers<[1], [0], [0], [1], [0, 0, 1, 1], [], []>} : vector<128x16xf32>, vector<16x32xf32>, vector<128x32xf32> -> vector<128x32xf32>
      %226 = arith.addf %218, %225 : vector<128x32xf32>
      %c0_i32_169 = arith.constant 0 : i32
      %227 = arith.addi %209, %c0_i32_169 : i32
      %c2_i32 = arith.constant 2 : i32
      %228 = arith.addi %227, %c2_i32 : i32
      %229 = arith.index_cast %228 : i32 to index
      %c0_170 = arith.constant 0 : index
      %230 = vector.load %arg25[%229, %c0_170] : memref<1024x16xf32, #tpu.memory_space<vmem>>, vector<128x16xf32>
      %c2_171 = arith.constant 2 : index
      %c0_172 = arith.constant 0 : index
      %c0_173 = arith.constant 0 : index
      %231 = vector.load %arg3[%c2_171, %c0_172, %c0_173] : memref<16x16x32xf32, #tpu.memory_space<vmem>>, vector<1x16x32xf32>
      %232 = vector.shape_cast %231 : vector<1x16x32xf32> to vector<16x32xf32>
      %cst_174 = arith.constant dense<0.000000e+00> : vector<128x32xf32>
      %233 = tpu.matmul %230, %232, %cst_174 {dimension_numbers = #tpu.dot_dimension_numbers<[1], [0], [0], [1], [0, 0, 1, 1], [], []>} : vector<128x16xf32>, vector<16x32xf32>, vector<128x32xf32> -> vector<128x32xf32>
      %234 = arith.addf %226, %233 : vector<128x32xf32>
      %c0_i32_175 = arith.constant 0 : i32
      %235 = arith.addi %209, %c0_i32_175 : i32
      %c3_i32 = arith.constant 3 : i32
      %236 = arith.addi %235, %c3_i32 : i32
      %237 = arith.index_cast %236 : i32 to index
      %c0_176 = arith.constant 0 : index
      %238 = vector.load %arg25[%237, %c0_176] : memref<1024x16xf32, #tpu.memory_space<vmem>>, vector<128x16xf32>
      %c3_177 = arith.constant 3 : index
      %c0_178 = arith.constant 0 : index
      %c0_179 = arith.constant 0 : index
      %239 = vector.load %arg3[%c3_177, %c0_178, %c0_179] : memref<16x16x32xf32, #tpu.memory_space<vmem>>, vector<1x16x32xf32>
      %240 = vector.shape_cast %239 : vector<1x16x32xf32> to vector<16x32xf32>
      %cst_180 = arith.constant dense<0.000000e+00> : vector<128x32xf32>
      %241 = tpu.matmul %238, %240, %cst_180 {dimension_numbers = #tpu.dot_dimension_numbers<[1], [0], [0], [1], [0, 0, 1, 1], [], []>} : vector<128x16xf32>, vector<16x32xf32>, vector<128x32xf32> -> vector<128x32xf32>
      %242 = arith.addf %234, %241 : vector<128x32xf32>
      %c14_i32 = arith.constant 14 : i32
      %243 = arith.addi %209, %c14_i32 : i32
      %c0_i32_181 = arith.constant 0 : i32
      %244 = arith.addi %243, %c0_i32_181 : i32
      %245 = arith.index_cast %244 : i32 to index
      %c0_182 = arith.constant 0 : index
      %246 = vector.load %arg25[%245, %c0_182] : memref<1024x16xf32, #tpu.memory_space<vmem>>, vector<128x16xf32>
      %c4_183 = arith.constant 4 : index
      %c0_184 = arith.constant 0 : index
      %c0_185 = arith.constant 0 : index
      %247 = vector.load %arg3[%c4_183, %c0_184, %c0_185] : memref<16x16x32xf32, #tpu.memory_space<vmem>>, vector<1x16x32xf32>
      %248 = vector.shape_cast %247 : vector<1x16x32xf32> to vector<16x32xf32>
      %cst_186 = arith.constant dense<0.000000e+00> : vector<128x32xf32>
      %249 = tpu.matmul %246, %248, %cst_186 {dimension_numbers = #tpu.dot_dimension_numbers<[1], [0], [0], [1], [0, 0, 1, 1], [], []>} : vector<128x16xf32>, vector<16x32xf32>, vector<128x32xf32> -> vector<128x32xf32>
      %250 = arith.addf %242, %249 : vector<128x32xf32>
      %c14_i32_187 = arith.constant 14 : i32
      %251 = arith.addi %209, %c14_i32_187 : i32
      %c1_i32_188 = arith.constant 1 : i32
      %252 = arith.addi %251, %c1_i32_188 : i32
      %253 = arith.index_cast %252 : i32 to index
      %c0_189 = arith.constant 0 : index
      %254 = vector.load %arg25[%253, %c0_189] : memref<1024x16xf32, #tpu.memory_space<vmem>>, vector<128x16xf32>
      %c5_190 = arith.constant 5 : index
      %c0_191 = arith.constant 0 : index
      %c0_192 = arith.constant 0 : index
      %255 = vector.load %arg3[%c5_190, %c0_191, %c0_192] : memref<16x16x32xf32, #tpu.memory_space<vmem>>, vector<1x16x32xf32>
      %256 = vector.shape_cast %255 : vector<1x16x32xf32> to vector<16x32xf32>
      %cst_193 = arith.constant dense<0.000000e+00> : vector<128x32xf32>
      %257 = tpu.matmul %254, %256, %cst_193 {dimension_numbers = #tpu.dot_dimension_numbers<[1], [0], [0], [1], [0, 0, 1, 1], [], []>} : vector<128x16xf32>, vector<16x32xf32>, vector<128x32xf32> -> vector<128x32xf32>
      %258 = arith.addf %250, %257 : vector<128x32xf32>
      %c14_i32_194 = arith.constant 14 : i32
      %259 = arith.addi %209, %c14_i32_194 : i32
      %c2_i32_195 = arith.constant 2 : i32
      %260 = arith.addi %259, %c2_i32_195 : i32
      %261 = arith.index_cast %260 : i32 to index
      %c0_196 = arith.constant 0 : index
      %262 = vector.load %arg25[%261, %c0_196] : memref<1024x16xf32, #tpu.memory_space<vmem>>, vector<128x16xf32>
      %c6_197 = arith.constant 6 : index
      %c0_198 = arith.constant 0 : index
      %c0_199 = arith.constant 0 : index
      %263 = vector.load %arg3[%c6_197, %c0_198, %c0_199] : memref<16x16x32xf32, #tpu.memory_space<vmem>>, vector<1x16x32xf32>
      %264 = vector.shape_cast %263 : vector<1x16x32xf32> to vector<16x32xf32>
      %cst_200 = arith.constant dense<0.000000e+00> : vector<128x32xf32>
      %265 = tpu.matmul %262, %264, %cst_200 {dimension_numbers = #tpu.dot_dimension_numbers<[1], [0], [0], [1], [0, 0, 1, 1], [], []>} : vector<128x16xf32>, vector<16x32xf32>, vector<128x32xf32> -> vector<128x32xf32>
      %266 = arith.addf %258, %265 : vector<128x32xf32>
      %c14_i32_201 = arith.constant 14 : i32
      %267 = arith.addi %209, %c14_i32_201 : i32
      %c3_i32_202 = arith.constant 3 : i32
      %268 = arith.addi %267, %c3_i32_202 : i32
      %269 = arith.index_cast %268 : i32 to index
      %c0_203 = arith.constant 0 : index
      %270 = vector.load %arg25[%269, %c0_203] : memref<1024x16xf32, #tpu.memory_space<vmem>>, vector<128x16xf32>
      %c7_204 = arith.constant 7 : index
      %c0_205 = arith.constant 0 : index
      %c0_206 = arith.constant 0 : index
      %271 = vector.load %arg3[%c7_204, %c0_205, %c0_206] : memref<16x16x32xf32, #tpu.memory_space<vmem>>, vector<1x16x32xf32>
      %272 = vector.shape_cast %271 : vector<1x16x32xf32> to vector<16x32xf32>
      %cst_207 = arith.constant dense<0.000000e+00> : vector<128x32xf32>
      %273 = tpu.matmul %270, %272, %cst_207 {dimension_numbers = #tpu.dot_dimension_numbers<[1], [0], [0], [1], [0, 0, 1, 1], [], []>} : vector<128x16xf32>, vector<16x32xf32>, vector<128x32xf32> -> vector<128x32xf32>
      %274 = arith.addf %266, %273 : vector<128x32xf32>
      %c28_i32 = arith.constant 28 : i32
      %275 = arith.addi %209, %c28_i32 : i32
      %c0_i32_208 = arith.constant 0 : i32
      %276 = arith.addi %275, %c0_i32_208 : i32
      %277 = arith.index_cast %276 : i32 to index
      %c0_209 = arith.constant 0 : index
      %278 = vector.load %arg25[%277, %c0_209] : memref<1024x16xf32, #tpu.memory_space<vmem>>, vector<128x16xf32>
      %c8_210 = arith.constant 8 : index
      %c0_211 = arith.constant 0 : index
      %c0_212 = arith.constant 0 : index
      %279 = vector.load %arg3[%c8_210, %c0_211, %c0_212] : memref<16x16x32xf32, #tpu.memory_space<vmem>>, vector<1x16x32xf32>
      %280 = vector.shape_cast %279 : vector<1x16x32xf32> to vector<16x32xf32>
      %cst_213 = arith.constant dense<0.000000e+00> : vector<128x32xf32>
      %281 = tpu.matmul %278, %280, %cst_213 {dimension_numbers = #tpu.dot_dimension_numbers<[1], [0], [0], [1], [0, 0, 1, 1], [], []>} : vector<128x16xf32>, vector<16x32xf32>, vector<128x32xf32> -> vector<128x32xf32>
      %282 = arith.addf %274, %281 : vector<128x32xf32>
      %c28_i32_214 = arith.constant 28 : i32
      %283 = arith.addi %209, %c28_i32_214 : i32
      %c1_i32_215 = arith.constant 1 : i32
      %284 = arith.addi %283, %c1_i32_215 : i32
      %285 = arith.index_cast %284 : i32 to index
      %c0_216 = arith.constant 0 : index
      %286 = vector.load %arg25[%285, %c0_216] : memref<1024x16xf32, #tpu.memory_space<vmem>>, vector<128x16xf32>
      %c9_217 = arith.constant 9 : index
      %c0_218 = arith.constant 0 : index
      %c0_219 = arith.constant 0 : index
      %287 = vector.load %arg3[%c9_217, %c0_218, %c0_219] : memref<16x16x32xf32, #tpu.memory_space<vmem>>, vector<1x16x32xf32>
      %288 = vector.shape_cast %287 : vector<1x16x32xf32> to vector<16x32xf32>
      %cst_220 = arith.constant dense<0.000000e+00> : vector<128x32xf32>
      %289 = tpu.matmul %286, %288, %cst_220 {dimension_numbers = #tpu.dot_dimension_numbers<[1], [0], [0], [1], [0, 0, 1, 1], [], []>} : vector<128x16xf32>, vector<16x32xf32>, vector<128x32xf32> -> vector<128x32xf32>
      %290 = arith.addf %282, %289 : vector<128x32xf32>
      %c28_i32_221 = arith.constant 28 : i32
      %291 = arith.addi %209, %c28_i32_221 : i32
      %c2_i32_222 = arith.constant 2 : i32
      %292 = arith.addi %291, %c2_i32_222 : i32
      %293 = arith.index_cast %292 : i32 to index
      %c0_223 = arith.constant 0 : index
      %294 = vector.load %arg25[%293, %c0_223] : memref<1024x16xf32, #tpu.memory_space<vmem>>, vector<128x16xf32>
      %c10_224 = arith.constant 10 : index
      %c0_225 = arith.constant 0 : index
      %c0_226 = arith.constant 0 : index
      %295 = vector.load %arg3[%c10_224, %c0_225, %c0_226] : memref<16x16x32xf32, #tpu.memory_space<vmem>>, vector<1x16x32xf32>
      %296 = vector.shape_cast %295 : vector<1x16x32xf32> to vector<16x32xf32>
      %cst_227 = arith.constant dense<0.000000e+00> : vector<128x32xf32>
      %297 = tpu.matmul %294, %296, %cst_227 {dimension_numbers = #tpu.dot_dimension_numbers<[1], [0], [0], [1], [0, 0, 1, 1], [], []>} : vector<128x16xf32>, vector<16x32xf32>, vector<128x32xf32> -> vector<128x32xf32>
      %298 = arith.addf %290, %297 : vector<128x32xf32>
      %c28_i32_228 = arith.constant 28 : i32
      %299 = arith.addi %209, %c28_i32_228 : i32
      %c3_i32_229 = arith.constant 3 : i32
      %300 = arith.addi %299, %c3_i32_229 : i32
      %301 = arith.index_cast %300 : i32 to index
      %c0_230 = arith.constant 0 : index
      %302 = vector.load %arg25[%301, %c0_230] : memref<1024x16xf32, #tpu.memory_space<vmem>>, vector<128x16xf32>
      %c11_231 = arith.constant 11 : index
      %c0_232 = arith.constant 0 : index
      %c0_233 = arith.constant 0 : index
      %303 = vector.load %arg3[%c11_231, %c0_232, %c0_233] : memref<16x16x32xf32, #tpu.memory_space<vmem>>, vector<1x16x32xf32>
      %304 = vector.shape_cast %303 : vector<1x16x32xf32> to vector<16x32xf32>
      %cst_234 = arith.constant dense<0.000000e+00> : vector<128x32xf32>
      %305 = tpu.matmul %302, %304, %cst_234 {dimension_numbers = #tpu.dot_dimension_numbers<[1], [0], [0], [1], [0, 0, 1, 1], [], []>} : vector<128x16xf32>, vector<16x32xf32>, vector<128x32xf32> -> vector<128x32xf32>
      %306 = arith.addf %298, %305 : vector<128x32xf32>
      %c42_i32 = arith.constant 42 : i32
      %307 = arith.addi %209, %c42_i32 : i32
      %c0_i32_235 = arith.constant 0 : i32
      %308 = arith.addi %307, %c0_i32_235 : i32
      %309 = arith.index_cast %308 : i32 to index
      %c0_236 = arith.constant 0 : index
      %310 = vector.load %arg25[%309, %c0_236] : memref<1024x16xf32, #tpu.memory_space<vmem>>, vector<128x16xf32>
      %c12_237 = arith.constant 12 : index
      %c0_238 = arith.constant 0 : index
      %c0_239 = arith.constant 0 : index
      %311 = vector.load %arg3[%c12_237, %c0_238, %c0_239] : memref<16x16x32xf32, #tpu.memory_space<vmem>>, vector<1x16x32xf32>
      %312 = vector.shape_cast %311 : vector<1x16x32xf32> to vector<16x32xf32>
      %cst_240 = arith.constant dense<0.000000e+00> : vector<128x32xf32>
      %313 = tpu.matmul %310, %312, %cst_240 {dimension_numbers = #tpu.dot_dimension_numbers<[1], [0], [0], [1], [0, 0, 1, 1], [], []>} : vector<128x16xf32>, vector<16x32xf32>, vector<128x32xf32> -> vector<128x32xf32>
      %314 = arith.addf %306, %313 : vector<128x32xf32>
      %c42_i32_241 = arith.constant 42 : i32
      %315 = arith.addi %209, %c42_i32_241 : i32
      %c1_i32_242 = arith.constant 1 : i32
      %316 = arith.addi %315, %c1_i32_242 : i32
      %317 = arith.index_cast %316 : i32 to index
      %c0_243 = arith.constant 0 : index
      %318 = vector.load %arg25[%317, %c0_243] : memref<1024x16xf32, #tpu.memory_space<vmem>>, vector<128x16xf32>
      %c13_244 = arith.constant 13 : index
      %c0_245 = arith.constant 0 : index
      %c0_246 = arith.constant 0 : index
      %319 = vector.load %arg3[%c13_244, %c0_245, %c0_246] : memref<16x16x32xf32, #tpu.memory_space<vmem>>, vector<1x16x32xf32>
      %320 = vector.shape_cast %319 : vector<1x16x32xf32> to vector<16x32xf32>
      %cst_247 = arith.constant dense<0.000000e+00> : vector<128x32xf32>
      %321 = tpu.matmul %318, %320, %cst_247 {dimension_numbers = #tpu.dot_dimension_numbers<[1], [0], [0], [1], [0, 0, 1, 1], [], []>} : vector<128x16xf32>, vector<16x32xf32>, vector<128x32xf32> -> vector<128x32xf32>
      %322 = arith.addf %314, %321 : vector<128x32xf32>
      %c42_i32_248 = arith.constant 42 : i32
      %323 = arith.addi %209, %c42_i32_248 : i32
      %c2_i32_249 = arith.constant 2 : i32
      %324 = arith.addi %323, %c2_i32_249 : i32
      %325 = arith.index_cast %324 : i32 to index
      %c0_250 = arith.constant 0 : index
      %326 = vector.load %arg25[%325, %c0_250] : memref<1024x16xf32, #tpu.memory_space<vmem>>, vector<128x16xf32>
      %c14_251 = arith.constant 14 : index
      %c0_252 = arith.constant 0 : index
      %c0_253 = arith.constant 0 : index
      %327 = vector.load %arg3[%c14_251, %c0_252, %c0_253] : memref<16x16x32xf32, #tpu.memory_space<vmem>>, vector<1x16x32xf32>
      %328 = vector.shape_cast %327 : vector<1x16x32xf32> to vector<16x32xf32>
      %cst_254 = arith.constant dense<0.000000e+00> : vector<128x32xf32>
      %329 = tpu.matmul %326, %328, %cst_254 {dimension_numbers = #tpu.dot_dimension_numbers<[1], [0], [0], [1], [0, 0, 1, 1], [], []>} : vector<128x16xf32>, vector<16x32xf32>, vector<128x32xf32> -> vector<128x32xf32>
      %330 = arith.addf %322, %329 : vector<128x32xf32>
      %c42_i32_255 = arith.constant 42 : i32
      %331 = arith.addi %209, %c42_i32_255 : i32
      %c3_i32_256 = arith.constant 3 : i32
      %332 = arith.addi %331, %c3_i32_256 : i32
      %333 = arith.index_cast %332 : i32 to index
      %c0_257 = arith.constant 0 : index
      %334 = vector.load %arg25[%333, %c0_257] : memref<1024x16xf32, #tpu.memory_space<vmem>>, vector<128x16xf32>
      %c15_258 = arith.constant 15 : index
      %c0_259 = arith.constant 0 : index
      %c0_260 = arith.constant 0 : index
      %335 = vector.load %arg3[%c15_258, %c0_259, %c0_260] : memref<16x16x32xf32, #tpu.memory_space<vmem>>, vector<1x16x32xf32>
      %336 = vector.shape_cast %335 : vector<1x16x32xf32> to vector<16x32xf32>
      %cst_261 = arith.constant dense<0.000000e+00> : vector<128x32xf32>
      %337 = tpu.matmul %334, %336, %cst_261 {dimension_numbers = #tpu.dot_dimension_numbers<[1], [0], [0], [1], [0, 0, 1, 1], [], []>} : vector<128x16xf32>, vector<16x32xf32>, vector<128x32xf32> -> vector<128x32xf32>
      %338 = arith.addf %330, %337 : vector<128x32xf32>
      %c0_262 = arith.constant 0 : index
      %c0_263 = arith.constant 0 : index
      %339 = vector.load %arg4[%c0_262, %c0_263] : memref<1x32xf32, #tpu.memory_space<vmem>>, vector<1x32xf32>
      %340 = vector.broadcast %339 : vector<1x32xf32> to vector<128x32xf32>
      %341 = arith.addf %338, %340 : vector<128x32xf32>
      %cst_264 = arith.constant 0.000000e+00 : f32
      %342 = vector.broadcast %cst_264 : f32 to vector<128x32xf32>
      %343 = arith.maximumf %341, %342 : vector<128x32xf32>
      %344 = arith.index_cast %209 : i32 to index
      %c0_265 = arith.constant 0 : index
      %345 = vector.load %arg26[%344, %c0_265] : memref<896x32xf32, #tpu.memory_space<vmem>>, vector<128x32xf32>
      tpu.vector_store %arg26[%344, %c0_265], %343 {strides = array<i32>} : memref<896x32xf32, #tpu.memory_space<vmem>>, vector<128x32xf32>,
    }
    %c7_i32_3 = arith.constant 7 : i32
    %c0_i32_4 = arith.constant 0 : i32
    %c6_i32 = arith.constant 6 : i32
    %2 = arith.addi %c0_i32_4, %c6_i32 : i32
    %c1_i32_5 = arith.constant 1 : i32
    scf.for %arg28 = %c0_i32_4 to %2 step %c1_i32_5  : i32 {
      %c128_i32 = arith.constant 128 : i32
      %208 = arith.muli %arg28, %c128_i32 : i32
      %209 = tpu.assume_multiple %208, 128 : i32
      %cst_154 = arith.constant 0.000000e+00 : f32
      %210 = vector.broadcast %cst_154 : f32 to vector<128x32xf32>
      %c0_i32_155 = arith.constant 0 : i32
      %211 = arith.addi %209, %c0_i32_155 : i32
      %c0_i32_156 = arith.constant 0 : i32
      %212 = arith.addi %211, %c0_i32_156 : i32
      %213 = arith.index_cast %212 : i32 to index
      %c0_157 = arith.constant 0 : index
      %214 = vector.load %arg26[%213, %c0_157] : memref<896x32xf32, #tpu.memory_space<vmem>>, vector<128x32xf32>
      %c0_158 = arith.constant 0 : index
      %c0_159 = arith.constant 0 : index
      %c0_160 = arith.constant 0 : index
      %215 = vector.load %arg5[%c0_158, %c0_159, %c0_160] : memref<16x32x32xf32, #tpu.memory_space<vmem>>, vector<1x32x32xf32>
      %216 = vector.shape_cast %215 : vector<1x32x32xf32> to vector<32x32xf32>
      %cst_161 = arith.constant dense<0.000000e+00> : vector<128x32xf32>
      %217 = tpu.matmul %214, %216, %cst_161 {dimension_numbers = #tpu.dot_dimension_numbers<[1], [0], [0], [1], [0, 0, 1, 1], [], []>} : vector<128x32xf32>, vector<32x32xf32>, vector<128x32xf32> -> vector<128x32xf32>
      %218 = arith.addf %210, %217 : vector<128x32xf32>
      %c0_i32_162 = arith.constant 0 : i32
      %219 = arith.addi %209, %c0_i32_162 : i32
      %c1_i32_163 = arith.constant 1 : i32
      %220 = arith.addi %219, %c1_i32_163 : i32
      %221 = arith.index_cast %220 : i32 to index
      %c0_164 = arith.constant 0 : index
      %222 = vector.load %arg26[%221, %c0_164] : memref<896x32xf32, #tpu.memory_space<vmem>>, vector<128x32xf32>
      %c1_165 = arith.constant 1 : index
      %c0_166 = arith.constant 0 : index
      %c0_167 = arith.constant 0 : index
      %223 = vector.load %arg5[%c1_165, %c0_166, %c0_167] : memref<16x32x32xf32, #tpu.memory_space<vmem>>, vector<1x32x32xf32>
      %224 = vector.shape_cast %223 : vector<1x32x32xf32> to vector<32x32xf32>
      %cst_168 = arith.constant dense<0.000000e+00> : vector<128x32xf32>
      %225 = tpu.matmul %222, %224, %cst_168 {dimension_numbers = #tpu.dot_dimension_numbers<[1], [0], [0], [1], [0, 0, 1, 1], [], []>} : vector<128x32xf32>, vector<32x32xf32>, vector<128x32xf32> -> vector<128x32xf32>
      %226 = arith.addf %218, %225 : vector<128x32xf32>
      %c0_i32_169 = arith.constant 0 : i32
      %227 = arith.addi %209, %c0_i32_169 : i32
      %c2_i32 = arith.constant 2 : i32
      %228 = arith.addi %227, %c2_i32 : i32
      %229 = arith.index_cast %228 : i32 to index
      %c0_170 = arith.constant 0 : index
      %230 = vector.load %arg26[%229, %c0_170] : memref<896x32xf32, #tpu.memory_space<vmem>>, vector<128x32xf32>
      %c2_171 = arith.constant 2 : index
      %c0_172 = arith.constant 0 : index
      %c0_173 = arith.constant 0 : index
      %231 = vector.load %arg5[%c2_171, %c0_172, %c0_173] : memref<16x32x32xf32, #tpu.memory_space<vmem>>, vector<1x32x32xf32>
      %232 = vector.shape_cast %231 : vector<1x32x32xf32> to vector<32x32xf32>
      %cst_174 = arith.constant dense<0.000000e+00> : vector<128x32xf32>
      %233 = tpu.matmul %230, %232, %cst_174 {dimension_numbers = #tpu.dot_dimension_numbers<[1], [0], [0], [1], [0, 0, 1, 1], [], []>} : vector<128x32xf32>, vector<32x32xf32>, vector<128x32xf32> -> vector<128x32xf32>
      %234 = arith.addf %226, %233 : vector<128x32xf32>
      %c0_i32_175 = arith.constant 0 : i32
      %235 = arith.addi %209, %c0_i32_175 : i32
      %c3_i32 = arith.constant 3 : i32
      %236 = arith.addi %235, %c3_i32 : i32
      %237 = arith.index_cast %236 : i32 to index
      %c0_176 = arith.constant 0 : index
      %238 = vector.load %arg26[%237, %c0_176] : memref<896x32xf32, #tpu.memory_space<vmem>>, vector<128x32xf32>
      %c3_177 = arith.constant 3 : index
      %c0_178 = arith.constant 0 : index
      %c0_179 = arith.constant 0 : index
      %239 = vector.load %arg5[%c3_177, %c0_178, %c0_179] : memref<16x32x32xf32, #tpu.memory_space<vmem>>, vector<1x32x32xf32>
      %240 = vector.shape_cast %239 : vector<1x32x32xf32> to vector<32x32xf32>
      %cst_180 = arith.constant dense<0.000000e+00> : vector<128x32xf32>
      %241 = tpu.matmul %238, %240, %cst_180 {dimension_numbers = #tpu.dot_dimension_numbers<[1], [0], [0], [1], [0, 0, 1, 1], [], []>} : vector<128x32xf32>, vector<32x32xf32>, vector<128x32xf32> -> vector<128x32xf32>
      %242 = arith.addf %234, %241 : vector<128x32xf32>
      %c14_i32 = arith.constant 14 : i32
      %243 = arith.addi %209, %c14_i32 : i32
      %c0_i32_181 = arith.constant 0 : i32
      %244 = arith.addi %243, %c0_i32_181 : i32
      %245 = arith.index_cast %244 : i32 to index
      %c0_182 = arith.constant 0 : index
      %246 = vector.load %arg26[%245, %c0_182] : memref<896x32xf32, #tpu.memory_space<vmem>>, vector<128x32xf32>
      %c4_183 = arith.constant 4 : index
      %c0_184 = arith.constant 0 : index
      %c0_185 = arith.constant 0 : index
      %247 = vector.load %arg5[%c4_183, %c0_184, %c0_185] : memref<16x32x32xf32, #tpu.memory_space<vmem>>, vector<1x32x32xf32>
      %248 = vector.shape_cast %247 : vector<1x32x32xf32> to vector<32x32xf32>
      %cst_186 = arith.constant dense<0.000000e+00> : vector<128x32xf32>
      %249 = tpu.matmul %246, %248, %cst_186 {dimension_numbers = #tpu.dot_dimension_numbers<[1], [0], [0], [1], [0, 0, 1, 1], [], []>} : vector<128x32xf32>, vector<32x32xf32>, vector<128x32xf32> -> vector<128x32xf32>
      %250 = arith.addf %242, %249 : vector<128x32xf32>
      %c14_i32_187 = arith.constant 14 : i32
      %251 = arith.addi %209, %c14_i32_187 : i32
      %c1_i32_188 = arith.constant 1 : i32
      %252 = arith.addi %251, %c1_i32_188 : i32
      %253 = arith.index_cast %252 : i32 to index
      %c0_189 = arith.constant 0 : index
      %254 = vector.load %arg26[%253, %c0_189] : memref<896x32xf32, #tpu.memory_space<vmem>>, vector<128x32xf32>
      %c5_190 = arith.constant 5 : index
      %c0_191 = arith.constant 0 : index
      %c0_192 = arith.constant 0 : index
      %255 = vector.load %arg5[%c5_190, %c0_191, %c0_192] : memref<16x32x32xf32, #tpu.memory_space<vmem>>, vector<1x32x32xf32>
      %256 = vector.shape_cast %255 : vector<1x32x32xf32> to vector<32x32xf32>
      %cst_193 = arith.constant dense<0.000000e+00> : vector<128x32xf32>
      %257 = tpu.matmul %254, %256, %cst_193 {dimension_numbers = #tpu.dot_dimension_numbers<[1], [0], [0], [1], [0, 0, 1, 1], [], []>} : vector<128x32xf32>, vector<32x32xf32>, vector<128x32xf32> -> vector<128x32xf32>
      %258 = arith.addf %250, %257 : vector<128x32xf32>
      %c14_i32_194 = arith.constant 14 : i32
      %259 = arith.addi %209, %c14_i32_194 : i32
      %c2_i32_195 = arith.constant 2 : i32
      %260 = arith.addi %259, %c2_i32_195 : i32
      %261 = arith.index_cast %260 : i32 to index
      %c0_196 = arith.constant 0 : index
      %262 = vector.load %arg26[%261, %c0_196] : memref<896x32xf32, #tpu.memory_space<vmem>>, vector<128x32xf32>
      %c6_197 = arith.constant 6 : index
      %c0_198 = arith.constant 0 : index
      %c0_199 = arith.constant 0 : index
      %263 = vector.load %arg5[%c6_197, %c0_198, %c0_199] : memref<16x32x32xf32, #tpu.memory_space<vmem>>, vector<1x32x32xf32>
      %264 = vector.shape_cast %263 : vector<1x32x32xf32> to vector<32x32xf32>
      %cst_200 = arith.constant dense<0.000000e+00> : vector<128x32xf32>
      %265 = tpu.matmul %262, %264, %cst_200 {dimension_numbers = #tpu.dot_dimension_numbers<[1], [0], [0], [1], [0, 0, 1, 1], [], []>} : vector<128x32xf32>, vector<32x32xf32>, vector<128x32xf32> -> vector<128x32xf32>
      %266 = arith.addf %258, %265 : vector<128x32xf32>
      %c14_i32_201 = arith.constant 14 : i32
      %267 = arith.addi %209, %c14_i32_201 : i32
      %c3_i32_202 = arith.constant 3 : i32
      %268 = arith.addi %267, %c3_i32_202 : i32
      %269 = arith.index_cast %268 : i32 to index
      %c0_203 = arith.constant 0 : index
      %270 = vector.load %arg26[%269, %c0_203] : memref<896x32xf32, #tpu.memory_space<vmem>>, vector<128x32xf32>
      %c7_204 = arith.constant 7 : index
      %c0_205 = arith.constant 0 : index
      %c0_206 = arith.constant 0 : index
      %271 = vector.load %arg5[%c7_204, %c0_205, %c0_206] : memref<16x32x32xf32, #tpu.memory_space<vmem>>, vector<1x32x32xf32>
      %272 = vector.shape_cast %271 : vector<1x32x32xf32> to vector<32x32xf32>
      %cst_207 = arith.constant dense<0.000000e+00> : vector<128x32xf32>
      %273 = tpu.matmul %270, %272, %cst_207 {dimension_numbers = #tpu.dot_dimension_numbers<[1], [0], [0], [1], [0, 0, 1, 1], [], []>} : vector<128x32xf32>, vector<32x32xf32>, vector<128x32xf32> -> vector<128x32xf32>
      %274 = arith.addf %266, %273 : vector<128x32xf32>
      %c28_i32 = arith.constant 28 : i32
      %275 = arith.addi %209, %c28_i32 : i32
      %c0_i32_208 = arith.constant 0 : i32
      %276 = arith.addi %275, %c0_i32_208 : i32
      %277 = arith.index_cast %276 : i32 to index
      %c0_209 = arith.constant 0 : index
      %278 = vector.load %arg26[%277, %c0_209] : memref<896x32xf32, #tpu.memory_space<vmem>>, vector<128x32xf32>
      %c8_210 = arith.constant 8 : index
      %c0_211 = arith.constant 0 : index
      %c0_212 = arith.constant 0 : index
      %279 = vector.load %arg5[%c8_210, %c0_211, %c0_212] : memref<16x32x32xf32, #tpu.memory_space<vmem>>, vector<1x32x32xf32>
      %280 = vector.shape_cast %279 : vector<1x32x32xf32> to vector<32x32xf32>
      %cst_213 = arith.constant dense<0.000000e+00> : vector<128x32xf32>
      %281 = tpu.matmul %278, %280, %cst_213 {dimension_numbers = #tpu.dot_dimension_numbers<[1], [0], [0], [1], [0, 0, 1, 1], [], []>} : vector<128x32xf32>, vector<32x32xf32>, vector<128x32xf32> -> vector<128x32xf32>
      %282 = arith.addf %274, %281 : vector<128x32xf32>
      %c28_i32_214 = arith.constant 28 : i32
      %283 = arith.addi %209, %c28_i32_214 : i32
      %c1_i32_215 = arith.constant 1 : i32
      %284 = arith.addi %283, %c1_i32_215 : i32
      %285 = arith.index_cast %284 : i32 to index
      %c0_216 = arith.constant 0 : index
      %286 = vector.load %arg26[%285, %c0_216] : memref<896x32xf32, #tpu.memory_space<vmem>>, vector<128x32xf32>
      %c9_217 = arith.constant 9 : index
      %c0_218 = arith.constant 0 : index
      %c0_219 = arith.constant 0 : index
      %287 = vector.load %arg5[%c9_217, %c0_218, %c0_219] : memref<16x32x32xf32, #tpu.memory_space<vmem>>, vector<1x32x32xf32>
      %288 = vector.shape_cast %287 : vector<1x32x32xf32> to vector<32x32xf32>
      %cst_220 = arith.constant dense<0.000000e+00> : vector<128x32xf32>
      %289 = tpu.matmul %286, %288, %cst_220 {dimension_numbers = #tpu.dot_dimension_numbers<[1], [0], [0], [1], [0, 0, 1, 1], [], []>} : vector<128x32xf32>, vector<32x32xf32>, vector<128x32xf32> -> vector<128x32xf32>
      %290 = arith.addf %282, %289 : vector<128x32xf32>
      %c28_i32_221 = arith.constant 28 : i32
      %291 = arith.addi %209, %c28_i32_221 : i32
      %c2_i32_222 = arith.constant 2 : i32
      %292 = arith.addi %291, %c2_i32_222 : i32
      %293 = arith.index_cast %292 : i32 to index
      %c0_223 = arith.constant 0 : index
      %294 = vector.load %arg26[%293, %c0_223] : memref<896x32xf32, #tpu.memory_space<vmem>>, vector<128x32xf32>
      %c10_224 = arith.constant 10 : index
      %c0_225 = arith.constant 0 : index
      %c0_226 = arith.constant 0 : index
      %295 = vector.load %arg5[%c10_224, %c0_225, %c0_226] : memref<16x32x32xf32, #tpu.memory_space<vmem>>, vector<1x32x32xf32>
      %296 = vector.shape_cast %295 : vector<1x32x32xf32> to vector<32x32xf32>
      %cst_227 = arith.constant dense<0.000000e+00> : vector<128x32xf32>
      %297 = tpu.matmul %294, %296, %cst_227 {dimension_numbers = #tpu.dot_dimension_numbers<[1], [0], [0], [1], [0, 0, 1, 1], [], []>} : vector<128x32xf32>, vector<32x32xf32>, vector<128x32xf32> -> vector<128x32xf32>
      %298 = arith.addf %290, %297 : vector<128x32xf32>
      %c28_i32_228 = arith.constant 28 : i32
      %299 = arith.addi %209, %c28_i32_228 : i32
      %c3_i32_229 = arith.constant 3 : i32
      %300 = arith.addi %299, %c3_i32_229 : i32
      %301 = arith.index_cast %300 : i32 to index
      %c0_230 = arith.constant 0 : index
      %302 = vector.load %arg26[%301, %c0_230] : memref<896x32xf32, #tpu.memory_space<vmem>>, vector<128x32xf32>
      %c11_231 = arith.constant 11 : index
      %c0_232 = arith.constant 0 : index
      %c0_233 = arith.constant 0 : index
      %303 = vector.load %arg5[%c11_231, %c0_232, %c0_233] : memref<16x32x32xf32, #tpu.memory_space<vmem>>, vector<1x32x32xf32>
      %304 = vector.shape_cast %303 : vector<1x32x32xf32> to vector<32x32xf32>
      %cst_234 = arith.constant dense<0.000000e+00> : vector<128x32xf32>
      %305 = tpu.matmul %302, %304, %cst_234 {dimension_numbers = #tpu.dot_dimension_numbers<[1], [0], [0], [1], [0, 0, 1, 1], [], []>} : vector<128x32xf32>, vector<32x32xf32>, vector<128x32xf32> -> vector<128x32xf32>
      %306 = arith.addf %298, %305 : vector<128x32xf32>
      %c42_i32 = arith.constant 42 : i32
      %307 = arith.addi %209, %c42_i32 : i32
      %c0_i32_235 = arith.constant 0 : i32
      %308 = arith.addi %307, %c0_i32_235 : i32
      %309 = arith.index_cast %308 : i32 to index
      %c0_236 = arith.constant 0 : index
      %310 = vector.load %arg26[%309, %c0_236] : memref<896x32xf32, #tpu.memory_space<vmem>>, vector<128x32xf32>
      %c12_237 = arith.constant 12 : index
      %c0_238 = arith.constant 0 : index
      %c0_239 = arith.constant 0 : index
      %311 = vector.load %arg5[%c12_237, %c0_238, %c0_239] : memref<16x32x32xf32, #tpu.memory_space<vmem>>, vector<1x32x32xf32>
      %312 = vector.shape_cast %311 : vector<1x32x32xf32> to vector<32x32xf32>
      %cst_240 = arith.constant dense<0.000000e+00> : vector<128x32xf32>
      %313 = tpu.matmul %310, %312, %cst_240 {dimension_numbers = #tpu.dot_dimension_numbers<[1], [0], [0], [1], [0, 0, 1, 1], [], []>} : vector<128x32xf32>, vector<32x32xf32>, vector<128x32xf32> -> vector<128x32xf32>
      %314 = arith.addf %306, %313 : vector<128x32xf32>
      %c42_i32_241 = arith.constant 42 : i32
      %315 = arith.addi %209, %c42_i32_241 : i32
      %c1_i32_242 = arith.constant 1 : i32
      %316 = arith.addi %315, %c1_i32_242 : i32
      %317 = arith.index_cast %316 : i32 to index
      %c0_243 = arith.constant 0 : index
      %318 = vector.load %arg26[%317, %c0_243] : memref<896x32xf32, #tpu.memory_space<vmem>>, vector<128x32xf32>
      %c13_244 = arith.constant 13 : index
      %c0_245 = arith.constant 0 : index
      %c0_246 = arith.constant 0 : index
      %319 = vector.load %arg5[%c13_244, %c0_245, %c0_246] : memref<16x32x32xf32, #tpu.memory_space<vmem>>, vector<1x32x32xf32>
      %320 = vector.shape_cast %319 : vector<1x32x32xf32> to vector<32x32xf32>
      %cst_247 = arith.constant dense<0.000000e+00> : vector<128x32xf32>
      %321 = tpu.matmul %318, %320, %cst_247 {dimension_numbers = #tpu.dot_dimension_numbers<[1], [0], [0], [1], [0, 0, 1, 1], [], []>} : vector<128x32xf32>, vector<32x32xf32>, vector<128x32xf32> -> vector<128x32xf32>
      %322 = arith.addf %314, %321 : vector<128x32xf32>
      %c42_i32_248 = arith.constant 42 : i32
      %323 = arith.addi %209, %c42_i32_248 : i32
      %c2_i32_249 = arith.constant 2 : i32
      %324 = arith.addi %323, %c2_i32_249 : i32
      %325 = arith.index_cast %324 : i32 to index
      %c0_250 = arith.constant 0 : index
      %326 = vector.load %arg26[%325, %c0_250] : memref<896x32xf32, #tpu.memory_space<vmem>>, vector<128x32xf32>
      %c14_251 = arith.constant 14 : index
      %c0_252 = arith.constant 0 : index
      %c0_253 = arith.constant 0 : index
      %327 = vector.load %arg5[%c14_251, %c0_252, %c0_253] : memref<16x32x32xf32, #tpu.memory_space<vmem>>, vector<1x32x32xf32>
      %328 = vector.shape_cast %327 : vector<1x32x32xf32> to vector<32x32xf32>
      %cst_254 = arith.constant dense<0.000000e+00> : vector<128x32xf32>
      %329 = tpu.matmul %326, %328, %cst_254 {dimension_numbers = #tpu.dot_dimension_numbers<[1], [0], [0], [1], [0, 0, 1, 1], [], []>} : vector<128x32xf32>, vector<32x32xf32>, vector<128x32xf32> -> vector<128x32xf32>
      %330 = arith.addf %322, %329 : vector<128x32xf32>
      %c42_i32_255 = arith.constant 42 : i32
      %331 = arith.addi %209, %c42_i32_255 : i32
      %c3_i32_256 = arith.constant 3 : i32
      %332 = arith.addi %331, %c3_i32_256 : i32
      %333 = arith.index_cast %332 : i32 to index
      %c0_257 = arith.constant 0 : index
      %334 = vector.load %arg26[%333, %c0_257] : memref<896x32xf32, #tpu.memory_space<vmem>>, vector<128x32xf32>
      %c15_258 = arith.constant 15 : index
      %c0_259 = arith.constant 0 : index
      %c0_260 = arith.constant 0 : index
      %335 = vector.load %arg5[%c15_258, %c0_259, %c0_260] : memref<16x32x32xf32, #tpu.memory_space<vmem>>, vector<1x32x32xf32>
      %336 = vector.shape_cast %335 : vector<1x32x32xf32> to vector<32x32xf32>
      %cst_261 = arith.constant dense<0.000000e+00> : vector<128x32xf32>
      %337 = tpu.matmul %334, %336, %cst_261 {dimension_numbers = #tpu.dot_dimension_numbers<[1], [0], [0], [1], [0, 0, 1, 1], [], []>} : vector<128x32xf32>, vector<32x32xf32>, vector<128x32xf32> -> vector<128x32xf32>
      %338 = arith.addf %330, %337 : vector<128x32xf32>
      %c0_262 = arith.constant 0 : index
      %c0_263 = arith.constant 0 : index
      %339 = vector.load %arg6[%c0_262, %c0_263] : memref<1x32xf32, #tpu.memory_space<vmem>>, vector<1x32xf32>
      %340 = vector.broadcast %339 : vector<1x32xf32> to vector<128x32xf32>
      %341 = arith.addf %338, %340 : vector<128x32xf32>
      %cst_264 = arith.constant 0.000000e+00 : f32
      %342 = vector.broadcast %cst_264 : f32 to vector<128x32xf32>
      %343 = arith.maximumf %341, %342 : vector<128x32xf32>
      %344 = arith.index_cast %209 : i32 to index
      %c0_265 = arith.constant 0 : index
      %345 = vector.load %arg27[%344, %c0_265] : memref<768x32xf32, #tpu.memory_space<vmem>>, vector<128x32xf32>
      tpu.vector_store %arg27[%344, %c0_265], %343 {strides = array<i32>} : memref<768x32xf32, #tpu.memory_space<vmem>>, vector<128x32xf32>,
    }
    %c6_i32_6 = arith.constant 6 : i32
    %cst = arith.constant 0.000000e+00 : f32
    %3 = vector.broadcast %cst : f32 to vector<100x32xf32>
    %c0 = arith.constant 0 : index
    %c0_7 = arith.constant 0 : index
    %4 = vector.load %arg7[%c0, %c0_7] : memref<100x768xf32, #tpu.memory_space<vmem>>, vector<100x128xf32>
    %c0_8 = arith.constant 0 : index
    %c0_9 = arith.constant 0 : index
    %5 = vector.load %arg27[%c0_8, %c0_9] : memref<768x32xf32, #tpu.memory_space<vmem>>, vector<128x32xf32>
    %cst_10 = arith.constant dense<0.000000e+00> : vector<100x32xf32>
    %6 = tpu.matmul %4, %5, %cst_10 {dimension_numbers = #tpu.dot_dimension_numbers<[1], [0], [0], [1], [0, 0, 1, 1], [], []>} : vector<100x128xf32>, vector<128x32xf32>, vector<100x32xf32> -> vector<100x32xf32>
    %7 = arith.addf %3, %6 : vector<100x32xf32>
    %c0_11 = arith.constant 0 : index
    %c128 = arith.constant 128 : index
    %8 = vector.load %arg7[%c0_11, %c128] : memref<100x768xf32, #tpu.memory_space<vmem>>, vector<100x128xf32>
    %c128_12 = arith.constant 128 : index
    %c0_13 = arith.constant 0 : index
    %9 = vector.load %arg27[%c128_12, %c0_13] : memref<768x32xf32, #tpu.memory_space<vmem>>, vector<128x32xf32>
    %cst_14 = arith.constant dense<0.000000e+00> : vector<100x32xf32>
    %10 = tpu.matmul %8, %9, %cst_14 {dimension_numbers = #tpu.dot_dimension_numbers<[1], [0], [0], [1], [0, 0, 1, 1], [], []>} : vector<100x128xf32>, vector<128x32xf32>, vector<100x32xf32> -> vector<100x32xf32>
    %11 = arith.addf %7, %10 : vector<100x32xf32>
    %c0_15 = arith.constant 0 : index
    %c256 = arith.constant 256 : index
    %12 = vector.load %arg7[%c0_15, %c256] : memref<100x768xf32, #tpu.memory_space<vmem>>, vector<100x128xf32>
    %c256_16 = arith.constant 256 : index
    %c0_17 = arith.constant 0 : index
    %13 = vector.load %arg27[%c256_16, %c0_17] : memref<768x32xf32, #tpu.memory_space<vmem>>, vector<128x32xf32>
    %cst_18 = arith.constant dense<0.000000e+00> : vector<100x32xf32>
    %14 = tpu.matmul %12, %13, %cst_18 {dimension_numbers = #tpu.dot_dimension_numbers<[1], [0], [0], [1], [0, 0, 1, 1], [], []>} : vector<100x128xf32>, vector<128x32xf32>, vector<100x32xf32> -> vector<100x32xf32>
    %15 = arith.addf %11, %14 : vector<100x32xf32>
    %c0_19 = arith.constant 0 : index
    %c384 = arith.constant 384 : index
    %16 = vector.load %arg7[%c0_19, %c384] : memref<100x768xf32, #tpu.memory_space<vmem>>, vector<100x128xf32>
    %c384_20 = arith.constant 384 : index
    %c0_21 = arith.constant 0 : index
    %17 = vector.load %arg27[%c384_20, %c0_21] : memref<768x32xf32, #tpu.memory_space<vmem>>, vector<128x32xf32>
    %cst_22 = arith.constant dense<0.000000e+00> : vector<100x32xf32>
    %18 = tpu.matmul %16, %17, %cst_22 {dimension_numbers = #tpu.dot_dimension_numbers<[1], [0], [0], [1], [0, 0, 1, 1], [], []>} : vector<100x128xf32>, vector<128x32xf32>, vector<100x32xf32> -> vector<100x32xf32>
    %19 = arith.addf %15, %18 : vector<100x32xf32>
    %c0_23 = arith.constant 0 : index
    %c512 = arith.constant 512 : index
    %20 = vector.load %arg7[%c0_23, %c512] : memref<100x768xf32, #tpu.memory_space<vmem>>, vector<100x128xf32>
    %c512_24 = arith.constant 512 : index
    %c0_25 = arith.constant 0 : index
    %21 = vector.load %arg27[%c512_24, %c0_25] : memref<768x32xf32, #tpu.memory_space<vmem>>, vector<128x32xf32>
    %cst_26 = arith.constant dense<0.000000e+00> : vector<100x32xf32>
    %22 = tpu.matmul %20, %21, %cst_26 {dimension_numbers = #tpu.dot_dimension_numbers<[1], [0], [0], [1], [0, 0, 1, 1], [], []>} : vector<100x128xf32>, vector<128x32xf32>, vector<100x32xf32> -> vector<100x32xf32>
    %23 = arith.addf %19, %22 : vector<100x32xf32>
    %c0_27 = arith.constant 0 : index
    %c640 = arith.constant 640 : index
    %24 = vector.load %arg7[%c0_27, %c640] : memref<100x768xf32, #tpu.memory_space<vmem>>, vector<100x128xf32>
    %c640_28 = arith.constant 640 : index
    %c0_29 = arith.constant 0 : index
    %25 = vector.load %arg27[%c640_28, %c0_29] : memref<768x32xf32, #tpu.memory_space<vmem>>, vector<128x32xf32>
    %cst_30 = arith.constant dense<0.000000e+00> : vector<100x32xf32>
    %26 = tpu.matmul %24, %25, %cst_30 {dimension_numbers = #tpu.dot_dimension_numbers<[1], [0], [0], [1], [0, 0, 1, 1], [], []>} : vector<100x128xf32>, vector<128x32xf32>, vector<100x32xf32> -> vector<100x32xf32>
    %27 = arith.addf %23, %26 : vector<100x32xf32>
    %cst_31 = arith.constant 0.000000e+00 : f32
    %28 = vector.broadcast %cst_31 : f32 to vector<4x50xf32>
    %29 = vector.extract_strided_slice %27 {offsets = [0, 0], sizes = [4, 32], strides = [1, 1]} : vector<100x32xf32> to vector<4x32xf32>
    %c0_32 = arith.constant 0 : index
    %c0_33 = arith.constant 0 : index
    %c0_34 = arith.constant 0 : index
    %30 = vector.load %arg8[%c0_32, %c0_33, %c0_34] : memref<25x32x50xf32, #tpu.memory_space<vmem>>, vector<1x32x50xf32>
    %31 = vector.shape_cast %30 : vector<1x32x50xf32> to vector<32x50xf32>
    %cst_35 = arith.constant dense<0.000000e+00> : vector<4x50xf32>
    %32 = tpu.matmul %29, %31, %cst_35 {dimension_numbers = #tpu.dot_dimension_numbers<[1], [0], [0], [1], [0, 0, 1, 1], [], []>} : vector<4x32xf32>, vector<32x50xf32>, vector<4x50xf32> -> vector<4x50xf32>
    %33 = arith.addf %28, %32 : vector<4x50xf32>
    %34 = vector.extract_strided_slice %27 {offsets = [4, 0], sizes = [4, 32], strides = [1, 1]} : vector<100x32xf32> to vector<4x32xf32>
    %c1 = arith.constant 1 : index
    %c0_36 = arith.constant 0 : index
    %c0_37 = arith.constant 0 : index
    %35 = vector.load %arg8[%c1, %c0_36, %c0_37] : memref<25x32x50xf32, #tpu.memory_space<vmem>>, vector<1x32x50xf32>
    %36 = vector.shape_cast %35 : vector<1x32x50xf32> to vector<32x50xf32>
    %cst_38 = arith.constant dense<0.000000e+00> : vector<4x50xf32>
    %37 = tpu.matmul %34, %36, %cst_38 {dimension_numbers = #tpu.dot_dimension_numbers<[1], [0], [0], [1], [0, 0, 1, 1], [], []>} : vector<4x32xf32>, vector<32x50xf32>, vector<4x50xf32> -> vector<4x50xf32>
    %38 = arith.addf %33, %37 : vector<4x50xf32>
    %39 = vector.extract_strided_slice %27 {offsets = [8, 0], sizes = [4, 32], strides = [1, 1]} : vector<100x32xf32> to vector<4x32xf32>
    %c2 = arith.constant 2 : index
    %c0_39 = arith.constant 0 : index
    %c0_40 = arith.constant 0 : index
    %40 = vector.load %arg8[%c2, %c0_39, %c0_40] : memref<25x32x50xf32, #tpu.memory_space<vmem>>, vector<1x32x50xf32>
    %41 = vector.shape_cast %40 : vector<1x32x50xf32> to vector<32x50xf32>
    %cst_41 = arith.constant dense<0.000000e+00> : vector<4x50xf32>
    %42 = tpu.matmul %39, %41, %cst_41 {dimension_numbers = #tpu.dot_dimension_numbers<[1], [0], [0], [1], [0, 0, 1, 1], [], []>} : vector<4x32xf32>, vector<32x50xf32>, vector<4x50xf32> -> vector<4x50xf32>
    %43 = arith.addf %38, %42 : vector<4x50xf32>
    %44 = vector.extract_strided_slice %27 {offsets = [12, 0], sizes = [4, 32], strides = [1, 1]} : vector<100x32xf32> to vector<4x32xf32>
    %c3 = arith.constant 3 : index
    %c0_42 = arith.constant 0 : index
    %c0_43 = arith.constant 0 : index
    %45 = vector.load %arg8[%c3, %c0_42, %c0_43] : memref<25x32x50xf32, #tpu.memory_space<vmem>>, vector<1x32x50xf32>
    %46 = vector.shape_cast %45 : vector<1x32x50xf32> to vector<32x50xf32>
    %cst_44 = arith.constant dense<0.000000e+00> : vector<4x50xf32>
    %47 = tpu.matmul %44, %46, %cst_44 {dimension_numbers = #tpu.dot_dimension_numbers<[1], [0], [0], [1], [0, 0, 1, 1], [], []>} : vector<4x32xf32>, vector<32x50xf32>, vector<4x50xf32> -> vector<4x50xf32>
    %48 = arith.addf %43, %47 : vector<4x50xf32>
    %49 = vector.extract_strided_slice %27 {offsets = [16, 0], sizes = [4, 32], strides = [1, 1]} : vector<100x32xf32> to vector<4x32xf32>
    %c4 = arith.constant 4 : index
    %c0_45 = arith.constant 0 : index
    %c0_46 = arith.constant 0 : index
    %50 = vector.load %arg8[%c4, %c0_45, %c0_46] : memref<25x32x50xf32, #tpu.memory_space<vmem>>, vector<1x32x50xf32>
    %51 = vector.shape_cast %50 : vector<1x32x50xf32> to vector<32x50xf32>
    %cst_47 = arith.constant dense<0.000000e+00> : vector<4x50xf32>
    %52 = tpu.matmul %49, %51, %cst_47 {dimension_numbers = #tpu.dot_dimension_numbers<[1], [0], [0], [1], [0, 0, 1, 1], [], []>} : vector<4x32xf32>, vector<32x50xf32>, vector<4x50xf32> -> vector<4x50xf32>
    %53 = arith.addf %48, %52 : vector<4x50xf32>
    %54 = vector.extract_strided_slice %27 {offsets = [20, 0], sizes = [4, 32], strides = [1, 1]} : vector<100x32xf32> to vector<4x32xf32>
    %c5 = arith.constant 5 : index
    %c0_48 = arith.constant 0 : index
    %c0_49 = arith.constant 0 : index
    %55 = vector.load %arg8[%c5, %c0_48, %c0_49] : memref<25x32x50xf32, #tpu.memory_space<vmem>>, vector<1x32x50xf32>
    %56 = vector.shape_cast %55 : vector<1x32x50xf32> to vector<32x50xf32>
    %cst_50 = arith.constant dense<0.000000e+00> : vector<4x50xf32>
    %57 = tpu.matmul %54, %56, %cst_50 {dimension_numbers = #tpu.dot_dimension_numbers<[1], [0], [0], [1], [0, 0, 1, 1], [], []>} : vector<4x32xf32>, vector<32x50xf32>, vector<4x50xf32> -> vector<4x50xf32>
    %58 = arith.addf %53, %57 : vector<4x50xf32>
    %59 = vector.extract_strided_slice %27 {offsets = [24, 0], sizes = [4, 32], strides = [1, 1]} : vector<100x32xf32> to vector<4x32xf32>
    %c6 = arith.constant 6 : index
    %c0_51 = arith.constant 0 : index
    %c0_52 = arith.constant 0 : index
    %60 = vector.load %arg8[%c6, %c0_51, %c0_52] : memref<25x32x50xf32, #tpu.memory_space<vmem>>, vector<1x32x50xf32>
    %61 = vector.shape_cast %60 : vector<1x32x50xf32> to vector<32x50xf32>
    %cst_53 = arith.constant dense<0.000000e+00> : vector<4x50xf32>
    %62 = tpu.matmul %59, %61, %cst_53 {dimension_numbers = #tpu.dot_dimension_numbers<[1], [0], [0], [1], [0, 0, 1, 1], [], []>} : vector<4x32xf32>, vector<32x50xf32>, vector<4x50xf32> -> vector<4x50xf32>
    %63 = arith.addf %58, %62 : vector<4x50xf32>
    %64 = vector.extract_strided_slice %27 {offsets = [28, 0], sizes = [4, 32], strides = [1, 1]} : vector<100x32xf32> to vector<4x32xf32>
    %c7 = arith.constant 7 : index
    %c0_54 = arith.constant 0 : index
    %c0_55 = arith.constant 0 : index
    %65 = vector.load %arg8[%c7, %c0_54, %c0_55] : memref<25x32x50xf32, #tpu.memory_space<vmem>>, vector<1x32x50xf32>
    %66 = vector.shape_cast %65 : vector<1x32x50xf32> to vector<32x50xf32>
    %cst_56 = arith.constant dense<0.000000e+00> : vector<4x50xf32>
    %67 = tpu.matmul %64, %66, %cst_56 {dimension_numbers = #tpu.dot_dimension_numbers<[1], [0], [0], [1], [0, 0, 1, 1], [], []>} : vector<4x32xf32>, vector<32x50xf32>, vector<4x50xf32> -> vector<4x50xf32>
    %68 = arith.addf %63, %67 : vector<4x50xf32>
    %69 = vector.extract_strided_slice %27 {offsets = [32, 0], sizes = [4, 32], strides = [1, 1]} : vector<100x32xf32> to vector<4x32xf32>
    %c8 = arith.constant 8 : index
    %c0_57 = arith.constant 0 : index
    %c0_58 = arith.constant 0 : index
    %70 = vector.load %arg8[%c8, %c0_57, %c0_58] : memref<25x32x50xf32, #tpu.memory_space<vmem>>, vector<1x32x50xf32>
    %71 = vector.shape_cast %70 : vector<1x32x50xf32> to vector<32x50xf32>
    %cst_59 = arith.constant dense<0.000000e+00> : vector<4x50xf32>
    %72 = tpu.matmul %69, %71, %cst_59 {dimension_numbers = #tpu.dot_dimension_numbers<[1], [0], [0], [1], [0, 0, 1, 1], [], []>} : vector<4x32xf32>, vector<32x50xf32>, vector<4x50xf32> -> vector<4x50xf32>
    %73 = arith.addf %68, %72 : vector<4x50xf32>
    %74 = vector.extract_strided_slice %27 {offsets = [36, 0], sizes = [4, 32], strides = [1, 1]} : vector<100x32xf32> to vector<4x32xf32>
    %c9 = arith.constant 9 : index
    %c0_60 = arith.constant 0 : index
    %c0_61 = arith.constant 0 : index
    %75 = vector.load %arg8[%c9, %c0_60, %c0_61] : memref<25x32x50xf32, #tpu.memory_space<vmem>>, vector<1x32x50xf32>
    %76 = vector.shape_cast %75 : vector<1x32x50xf32> to vector<32x50xf32>
    %cst_62 = arith.constant dense<0.000000e+00> : vector<4x50xf32>
    %77 = tpu.matmul %74, %76, %cst_62 {dimension_numbers = #tpu.dot_dimension_numbers<[1], [0], [0], [1], [0, 0, 1, 1], [], []>} : vector<4x32xf32>, vector<32x50xf32>, vector<4x50xf32> -> vector<4x50xf32>
    %78 = arith.addf %73, %77 : vector<4x50xf32>
    %79 = vector.extract_strided_slice %27 {offsets = [40, 0], sizes = [4, 32], strides = [1, 1]} : vector<100x32xf32> to vector<4x32xf32>
    %c10 = arith.constant 10 : index
    %c0_63 = arith.constant 0 : index
    %c0_64 = arith.constant 0 : index
    %80 = vector.load %arg8[%c10, %c0_63, %c0_64] : memref<25x32x50xf32, #tpu.memory_space<vmem>>, vector<1x32x50xf32>
    %81 = vector.shape_cast %80 : vector<1x32x50xf32> to vector<32x50xf32>
    %cst_65 = arith.constant dense<0.000000e+00> : vector<4x50xf32>
    %82 = tpu.matmul %79, %81, %cst_65 {dimension_numbers = #tpu.dot_dimension_numbers<[1], [0], [0], [1], [0, 0, 1, 1], [], []>} : vector<4x32xf32>, vector<32x50xf32>, vector<4x50xf32> -> vector<4x50xf32>
    %83 = arith.addf %78, %82 : vector<4x50xf32>
    %84 = vector.extract_strided_slice %27 {offsets = [44, 0], sizes = [4, 32], strides = [1, 1]} : vector<100x32xf32> to vector<4x32xf32>
    %c11 = arith.constant 11 : index
    %c0_66 = arith.constant 0 : index
    %c0_67 = arith.constant 0 : index
    %85 = vector.load %arg8[%c11, %c0_66, %c0_67] : memref<25x32x50xf32, #tpu.memory_space<vmem>>, vector<1x32x50xf32>
    %86 = vector.shape_cast %85 : vector<1x32x50xf32> to vector<32x50xf32>
    %cst_68 = arith.constant dense<0.000000e+00> : vector<4x50xf32>
    %87 = tpu.matmul %84, %86, %cst_68 {dimension_numbers = #tpu.dot_dimension_numbers<[1], [0], [0], [1], [0, 0, 1, 1], [], []>} : vector<4x32xf32>, vector<32x50xf32>, vector<4x50xf32> -> vector<4x50xf32>
    %88 = arith.addf %83, %87 : vector<4x50xf32>
    %89 = vector.extract_strided_slice %27 {offsets = [48, 0], sizes = [4, 32], strides = [1, 1]} : vector<100x32xf32> to vector<4x32xf32>
    %c12 = arith.constant 12 : index
    %c0_69 = arith.constant 0 : index
    %c0_70 = arith.constant 0 : index
    %90 = vector.load %arg8[%c12, %c0_69, %c0_70] : memref<25x32x50xf32, #tpu.memory_space<vmem>>, vector<1x32x50xf32>
    %91 = vector.shape_cast %90 : vector<1x32x50xf32> to vector<32x50xf32>
    %cst_71 = arith.constant dense<0.000000e+00> : vector<4x50xf32>
    %92 = tpu.matmul %89, %91, %cst_71 {dimension_numbers = #tpu.dot_dimension_numbers<[1], [0], [0], [1], [0, 0, 1, 1], [], []>} : vector<4x32xf32>, vector<32x50xf32>, vector<4x50xf32> -> vector<4x50xf32>
    %93 = arith.addf %88, %92 : vector<4x50xf32>
    %94 = vector.extract_strided_slice %27 {offsets = [52, 0], sizes = [4, 32], strides = [1, 1]} : vector<100x32xf32> to vector<4x32xf32>
    %c13 = arith.constant 13 : index
    %c0_72 = arith.constant 0 : index
    %c0_73 = arith.constant 0 : index
    %95 = vector.load %arg8[%c13, %c0_72, %c0_73] : memref<25x32x50xf32, #tpu.memory_space<vmem>>, vector<1x32x50xf32>
    %96 = vector.shape_cast %95 : vector<1x32x50xf32> to vector<32x50xf32>
    %cst_74 = arith.constant dense<0.000000e+00> : vector<4x50xf32>
    %97 = tpu.matmul %94, %96, %cst_74 {dimension_numbers = #tpu.dot_dimension_numbers<[1], [0], [0], [1], [0, 0, 1, 1], [], []>} : vector<4x32xf32>, vector<32x50xf32>, vector<4x50xf32> -> vector<4x50xf32>
    %98 = arith.addf %93, %97 : vector<4x50xf32>
    %99 = vector.extract_strided_slice %27 {offsets = [56, 0], sizes = [4, 32], strides = [1, 1]} : vector<100x32xf32> to vector<4x32xf32>
    %c14 = arith.constant 14 : index
    %c0_75 = arith.constant 0 : index
    %c0_76 = arith.constant 0 : index
    %100 = vector.load %arg8[%c14, %c0_75, %c0_76] : memref<25x32x50xf32, #tpu.memory_space<vmem>>, vector<1x32x50xf32>
    %101 = vector.shape_cast %100 : vector<1x32x50xf32> to vector<32x50xf32>
    %cst_77 = arith.constant dense<0.000000e+00> : vector<4x50xf32>
    %102 = tpu.matmul %99, %101, %cst_77 {dimension_numbers = #tpu.dot_dimension_numbers<[1], [0], [0], [1], [0, 0, 1, 1], [], []>} : vector<4x32xf32>, vector<32x50xf32>, vector<4x50xf32> -> vector<4x50xf32>
    %103 = arith.addf %98, %102 : vector<4x50xf32>
    %104 = vector.extract_strided_slice %27 {offsets = [60, 0], sizes = [4, 32], strides = [1, 1]} : vector<100x32xf32> to vector<4x32xf32>
    %c15 = arith.constant 15 : index
    %c0_78 = arith.constant 0 : index
    %c0_79 = arith.constant 0 : index
    %105 = vector.load %arg8[%c15, %c0_78, %c0_79] : memref<25x32x50xf32, #tpu.memory_space<vmem>>, vector<1x32x50xf32>
    %106 = vector.shape_cast %105 : vector<1x32x50xf32> to vector<32x50xf32>
    %cst_80 = arith.constant dense<0.000000e+00> : vector<4x50xf32>
    %107 = tpu.matmul %104, %106, %cst_80 {dimension_numbers = #tpu.dot_dimension_numbers<[1], [0], [0], [1], [0, 0, 1, 1], [], []>} : vector<4x32xf32>, vector<32x50xf32>, vector<4x50xf32> -> vector<4x50xf32>
    %108 = arith.addf %103, %107 : vector<4x50xf32>
    %109 = vector.extract_strided_slice %27 {offsets = [64, 0], sizes = [4, 32], strides = [1, 1]} : vector<100x32xf32> to vector<4x32xf32>
    %c16 = arith.constant 16 : index
    %c0_81 = arith.constant 0 : index
    %c0_82 = arith.constant 0 : index
    %110 = vector.load %arg8[%c16, %c0_81, %c0_82] : memref<25x32x50xf32, #tpu.memory_space<vmem>>, vector<1x32x50xf32>
    %111 = vector.shape_cast %110 : vector<1x32x50xf32> to vector<32x50xf32>
    %cst_83 = arith.constant dense<0.000000e+00> : vector<4x50xf32>
    %112 = tpu.matmul %109, %111, %cst_83 {dimension_numbers = #tpu.dot_dimension_numbers<[1], [0], [0], [1], [0, 0, 1, 1], [], []>} : vector<4x32xf32>, vector<32x50xf32>, vector<4x50xf32> -> vector<4x50xf32>
    %113 = arith.addf %108, %112 : vector<4x50xf32>
    %114 = vector.extract_strided_slice %27 {offsets = [68, 0], sizes = [4, 32], strides = [1, 1]} : vector<100x32xf32> to vector<4x32xf32>
    %c17 = arith.constant 17 : index
    %c0_84 = arith.constant 0 : index
    %c0_85 = arith.constant 0 : index
    %115 = vector.load %arg8[%c17, %c0_84, %c0_85] : memref<25x32x50xf32, #tpu.memory_space<vmem>>, vector<1x32x50xf32>
    %116 = vector.shape_cast %115 : vector<1x32x50xf32> to vector<32x50xf32>
    %cst_86 = arith.constant dense<0.000000e+00> : vector<4x50xf32>
    %117 = tpu.matmul %114, %116, %cst_86 {dimension_numbers = #tpu.dot_dimension_numbers<[1], [0], [0], [1], [0, 0, 1, 1], [], []>} : vector<4x32xf32>, vector<32x50xf32>, vector<4x50xf32> -> vector<4x50xf32>
    %118 = arith.addf %113, %117 : vector<4x50xf32>
    %119 = vector.extract_strided_slice %27 {offsets = [72, 0], sizes = [4, 32], strides = [1, 1]} : vector<100x32xf32> to vector<4x32xf32>
    %c18 = arith.constant 18 : index
    %c0_87 = arith.constant 0 : index
    %c0_88 = arith.constant 0 : index
    %120 = vector.load %arg8[%c18, %c0_87, %c0_88] : memref<25x32x50xf32, #tpu.memory_space<vmem>>, vector<1x32x50xf32>
    %121 = vector.shape_cast %120 : vector<1x32x50xf32> to vector<32x50xf32>
    %cst_89 = arith.constant dense<0.000000e+00> : vector<4x50xf32>
    %122 = tpu.matmul %119, %121, %cst_89 {dimension_numbers = #tpu.dot_dimension_numbers<[1], [0], [0], [1], [0, 0, 1, 1], [], []>} : vector<4x32xf32>, vector<32x50xf32>, vector<4x50xf32> -> vector<4x50xf32>
    %123 = arith.addf %118, %122 : vector<4x50xf32>
    %124 = vector.extract_strided_slice %27 {offsets = [76, 0], sizes = [4, 32], strides = [1, 1]} : vector<100x32xf32> to vector<4x32xf32>
    %c19 = arith.constant 19 : index
    %c0_90 = arith.constant 0 : index
    %c0_91 = arith.constant 0 : index
    %125 = vector.load %arg8[%c19, %c0_90, %c0_91] : memref<25x32x50xf32, #tpu.memory_space<vmem>>, vector<1x32x50xf32>
    %126 = vector.shape_cast %125 : vector<1x32x50xf32> to vector<32x50xf32>
    %cst_92 = arith.constant dense<0.000000e+00> : vector<4x50xf32>
    %127 = tpu.matmul %124, %126, %cst_92 {dimension_numbers = #tpu.dot_dimension_numbers<[1], [0], [0], [1], [0, 0, 1, 1], [], []>} : vector<4x32xf32>, vector<32x50xf32>, vector<4x50xf32> -> vector<4x50xf32>
    %128 = arith.addf %123, %127 : vector<4x50xf32>
    %129 = vector.extract_strided_slice %27 {offsets = [80, 0], sizes = [4, 32], strides = [1, 1]} : vector<100x32xf32> to vector<4x32xf32>
    %c20 = arith.constant 20 : index
    %c0_93 = arith.constant 0 : index
    %c0_94 = arith.constant 0 : index
    %130 = vector.load %arg8[%c20, %c0_93, %c0_94] : memref<25x32x50xf32, #tpu.memory_space<vmem>>, vector<1x32x50xf32>
    %131 = vector.shape_cast %130 : vector<1x32x50xf32> to vector<32x50xf32>
    %cst_95 = arith.constant dense<0.000000e+00> : vector<4x50xf32>
    %132 = tpu.matmul %129, %131, %cst_95 {dimension_numbers = #tpu.dot_dimension_numbers<[1], [0], [0], [1], [0, 0, 1, 1], [], []>} : vector<4x32xf32>, vector<32x50xf32>, vector<4x50xf32> -> vector<4x50xf32>
    %133 = arith.addf %128, %132 : vector<4x50xf32>
    %134 = vector.extract_strided_slice %27 {offsets = [84, 0], sizes = [4, 32], strides = [1, 1]} : vector<100x32xf32> to vector<4x32xf32>
    %c21 = arith.constant 21 : index
    %c0_96 = arith.constant 0 : index
    %c0_97 = arith.constant 0 : index
    %135 = vector.load %arg8[%c21, %c0_96, %c0_97] : memref<25x32x50xf32, #tpu.memory_space<vmem>>, vector<1x32x50xf32>
    %136 = vector.shape_cast %135 : vector<1x32x50xf32> to vector<32x50xf32>
    %cst_98 = arith.constant dense<0.000000e+00> : vector<4x50xf32>
    %137 = tpu.matmul %134, %136, %cst_98 {dimension_numbers = #tpu.dot_dimension_numbers<[1], [0], [0], [1], [0, 0, 1, 1], [], []>} : vector<4x32xf32>, vector<32x50xf32>, vector<4x50xf32> -> vector<4x50xf32>
    %138 = arith.addf %133, %137 : vector<4x50xf32>
    %139 = vector.extract_strided_slice %27 {offsets = [88, 0], sizes = [4, 32], strides = [1, 1]} : vector<100x32xf32> to vector<4x32xf32>
    %c22 = arith.constant 22 : index
    %c0_99 = arith.constant 0 : index
    %c0_100 = arith.constant 0 : index
    %140 = vector.load %arg8[%c22, %c0_99, %c0_100] : memref<25x32x50xf32, #tpu.memory_space<vmem>>, vector<1x32x50xf32>
    %141 = vector.shape_cast %140 : vector<1x32x50xf32> to vector<32x50xf32>
    %cst_101 = arith.constant dense<0.000000e+00> : vector<4x50xf32>
    %142 = tpu.matmul %139, %141, %cst_101 {dimension_numbers = #tpu.dot_dimension_numbers<[1], [0], [0], [1], [0, 0, 1, 1], [], []>} : vector<4x32xf32>, vector<32x50xf32>, vector<4x50xf32> -> vector<4x50xf32>
    %143 = arith.addf %138, %142 : vector<4x50xf32>
    %144 = vector.extract_strided_slice %27 {offsets = [92, 0], sizes = [4, 32], strides = [1, 1]} : vector<100x32xf32> to vector<4x32xf32>
    %c23 = arith.constant 23 : index
    %c0_102 = arith.constant 0 : index
    %c0_103 = arith.constant 0 : index
    %145 = vector.load %arg8[%c23, %c0_102, %c0_103] : memref<25x32x50xf32, #tpu.memory_space<vmem>>, vector<1x32x50xf32>
    %146 = vector.shape_cast %145 : vector<1x32x50xf32> to vector<32x50xf32>
    %cst_104 = arith.constant dense<0.000000e+00> : vector<4x50xf32>
    %147 = tpu.matmul %144, %146, %cst_104 {dimension_numbers = #tpu.dot_dimension_numbers<[1], [0], [0], [1], [0, 0, 1, 1], [], []>} : vector<4x32xf32>, vector<32x50xf32>, vector<4x50xf32> -> vector<4x50xf32>
    %148 = arith.addf %143, %147 : vector<4x50xf32>
    %149 = vector.extract_strided_slice %27 {offsets = [96, 0], sizes = [4, 32], strides = [1, 1]} : vector<100x32xf32> to vector<4x32xf32>
    %c24 = arith.constant 24 : index
    %c0_105 = arith.constant 0 : index
    %c0_106 = arith.constant 0 : index
    %150 = vector.load %arg8[%c24, %c0_105, %c0_106] : memref<25x32x50xf32, #tpu.memory_space<vmem>>, vector<1x32x50xf32>
    %151 = vector.shape_cast %150 : vector<1x32x50xf32> to vector<32x50xf32>
    %cst_107 = arith.constant dense<0.000000e+00> : vector<4x50xf32>
    %152 = tpu.matmul %149, %151, %cst_107 {dimension_numbers = #tpu.dot_dimension_numbers<[1], [0], [0], [1], [0, 0, 1, 1], [], []>} : vector<4x32xf32>, vector<32x50xf32>, vector<4x50xf32> -> vector<4x50xf32>
    %153 = arith.addf %148, %152 : vector<4x50xf32>
    %c0_108 = arith.constant 0 : index
    %c0_109 = arith.constant 0 : index
    %154 = vector.load %arg9[%c0_108, %c0_109] : memref<1x50xf32, #tpu.memory_space<vmem>>, vector<1x50xf32>
    %155 = vector.broadcast %154 : vector<1x50xf32> to vector<4x50xf32>
    %156 = arith.addf %153, %155 : vector<4x50xf32>
    %cst_110 = arith.constant 0.000000e+00 : f32
    %157 = vector.broadcast %cst_110 : f32 to vector<4x50xf32>
    %158 = arith.maximumf %156, %157 : vector<4x50xf32>
    %c0_111 = arith.constant 0 : index
    %c0_112 = arith.constant 0 : index
    %159 = vector.load %arg10[%c0_111, %c0_112] : memref<50x50xf32, #tpu.memory_space<vmem>>, vector<50x50xf32>
    %cst_113 = arith.constant dense<0.000000e+00> : vector<4x50xf32>
    %160 = tpu.matmul %158, %159, %cst_113 {dimension_numbers = #tpu.dot_dimension_numbers<[1], [0], [0], [1], [0, 0, 1, 1], [], []>} : vector<4x50xf32>, vector<50x50xf32>, vector<4x50xf32> -> vector<4x50xf32>
    %c0_114 = arith.constant 0 : index
    %c0_115 = arith.constant 0 : index
    %161 = vector.load %arg11[%c0_114, %c0_115] : memref<1x50xf32, #tpu.memory_space<vmem>>, vector<1x50xf32>
    %162 = vector.broadcast %161 : vector<1x50xf32> to vector<4x50xf32>
    %163 = arith.addf %160, %162 : vector<4x50xf32>
    %cst_116 = arith.constant 0.000000e+00 : f32
    %164 = vector.broadcast %cst_116 : f32 to vector<4x50xf32>
    %165 = arith.maximumf %163, %164 : vector<4x50xf32>
    %c0_117 = arith.constant 0 : index
    %c0_118 = arith.constant 0 : index
    %166 = vector.load %arg12[%c0_117, %c0_118] : memref<50x10xf32, #tpu.memory_space<vmem>>, vector<50x10xf32>
    %cst_119 = arith.constant dense<0.000000e+00> : vector<4x10xf32>
    %167 = tpu.matmul %165, %166, %cst_119 {dimension_numbers = #tpu.dot_dimension_numbers<[1], [0], [0], [1], [0, 0, 1, 1], [], []>} : vector<4x50xf32>, vector<50x10xf32>, vector<4x10xf32> -> vector<4x10xf32>
    %c0_120 = arith.constant 0 : index
    %c0_121 = arith.constant 0 : index
    %168 = vector.load %arg13[%c0_120, %c0_121] : memref<1x10xf32, #tpu.memory_space<vmem>>, vector<1x10xf32>
    %169 = vector.broadcast %168 : vector<1x10xf32> to vector<4x10xf32>
    %170 = arith.addf %167, %169 : vector<4x10xf32>
    %c0_122 = arith.constant 0 : index
    %c0_123 = arith.constant 0 : index
    %171 = vector.load %arg24[%c0_122, %c0_123] : memref<4x10xf32, #tpu.memory_space<vmem>>, vector<4x10xf32>
    tpu.vector_store %arg24[%c0_122, %c0_123], %170 {strides = array<i32>} : memref<4x10xf32, #tpu.memory_space<vmem>>, vector<4x10xf32>,
    %172 = vector.extract_strided_slice %170 {offsets = [0, 0], sizes = [2, 10], strides = [1, 1]} : vector<4x10xf32> to vector<2x10xf32>
    %cst_124 = arith.constant 0.000000e+00 : f32
    %173 = vector.broadcast %cst_124 : f32 to vector<2x10xf32>
    %174 = arith.maximumf %172, %173 : vector<2x10xf32>
    %175 = vector.extract_strided_slice %170 {offsets = [2, 0], sizes = [2, 10], strides = [1, 1]} : vector<4x10xf32> to vector<2x10xf32>
    %cst_125 = arith.constant 0.000000e+00 : f32
    %176 = vector.broadcast %cst_125 : f32 to vector<2x10xf32>
    %177 = arith.maximumf %175, %176 : vector<2x10xf32>
    %c0_126 = arith.constant 0 : index
    %c0_127 = arith.constant 0 : index
    %178 = vector.load %arg14[%c0_126, %c0_127] : memref<10x50xf32, #tpu.memory_space<vmem>>, vector<10x50xf32>
    %cst_128 = arith.constant dense<0.000000e+00> : vector<2x50xf32>
    %179 = tpu.matmul %174, %178, %cst_128 {dimension_numbers = #tpu.dot_dimension_numbers<[1], [0], [0], [1], [0, 0, 1, 1], [], []>} : vector<2x10xf32>, vector<10x50xf32>, vector<2x50xf32> -> vector<2x50xf32>
    %c0_129 = arith.constant 0 : index
    %c0_130 = arith.constant 0 : index
    %180 = vector.load %arg15[%c0_129, %c0_130] : memref<10x50xf32, #tpu.memory_space<vmem>>, vector<10x50xf32>
    %cst_131 = arith.constant dense<0.000000e+00> : vector<2x50xf32>
    %181 = tpu.matmul %177, %180, %cst_131 {dimension_numbers = #tpu.dot_dimension_numbers<[1], [0], [0], [1], [0, 0, 1, 1], [], []>} : vector<2x10xf32>, vector<10x50xf32>, vector<2x50xf32> -> vector<2x50xf32>
    %182 = arith.addf %179, %181 : vector<2x50xf32>
    %c0_132 = arith.constant 0 : index
    %c0_133 = arith.constant 0 : index
    %183 = vector.load %arg16[%c0_132, %c0_133] : memref<1x50xf32, #tpu.memory_space<vmem>>, vector<1x50xf32>
    %184 = vector.broadcast %183 : vector<1x50xf32> to vector<2x50xf32>
    %185 = arith.addf %182, %184 : vector<2x50xf32>
    %cst_134 = arith.constant 0.000000e+00 : f32
    %186 = vector.broadcast %cst_134 : f32 to vector<2x50xf32>
    %187 = arith.maximumf %185, %186 : vector<2x50xf32>
    %c0_135 = arith.constant 0 : index
    %c0_136 = arith.constant 0 : index
    %188 = vector.load %arg17[%c0_135, %c0_136] : memref<50x50xf32, #tpu.memory_space<vmem>>, vector<50x50xf32>
    %cst_137 = arith.constant dense<0.000000e+00> : vector<2x50xf32>
    %189 = tpu.matmul %187, %188, %cst_137 {dimension_numbers = #tpu.dot_dimension_numbers<[1], [0], [0], [1], [0, 0, 1, 1], [], []>} : vector<2x50xf32>, vector<50x50xf32>, vector<2x50xf32> -> vector<2x50xf32>
    %c0_138 = arith.constant 0 : index
    %c0_139 = arith.constant 0 : index
    %190 = vector.load %arg18[%c0_138, %c0_139] : memref<1x50xf32, #tpu.memory_space<vmem>>, vector<1x50xf32>
    %191 = vector.broadcast %190 : vector<1x50xf32> to vector<2x50xf32>
    %192 = arith.addf %189, %191 : vector<2x50xf32>
    %cst_140 = arith.constant 0.000000e+00 : f32
    %193 = vector.broadcast %cst_140 : f32 to vector<2x50xf32>
    %194 = arith.maximumf %192, %193 : vector<2x50xf32>
    %c0_141 = arith.constant 0 : index
    %c0_142 = arith.constant 0 : index
    %195 = vector.load %arg19[%c0_141, %c0_142] : memref<50x50xf32, #tpu.memory_space<vmem>>, vector<50x50xf32>
    %cst_143 = arith.constant dense<0.000000e+00> : vector<2x50xf32>
    %196 = tpu.matmul %194, %195, %cst_143 {dimension_numbers = #tpu.dot_dimension_numbers<[1], [0], [0], [1], [0, 0, 1, 1], [], []>} : vector<2x50xf32>, vector<50x50xf32>, vector<2x50xf32> -> vector<2x50xf32>
    %c0_144 = arith.constant 0 : index
    %c0_145 = arith.constant 0 : index
    %197 = vector.load %arg20[%c0_144, %c0_145] : memref<1x50xf32, #tpu.memory_space<vmem>>, vector<1x50xf32>
    %198 = vector.broadcast %197 : vector<1x50xf32> to vector<2x50xf32>
    %199 = arith.addf %196, %198 : vector<2x50xf32>
    %cst_146 = arith.constant 0.000000e+00 : f32
    %200 = vector.broadcast %cst_146 : f32 to vector<2x50xf32>
    %201 = arith.maximumf %199, %200 : vector<2x50xf32>
    %c0_147 = arith.constant 0 : index
    %c0_148 = arith.constant 0 : index
    %202 = vector.load %arg21[%c0_147, %c0_148] : memref<50x1xf32, #tpu.memory_space<vmem>>, vector<50x1xf32>
    %cst_149 = arith.constant dense<0.000000e+00> : vector<2x1xf32>
    %203 = tpu.matmul %201, %202, %cst_149 {dimension_numbers = #tpu.dot_dimension_numbers<[1], [0], [0], [1], [0, 0, 1, 1], [], []>} : vector<2x50xf32>, vector<50x1xf32>, vector<2x1xf32> -> vector<2x1xf32>
    %c0_150 = arith.constant 0 : index
    %c0_151 = arith.constant 0 : index
    %204 = vector.load %arg22[%c0_150, %c0_151] : memref<1x1xf32, #tpu.memory_space<vmem>>, vector<1x1xf32>
    %205 = vector.broadcast %204 : vector<1x1xf32> to vector<2x1xf32>
    %206 = arith.addf %203, %205 : vector<2x1xf32>
    %c0_152 = arith.constant 0 : index
    %c0_153 = arith.constant 0 : index
    %207 = vector.load %arg23[%c0_152, %c0_153] : memref<2x1xf32, #tpu.memory_space<vmem>>, vector<2x1xf32>
    tpu.vector_store %arg23[%c0_152, %c0_153], %206 {strides = array<i32>} : memref<2x1xf32, #tpu.memory_space<vmem>>, vector<2x1xf32>,
    return
  }
}

</mosaic_0001>

<bundles_post_ra>
// kernel: forward.1
= control target key start
LH: loop header
LB: loop body
LE: loop exit
PB: predicated region body
PF: predicated region fallthrough
CT: control target
= control target key end

     0   :  { %s17982_s27 = smov 0   ;;  %s23358_s0 = inlined_call_operand.vmem [shape: f32[1072,1], index: 0, kind: input, shape index: {}]   ;;  %s23359_s1 = inlined_call_operand.vmem [shape: f32[16,16], index: 1, kind: input, shape index: {}]   ;;  %s23360_s2 = inlined_call_operand.vmem [shape: f32[1,16], index: 2, kind: input, shape index: {}]   ;;  %s23361_s3 = inlined_call_operand.vmem [shape: f32[16,16,32], index: 3, kind: input, shape index: {}]   ;;  %s23362_s4 = inlined_call_operand.vmem [shape: f32[1,32], index: 4, kind: input, shape index: {}]   ;;  %s23363_s5 = inlined_call_operand.vmem [shape: f32[16,32,32], index: 5, kind: input, shape index: {}]   ;;  %s23364_s6 = inlined_call_operand.vmem [shape: f32[1,32], index: 6, kind: input, shape index: {}]   ;;  %s23365_s7 = inlined_call_operand.vmem [shape: f32[100,768], index: 7, kind: input, shape index: {}]   ;;  %s23366_s8 = inlined_call_operand.vmem [shape: f32[25,32,50], index: 8, kind: input, shape index: {}]   ;;  %s23367_s9 = inlined_call_operand.vmem [shape: f32[1,50], index: 9, kind: input, shape index: {}]   ;;  %s23368_s10 = inlined_call_operand.vmem [shape: f32[50,50], index: 10, kind: input, shape index: {}]   ;;  %s23369_s11 = inlined_call_operand.vmem [shape: f32[1,50], index: 11, kind: input, shape index: {}]   ;;  %s23370_s12 = inlined_call_operand.vmem [shape: f32[50,10], index: 12, kind: input, shape index: {}]   ;;  %s23371_s13 = inlined_call_operand.vmem [shape: f32[1,10], index: 13, kind: input, shape index: {}]   ;;  %s23372_s14 = inlined_call_operand.vmem [shape: f32[10,50], index: 14, kind: input, shape index: {}]   ;;  %s23373_s15 = inlined_call_operand.vmem [shape: f32[10,50], index: 15, kind: input, shape index: {}]   ;;  %s23374_s16 = inlined_call_operand.vmem [shape: f32[1,50], index: 16, kind: input, shape index: {}]   ;;  %s23375_s17 = inlined_call_operand.vmem [shape: f32[50,50], index: 17, kind: input, shape index: {}]   ;;  %s23376_s18 = inlined_call_operand.vmem [shape: f32[1,50], index: 18, kind: input, shape index: {}]   ;;  %s23377_s19 = inlined_call_operand.vmem [shape: f32[50,50], index: 19, kind: input, shape index: {}]   ;;  %s23378_s20 = inlined_call_operand.vmem [shape: f32[1,50], index: 20, kind: input, shape index: {}]   ;;  %s23379_s21 = inlined_call_operand.vmem [shape: f32[50,1], index: 21, kind: input, shape index: {}]   ;;  %s23380_s22 = inlined_call_operand.<no memory space> [shape: f32[1,1], index: 22, kind: input, shape index: {}]   ;;  %s23381_s23 = inlined_call_operand.vmem [shape: f32[2,1], index: 23, kind: output, shape index: {0}]   ;;  %s23382_s24 = inlined_call_operand.vmem [shape: f32[4,10], index: 24, kind: output, shape index: {1}]  }
   0x1   :  { %23436 = sst [smem:[#allocation178_spill]] %s23358_s0  ;;  %v30_v0 = vstv %s23380_s22 }
   0x2   :  { %23437 = sst [smem:[#allocation179_spill]] %s23359_s1  ;;  %31 = vst [vmem:[#allocation5] sm:$0x1] %v30_v0 }
   0x3   :  { %23438 = sst [smem:[#allocation180_spill]] %s23360_s2 }
   0x4   :  { %23439 = sst [smem:[#allocation181_spill]] %s23361_s3 }
   0x5   :  { %23440 = sst [smem:[#allocation182_spill]] %s23362_s4 }
   0x6   :  { %23441 = sst [smem:[#allocation183_spill]] %s23363_s5 }
   0x7   :  { %23442 = sst [smem:[#allocation184_spill]] %s23364_s6 }
   0x8   :  { %23443 = sst [smem:[#allocation185_spill]] %s23365_s7 }
   0x9   :  { %23444 = sst [smem:[#allocation186_spill]] %s23366_s8 }
   0xa LB: > { %v17851_v1 = vmov 0   ;;  %s13538_s28 = sshll.u32 %s17841_s27, 7  ;;  %s23445_s29 = sld [smem:[#allocation178_spill]]  ;;  %vm2284_vm0 = vcmask 130048   ;;  %s17841_s27 = sphi %s17982_s27, %s83_s27  }
   0xb   : > { %17810 = vset.pattern.permute.xlu1 %v17851_v1  ;;  %17809 = vset.pattern.permute.xlu0 %v17851_v1  ;;  %s23577_s30 = sld [smem:[#allocation179_spill]]  ;;  %s19298_s2 = scalar_lea.vmem [#allocation2], %s13538_s28 }
   0xc   : > { %s23733_s6 = sld [smem:[#allocation180_spill]]  ;;  %s83_s27 = sadd.s32 1, %s17841_s27  }
   0xd   : > { %p80_p0 = scmp.ge.s32.totalorder %s83_s27, 8  }
  0x10   : > { %s17993_s0 = scalar_lea.vmem %s23445_s29, %s13538_s28  ;;  %s19403_s28 = smov (%p80_p0), 0  }
  0x11   : > { %v17996_v2 = vld [vmem:[%s17993_s0 + $0x10] sm:$0xff]  ;;  %v86_v3 = vld [vmem:[%s17993_s0] sm:$0xff]  ;;  %v18001_v4 = vld [vmem:[%s17993_s0 + $0x18] sm:$0xff] }
  0x12   : > { %115 = vperm.xlu1 %17810, %v17996_v2   ;;  %105 = vperm.xlu0 %17809, %v86_v3   ;;  %v87_v5 = vld [vmem:[%s17993_s0 + $0x8] sm:$0xff]  ;;  %v18009_v7 = vld [vmem:[%s17993_s0 + $0x20] sm:$0xff]  ;;  %v18014_v8 = vld [vmem:[%s17993_s0 + $0x38] sm:$0xff] }
  0x13   : > { %v18006_v6 = vld [vmem:[%s17993_s0 + $0x28] sm:$0xff]  ;;  %v18017_v9 = vld [vmem:[%s17993_s0 + $0x30] sm:$0xff]  ;;  %v18025_v11 = vld [vmem:[%s17993_s0 + $0x40] sm:$0xff] }
  0x14   : > { %v18022_v10 = vld [vmem:[%s17993_s0 + $0x48] sm:$0xff]  ;;  %v18030_v12 = vld [vmem:[%s17993_s0 + $0x58] sm:$0xff]  ;;  %v18033_v13 = vld [vmem:[%s17993_s0 + $0x50] sm:$0xff] }
  0x15   : > { %v18038_v14 = vld [vmem:[%s17993_s0 + $0x68] sm:$0xff]  ;;  %v18041_v15 = vld [vmem:[%s17993_s0 + $0x60] sm:$0xff]  ;;  %v18046_v16 = vld [vmem:[%s17993_s0 + $0x78] sm:$0xff] }
  0x16   : > { %120 = vperm.xlu1 %17810, %v18001_v4   ;;  %110 = vperm.xlu0 %17809, %v87_v5   ;;  %v18049_v17 = vld [vmem:[%s17993_s0 + $0x70] sm:$0xff]  ;;  %v13541_v19 = vld [vmem:[%s17993_s0 + $0x1] sm:$0xff]  ;;  %v18056_v20 = vld [vmem:[%s17993_s0 + $0x19] sm:$0xff] }
  0x17   : > { %v13542_v18 = vld [vmem:[%s17993_s0 + $0x9] sm:$0xff]  ;;  %v18059_v21 = vld [vmem:[%s17993_s0 + $0x11] sm:$0xff]  ;;  %v18067_v23 = vld [vmem:[%s17993_s0 + $0x21] sm:$0xff] }
  0x18   : > { %v18064_v22 = vld [vmem:[%s17993_s0 + $0x29] sm:$0xff]  ;;  %v18072_v24 = vld [vmem:[%s17993_s0 + $0x39] sm:$0xff]  ;;  %v18075_v25 = vld [vmem:[%s17993_s0 + $0x31] sm:$0xff] }
  0x19   : > { %v18080_v26 = vld [vmem:[%s17993_s0 + $0x49] sm:$0xff]  ;;  %v18083_v27 = vld [vmem:[%s17993_s0 + $0x41] sm:$0xff]  ;;  %v18088_v28 = vld [vmem:[%s17993_s0 + $0x59] sm:$0xff] }
  0x1a   : > { %130 = vperm.xlu1 %17810, %v18006_v6   ;;  %125 = vperm.xlu0 %17809, %v18009_v7   ;;  %v18091_v29 = vld [vmem:[%s17993_s0 + $0x51] sm:$0xff]  ;;  %v18096_v30 = vld [vmem:[%s17993_s0 + $0x69] sm:$0xff]  ;;  %v18099_v31 = vld [vmem:[%s17993_s0 + $0x61] sm:$0xff] }
  0x1b   : > { %v18104_v32 = vld [vmem:[%s17993_s0 + $0x79] sm:$0xff]  ;;  %v18107_v33 = vld [vmem:[%s17993_s0 + $0x71] sm:$0xff]  ;;  %v13559_v35 = vld [vmem:[%s17993_s0 + $0x2] sm:$0xff] }
  0x1c   : > { %v13560_v34 = vld [vmem:[%s17993_s0 + $0xa] sm:$0xff]  ;;  %v13562_v36 = vld [vmem:[%s17993_s0 + $0x1a] sm:$0xff]  ;;  %v13561_v37 = vld [vmem:[%s17993_s0 + $0x12] sm:$0xff] }
  0x1d   : > { %v13564_v38 = vld [vmem:[%s17993_s0 + $0x2a] sm:$0xff]  ;;  %v13563_v39 = vld [vmem:[%s17993_s0 + $0x22] sm:$0xff]  ;;  %v13566_v40 = vld [vmem:[%s17993_s0 + $0x3a] sm:$0xff] }
  0x1e   : > { %140 = vperm.xlu1 %17810, %v18014_v8   ;;  %135 = vperm.xlu0 %17809, %v18017_v9   ;;  %v13565_v41 = vld [vmem:[%s17993_s0 + $0x32] sm:$0xff]  ;;  %v13568_v42 = vld [vmem:[%s17993_s0 + $0x4a] sm:$0xff]  ;;  %v13567_v43 = vld [vmem:[%s17993_s0 + $0x42] sm:$0xff] }
  0x1f   : > { %v13570_v44 = vld [vmem:[%s17993_s0 + $0x5a] sm:$0xff]  ;;  %v13569_v45 = vld [vmem:[%s17993_s0 + $0x52] sm:$0xff]  ;;  %v13572_v46 = vld [vmem:[%s17993_s0 + $0x6a] sm:$0xff] }
  0x20   : > { %v13571_v47 = vld [vmem:[%s17993_s0 + $0x62] sm:$0xff]  ;;  %v13574_v48 = vld [vmem:[%s17993_s0 + $0x7a] sm:$0xff]  ;;  %v13573_v49 = vld [vmem:[%s17993_s0 + $0x72] sm:$0xff] }
  0x21   : > { %v13578_v50 = vld [vmem:[%s17993_s0 + $0xb] sm:$0xff]  ;;  %v13577_v51 = vld [vmem:[%s17993_s0 + $0x3] sm:$0xff]  ;;  %v13580_v52 = vld [vmem:[%s17993_s0 + $0x1b] sm:$0xff] }
  0x22   : > { %150 = vperm.xlu1 %17810, %v18022_v10   ;;  %145 = vperm.xlu0 %17809, %v18025_v11   ;;  %v13579_v53 = vld [vmem:[%s17993_s0 + $0x13] sm:$0xff]  ;;  %v13582_v54 = vld [vmem:[%s17993_s0 + $0x2b] sm:$0xff]  ;;  %v13581_v55 = vld [vmem:[%s17993_s0 + $0x23] sm:$0xff] }
  0x23   : > { %v13584_v56 = vld [vmem:[%s17993_s0 + $0x3b] sm:$0xff]  ;;  %v13583_v57 = vld [vmem:[%s17993_s0 + $0x33] sm:$0xff]  ;;  %v13586_v58 = vld [vmem:[%s17993_s0 + $0x4b] sm:$0xff] }
  0x24   : > { %v13585_v59 = vld [vmem:[%s17993_s0 + $0x43] sm:$0xff]  ;;  %v13588_v60 = vld [vmem:[%s17993_s0 + $0x5b] sm:$0xff]  ;;  %v13587_v61 = vld [vmem:[%s17993_s0 + $0x53] sm:$0xff] }
  0x25   : > { %v13590_v62 = vld [vmem:[%s17993_s0 + $0x6b] sm:$0xff]  ;;  %v13589_v63 = vld [vmem:[%s17993_s0 + $0x63] sm:$0xff]  ;;  %v13592_v0 = vld [vmem:[%s17993_s0 + $0x7b] sm:$0xff] }
  0x26   : > { %160 = vperm.xlu1 %17810, %v18030_v12   ;;  %155 = vperm.xlu0 %17809, %v18033_v13   ;;  %v13591_v1 = vld [vmem:[%s17993_s0 + $0x73] sm:$0xff] }
  0x2a   : > { %170 = vperm.xlu1 %17810, %v18038_v14   ;;  %165 = vperm.xlu0 %17809, %v18041_v15  }
  0x2e   : > { %180 = vperm.xlu1 %17810, %v18046_v16   ;;  %175 = vperm.xlu0 %17809, %v18049_v17  }
  0x32   : > { %245 = vperm.xlu1 %17810, %v13542_v18   ;;  %240 = vperm.xlu0 %17809, %v13541_v19   ;;  %v13596_v18 = vld [vmem:[%s17993_s0 + $0x16] sm:$0xff]  ;;  %v13595_v19 = vld [vmem:[%s17993_s0 + $0xe] sm:$0xff] }
  0x36   : > { %255 = vperm.xlu1 %17810, %v18056_v20   ;;  %250 = vperm.xlu0 %17809, %v18059_v21  }
  0x3a   : > { %265 = vperm.xlu1 %17810, %v18064_v22   ;;  %260 = vperm.xlu0 %17809, %v18067_v23  }
  0x3e   : > { %275 = vperm.xlu1 %17810, %v18072_v24   ;;  %270 = vperm.xlu0 %17809, %v18075_v25  }
  0x42   : > { %285 = vperm.xlu1 %17810, %v18080_v26   ;;  %280 = vperm.xlu0 %17809, %v18083_v27  }
  0x46   : > { %295 = vperm.xlu1 %17810, %v18088_v28   ;;  %290 = vperm.xlu0 %17809, %v18091_v29  }
  0x4a   : > { %305 = vperm.xlu1 %17810, %v18096_v30   ;;  %300 = vperm.xlu0 %17809, %v18099_v31  }
  0x4e   : > { %315 = vperm.xlu1 %17810, %v18104_v32   ;;  %310 = vperm.xlu0 %17809, %v18107_v33  }
  0x52   : > { %380 = vperm.xlu1 %17810, %v13560_v34   ;;  %375 = vperm.xlu0 %17809, %v13559_v35  }
  0x56   : > { %390 = vperm.xlu1 %17810, %v13562_v36   ;;  %385 = vperm.xlu0 %17809, %v13561_v37   ;;  %v18154_v36 = vld [vmem:[%s17993_s0 + $0x26] sm:$0xff]  ;;  %v18157_v37 = vld [vmem:[%s17993_s0 + $0x1e] sm:$0xff] }
  0x5a   : > { %400 = vperm.xlu1 %17810, %v13564_v38   ;;  %395 = vperm.xlu0 %17809, %v13563_v39  }
  0x5e   : > { %410 = vperm.xlu1 %17810, %v13566_v40   ;;  %405 = vperm.xlu0 %17809, %v13565_v41   ;;  %v18166_v40 = vld [vmem:[%s17993_s0 + $0x36] sm:$0xff]  ;;  %v18169_v41 = vld [vmem:[%s17993_s0 + $0x2e] sm:$0xff] }
  0x62   : > { %420 = vperm.xlu1 %17810, %v13568_v42   ;;  %415 = vperm.xlu0 %17809, %v13567_v43  }
  0x66   : > { %430 = vperm.xlu1 %17810, %v13570_v44   ;;  %425 = vperm.xlu0 %17809, %v13569_v45   ;;  %v18178_v44 = vld [vmem:[%s17993_s0 + $0x46] sm:$0xff]  ;;  %v18181_v45 = vld [vmem:[%s17993_s0 + $0x3e] sm:$0xff] }
  0x6a   : > { %440 = vperm.xlu1 %17810, %v13572_v46   ;;  %435 = vperm.xlu0 %17809, %v13571_v47  }
  0x6e   : > { %450 = vperm.xlu1 %17810, %v13574_v48   ;;  %445 = vperm.xlu0 %17809, %v13573_v49   ;;  %v18190_v48 = vld [vmem:[%s17993_s0 + $0x56] sm:$0xff]  ;;  %v18193_v49 = vld [vmem:[%s17993_s0 + $0x4e] sm:$0xff] }
  0x72   : > { %515 = vperm.xlu1 %17810, %v13578_v50   ;;  %510 = vperm.xlu0 %17809, %v13577_v51  }
  0x76   : > { %525 = vperm.xlu1 %17810, %v13580_v52   ;;  %520 = vperm.xlu0 %17809, %v13579_v53   ;;  %v18202_v52 = vld [vmem:[%s17993_s0 + $0x66] sm:$0xff]  ;;  %v18205_v53 = vld [vmem:[%s17993_s0 + $0x5e] sm:$0xff] }
  0x7a   : > { %535 = vperm.xlu1 %17810, %v13582_v54   ;;  %530 = vperm.xlu0 %17809, %v13581_v55  }
  0x7e   : > { %545 = vperm.xlu1 %17810, %v13584_v56   ;;  %540 = vperm.xlu0 %17809, %v13583_v57   ;;  %v18214_v56 = vld [vmem:[%s17993_s0 + $0x76] sm:$0xff]  ;;  %v18217_v57 = vld [vmem:[%s17993_s0 + $0x6e] sm:$0xff] }
  0x82   : > { %555 = vperm.xlu1 %17810, %v13586_v58   ;;  %550 = vperm.xlu0 %17809, %v13585_v59  }
  0x86   : > { %565 = vperm.xlu1 %17810, %v13588_v60   ;;  %560 = vperm.xlu0 %17809, %v13587_v61   ;;  %v18226_v60 = vld [vmem:[%s17993_s0 + $0x86] sm:$0xff]  ;;  %v18229_v61 = vld [vmem:[%s17993_s0 + $0x7e] sm:$0xff] }
  0x8a   : > { %575 = vperm.xlu1 %17810, %v13590_v62   ;;  %570 = vperm.xlu0 %17809, %v13589_v63  }
  0x8d   : > { %v18143_v3 = vpop.permute.xlu1 %115  ;;  %v18145_v5 = vpop.permute.xlu0 %105 }
  0x8e   : > { %585 = vperm.xlu1 %17810, %v13592_v0   ;;  %580 = vperm.xlu0 %17809, %v13591_v1   ;;  %v13614_v0 = vld [vmem:[%s17993_s0 + $0x17] sm:$0xff]  ;;  %v13613_v1 = vld [vmem:[%s17993_s0 + $0xf] sm:$0xff] }
  0x91   : > { %v18149_v34 = vpop.permute.xlu1 %120  ;;  %v18151_v35 = vpop.permute.xlu0 %110 }
  0x92   : > { %23446 = vst [vmem:[#allocation6_spill] sm:$0xff] %v18149_v34  ;;  %23447 = vst [vmem:[#allocation7_spill] sm:$0xff] %v18151_v35  ;;  %650 = vperm.xlu1 %17810, %v13596_v18   ;;  %645 = vperm.xlu0 %17809, %v13595_v19  }
  0x95   : > { %v18159_v38 = vpop.permute.xlu1 %130  ;;  %v18161_v39 = vpop.permute.xlu0 %125 }
  0x96   : > { %23448 = vst [vmem:[#allocation8_spill] sm:$0xff] %v18159_v38  ;;  %23449 = vst [vmem:[#allocation9_spill] sm:$0xff] %v18161_v39  ;;  %660 = vperm.xlu1 %17810, %v18154_v36   ;;  %655 = vperm.xlu0 %17809, %v18157_v37   ;;  %v18316_v39 = vld [vmem:[%s17993_s0 + $0x87] sm:$0xff] }
  0x99   : > { %v18171_v42 = vpop.permute.xlu1 %140  ;;  %v18173_v43 = vpop.permute.xlu0 %135 }
  0x9a   : > { %23450 = vst [vmem:[#allocation10_spill] sm:$0xff] %v18171_v42  ;;  %23451 = vst [vmem:[#allocation11_spill] sm:$0xff] %v18173_v43  ;;  %670 = vperm.xlu1 %17810, %v18166_v40   ;;  %665 = vperm.xlu0 %17809, %v18169_v41  }
  0x9d   : > { %v18183_v46 = vpop.permute.xlu1 %150  ;;  %v18185_v47 = vpop.permute.xlu0 %145 }
  0x9e   : > { %23452 = vst [vmem:[#allocation12_spill] sm:$0xff] %v18183_v46  ;;  %23453 = vst [vmem:[#allocation13_spill] sm:$0xff] %v18185_v47  ;;  %680 = vperm.xlu1 %17810, %v18178_v44   ;;  %675 = vperm.xlu0 %17809, %v18181_v45  }
  0xa1   : > { %v18195_v50 = vpop.permute.xlu1 %160  ;;  %v18197_v51 = vpop.permute.xlu0 %155 }
  0xa2   : > { %23454 = vst [vmem:[#allocation14_spill] sm:$0xff] %v18195_v50  ;;  %23455 = vst [vmem:[#allocation15_spill] sm:$0xff] %v18197_v51  ;;  %690 = vperm.xlu1 %17810, %v18190_v48   ;;  %685 = vperm.xlu0 %17809, %v18193_v49  }
  0xa5   : > { %v18207_v54 = vpop.permute.xlu1 %170  ;;  %v18209_v55 = vpop.permute.xlu0 %165 }
  0xa6   : > { %23456 = vst [vmem:[#allocation16_spill] sm:$0xff] %v18207_v54  ;;  %23457 = vst [vmem:[#allocation17_spill] sm:$0xff] %v18209_v55  ;;  %700 = vperm.xlu1 %17810, %v18202_v52   ;;  %695 = vperm.xlu0 %17809, %v18205_v53  }
  0xa9   : > { %v18219_v58 = vpop.permute.xlu1 %180  ;;  %v18221_v59 = vpop.permute.xlu0 %175 }
  0xaa   : > { %23458 = vst [vmem:[#allocation18_spill] sm:$0xff] %v18219_v58  ;;  %23459 = vst [vmem:[#allocation19_spill] sm:$0xff] %v18221_v59  ;;  %710 = vperm.xlu1 %17810, %v18214_v56   ;;  %705 = vperm.xlu0 %17809, %v18217_v57   ;;  %v18244_v59 = vld [vmem:[%s17993_s0 + $0x27] sm:$0xff]  ;;  %v18247_v58 = vld [vmem:[%s17993_s0 + $0x1f] sm:$0xff] }
  0xad   : > { %v18231_v62 = vpop.permute.xlu1 %245  ;;  %v18233_v63 = vpop.permute.xlu0 %240 }
  0xae   : > { %23460 = vst [vmem:[#allocation20_spill] sm:$0xff] %v18231_v62  ;;  %23461 = vst [vmem:[#allocation21_spill] sm:$0xff] %v18233_v63  ;;  %720 = vperm.xlu1 %17810, %v18226_v60   ;;  %715 = vperm.xlu0 %17809, %v18229_v61  }
  0xb1   : > { %v18239_v18 = vpop.permute.xlu1 %255  ;;  %v18241_v19 = vpop.permute.xlu0 %250 }
  0xb2   : > { %23462 = vst [vmem:[#allocation22_spill] sm:$0xff] %v18239_v18  ;;  %23463 = vst [vmem:[#allocation23_spill] sm:$0xff] %v18241_v19  ;;  %785 = vperm.xlu1 %17810, %v13614_v0   ;;  %780 = vperm.xlu0 %17809, %v13613_v1   ;;  %v18256_v18 = vld [vmem:[%s17993_s0 + $0x37] sm:$0xff]  ;;  %v18259_v19 = vld [vmem:[%s17993_s0 + $0x2f] sm:$0xff] }
  0xb5   : > { %v18249_v55 = vpop.permute.xlu1 %265  ;;  %v18251_v54 = vpop.permute.xlu0 %260 }
  0xb6   : > { %23464 = vst [vmem:[#allocation24_spill] sm:$0xff] %v18249_v55  ;;  %23465 = vst [vmem:[#allocation25_spill] sm:$0xff] %v18251_v54  ;;  %795 = vperm.xlu1 %17810, %v18244_v59   ;;  %790 = vperm.xlu0 %17809, %v18247_v58   ;;  %v18268_v54 = vld [vmem:[%s17993_s0 + $0x47] sm:$0xff]  ;;  %v18271_v55 = vld [vmem:[%s17993_s0 + $0x3f] sm:$0xff] }
  0xb9   : > { %v18261_v0 = vpop.permute.xlu1 %275  ;;  %v18263_v1 = vpop.permute.xlu0 %270 }
  0xba   : > { %23466 = vst [vmem:[#allocation26_spill] sm:$0xff] %v18261_v0  ;;  %23467 = vst [vmem:[#allocation27_spill] sm:$0xff] %v18263_v1  ;;  %805 = vperm.xlu1 %17810, %v18256_v18   ;;  %800 = vperm.xlu0 %17809, %v18259_v19   ;;  %v18280_v1 = vld [vmem:[%s17993_s0 + $0x57] sm:$0xff]  ;;  %v18283_v0 = vld [vmem:[%s17993_s0 + $0x4f] sm:$0xff] }
  0xbd   : > { %v18273_v51 = vpop.permute.xlu1 %285  ;;  %v18275_v63 = vpop.permute.xlu0 %280 }
  0xbe   : > { %23468 = vst [vmem:[#allocation28_spill] sm:$0xff] %v18273_v51  ;;  %23469 = vst [vmem:[#allocation29_spill] sm:$0xff] %v18275_v63  ;;  %815 = vperm.xlu1 %17810, %v18268_v54   ;;  %810 = vperm.xlu0 %17809, %v18271_v55   ;;  %v18292_v63 = vld [vmem:[%s17993_s0 + $0x67] sm:$0xff]  ;;  %v18295_v51 = vld [vmem:[%s17993_s0 + $0x5f] sm:$0xff] }
  0xc1   : > { %v18285_v50 = vpop.permute.xlu1 %295  ;;  %v18287_v47 = vpop.permute.xlu0 %290 }
  0xc2   : > { %23470 = vst [vmem:[#allocation30_spill] sm:$0xff] %v18285_v50  ;;  %23471 = vst [vmem:[#allocation31_spill] sm:$0xff] %v18287_v47  ;;  %825 = vperm.xlu1 %17810, %v18280_v1   ;;  %820 = vperm.xlu0 %17809, %v18283_v0   ;;  %v18304_v50 = vld [vmem:[%s17993_s0 + $0x77] sm:$0xff]  ;;  %v18307_v47 = vld [vmem:[%s17993_s0 + $0x6f] sm:$0xff] }
  0xc5   : > { %v18297_v46 = vpop.permute.xlu1 %305  ;;  %v18299_v62 = vpop.permute.xlu0 %300 }
  0xc6   : > { %23472 = vst [vmem:[#allocation32_spill] sm:$0xff] %v18297_v46  ;;  %23473 = vst [vmem:[#allocation33_spill] sm:$0xff] %v18299_v62  ;;  %835 = vperm.xlu1 %17810, %v18292_v63   ;;  %830 = vperm.xlu0 %17809, %v18295_v51   ;;  %v18319_v46 = vld [vmem:[%s17993_s0 + $0x7f] sm:$0xff] }
  0xc9   : > { %v18309_v43 = vpop.permute.xlu1 %315  ;;  %v18311_v42 = vpop.permute.xlu0 %310 }
  0xca   : > { %23474 = vst [vmem:[#allocation34_spill] sm:$0xff] %v18309_v43  ;;  %23475 = vst [vmem:[#allocation35_spill] sm:$0xff] %v18311_v42  ;;  %845 = vperm.xlu1 %17810, %v18304_v50   ;;  %840 = vperm.xlu0 %17809, %v18307_v47  }
  0xcd   : > { %v18321_v62 = vpop.permute.xlu1 %380  ;;  %v18323_v38 = vpop.permute.xlu0 %375 }
  0xce   : > { %23476 = vst [vmem:[#allocation36_spill] sm:$0xff] %v18321_v62  ;;  %23477 = vst [vmem:[#allocation37_spill] sm:$0xff] %v18323_v38  ;;  %855 = vperm.xlu1 %17810, %v18316_v39   ;;  %850 = vperm.xlu0 %17809, %v18319_v46  }
  0xd1   : > { %v18327_v35 = vpop.permute.xlu1 %390  ;;  %v18329_v43 = vpop.permute.xlu0 %385 }
  0xd2   : > { %23478 = vst [vmem:[#allocation38_spill] sm:$0xff] %v18329_v43  ;;  %920 = vperm.xlu1 %17810, %v18001_v4   ;;  %915 = vperm.xlu0 %17809, %v17996_v2  }
  0xd5   : > { %v18333_v42 = vpop.permute.xlu1 %400  ;;  %v18335_v34 = vpop.permute.xlu0 %395 }
  0xd6   : > { %930 = vperm.xlu1 %17810, %v18006_v6   ;;  %925 = vperm.xlu0 %17809, %v18009_v7  }
  0xd9   : > { %v18339_v38 = vpop.permute.xlu1 %410  ;;  %v18341_v62 = vpop.permute.xlu0 %405 }
  0xda   : > { %940 = vperm.xlu1 %17810, %v18014_v8   ;;  %935 = vperm.xlu0 %17809, %v18017_v9  }
  0xdd   : > { %v18345_v43 = vpop.permute.xlu1 %420  ;;  %v18347_v2 = vpop.permute.xlu0 %415 }
  0xde   : > { %950 = vperm.xlu1 %17810, %v18022_v10   ;;  %945 = vperm.xlu0 %17809, %v18025_v11   ;;  %v13646_v11 = vld [vmem:[%s17993_s0 + $0x88] sm:$0xff] }
  0xe1   : > { %v18351_v4 = vpop.permute.xlu1 %430  ;;  %v18353_v6 = vpop.permute.xlu0 %425 }
  0xe2   : > { %23479 = vst [vmem:[#allocation39_spill] sm:$0xff] %v18353_v6  ;;  %960 = vperm.xlu1 %17810, %v18030_v12   ;;  %955 = vperm.xlu0 %17809, %v18033_v13   ;;  %v13645_v12 = vld [vmem:[%s17993_s0 + $0x80] sm:$0xff] }
  0xe5   : > { %v18357_v7 = vpop.permute.xlu1 %440  ;;  %v18359_v8 = vpop.permute.xlu0 %435 }
  0xe6   : > { %23480 = vst [vmem:[#allocation40_spill] sm:$0xff] %v18359_v8  ;;  %970 = vperm.xlu1 %17810, %v18038_v14   ;;  %965 = vperm.xlu0 %17809, %v18041_v15  }
  0xe9   : > { %v18363_v9 = vpop.permute.xlu1 %450  ;;  %v18365_v10 = vpop.permute.xlu0 %445 }
  0xea   : > { %980 = vperm.xlu1 %17810, %v18046_v16   ;;  %975 = vperm.xlu0 %17809, %v18049_v17  }
  0xed   : > { %v18371_v6 = vpop.permute.xlu1 %515  ;;  %v18373_v13 = vpop.permute.xlu0 %510 }
  0xee   : > { %990 = vperm.xlu1 %17810, %v13646_v11   ;;  %985 = vperm.xlu0 %17809, %v13645_v12  }
  0xf1   : > { %v18375_v8 = vpop.permute.xlu1 %525  ;;  %v18377_v14 = vpop.permute.xlu0 %520 }
  0xf2   : > { %1055 = vperm.xlu1 %17810, %v18056_v20   ;;  %1050 = vperm.xlu0 %17809, %v18059_v21  }
  0xf5   : > { %v18381_v15 = vpop.permute.xlu1 %535  ;;  %v18383_v16 = vpop.permute.xlu0 %530 }
  0xf6   : > { %1065 = vperm.xlu1 %17810, %v18064_v22   ;;  %1060 = vperm.xlu0 %17809, %v18067_v23  }
  0xf9   : > { %v18387_v17 = vpop.permute.xlu1 %545  ;;  %v18389_v11 = vpop.permute.xlu0 %540 }
  0xfa   : > { %23481 = vst [vmem:[#allocation41_spill] sm:$0xff] %v18387_v17  ;;  %23482 = vst [vmem:[#allocation42_spill] sm:$0xff] %v18389_v11  ;;  %1075 = vperm.xlu1 %17810, %v18072_v24   ;;  %1070 = vperm.xlu0 %17809, %v18075_v25  }
  0xfd   : > { %v18393_v12 = vpop.permute.xlu1 %555  ;;  %v18395_v20 = vpop.permute.xlu0 %550 }
  0xfe   : > { %23483 = vst [vmem:[#allocation43_spill] sm:$0xff] %v18393_v12  ;;  %23484 = vst [vmem:[#allocation44_spill] sm:$0xff] %v18395_v20  ;;  %1085 = vperm.xlu1 %17810, %v18080_v26   ;;  %1080 = vperm.xlu0 %17809, %v18083_v27   ;;  %v13664_v27 = vld [vmem:[%s17993_s0 + $0x89] sm:$0xff] }
  0xff   : > { %v13757_v12 = vld [vmem:[%s17993_s0 + $0x2b] sm:$0xff] }
 0x101   : > { %v18399_v21 = vpop.permute.xlu1 %565  ;;  %v18401_v22 = vpop.permute.xlu0 %560 }
 0x102   : > { %23485 = vst [vmem:[#allocation45_spill] sm:$0xff] %v18399_v21  ;;  %23486 = vst [vmem:[#allocation46_spill] sm:$0xff] %v18401_v22  ;;  %1095 = vperm.xlu1 %17810, %v18088_v28   ;;  %1090 = vperm.xlu0 %17809, %v18091_v29   ;;  %v13663_v28 = vld [vmem:[%s17993_s0 + $0x81] sm:$0xff] }
 0x105   : > { %v18405_v23 = vpop.permute.xlu1 %575  ;;  %v18407_v24 = vpop.permute.xlu0 %570 }
 0x106   : > { %23487 = vst [vmem:[#allocation47_spill] sm:$0xff] %v18405_v23  ;;  %23488 = vst [vmem:[#allocation48_spill] sm:$0xff] %v18407_v24  ;;  %1105 = vperm.xlu1 %17810, %v18096_v30   ;;  %1100 = vperm.xlu0 %17809, %v18099_v31   ;;  %v13668_v30 = vld [vmem:[%s17993_s0 + $0x24] sm:$0xff]  ;;  %v13667_v31 = vld [vmem:[%s17993_s0 + $0x1c] sm:$0xff] }
 0x109   : > { %v18411_v25 = vpop.permute.xlu1 %585  ;;  %v18413_v26 = vpop.permute.xlu0 %580 }
 0x10a   : > { %23489 = vst [vmem:[#allocation49_spill] sm:$0xff] %v18411_v25  ;;  %23490 = vst [vmem:[#allocation50_spill] sm:$0xff] %v18413_v26  ;;  %1115 = vperm.xlu1 %17810, %v18104_v32   ;;  %1110 = vperm.xlu0 %17809, %v18107_v33   ;;  %v18430_v32 = vld [vmem:[%s17993_s0 + $0x34] sm:$0xff]  ;;  %v18433_v33 = vld [vmem:[%s17993_s0 + $0x2c] sm:$0xff] }
 0x10b   : > { %23495 = vst [vmem:[#allocation55_spill] sm:$0xff] %v18430_v32  ;;  %23496 = vst [vmem:[#allocation56_spill] sm:$0xff] %v18433_v33 }
 0x10d   : > { %v18419_v29 = vpop.permute.xlu1 %650  ;;  %v18421_v24 = vpop.permute.xlu0 %645 }
 0x10e   : > { %23491 = vst [vmem:[#allocation51_spill] sm:$0xff] %v18419_v29  ;;  %23492 = vst [vmem:[#allocation52_spill] sm:$0xff] %v18421_v24  ;;  %1125 = vperm.xlu1 %17810, %v13664_v27   ;;  %1120 = vperm.xlu0 %17809, %v13663_v28   ;;  %v18442_v27 = vld [vmem:[%s17993_s0 + $0x44] sm:$0xff]  ;;  %v18445_v28 = vld [vmem:[%s17993_s0 + $0x3c] sm:$0xff] }
 0x10f   : > { %23499 = vst [vmem:[#allocation59_spill] sm:$0xff] %v18442_v27  ;;  %23500 = vst [vmem:[#allocation60_spill] sm:$0xff] %v18445_v28 }
 0x111   : > { %v18425_v25 = vpop.permute.xlu1 %660  ;;  %v18427_v26 = vpop.permute.xlu0 %655 }
 0x112   : > { %23493 = vst [vmem:[#allocation53_spill] sm:$0xff] %v18425_v25  ;;  %23494 = vst [vmem:[#allocation54_spill] sm:$0xff] %v18427_v26  ;;  %1190 = vperm.xlu1 %17810, %v13668_v30   ;;  %1185 = vperm.xlu0 %17809, %v13667_v31  }
 0x115   : > { %v18435_v29 = vpop.permute.xlu1 %670  ;;  %v18437_v24 = vpop.permute.xlu0 %665 }
 0x116   : > { %23497 = vst [vmem:[#allocation57_spill] sm:$0xff] %v18435_v29  ;;  %23498 = vst [vmem:[#allocation58_spill] sm:$0xff] %v18437_v24  ;;  %1200 = vperm.xlu1 %17810, %v18430_v32   ;;  %1195 = vperm.xlu0 %17809, %v18433_v33   ;;  %v18454_v24 = vld [vmem:[%s17993_s0 + $0x54] sm:$0xff]  ;;  %v18457_v29 = vld [vmem:[%s17993_s0 + $0x4c] sm:$0xff] }
 0x117   : > { %23503 = vst [vmem:[#allocation63_spill] sm:$0xff] %v18454_v24  ;;  %23504 = vst [vmem:[#allocation64_spill] sm:$0xff] %v18457_v29 }
 0x119   : > { %v18447_v30 = vpop.permute.xlu1 %680  ;;  %v18449_v31 = vpop.permute.xlu0 %675 }
 0x11a   : > { %23501 = vst [vmem:[#allocation61_spill] sm:$0xff] %v18447_v30  ;;  %23502 = vst [vmem:[#allocation62_spill] sm:$0xff] %v18449_v31  ;;  %1210 = vperm.xlu1 %17810, %v18442_v27   ;;  %1205 = vperm.xlu0 %17809, %v18445_v28   ;;  %v18466_v31 = vld [vmem:[%s17993_s0 + $0x64] sm:$0xff]  ;;  %v18469_v30 = vld [vmem:[%s17993_s0 + $0x5c] sm:$0xff] }
 0x11b   : > { %23507 = vst [vmem:[#allocation67_spill] sm:$0xff] %v18466_v31  ;;  %23508 = vst [vmem:[#allocation68_spill] sm:$0xff] %v18469_v30 }
 0x11d   : > { %v18459_v32 = vpop.permute.xlu1 %690  ;;  %v18461_v33 = vpop.permute.xlu0 %685 }
 0x11e   : > { %23505 = vst [vmem:[#allocation65_spill] sm:$0xff] %v18459_v32  ;;  %23506 = vst [vmem:[#allocation66_spill] sm:$0xff] %v18461_v33  ;;  %1220 = vperm.xlu1 %17810, %v18454_v24   ;;  %1215 = vperm.xlu0 %17809, %v18457_v29   ;;  %v18478_v33 = vld [vmem:[%s17993_s0 + $0x74] sm:$0xff]  ;;  %v18481_v32 = vld [vmem:[%s17993_s0 + $0x6c] sm:$0xff] }
 0x11f   : > { %23511 = vst [vmem:[#allocation71_spill] sm:$0xff] %v18478_v33  ;;  %23512 = vst [vmem:[#allocation72_spill] sm:$0xff] %v18481_v32 }
 0x121   : > { %v18471_v27 = vpop.permute.xlu1 %700  ;;  %v18473_v28 = vpop.permute.xlu0 %695 }
 0x122   : > { %23509 = vst [vmem:[#allocation69_spill] sm:$0xff] %v18471_v27  ;;  %23510 = vst [vmem:[#allocation70_spill] sm:$0xff] %v18473_v28  ;;  %1230 = vperm.xlu1 %17810, %v18466_v31   ;;  %1225 = vperm.xlu0 %17809, %v18469_v30   ;;  %v18490_v28 = vld [vmem:[%s17993_s0 + $0x84] sm:$0xff]  ;;  %v18493_v27 = vld [vmem:[%s17993_s0 + $0x7c] sm:$0xff] }
 0x123   : > { %23515 = vst [vmem:[#allocation75_spill] sm:$0xff] %v18490_v28  ;;  %23516 = vst [vmem:[#allocation76_spill] sm:$0xff] %v18493_v27 }
 0x125   : > { %v18483_v24 = vpop.permute.xlu1 %710  ;;  %v18485_v29 = vpop.permute.xlu0 %705 }
 0x126   : > { %23513 = vst [vmem:[#allocation73_spill] sm:$0xff] %v18483_v24  ;;  %23514 = vst [vmem:[#allocation74_spill] sm:$0xff] %v18485_v29  ;;  %1240 = vperm.xlu1 %17810, %v18478_v33   ;;  %1235 = vperm.xlu0 %17809, %v18481_v32   ;;  %v13682_v29 = vld [vmem:[%s17993_s0 + $0x94] sm:$0xff]  ;;  %v13681_v24 = vld [vmem:[%s17993_s0 + $0x8c] sm:$0xff] }
 0x127   : > { %v13686_v33 = vld [vmem:[%s17993_s0 + $0x25] sm:$0xff] }
 0x129   : > { %v18495_v31 = vpop.permute.xlu1 %720  ;;  %v18497_v30 = vpop.permute.xlu0 %715 }
 0x12a   : > { %23517 = vst [vmem:[#allocation77_spill] sm:$0xff] %v18495_v31  ;;  %23518 = vst [vmem:[#allocation78_spill] sm:$0xff] %v18497_v30  ;;  %1250 = vperm.xlu1 %17810, %v18490_v28   ;;  %1245 = vperm.xlu0 %17809, %v18493_v27   ;;  %v13685_v31 = vld [vmem:[%s17993_s0 + $0x1d] sm:$0xff]  ;;  %v13688_v27 = vld [vmem:[%s17993_s0 + $0x35] sm:$0xff] }
 0x12b   : > { %v13687_v28 = vld [vmem:[%s17993_s0 + $0x2d] sm:$0xff] }
 0x12d   : > { %v18503_v26 = vpop.permute.xlu1 %785  ;;  %v18505_v32 = vpop.permute.xlu0 %780 }
 0x12e   : > { %23519 = vst [vmem:[#allocation79_spill] sm:$0xff] %v18503_v26  ;;  %23520 = vst [vmem:[#allocation80_spill] sm:$0xff] %v18505_v32  ;;  %1260 = vperm.xlu1 %17810, %v13682_v29   ;;  %1255 = vperm.xlu0 %17809, %v13681_v24   ;;  %v13690_v24 = vld [vmem:[%s17993_s0 + $0x45] sm:$0xff]  ;;  %v13689_v29 = vld [vmem:[%s17993_s0 + $0x3d] sm:$0xff] }
 0x131   : > { %v18509_v25 = vpop.permute.xlu1 %795  ;;  %v18511_v30 = vpop.permute.xlu0 %790 }
 0x132   : > { %23521 = vst [vmem:[#allocation81_spill] sm:$0xff] %v18509_v25  ;;  %23522 = vst [vmem:[#allocation82_spill] sm:$0xff] %v18511_v30  ;;  %1325 = vperm.xlu1 %17810, %v13686_v33   ;;  %1320 = vperm.xlu0 %17809, %v13685_v31   ;;  %v13692_v33 = vld [vmem:[%s17993_s0 + $0x55] sm:$0xff]  ;;  %v13691_v31 = vld [vmem:[%s17993_s0 + $0x4d] sm:$0xff] }
 0x135   : > { %v18515_v23 = vpop.permute.xlu1 %805  ;;  %v18517_v26 = vpop.permute.xlu0 %800 }
 0x136   : > { %23523 = vst [vmem:[#allocation83_spill] sm:$0xff] %v18515_v23  ;;  %23524 = vst [vmem:[#allocation84_spill] sm:$0xff] %v18517_v26  ;;  %1335 = vperm.xlu1 %17810, %v13688_v27   ;;  %1330 = vperm.xlu0 %17809, %v13687_v28   ;;  %v13694_v27 = vld [vmem:[%s17993_s0 + $0x65] sm:$0xff]  ;;  %v13693_v28 = vld [vmem:[%s17993_s0 + $0x5d] sm:$0xff] }
 0x139   : > { %v18521_v32 = vpop.permute.xlu1 %815  ;;  %v18523_v25 = vpop.permute.xlu0 %810 }
 0x13a   : > { %23525 = vst [vmem:[#allocation85_spill] sm:$0xff] %v18521_v32  ;;  %23526 = vst [vmem:[#allocation86_spill] sm:$0xff] %v18523_v25  ;;  %1345 = vperm.xlu1 %17810, %v13690_v24   ;;  %1340 = vperm.xlu0 %17809, %v13689_v29   ;;  %v13696_v24 = vld [vmem:[%s17993_s0 + $0x75] sm:$0xff]  ;;  %v13695_v29 = vld [vmem:[%s17993_s0 + $0x6d] sm:$0xff] }
 0x13d   : > { %v18527_v30 = vpop.permute.xlu1 %825  ;;  %v18529_v23 = vpop.permute.xlu0 %820 }
 0x13e   : > { %23527 = vst [vmem:[#allocation87_spill] sm:$0xff] %v18527_v30  ;;  %23528 = vst [vmem:[#allocation88_spill] sm:$0xff] %v18529_v23  ;;  %1355 = vperm.xlu1 %17810, %v13692_v33   ;;  %1350 = vperm.xlu0 %17809, %v13691_v31   ;;  %v13698_v33 = vld [vmem:[%s17993_s0 + $0x85] sm:$0xff]  ;;  %v13697_v31 = vld [vmem:[%s17993_s0 + $0x7d] sm:$0xff] }
 0x141   : > { %v18533_v26 = vpop.permute.xlu1 %835  ;;  %v18535_v32 = vpop.permute.xlu0 %830 }
 0x142   : > { %23529 = vst [vmem:[#allocation89_spill] sm:$0xff] %v18533_v26  ;;  %23530 = vst [vmem:[#allocation90_spill] sm:$0xff] %v18535_v32  ;;  %1365 = vperm.xlu1 %17810, %v13694_v27   ;;  %1360 = vperm.xlu0 %17809, %v13693_v28   ;;  %v13700_v32 = vld [vmem:[%s17993_s0 + $0x95] sm:$0xff]  ;;  %v13699_v26 = vld [vmem:[%s17993_s0 + $0x8d] sm:$0xff] }
 0x145   : > { %v18539_v25 = vpop.permute.xlu1 %845  ;;  %v18541_v30 = vpop.permute.xlu0 %840 }
 0x146   : > { %23531 = vst [vmem:[#allocation91_spill] sm:$0xff] %v18539_v25  ;;  %23532 = vst [vmem:[#allocation92_spill] sm:$0xff] %v18541_v30  ;;  %1375 = vperm.xlu1 %17810, %v13696_v24   ;;  %1370 = vperm.xlu0 %17809, %v13695_v29   ;;  %v23608_v30 = vld [vmem:[#allocation30_spill] sm:$0xff] }
 0x149   : > { %v18545_v23 = vpop.permute.xlu1 %855  ;;  %v18547_v22 = vpop.permute.xlu0 %850 }
 0x14a   : > { %23533 = vst [vmem:[#allocation93_spill] sm:$0xff] %v18545_v23  ;;  %23534 = vst [vmem:[#allocation94_spill] sm:$0xff] %v18547_v22  ;;  %1385 = vperm.xlu1 %17810, %v13698_v33   ;;  %1380 = vperm.xlu0 %17809, %v13697_v31   ;;  %v23607_v22 = vld [vmem:[#allocation29_spill] sm:$0xff] }
 0x14d   : > { %v18551_v27 = vpop.permute.xlu1 %920  ;;  %v18553_v28 = vpop.permute.xlu0 %915 }
 0x14e   : > { %23535 = vst [vmem:[#allocation95_spill] sm:$0xff] %v18551_v27  ;;  %23536 = vst [vmem:[#allocation96_spill] sm:$0xff] %v18553_v28  ;;  %1395 = vperm.xlu1 %17810, %v13700_v32   ;;  %1390 = vperm.xlu0 %17809, %v13699_v26   ;;  %v23606_v27 = vld [vmem:[#allocation28_spill] sm:$0xff] }
 0x151   : > { %v18555_v25 = vpop.permute.xlu1 %930  ;;  %v18557_v24 = vpop.permute.xlu0 %925 }
 0x152   : > { %23537 = vst [vmem:[#allocation97_spill] sm:$0xff] %v18555_v25  ;;  %23538 = vst [vmem:[#allocation98_spill] sm:$0xff] %v18557_v24  ;;  %1460 = vperm.xlu1 %17810, %v18154_v36   ;;  %1455 = vperm.xlu0 %17809, %v18157_v37  }
 0x155   : > { %v18561_v29 = vpop.permute.xlu1 %940  ;;  %v18563_v33 = vpop.permute.xlu0 %935 }
 0x156   : > { %23539 = vst [vmem:[#allocation99_spill] sm:$0xff] %v18561_v29  ;;  %23540 = vst [vmem:[#allocation100_spill] sm:$0xff] %v18563_v33  ;;  %1470 = vperm.xlu1 %17810, %v18166_v40   ;;  %1465 = vperm.xlu0 %17809, %v18169_v41  }
 0x159   : > { %v18567_v31 = vpop.permute.xlu1 %950  ;;  %v18569_v32 = vpop.permute.xlu0 %945 }
 0x15a   : > { %23541 = vst [vmem:[#allocation101_spill] sm:$0xff] %v18567_v31  ;;  %23542 = vst [vmem:[#allocation102_spill] sm:$0xff] %v18569_v32  ;;  %1480 = vperm.xlu1 %17810, %v18178_v44   ;;  %1475 = vperm.xlu0 %17809, %v18181_v45   ;;  %v23599_v32 = vld [vmem:[#allocation19_spill] sm:$0xff]  ;;  %v23600_v31 = vld [vmem:[#allocation24_spill] sm:$0xff] }
 0x15d   : > { %v18573_v26 = vpop.permute.xlu1 %960  ;;  %v18575_v36 = vpop.permute.xlu0 %955 }
 0x15e   : > { %23543 = vst [vmem:[#allocation103_spill] sm:$0xff] %v18573_v26  ;;  %23544 = vst [vmem:[#allocation104_spill] sm:$0xff] %v18575_v36  ;;  %1490 = vperm.xlu1 %17810, %v18190_v48   ;;  %1485 = vperm.xlu0 %17809, %v18193_v49   ;;  %v13718_v49 = vld [vmem:[%s17993_s0 + $0x96] sm:$0xff]  ;;  %v23595_v36 = vld [vmem:[#allocation22_spill] sm:$0xff] }
 0x15f   : > { %v23596_v26 = vld [vmem:[#allocation23_spill] sm:$0xff] }
 0x161   : > { %v18579_v37 = vpop.permute.xlu1 %970  ;;  %v18581_v40 = vpop.permute.xlu0 %965 }
 0x162   : > { %23545 = vst [vmem:[#allocation105_spill] sm:$0xff] %v18579_v37  ;;  %23546 = vst [vmem:[#allocation106_spill] sm:$0xff] %v18581_v40  ;;  %1500 = vperm.xlu1 %17810, %v18202_v52   ;;  %1495 = vperm.xlu0 %17809, %v18205_v53   ;;  %v13717_v52 = vld [vmem:[%s17993_s0 + $0x8e] sm:$0xff] }
 0x163   : > { %v23594_v37 = vld [vmem:[#allocation16_spill] sm:$0xff] }
 0x165   : > { %v18585_v41 = vpop.permute.xlu1 %980  ;;  %v18587_v44 = vpop.permute.xlu0 %975 }
 0x166   : > { %23547 = vst [vmem:[#allocation107_spill] sm:$0xff] %v18585_v41  ;;  %23548 = vst [vmem:[#allocation108_spill] sm:$0xff] %v18587_v44  ;;  %1510 = vperm.xlu1 %17810, %v18214_v56   ;;  %1505 = vperm.xlu0 %17809, %v18217_v57   ;;  %v23593_v41 = vld [vmem:[#allocation15_spill] sm:$0xff] }
 0x169   : > { %v18591_v45 = vpop.permute.xlu1 %990  ;;  %v18593_v48 = vpop.permute.xlu0 %985 }
 0x16a   : > { %23549 = vst [vmem:[#allocation109_spill] sm:$0xff] %v18591_v45  ;;  %23550 = vst [vmem:[#allocation110_spill] sm:$0xff] %v18593_v48  ;;  %1520 = vperm.xlu1 %17810, %v18226_v60   ;;  %1515 = vperm.xlu0 %17809, %v18229_v61   ;;  %v23592_v48 = vld [vmem:[#allocation21_spill] sm:$0xff] }
 0x16b   : > { %v13752_v45 = vld [vmem:[%s17993_s0 + $0x92] sm:$0xff] }
 0x16d   : > { %v18599_v40 = vpop.permute.xlu1 %1055  ;;  %v18601_v53 = vpop.permute.xlu0 %1050 }
 0x16e   : > { %23551 = vst [vmem:[#allocation111_spill] sm:$0xff] %v18599_v40  ;;  %23552 = vst [vmem:[#allocation112_spill] sm:$0xff] %v18601_v53  ;;  %1530 = vperm.xlu1 %17810, %v13718_v49   ;;  %1525 = vperm.xlu0 %17809, %v13717_v52   ;;  %v23590_v53 = vld [vmem:[#allocation13_spill] sm:$0xff]  ;;  %v23591_v40 = vld [vmem:[#allocation14_spill] sm:$0xff] }
 0x171   : > { %v18603_v44 = vpop.permute.xlu1 %1065  ;;  %v18605_v56 = vpop.permute.xlu0 %1060 }
 0x172   : > { %23553 = vst [vmem:[#allocation113_spill] sm:$0xff] %v18603_v44  ;;  %23554 = vst [vmem:[#allocation114_spill] sm:$0xff] %v18605_v56  ;;  %1595 = vperm.xlu1 %17810, %v18244_v59   ;;  %1590 = vperm.xlu0 %17809, %v18247_v58   ;;  %v23588_v56 = vld [vmem:[#allocation20_spill] sm:$0xff] }
 0x175   : > { %v18609_v57 = vpop.permute.xlu1 %1075  ;;  %v18611_v60 = vpop.permute.xlu0 %1070 }
 0x176   : > { %23555 = vst [vmem:[#allocation115_spill] sm:$0xff] %v18609_v57  ;;  %23556 = vst [vmem:[#allocation116_spill] sm:$0xff] %v18611_v60  ;;  %1605 = vperm.xlu1 %17810, %v18256_v18   ;;  %1600 = vperm.xlu0 %17809, %v18259_v19   ;;  %v23587_v57 = vld [vmem:[#allocation11_spill] sm:$0xff] }
 0x179   : > { %v18615_v61 = vpop.permute.xlu1 %1085  ;;  %v18617_v49 = vpop.permute.xlu0 %1080 }
 0x17a   : > { %23557 = vst [vmem:[#allocation117_spill] sm:$0xff] %v18615_v61  ;;  %23558 = vst [vmem:[#allocation118_spill] sm:$0xff] %v18617_v49  ;;  %1615 = vperm.xlu1 %17810, %v18268_v54   ;;  %1610 = vperm.xlu0 %17809, %v18271_v55   ;;  %v23586_v61 = vld [vmem:[#allocation10_spill] sm:$0xff] }
 0x17d   : > { %v18621_v52 = vpop.permute.xlu1 %1095  ;;  %v18623_v58 = vpop.permute.xlu0 %1090 }
 0x17e   : > { %23559 = vst [vmem:[#allocation119_spill] sm:$0xff] %v18621_v52  ;;  %23560 = vst [vmem:[#allocation120_spill] sm:$0xff] %v18623_v58  ;;  %1625 = vperm.xlu1 %17810, %v18280_v1   ;;  %1620 = vperm.xlu0 %17809, %v18283_v0   ;;  %v23582_v58 = vld [vmem:[#allocation8_spill] sm:$0xff] }
 0x181   : > { %v18627_v59 = vpop.permute.xlu1 %1105  ;;  %v18629_v18 = vpop.permute.xlu0 %1100 }
 0x182   : > { %23561 = vst [vmem:[#allocation121_spill] sm:$0xff] %v18627_v59  ;;  %23562 = vst [vmem:[#allocation122_spill] sm:$0xff] %v18629_v18  ;;  %1635 = vperm.xlu1 %17810, %v18292_v63   ;;  %1630 = vperm.xlu0 %17809, %v18295_v51   ;;  %v13736_v51 = vld [vmem:[%s17993_s0 + $0x97] sm:$0xff]  ;;  %v13735_v63 = vld [vmem:[%s17993_s0 + $0x8f] sm:$0xff] }
 0x183   : > { %v23581_v59 = vld [vmem:[#allocation7_spill] sm:$0xff] }
 0x185   : > { %v18633_v54 = vpop.permute.xlu1 %1115  ;;  %v18635_v55 = vpop.permute.xlu0 %1110 }
 0x186   : > { %23563 = vst [vmem:[#allocation123_spill] sm:$0xff] %v18633_v54  ;;  %23564 = vst [vmem:[#allocation124_spill] sm:$0xff] %v18635_v55  ;;  %1645 = vperm.xlu1 %17810, %v18304_v50   ;;  %1640 = vperm.xlu0 %17809, %v18307_v47   ;;  %v13740_v47 = vld [vmem:[%s17993_s0 + $0x32] sm:$0xff]  ;;  %v13739_v50 = vld [vmem:[%s17993_s0 + $0x2a] sm:$0xff] }
 0x189   : > { %v18639_v19 = vpop.permute.xlu1 %1125  ;;  %v18641_v0 = vpop.permute.xlu0 %1120 }
 0x18a   : > { %23565 = vst [vmem:[#allocation125_spill] sm:$0xff] %v18639_v19  ;;  %23566 = vst [vmem:[#allocation126_spill] sm:$0xff] %v18641_v0  ;;  %1655 = vperm.xlu1 %17810, %v18316_v39   ;;  %1650 = vperm.xlu0 %17809, %v18319_v46   ;;  %v13742_v39 = vld [vmem:[%s17993_s0 + $0x42] sm:$0xff]  ;;  %v13741_v46 = vld [vmem:[%s17993_s0 + $0x3a] sm:$0xff] }
 0x18d   : > { %v18647_v1 = vpop.permute.xlu1 %1190  ;;  %v18649_v55 = vpop.permute.xlu0 %1185 }
 0x18e   : > { %23567 = vst [vmem:[#allocation127_spill] sm:$0xff] %v18647_v1  ;;  %23568 = vst [vmem:[#allocation128_spill] sm:$0xff] %v18649_v55  ;;  %1665 = vperm.xlu1 %17810, %v13736_v51   ;;  %1660 = vperm.xlu0 %17809, %v13735_v63   ;;  %v13744_v51 = vld [vmem:[%s17993_s0 + $0x52] sm:$0xff]  ;;  %v13743_v63 = vld [vmem:[%s17993_s0 + $0x4a] sm:$0xff] }
 0x191   : > { %v18653_v54 = vpop.permute.xlu1 %1200  ;;  %v18655_v0 = vpop.permute.xlu0 %1195 }
 0x192   : > { %23569 = vst [vmem:[#allocation129_spill] sm:$0xff] %v18653_v54  ;;  %23570 = vst [vmem:[#allocation130_spill] sm:$0xff] %v18655_v0  ;;  %1730 = vperm.xlu1 %17810, %v13740_v47   ;;  %1725 = vperm.xlu0 %17809, %v13739_v50   ;;  %v13746_v47 = vld [vmem:[%s17993_s0 + $0x62] sm:$0xff]  ;;  %v13745_v50 = vld [vmem:[%s17993_s0 + $0x5a] sm:$0xff] }
 0x195   : > { %v18659_v19 = vpop.permute.xlu1 %1210  ;;  %v18661_v1 = vpop.permute.xlu0 %1205 }
 0x196   : > { %23571 = vst [vmem:[#allocation131_spill] sm:$0xff] %v18659_v19  ;;  %23572 = vst [vmem:[#allocation132_spill] sm:$0xff] %v18661_v1  ;;  %1740 = vperm.xlu1 %17810, %v13742_v39   ;;  %1735 = vperm.xlu0 %17809, %v13741_v46   ;;  %v13748_v39 = vld [vmem:[%s17993_s0 + $0x72] sm:$0xff]  ;;  %v13747_v46 = vld [vmem:[%s17993_s0 + $0x6a] sm:$0xff] }
 0x199   : > { %v18665_v55 = vpop.permute.xlu1 %1220  ;;  %v18667_v54 = vpop.permute.xlu0 %1215 }
 0x19a   : > { %23573 = vst [vmem:[#allocation133_spill] sm:$0xff] %v18665_v55  ;;  %23574 = vst [vmem:[#allocation134_spill] sm:$0xff] %v18667_v54  ;;  %1750 = vperm.xlu1 %17810, %v13744_v51   ;;  %1745 = vperm.xlu0 %17809, %v13743_v63   ;;  %v13539_v55 = vld [vmem:[%s23577_s30] ss:$0 sm:$0xff]  ;;  %v13557_v63 = vld [vmem:[%s23577_s30 + $0x1] ss:$0 sm:$0xff] }
 0x19b   : > { %v23580_v54 = vld [vmem:[#allocation6_spill] sm:$0xff]  ;;  %v194_v60 = vmul.f32 %v13539_v55, %v23586_v61  ;;  %v200_v61 = vmul.f32 %v13539_v55, %v23594_v37  ;;  %v23603_v37 = vld [vmem:[#allocation25_spill] sm:$0xff] }
 0x19c   : > { %v190_v18 = vmul.f32 %v13539_v55, %v23580_v54  ;;  %v23589_v54 = vld [vmem:[#allocation12_spill] sm:$0xff]  ;;  %v326_v24 = vmul.f32 %v13557_v63, %v23603_v37 }
 0x19d   : > { %v18671_v0 = vpop.permute.xlu1 %1230  ;;  %v18673_v19 = vpop.permute.xlu0 %1225  ;;  %v196_v44 = vmul.f32 %v13539_v55, %v23589_v54  ;;  %v23598_v54 = vld [vmem:[#allocation18_spill] sm:$0xff] }
 0x19e   : > { %23575 = vst [vmem:[#allocation135_spill] sm:$0xff] %v18671_v0  ;;  %23576 = vst [vmem:[#allocation136_spill] sm:$0xff] %v18673_v19  ;;  %1760 = vperm.xlu1 %17810, %v13746_v47   ;;  %1755 = vperm.xlu0 %17809, %v13745_v50   ;;  %v13750_v0 = vld [vmem:[%s17993_s0 + $0x82] sm:$0xff]  ;;  %v13749_v19 = vld [vmem:[%s17993_s0 + $0x7a] sm:$0xff]  ;;  %v189_v47 = vmul.f32 %v13539_v55, %v18143_v3  ;;  %v187_v50 = vmul.f32 %v13539_v55, %v18145_v5 }
 0x19f   : > { %v193_v3 = vmul.f32 %v13539_v55, %v23587_v57  ;;  %v323_v5 = vmul.f32 %v13557_v63, %v23588_v56  ;;  %v325_v57 = vmul.f32 %v13557_v63, %v23595_v36  ;;  %v324_v56 = vmul.f32 %v13557_v63, %v23596_v26  ;;  %v23604_v36 = vld [vmem:[#allocation26_spill] sm:$0xff] }
 0x1a0   : > { %v329_v25 = vmul.f32 %v13557_v63, %v23604_v36 }
 0x1a1   : > { %v18680_v1 = vpop.permute.xlu1 %1240  ;;  %v18682_v51 = vpop.permute.xlu0 %1235  ;;  %v341_v23 = vadd.f32 %v325_v57, %v190_v18  ;;  %v23614_v57 = vld [vmem:[#allocation35_spill] sm:$0xff] }
 0x1a2   : > { %23578 = vst [vmem:[#allocation137_spill] sm:$0xff] %v18680_v1  ;;  %23579 = vst [vmem:[#allocation138_spill] sm:$0xff] %v18682_v51  ;;  %1770 = vperm.xlu1 %17810, %v13748_v39   ;;  %1765 = vperm.xlu0 %17809, %v13747_v46   ;;  %v188_v1 = vmul.f32 %v13539_v55, %v23581_v59  ;;  %v192_v51 = vmul.f32 %v13539_v55, %v23582_v58  ;;  %v23583_v39 = vld [vmem:[#allocation9_spill] sm:$0xff] }
 0x1a3   : > { %v191_v46 = vmul.f32 %v13539_v55, %v23583_v39  ;;  %v195_v59 = vmul.f32 %v13539_v55, %v23590_v53  ;;  %v198_v58 = vmul.f32 %v13539_v55, %v23591_v40  ;;  %v322_v39 = vmul.f32 %v13557_v63, %v23592_v48 }
 0x1a4   : > { %v202_v53 = vmul.f32 %v13539_v55, %v23598_v54  ;;  %v201_v40 = vmul.f32 %v13539_v55, %v23599_v32  ;;  %v327_v48 = vmul.f32 %v13557_v63, %v23600_v31  ;;  %v331_v54 = vmul.f32 %v13557_v63, %v23606_v27  ;;  %v13753_v31 = vld [vmem:[%s17993_s0 + $0x9a] sm:$0xff] }
 0x1a5   : > { %v18695_v52 = vpop.permute.xlu1 %1250  ;;  %v18697_v49 = vpop.permute.xlu0 %1245  ;;  %v338_v26 = vadd.f32 %v322_v39, %v187_v50  ;;  %v330_v32 = vmul.f32 %v13557_v63, %v23607_v22  ;;  %v23610_v50 = vld [vmem:[#allocation32_spill] sm:$0xff]  ;;  %v23611_v27 = vld [vmem:[#allocation33_spill] sm:$0xff]  ;;  %v23612_v22 = vld [vmem:[#allocation34_spill] sm:$0xff] }
 0x1a6   : > { %23584 = vst [vmem:[#allocation6_spill] sm:$0xff] %v18695_v52  ;;  %23585 = vst [vmem:[#allocation7_spill] sm:$0xff] %v18697_v49  ;;  %1780 = vperm.xlu1 %17810, %v13750_v0   ;;  %1775 = vperm.xlu0 %17809, %v13749_v19   ;;  %v13751_v52 = vld [vmem:[%s17993_s0 + $0x8a] sm:$0xff]  ;;  %v197_v49 = vmul.f32 %v13539_v55, %v23593_v41  ;;  %v23597_v0 = vld [vmem:[#allocation17_spill] sm:$0xff]  ;;  %v339_v41 = vadd.f32 %v323_v5, %v188_v1 }
 0x1a7   : > { %v199_v19 = vmul.f32 %v13539_v55, %v23597_v0  ;;  %v23605_v0 = vld [vmem:[#allocation27_spill] sm:$0xff]  ;;  %v335_v39 = vmul.f32 %v13557_v63, %v23610_v50  ;;  %v334_v37 = vmul.f32 %v13557_v63, %v23611_v27  ;;  %v337_v36 = vmul.f32 %v13557_v63, %v23612_v22  ;;  %v13758_v50 = vld [vmem:[%s17993_s0 + $0x33] sm:$0xff] }
 0x1a8   : > { %v328_v28 = vmul.f32 %v13557_v63, %v23605_v0  ;;  %v13754_v55 = vld [vmem:[%s17993_s0 + $0xa2] sm:$0xff]  ;;  %v347_v21 = vadd.f32 %v331_v54, %v196_v44  ;;  %v23616_v22 = vld [vmem:[#allocation37_spill] sm:$0xff] }
 0x1a9   : > { %v18716_v33 = vpop.permute.xlu1 %1260  ;;  %v18718_v29 = vpop.permute.xlu0 %1255  ;;  %v23609_v1 = vld [vmem:[#allocation31_spill] sm:$0xff] }
 0x1aa   : > { %23601 = vst [vmem:[#allocation8_spill] sm:$0xff] %v18716_v33  ;;  %23602 = vst [vmem:[#allocation9_spill] sm:$0xff] %v18718_v29  ;;  %1790 = vperm.xlu1 %17810, %v13752_v45   ;;  %1785 = vperm.xlu0 %17809, %v13751_v52   ;;  %v340_v33 = vadd.f32 %v324_v56, %v189_v47  ;;  %v333_v29 = vmul.f32 %v13557_v63, %v23608_v30  ;;  %v13575_v45 = vld [vmem:[%s23577_s30 + $0x2] ss:$0 sm:$0xff] }
 0x1ab   : > { %v332_v5 = vmul.f32 %v13557_v63, %v23609_v1  ;;  %v343_v52 = vadd.f32 %v327_v48, %v192_v51  ;;  %v342_v30 = vadd.f32 %v326_v24, %v191_v46  ;;  %v345_v47 = vadd.f32 %v329_v25, %v194_v60  ;;  %v23615_v48 = vld [vmem:[#allocation36_spill] sm:$0xff] }
 0x1ac   : > { %v336_v56 = vmul.f32 %v13557_v63, %v23614_v57  ;;  %v344_v1 = vadd.f32 %v328_v28, %v193_v3  ;;  %v346_v51 = vadd.f32 %v330_v32, %v195_v59  ;;  %v458_v20 = vmul.f32 %v13575_v45, %v23615_v48  ;;  %v23617_v63 = vld [vmem:[#allocation38_spill] sm:$0xff] }
 0x1ad   : > { %v18735_v0 = vpop.permute.xlu1 %1325  ;;  %v18737_v18 = vpop.permute.xlu0 %1320  ;;  %v349_v27 = vadd.f32 %v333_v29, %v198_v58  ;;  %v348_v11 = vadd.f32 %v332_v5, %v197_v49  ;;  %v457_v17 = vmul.f32 %v13575_v45, %v23616_v22  ;;  %v351_v24 = vadd.f32 %v335_v39, %v200_v61  ;;  %v13762_v5 = vld [vmem:[%s17993_s0 + $0x53] sm:$0xff]  ;;  %v13761_v39 = vld [vmem:[%s17993_s0 + $0x4b] sm:$0xff]  ;;  %v23621_v48 = vld [vmem:[#allocation42_spill] sm:$0xff] }
 0x1ae   : > { %23613 = vst [vmem:[#allocation10_spill] sm:$0xff] %v18735_v0  ;;  %1800 = vperm.xlu1 %17810, %v13754_v55   ;;  %1795 = vperm.xlu0 %17809, %v13753_v31   ;;  %v460_v0 = vmul.f32 %v13575_v45, %v18327_v35  ;;  %v350_v25 = vadd.f32 %v334_v37, %v199_v19  ;;  %v13760_v19 = vld [vmem:[%s17993_s0 + $0x43] sm:$0xff] }
 0x1af   : > { %v353_v60 = vadd.f32 %v337_v36, %v202_v53  ;;  %v459_v46 = vmul.f32 %v13575_v45, %v23617_v63  ;;  %v352_v3 = vadd.f32 %v336_v56, %v201_v40  ;;  %v462_v59 = vmul.f32 %v13575_v45, %v18333_v42  ;;  %v13759_v53 = vld [vmem:[%s17993_s0 + $0x3b] sm:$0xff]  ;;  %v23618_v31 = vld [vmem:[#allocation39_spill] sm:$0xff] }
 0x1b0   : > { %v461_v29 = vmul.f32 %v13575_v45, %v18335_v34  ;;  %v474_v49 = vadd.f32 %v458_v20, %v339_v41  ;;  %v464_v35 = vmul.f32 %v13575_v45, %v18339_v38  ;;  %v463_v58 = vmul.f32 %v13575_v45, %v18341_v62  ;;  %v23619_v38 = vld [vmem:[#allocation40_spill] sm:$0xff] }
 0x1b1   : > { %v18746_v28 = vpop.permute.xlu1 %1335  ;;  %v18748_v44 = vpop.permute.xlu0 %1330  ;;  %v466_v61 = vmul.f32 %v13575_v45, %v18345_v43  ;;  %v473_v54 = vadd.f32 %v457_v17, %v338_v26  ;;  %v476_v32 = vadd.f32 %v460_v0, %v341_v23  ;;  %v465_v55 = vmul.f32 %v13575_v45, %v18347_v2  ;;  %v13593_v43 = vld [vmem:[%s23577_s30 + $0x3] ss:$0 sm:$0xff] }
 0x1b2   : > { %1865 = vperm.xlu1 %17810, %v13758_v50   ;;  %1860 = vperm.xlu0 %17809, %v13757_v12   ;;  %v468_v40 = vmul.f32 %v13575_v45, %v18351_v4  ;;  %v475_v42 = vadd.f32 %v459_v46, %v340_v33  ;;  %v467_v34 = vmul.f32 %v13575_v45, %v23618_v31 }
 0x1b3   : > { %v470_v12 = vmul.f32 %v13575_v45, %v18357_v7  ;;  %v469_v20 = vmul.f32 %v13575_v45, %v23619_v38  ;;  %v478_v2 = vadd.f32 %v462_v59, %v343_v52  ;;  %v477_v23 = vadd.f32 %v461_v29, %v342_v30  ;;  %v23624_v59 = vld [vmem:[#allocation45_spill] sm:$0xff]  ;;  %v23625_v29 = vld [vmem:[#allocation46_spill] sm:$0xff] }
 0x1b4   : > { %v472_v4 = vmul.f32 %v13575_v45, %v18363_v9  ;;  %v480_v33 = vadd.f32 %v464_v35, %v345_v47  ;;  %v479_v41 = vadd.f32 %v463_v58, %v344_v1  ;;  %v482_v26 = vadd.f32 %v466_v61, %v347_v21  ;;  %v13611_v58 = vld [vmem:[%s23577_s30 + $0x4] ss:$0 sm:$0xff]  ;;  %v13766_v38 = vld [vmem:[%s17993_s0 + $0x73] sm:$0xff] }
 0x1b5   : > { %v18765_v62 = vpop.permute.xlu1 %1345  ;;  %v18767_v17 = vpop.permute.xlu0 %1340  ;;  %v471_v7 = vmul.f32 %v13575_v45, %v18365_v10  ;;  %v481_v37 = vadd.f32 %v465_v55, %v346_v51  ;;  %v484_v36 = vadd.f32 %v468_v40, %v349_v27  ;;  %v593_v0 = vmul.f32 %v13593_v43, %v18371_v6  ;;  %v13764_v27 = vld [vmem:[%s17993_s0 + $0x63] sm:$0xff] }
 0x1b6   : > { %1875 = vperm.xlu1 %17810, %v13760_v19   ;;  %1870 = vperm.xlu0 %17809, %v13759_v53   ;;  %v592_v57 = vmul.f32 %v13593_v43, %v18373_v13  ;;  %v483_v52 = vadd.f32 %v467_v34, %v348_v11  ;;  %v486_v30 = vadd.f32 %v470_v12, %v351_v24  ;;  %v23620_v11 = vld [vmem:[#allocation41_spill] sm:$0xff] }
 0x1b7   : > { %v485_v9 = vadd.f32 %v469_v20, %v350_v25  ;;  %v595_v56 = vmul.f32 %v13593_v43, %v18375_v8  ;;  %v488_v10 = vadd.f32 %v472_v4, %v353_v60  ;;  %v594_v45 = vmul.f32 %v13593_v43, %v18377_v14  ;;  %v13763_v8 = vld [vmem:[%s17993_s0 + $0x5b] sm:$0xff]  ;;  %v23622_v25 = vld [vmem:[#allocation43_spill] sm:$0xff]  ;;  %v23623_v60 = vld [vmem:[#allocation44_spill] sm:$0xff] }
 0x1b8   : > { %v597_v1 = vmul.f32 %v13593_v43, %v18381_v15  ;;  %v487_v6 = vadd.f32 %v471_v7, %v352_v3  ;;  %v596_v13 = vmul.f32 %v13593_v43, %v18383_v16  ;;  %v599_v51 = vmul.f32 %v13593_v43, %v23620_v11  ;;  %v23626_v16 = vld [vmem:[#allocation47_spill] sm:$0xff]  ;;  %v23628_v34 = vld [vmem:[#allocation49_spill] sm:$0xff] }
 0x1b9   : > { %v18776_v47 = vpop.permute.xlu1 %1355  ;;  %v18778_v21 = vpop.permute.xlu0 %1350  ;;  %v598_v50 = vmul.f32 %v13593_v43, %v23621_v48  ;;  %v609_v22 = vadd.f32 %v593_v0, %v474_v49  ;;  %v608_v24 = vadd.f32 %v592_v57, %v473_v54  ;;  %v601_v63 = vmul.f32 %v13593_v43, %v23622_v25  ;;  %v23627_v54 = vld [vmem:[#allocation48_spill] sm:$0xff]  ;;  %v23630_v0 = vld [vmem:[#allocation51_spill] sm:$0xff] }
 0x1ba   : > { %1885 = vperm.xlu1 %17810, %v13762_v5   ;;  %1880 = vperm.xlu0 %17809, %v13761_v39   ;;  %v600_v46 = vmul.f32 %v13593_v43, %v23623_v60  ;;  %v611_v14 = vadd.f32 %v595_v56, %v476_v32  ;;  %v603_v15 = vmul.f32 %v13593_v43, %v23624_v59  ;;  %v13765_v20 = vld [vmem:[%s17993_s0 + $0x6b] sm:$0xff]  ;;  %v23629_v5 = vld [vmem:[#allocation50_spill] sm:$0xff] }
 0x1bb   : > { %v602_v3 = vmul.f32 %v13593_v43, %v23625_v29  ;;  %v605_v35 = vmul.f32 %v13593_v43, %v23626_v16  ;;  %v610_v19 = vadd.f32 %v594_v45, %v475_v42  ;;  %v613_v53 = vadd.f32 %v597_v1, %v478_v2  ;;  %v23631_v45 = vld [vmem:[#allocation52_spill] sm:$0xff]  ;;  %v23637_v60 = vld [vmem:[#allocation62_spill] sm:$0xff]  ;;  %v23640_v16 = vld [vmem:[#allocation69_spill] sm:$0xff] }
 0x1bc   : > { %v604_v32 = vmul.f32 %v13593_v43, %v23627_v54  ;;  %v612_v55 = vadd.f32 %v596_v13, %v477_v23  ;;  %v615_v40 = vadd.f32 %v599_v51, %v480_v33  ;;  %v614_v31 = vadd.f32 %v598_v50, %v479_v41  ;;  %v23632_v13 = vld [vmem:[#allocation53_spill] sm:$0xff]  ;;  %v23639_v29 = vld [vmem:[#allocation66_spill] sm:$0xff] }
 0x1bd   : > { %v18795_v61 = vpop.permute.xlu1 %1365  ;;  %v18797_v49 = vpop.permute.xlu0 %1360  ;;  %v607_v12 = vmul.f32 %v13593_v43, %v23628_v34  ;;  %v617_v4 = vadd.f32 %v601_v63, %v482_v26  ;;  %v616_v7 = vadd.f32 %v600_v46, %v481_v37  ;;  %v606_v39 = vmul.f32 %v13593_v43, %v23629_v5  ;;  %v23633_v26 = vld [vmem:[#allocation54_spill] sm:$0xff]  ;;  %v23634_v51 = vld [vmem:[#allocation57_spill] sm:$0xff] }
 0x1be   : > { %1895 = vperm.xlu1 %17810, %v13764_v27   ;;  %1890 = vperm.xlu0 %17809, %v13763_v8   ;;  %v728_v57 = vmul.f32 %v13611_v58, %v23630_v0  ;;  %v619_v42 = vadd.f32 %v603_v15, %v484_v36  ;;  %v618_v2 = vadd.f32 %v602_v3, %v483_v52  ;;  %v23635_v36 = vld [vmem:[#allocation58_spill] sm:$0xff]  ;;  %v23636_v52 = vld [vmem:[#allocation61_spill] sm:$0xff] }
 0x1bf   : > { %v621_v56 = vadd.f32 %v605_v35, %v486_v30  ;;  %v727_v1 = vmul.f32 %v13611_v58, %v23631_v45  ;;  %v620_v41 = vadd.f32 %v604_v32, %v485_v9  ;;  %v730_v11 = vmul.f32 %v13611_v58, %v23632_v13  ;;  %v13768_v27 = vld [vmem:[%s17993_s0 + $0x83] sm:$0xff]  ;;  %v13767_v8 = vld [vmem:[%s17993_s0 + $0x7b] sm:$0xff]  ;;  %v13770_v45 = vld [vmem:[%s17993_s0 + $0x93] sm:$0xff] }
 0x1c0   : > { %v729_v37 = vmul.f32 %v13611_v58, %v23633_v26  ;;  %v623_v43 = vadd.f32 %v607_v12, %v488_v10  ;;  %v732_v48 = vmul.f32 %v13611_v58, %v23634_v51  ;;  %v731_v50 = vmul.f32 %v13611_v58, %v23635_v36  ;;  %v23638_v9 = vld [vmem:[#allocation65_spill] sm:$0xff]  ;;  %v23641_v35 = vld [vmem:[#allocation70_spill] sm:$0xff] }
 0x1c1   : > { %v18806_v23 = vpop.permute.xlu1 %1375  ;;  %v18808_v33 = vpop.permute.xlu0 %1370  ;;  %v734_v30 = vmul.f32 %v13611_v58, %v23636_v52  ;;  %v622_v25 = vadd.f32 %v606_v39, %v487_v6  ;;  %v744_v63 = vadd.f32 %v728_v57, %v609_v22  ;;  %v733_v46 = vmul.f32 %v13611_v58, %v23637_v60  ;;  %v23644_v22 = vld [vmem:[#allocation73_spill] sm:$0xff]  ;;  %v23645_v0 = vld [vmem:[#allocation74_spill] sm:$0xff] }
 0x1c2   : > { %1905 = vperm.xlu1 %17810, %v13766_v38   ;;  %1900 = vperm.xlu0 %17809, %v13765_v20   ;;  %v736_v59 = vmul.f32 %v13611_v58, %v23638_v9  ;;  %v743_v15 = vadd.f32 %v727_v1, %v608_v24  ;;  %v735_v3 = vmul.f32 %v13611_v58, %v23639_v29  ;;  %v13629_v24 = vld [vmem:[%s23577_s30 + $0x5] ss:$0 sm:$0xff]  ;;  %v13769_v1 = vld [vmem:[%s17993_s0 + $0x8b] sm:$0xff]  ;;  %v23646_v51 = vld [vmem:[#allocation77_spill] sm:$0xff] }
 0x1c3   : > { %v738_v10 = vmul.f32 %v13611_v58, %v23640_v16  ;;  %v737_v54 = vmul.f32 %v13611_v58, %v23641_v35  ;;  %v746_v12 = vadd.f32 %v730_v11, %v611_v14  ;;  %v745_v6 = vadd.f32 %v729_v37, %v610_v19  ;;  %v23647_v19 = vld [vmem:[#allocation78_spill] sm:$0xff]  ;;  %v23654_v16 = vld [vmem:[#allocation85_spill] sm:$0xff] }
 0x1c4   : > { %v740_v38 = vmul.f32 %v13611_v58, %v23644_v22  ;;  %v748_v20 = vadd.f32 %v732_v48, %v613_v53  ;;  %v747_v5 = vadd.f32 %v731_v50, %v612_v55  ;;  %v750_v39 = vadd.f32 %v734_v30, %v615_v40  ;;  %v23649_v48 = vld [vmem:[#allocation80_spill] sm:$0xff]  ;;  %v13772_v9 = vld [vmem:[%s17993_s0 + $0xa3] sm:$0xff] }
 0x1c5   : > { %v18822_v32 = vpop.permute.xlu1 %1385  ;;  %v18824_v34 = vpop.permute.xlu0 %1380  ;;  %v739_v57 = vmul.f32 %v13611_v58, %v23645_v0  ;;  %v749_v13 = vadd.f32 %v733_v46, %v614_v31  ;;  %v752_v26 = vadd.f32 %v736_v59, %v617_v4  ;;  %v742_v14 = vmul.f32 %v13611_v58, %v23646_v51  ;;  %v23650_v31 = vld [vmem:[#allocation81_spill] sm:$0xff]  ;;  %v23656_v22 = vld [vmem:[#allocation87_spill] sm:$0xff]  ;;  %v23657_v0 = vld [vmem:[#allocation88_spill] sm:$0xff] }
 0x1c6   : > { %23642 = vst [vmem:[#allocation11_spill] sm:$0xff] %v18822_v32  ;;  %23643 = vst [vmem:[#allocation20_spill] sm:$0xff] %v18824_v34  ;;  %1915 = vperm.xlu1 %17810, %v13768_v27   ;;  %1910 = vperm.xlu0 %17809, %v13767_v8   ;;  %v741_v11 = vmul.f32 %v13611_v58, %v23647_v19  ;;  %v751_v37 = vadd.f32 %v735_v3, %v616_v7  ;;  %v23648_v27 = vld [vmem:[#allocation79_spill] sm:$0xff]  ;;  %v23651_v58 = vld [vmem:[#allocation82_spill] sm:$0xff] }
 0x1c7   : > { %v754_v36 = vadd.f32 %v738_v10, %v619_v42  ;;  %v753_v52 = vadd.f32 %v737_v54, %v618_v2  ;;  %v863_v8 = vmul.f32 %v13629_v24, %v23648_v27  ;;  %v756_v40 = vadd.f32 %v740_v38, %v621_v56  ;;  %v23652_v7 = vld [vmem:[#allocation83_spill] sm:$0xff]  ;;  %v23653_v42 = vld [vmem:[#allocation84_spill] sm:$0xff]  ;;  %v13771_v59 = vld [vmem:[%s17993_s0 + $0x9b] sm:$0xff] }
 0x1c8   : > { %v862_v50 = vmul.f32 %v13629_v24, %v23649_v48  ;;  %v865_v4 = vmul.f32 %v13629_v24, %v23650_v31  ;;  %v755_v30 = vadd.f32 %v739_v57, %v620_v41  ;;  %v864_v60 = vmul.f32 %v13629_v24, %v23651_v58  ;;  %v23655_v56 = vld [vmem:[#allocation86_spill] sm:$0xff]  ;;  %v23658_v41 = vld [vmem:[#allocation89_spill] sm:$0xff] }
 0x1c9   : > { %v18836_v53 = vpop.permute.xlu1 %1395  ;;  %v18838_v55 = vpop.permute.xlu0 %1390  ;;  %v867_v46 = vmul.f32 %v13629_v24, %v23652_v7  ;;  %v866_v2 = vmul.f32 %v13629_v24, %v23653_v42  ;;  %v758_v29 = vadd.f32 %v742_v14, %v623_v43  ;;  %v757_v3 = vadd.f32 %v741_v11, %v622_v25  ;;  %v23659_v48 = vld [vmem:[#allocation90_spill] sm:$0xff]  ;;  %v23661_v42 = vld [vmem:[#allocation92_spill] sm:$0xff] }
 0x1ca   : > { %1925 = vperm.xlu1 %17810, %v13770_v45   ;;  %1920 = vperm.xlu0 %17809, %v13769_v1   ;;  %v869_v10 = vmul.f32 %v13629_v24, %v23654_v16  ;;  %v868_v35 = vmul.f32 %v13629_v24, %v23655_v56  ;;  %v879_v54 = vadd.f32 %v863_v8, %v744_v63  ;;  %v23660_v63 = vld [vmem:[#allocation91_spill] sm:$0xff]  ;;  %v13647_v31 = vld [vmem:[%s23577_s30 + $0x6] ss:$0 sm:$0xff]  ;;  %v23662_v56 = vld [vmem:[#allocation93_spill] sm:$0xff] }
 0x1cb   : > { %v871_v38 = vmul.f32 %v13629_v24, %v23656_v22  ;;  %v870_v45 = vmul.f32 %v13629_v24, %v23657_v0  ;;  %v873_v57 = vmul.f32 %v13629_v24, %v23658_v41  ;;  %v878_v19 = vadd.f32 %v862_v50, %v743_v15  ;;  %v23671_v41 = vld [vmem:[#allocation100_spill] sm:$0xff] }
 0x1cc   : > { %v881_v27 = vadd.f32 %v865_v4, %v746_v12  ;;  %v872_v43 = vmul.f32 %v13629_v24, %v23659_v48  ;;  %v880_v25 = vadd.f32 %v864_v60, %v745_v6  ;;  %v883_v14 = vadd.f32 %v867_v46, %v748_v20  ;;  %v23664_v60 = vld [vmem:[#allocation95_spill] sm:$0xff] }
 0x1cd   : > { %v18852_v1 = vpop.permute.xlu1 %1460  ;;  %v18854_v51 = vpop.permute.xlu0 %1455  ;;  %v882_v11 = vadd.f32 %v866_v2, %v747_v5  ;;  %v875_v8 = vmul.f32 %v13629_v24, %v23660_v63  ;;  %v885_v58 = vadd.f32 %v869_v10, %v750_v39  ;;  %v884_v7 = vadd.f32 %v868_v35, %v749_v13  ;;  %v23665_v2 = vld [vmem:[#allocation96_spill] sm:$0xff]  ;;  %v23666_v39 = vld [vmem:[#allocation55_spill] sm:$0xff]  ;;  %v23668_v35 = vld [vmem:[#allocation97_spill] sm:$0xff] }
 0x1ce   : > { %1935 = vperm.xlu1 %17810, %v13772_v9   ;;  %1930 = vperm.xlu0 %17809, %v13771_v59   ;;  %v874_v16 = vmul.f32 %v13629_v24, %v23661_v42  ;;  %v877_v15 = vmul.f32 %v13629_v24, %v23662_v56  ;;  %v887_v12 = vadd.f32 %v871_v38, %v752_v26  ;;  %v23663_v9 = vld [vmem:[#allocation94_spill] sm:$0xff]  ;;  %v23667_v13 = vld [vmem:[#allocation56_spill] sm:$0xff]  ;;  %v23670_v38 = vld [vmem:[#allocation99_spill] sm:$0xff] }
 0x1cf   : > { %v886_v50 = vadd.f32 %v870_v45, %v751_v37  ;;  %v889_v4 = vadd.f32 %v873_v57, %v754_v36  ;;  %v876_v59 = vmul.f32 %v13629_v24, %v23663_v9  ;;  %v888_v5 = vadd.f32 %v872_v43, %v753_v52  ;;  %v23669_v37 = vld [vmem:[#allocation98_spill] sm:$0xff]  ;;  %v23672_v52 = vld [vmem:[#allocation101_spill] sm:$0xff]  ;;  %v23674_v56 = vld [vmem:[#allocation103_spill] sm:$0xff] }
 0x1d0   : > { %v998_v46 = vmul.f32 %v13647_v31, %v23664_v60  ;;  %v997_v22 = vmul.f32 %v13647_v31, %v23665_v2  ;;  %v891_v10 = vadd.f32 %v875_v8, %v756_v40  ;;  %v1000_v26 = vmul.f32 %v13647_v31, %v23668_v35  ;;  %v23673_v63 = vld [vmem:[#allocation102_spill] sm:$0xff]  ;;  %v23675_v60 = vld [vmem:[#allocation104_spill] sm:$0xff]  ;;  %v23676_v35 = vld [vmem:[#allocation105_spill] sm:$0xff] }
 0x1d1   : > { %v18864_v6 = vpop.permute.xlu1 %1470  ;;  %v18866_v20 = vpop.permute.xlu0 %1465  ;;  %v999_v36 = vmul.f32 %v13647_v31, %v23669_v37  ;;  %v1002_v24 = vmul.f32 %v13647_v31, %v23670_v38  ;;  %v890_v0 = vadd.f32 %v874_v16, %v755_v30  ;;  %v893_v45 = vadd.f32 %v877_v15, %v758_v29  ;;  %v23677_v29 = vld [vmem:[#allocation59_spill] sm:$0xff]  ;;  %v23678_v16 = vld [vmem:[#allocation60_spill] sm:$0xff]  ;;  %v23679_v37 = vld [vmem:[#allocation106_spill] sm:$0xff] }
 0x1d2   : > { %2000 = vperm.xlu1 %17810, %v23666_v39   ;;  %1995 = vperm.xlu0 %17809, %v23667_v13   ;;  %v1001_v57 = vmul.f32 %v13647_v31, %v23671_v41  ;;  %v1004_v48 = vmul.f32 %v13647_v31, %v23672_v52  ;;  %v892_v43 = vadd.f32 %v876_v59, %v757_v3  ;;  %v18891_v41 = vld [vmem:[%s23577_s30 + $0x7] ss:$0 sm:$0xff] }
 0x1d3   : > { %v1003_v42 = vmul.f32 %v13647_v31, %v23673_v63  ;;  %v1006_v9 = vmul.f32 %v13647_v31, %v23674_v56  ;;  %v1005_v2 = vmul.f32 %v13647_v31, %v23675_v60  ;;  %v1014_v39 = vadd.f32 %v998_v46, %v879_v54  ;;  %v23680_v54 = vld [vmem:[#allocation107_spill] sm:$0xff]  ;;  %v23681_v46 = vld [vmem:[#allocation108_spill] sm:$0xff] }
 0x1d4   : > { %v1013_v13 = vadd.f32 %v997_v22, %v878_v19  ;;  %v1008_v30 = vmul.f32 %v13647_v31, %v23676_v35  ;;  %v1016_v15 = vadd.f32 %v1000_v26, %v881_v27  ;;  %v1015_v3 = vadd.f32 %v999_v36, %v880_v25  ;;  %v23683_v36 = vld [vmem:[#allocation110_spill] sm:$0xff] }
 0x1d5   : > { %v18880_v40 = vpop.permute.xlu1 %1480  ;;  %v18882_v8 = vpop.permute.xlu0 %1475  ;;  %v1018_v59 = vadd.f32 %v1002_v24, %v883_v14  ;;  %v1007_v38 = vmul.f32 %v13647_v31, %v23679_v37  ;;  %v1017_v52 = vadd.f32 %v1001_v57, %v882_v11  ;;  %v1020_v63 = vadd.f32 %v1004_v48, %v885_v58  ;;  %v23685_v58 = vld [vmem:[#allocation63_spill] sm:$0xff]  ;;  %v23686_v57 = vld [vmem:[#allocation64_spill] sm:$0xff] }
 0x1d6   : > { %2010 = vperm.xlu1 %17810, %v23677_v29   ;;  %2005 = vperm.xlu0 %17809, %v23678_v16   ;;  %v1010_v19 = vmul.f32 %v13647_v31, %v23680_v54  ;;  %v1009_v22 = vmul.f32 %v13647_v31, %v23681_v46  ;;  %v1019_v56 = vadd.f32 %v1003_v42, %v884_v7  ;;  %v23682_v29 = vld [vmem:[#allocation109_spill] sm:$0xff]  ;;  %v23684_v16 = vld [vmem:[#allocation111_spill] sm:$0xff]  ;;  %v23687_v7 = vld [vmem:[#allocation112_spill] sm:$0xff] }
 0x1d7   : > { %v1022_v60 = vadd.f32 %v1006_v9, %v887_v12  ;;  %v1021_v35 = vadd.f32 %v1005_v2, %v886_v50  ;;  %v1012_v27 = vmul.f32 %v13647_v31, %v23682_v29  ;;  %v1024_v26 = vadd.f32 %v1008_v30, %v889_v4  ;;  %v23688_v50 = vld [vmem:[#allocation113_spill] sm:$0xff]  ;;  %v23689_v9 = vld [vmem:[#allocation114_spill] sm:$0xff]  ;;  %v23691_v54 = vld [vmem:[#allocation116_spill] sm:$0xff] }
 0x1d8   : > { %v1011_v24 = vmul.f32 %v13647_v31, %v23683_v36  ;;  %v1133_v11 = vmul.f32 %v18891_v41, %v23684_v16  ;;  %v1023_v48 = vadd.f32 %v1007_v38, %v888_v5  ;;  %v1132_v12 = vmul.f32 %v18891_v41, %v23687_v7  ;;  %v23690_v31 = vld [vmem:[#allocation115_spill] sm:$0xff]  ;;  %v23692_v5 = vld [vmem:[#allocation117_spill] sm:$0xff]  ;;  %v23693_v36 = vld [vmem:[#allocation118_spill] sm:$0xff] }
 0x1d9   : > { %v18896_v25 = vpop.permute.xlu1 %1490  ;;  %v18898_v14 = vpop.permute.xlu0 %1485  ;;  %v1135_v42 = vmul.f32 %v18891_v41, %v23688_v50  ;;  %v1134_v2 = vmul.f32 %v18891_v41, %v23689_v9  ;;  %v1026_v4 = vadd.f32 %v1010_v19, %v891_v10  ;;  %v18911_v30 = vadd.f32 %v1009_v22, %v890_v0  ;;  %v23695_v22 = vld [vmem:[#allocation120_spill] sm:$0xff]  ;;  %v23696_v9 = vld [vmem:[#allocation67_spill] sm:$0xff] }
 0x1da   : > { %2020 = vperm.xlu1 %17810, %v23685_v58   ;;  %2015 = vperm.xlu0 %17809, %v23686_v57   ;;  %v1137_v37 = vmul.f32 %v18891_v41, %v23690_v31  ;;  %v1136_v46 = vmul.f32 %v18891_v41, %v23691_v54  ;;  %v1028_v29 = vadd.f32 %v1012_v27, %v893_v45  ;;  %v23694_v58 = vld [vmem:[#allocation119_spill] sm:$0xff]  ;;  %v23697_v45 = vld [vmem:[#allocation68_spill] sm:$0xff] }
 0x1db   : > { %v1139_v38 = vmul.f32 %v18891_v41, %v23692_v5  ;;  %v1138_v16 = vmul.f32 %v18891_v41, %v23693_v36  ;;  %v1141_v57 = vmul.f32 %v18891_v41, %v23694_v58  ;;  %v1027_v0 = vadd.f32 %v1011_v24, %v892_v43  ;;  %v23698_v5 = vld [vmem:[#allocation121_spill] sm:$0xff]  ;;  %v18936_v58 = vld [vmem:[%s23577_s30 + $0x8] ss:$0 sm:$0xff] }
 0x1dc   : > { %v1149_v19 = vadd.f32 %v1133_v11, %v1014_v39  ;;  %v1140_v50 = vmul.f32 %v18891_v41, %v23695_v22  ;;  %v1148_v27 = vadd.f32 %v1132_v12, %v1013_v13  ;;  %v1151_v31 = vadd.f32 %v1135_v42, %v1016_v15  ;;  %v23699_v24 = vld [vmem:[#allocation122_spill] sm:$0xff]  ;;  %v23700_v22 = vld [vmem:[#allocation125_spill] sm:$0xff] }
 0x1dd   : > { %v18923_v7 = vpop.permute.xlu1 %1500  ;;  %v18925_v10 = vpop.permute.xlu0 %1495  ;;  %v1150_v54 = vadd.f32 %v1134_v2, %v1015_v3  ;;  %v1143_v36 = vmul.f32 %v18891_v41, %v23698_v5  ;;  %v1153_v43 = vadd.f32 %v1137_v37, %v1018_v59  ;;  %v18938_v39 = vadd.f32 %v1136_v46, %v1017_v52  ;;  %v23701_v12 = vld [vmem:[#allocation126_spill] sm:$0xff]  ;;  %v23702_v37 = vld [vmem:[#allocation123_spill] sm:$0xff]  ;;  %v23707_v5 = vld [vmem:[#allocation8_spill] sm:$0xff] }
 0x1de   : > { %2030 = vperm.xlu1 %17810, %v23696_v9   ;;  %2025 = vperm.xlu0 %17809, %v23697_v45   ;;  %v1142_v11 = vmul.f32 %v18891_v41, %v23699_v24  ;;  %v1147_v9 = vmul.f32 %v18891_v41, %v23700_v22  ;;  %v18944_v13 = vadd.f32 %v1139_v38, %v1020_v63  ;;  %v23703_v45 = vld [vmem:[#allocation127_spill] sm:$0xff] }
 0x1df   : > { %v18946_v15 = vadd.f32 %v1138_v16, %v1019_v56  ;;  %v18948_v3 = vadd.f32 %v1141_v57, %v1022_v60  ;;  %v1146_v42 = vmul.f32 %v18891_v41, %v23701_v12  ;;  %v18956_v52 = vadd.f32 %v1140_v50, %v1021_v35  ;;  %v23704_v38 = vld [vmem:[#allocation71_spill] sm:$0xff]  ;;  %v23705_v56 = vld [vmem:[#allocation72_spill] sm:$0xff]  ;;  %v23708_v35 = vld [vmem:[#allocation9_spill] sm:$0xff] }
 0x1e0   : > { %v1145_v46 = vmul.f32 %v18891_v41, %v23702_v37  ;;  %v1268_v63 = vmul.f32 %v18936_v58, %v23703_v45  ;;  %v18964_v60 = vadd.f32 %v1143_v36, %v1024_v26  ;;  %v23706_v16 = vld [vmem:[#allocation128_spill] sm:$0xff]  ;;  %v1282_v24 = vmul.f32 %v18936_v58, %v23707_v5  ;;  %v23709_v37 = vld [vmem:[#allocation129_spill] sm:$0xff]  ;;  %v18981_v26 = vld [vmem:[%s23577_s30 + $0x9] ss:$0 sm:$0xff] }
 0x1e1   : > { %v18952_v2 = vpop.permute.xlu1 %1510  ;;  %v18954_v59 = vpop.permute.xlu0 %1505  ;;  %v1267_v57 = vmul.f32 %v18936_v58, %v23706_v16  ;;  %v1281_v50 = vmul.f32 %v18936_v58, %v23708_v35  ;;  %v18972_v22 = vadd.f32 %v1142_v11, %v1023_v48  ;;  %v1163_v12 = vadd.f32 %v1147_v9, %v1028_v29  ;;  %v23711_v16 = vld [vmem:[#allocation131_spill] sm:$0xff] }
 0x1e2   : > { %2040 = vperm.xlu1 %17810, %v23704_v38   ;;  %2035 = vperm.xlu0 %17809, %v23705_v56   ;;  %v1270_v45 = vmul.f32 %v18936_v58, %v23709_v37  ;;  %v23710_v38 = vld [vmem:[#allocation130_spill] sm:$0xff]  ;;  %v1162_v36 = vadd.f32 %v1146_v42, %v1027_v0  ;;  %v1272_v5 = vmul.f32 %v18936_v58, %v23711_v16  ;;  %v23715_v37 = vld [vmem:[#allocation124_spill] sm:$0xff]  ;;  %v19002_v42 = vld [vmem:[%s23577_s30 + $0xa] ss:$0 sm:$0xff] }
 0x1e3   : > { %v1269_v56 = vmul.f32 %v18936_v58, %v23710_v38  ;;  %v1417_v48 = vmul.f32 %v18981_v26, %v18836_v53  ;;  %v1416_v29 = vmul.f32 %v18981_v26, %v18838_v55  ;;  %v18993_v35 = vadd.f32 %v1145_v46, %v1026_v4  ;;  %v23716_v53 = vld [vmem:[#allocation75_spill] sm:$0xff]  ;;  %v23717_v16 = vld [vmem:[#allocation76_spill] sm:$0xff]  ;;  %v23718_v4 = vld [vmem:[#allocation10_spill] sm:$0xff] }
 0x1e4   : > { %v18997_v38 = vmul.f32 %v18891_v41, %v23715_v37  ;;  %v1284_v0 = vadd.f32 %v1268_v63, %v1149_v19  ;;  %v1283_v55 = vadd.f32 %v1267_v57, %v1148_v27  ;;  %v1403_v46 = vmul.f32 %v18981_v26, %v23718_v4  ;;  %v23719_v19 = vld [vmem:[#allocation132_spill] sm:$0xff] }
 0x1e5   : > { %v18989_v11 = vpop.permute.xlu1 %1520  ;;  %v18991_v9 = vpop.permute.xlu0 %1515  ;;  %23714 = vst [vmem:[#allocation14_spill] sm:$0xff] %v18993_v35  ;;  %v1286_v41 = vadd.f32 %v1270_v45, %v1151_v31  ;;  %v1285_v37 = vadd.f32 %v1269_v56, %v1150_v54  ;;  %v1271_v63 = vmul.f32 %v18936_v58, %v23719_v19  ;;  %v1402_v34 = vmul.f32 %v18981_v26, %v18737_v18  ;;  %v17812_v18 = vld [vmem:[%s17993_s0 + $0x8c] sm:$0xff] }
 0x1e6   : > { %23712 = vst [vmem:[#allocation12_spill] sm:$0xff] %v18989_v11  ;;  %23713 = vst [vmem:[#allocation13_spill] sm:$0xff] %v18991_v9  ;;  %2050 = vperm.xlu1 %17810, %v23716_v53   ;;  %2045 = vperm.xlu0 %17809, %v23717_v16   ;;  %v1298_v11 = vadd.f32 %v1282_v24, %v1163_v12  ;;  %v1297_v9 = vadd.f32 %v1281_v50, %v1162_v36  ;;  %v17811_v12 = vld [vmem:[%s17993_s0 + $0x94] sm:$0xff] }
 0x1e7   : > { %v1288_v35 = vadd.f32 %v1272_v5, %v1153_v43  ;;  %v1538_v27 = vmul.f32 %v19002_v42, %v18852_v1  ;;  %v1537_v31 = vmul.f32 %v19002_v42, %v18854_v51  ;;  %v23720_v43 = vld [vmem:[#allocation133_spill] sm:$0xff]  ;;  %v1419_v56 = vadd.f32 %v1403_v46, %v1284_v0  ;;  %v19029_v51 = vld [vmem:[%s23577_s30 + $0xb] ss:$0 sm:$0xff]  ;;  %v23721_v0 = vld [vmem:[#allocation134_spill] sm:$0xff] }
 0x1e8   : > { %v1433_v53 = vadd.f32 %v1417_v48, %v1298_v11  ;;  %v1432_v32 = vadd.f32 %v1416_v29, %v1297_v9  ;;  %v1274_v45 = vmul.f32 %v18936_v58, %v23720_v43  ;;  %v1405_v1 = vmul.f32 %v18981_v26, %v18746_v28  ;;  %v13790_v5 = vld [vmem:[%s17993_s0 + $0xa4] sm:$0xff]  ;;  %v13789_v48 = vld [vmem:[%s17993_s0 + $0x9c] sm:$0xff] }
 0x1e9   : > { %v1531_v57 = vpop.permute.xlu1 %1530  ;;  %v1526_v24 = vpop.permute.xlu0 %1525  ;;  %v1404_v36 = vmul.f32 %v18981_v26, %v18748_v44  ;;  %v1287_v29 = vadd.f32 %v1271_v63, %v18938_v39  ;;  %v1418_v11 = vadd.f32 %v1402_v34, %v1283_v55  ;;  %v1273_v28 = vmul.f32 %v18936_v58, %v23721_v0 }
 0x1ea   : > { %v1552_v54 = vmul.f32 %v19002_v42, %v1531_v57  ;;  %v1551_v50 = vmul.f32 %v19002_v42, %v1526_v24  ;;  %2060 = vperm.xlu1 %17810, %v17811_v12   ;;  %2055 = vperm.xlu0 %17809, %v17812_v18   ;;  %v1554_v4 = vadd.f32 %v1538_v27, %v1419_v56  ;;  %v17814_v56 = vld [vmem:[%s17993_s0 + $0x2d] sm:$0xff] }
 0x1eb   : > { %v1540_v44 = vmul.f32 %v19002_v42, %v18864_v6  ;;  %v1539_v46 = vmul.f32 %v19002_v42, %v18866_v20  ;;  %v1553_v24 = vadd.f32 %v1537_v31, %v1418_v11  ;;  %v1421_v55 = vadd.f32 %v1405_v1, %v1286_v41  ;;  %v23723_v1 = vld [vmem:[#allocation136_spill] sm:$0xff] }
 0x1ec   : > { %v19034_v9 = vadd.f32 %v1552_v54, %v1433_v53  ;;  %v19036_v16 = vadd.f32 %v1551_v50, %v1432_v32  ;;  %v1290_v32 = vadd.f32 %v1274_v45, %v18944_v13  ;;  %v1420_v63 = vadd.f32 %v1404_v36, %v1285_v37  ;;  %v23722_v53 = vld [vmem:[#allocation135_spill] sm:$0xff]  ;;  %v17813_v45 = vld [vmem:[%s17993_s0 + $0x35] sm:$0xff] }
 0x1ed   : > { %v1596_v19 = vpop.permute.xlu1 %1595  ;;  %v1591_v57 = vpop.permute.xlu0 %1590  ;;  %v1407_v6 = vmul.f32 %v18981_v26, %v18765_v62  ;;  %v1276_v20 = vmul.f32 %v18936_v58, %v23722_v53  ;;  %v1406_v27 = vmul.f32 %v18981_v26, %v18767_v17  ;;  %v1289_v50 = vadd.f32 %v1273_v28, %v18946_v15  ;;  %v23724_v28 = vld [vmem:[#allocation137_spill] sm:$0xff] }
 0x1ee   : > { %v1673_v39 = vmul.f32 %v19029_v51, %v1596_v19  ;;  %v1672_v34 = vmul.f32 %v19029_v51, %v1591_v57  ;;  %2070 = vperm.xlu1 %17810, %v13790_v5   ;;  %2065 = vperm.xlu0 %17809, %v13789_v48   ;;  %v1556_v13 = vadd.f32 %v1540_v44, %v1421_v55  ;;  %v17815_v57 = vld [vmem:[%s17993_s0 + $0x45] sm:$0xff] }
 0x1ef   : > { %v1555_v41 = vadd.f32 %v1539_v46, %v1420_v63  ;;  %v1542_v37 = vmul.f32 %v19002_v42, %v18880_v40  ;;  %v1541_v18 = vmul.f32 %v19002_v42, %v18882_v8  ;;  %v1275_v15 = vmul.f32 %v18936_v58, %v23723_v1 }
 0x1f0   : > { %v19053_v31 = vadd.f32 %v1673_v39, %v1554_v4  ;;  %v19055_v54 = vadd.f32 %v1672_v34, %v1553_v24  ;;  %v1423_v36 = vadd.f32 %v1407_v6, %v1288_v35  ;;  %v1409_v40 = vmul.f32 %v18981_v26, %v18776_v47  ;;  %v17816_v24 = vld [vmem:[%s17993_s0 + $0x3d] sm:$0xff] }
 0x1f1   : > { %v1606_v12 = vpop.permute.xlu1 %1605  ;;  %v1601_v62 = vpop.permute.xlu0 %1600  ;;  %v1408_v5 = vmul.f32 %v18981_v26, %v18778_v21  ;;  %v1292_v8 = vadd.f32 %v1276_v20, %v18948_v3  ;;  %v1422_v48 = vadd.f32 %v1406_v27, %v1287_v29  ;;  %v1278_v4 = vmul.f32 %v18936_v58, %v23724_v28  ;;  %v23725_v39 = vld [vmem:[#allocation138_spill] sm:$0xff] }
 0x1f2   : > { %v1675_v43 = vmul.f32 %v19029_v51, %v1606_v12  ;;  %v1674_v17 = vmul.f32 %v19029_v51, %v1601_v62  ;;  %2135 = vperm.xlu1 %17810, %v17813_v45   ;;  %2130 = vperm.xlu0 %17809, %v17814_v56   ;;  %v1558_v44 = vadd.f32 %v1542_v37, %v1423_v36  ;;  %v17817_v12 = vld [vmem:[%s17993_s0 + $0x55] sm:$0xff]  ;;  %v17818_v62 = vld [vmem:[%s17993_s0 + $0x4d] sm:$0xff] }
 0x1f3   : > { %v1544_v35 = vmul.f32 %v19002_v42, %v18896_v25  ;;  %v1543_v47 = vmul.f32 %v19002_v42, %v18898_v14  ;;  %v1557_v19 = vadd.f32 %v1541_v18, %v1422_v48  ;;  %v1277_v34 = vmul.f32 %v18936_v58, %v23725_v39 }
 0x1f4   : > { %v19073_v11 = vadd.f32 %v1675_v43, %v1556_v13  ;;  %v19075_v0 = vadd.f32 %v1674_v17, %v1555_v41  ;;  %v1425_v55 = vadd.f32 %v1409_v40, %v1290_v32  ;;  %v1424_v25 = vadd.f32 %v1408_v5, %v1289_v50  ;;  %v23726_v17 = vld [vmem:[#allocation6_spill] sm:$0xff] }
 0x1f5   : > { %v1616_v46 = vpop.permute.xlu1 %1615  ;;  %v1611_v21 = vpop.permute.xlu0 %1610  ;;  %v1411_v14 = vmul.f32 %v18981_v26, %v18795_v61  ;;  %v1291_v63 = vadd.f32 %v1275_v15, %v18956_v52  ;;  %v1410_v6 = vmul.f32 %v18981_v26, %v18797_v49  ;;  %v1294_v27 = vadd.f32 %v1278_v4, %v18964_v60  ;;  %v23727_v15 = vld [vmem:[#allocation7_spill] sm:$0xff] }
 0x1f6   : > { %v1677_v3 = vmul.f32 %v19029_v51, %v1616_v46  ;;  %v1676_v29 = vmul.f32 %v19029_v51, %v1611_v21  ;;  %2145 = vperm.xlu1 %17810, %v17815_v57   ;;  %2140 = vperm.xlu0 %17809, %v17816_v24   ;;  %v1560_v13 = vadd.f32 %v1544_v35, %v1425_v55  ;;  %v17819_v4 = vld [vmem:[%s17993_s0 + $0x65] sm:$0xff] }
 0x1f7   : > { %v1559_v41 = vadd.f32 %v1543_v47, %v1424_v25  ;;  %v1546_v32 = vmul.f32 %v19002_v42, %v18923_v7  ;;  %v1545_v61 = vmul.f32 %v19002_v42, %v18925_v10  ;;  %v1293_v60 = vadd.f32 %v1277_v34, %v18972_v22  ;;  %v23728_v47 = vld [vmem:[#allocation11_spill] sm:$0xff]  ;;  %v23729_v46 = vld [vmem:[#allocation14_spill] sm:$0xff] }
 0x1f8   : > { %v19094_v53 = vadd.f32 %v1677_v3, %v1558_v44  ;;  %v19096_v20 = vadd.f32 %v1676_v29, %v1557_v19  ;;  %v1427_v18 = vadd.f32 %v1411_v14, %v1292_v8  ;;  %v1413_v7 = vmul.f32 %v18981_v26, %v18806_v23  ;;  %v17820_v44 = vld [vmem:[%s17993_s0 + $0x5d] sm:$0xff]  ;;  %v23730_v19 = vld [vmem:[#allocation20_spill] sm:$0xff] }
 0x1f9   : > { %v1626_v50 = vpop.permute.xlu1 %1625  ;;  %v1621_v37 = vpop.permute.xlu0 %1620  ;;  %v1412_v43 = vmul.f32 %v18981_v26, %v18808_v33  ;;  %v1280_v10 = vmul.f32 %v18936_v58, %v23726_v17  ;;  %v1426_v45 = vadd.f32 %v1410_v6, %v1291_v63  ;;  %v1279_v22 = vmul.f32 %v18936_v58, %v23727_v15  ;;  %v23732_v14 = vld [vmem:[#allocation13_spill] sm:$0xff] }
 0x1fa   : > { %v1679_v52 = vmul.f32 %v19029_v51, %v1626_v50  ;;  %v1678_v49 = vmul.f32 %v19029_v51, %v1621_v37  ;;  %2155 = vperm.xlu1 %17810, %v17817_v12   ;;  %2150 = vperm.xlu0 %17809, %v17818_v62   ;;  %v1562_v36 = vadd.f32 %v1546_v32, %v1427_v18  ;;  %v17824_v18 = vld [vmem:[%s17993_s0 + $0x7d] sm:$0xff] }
 0x1fb   : > { %v1548_v40 = vmul.f32 %v19002_v42, %v18952_v2  ;;  %v1547_v23 = vmul.f32 %v19002_v42, %v18954_v59  ;;  %v1561_v8 = vadd.f32 %v1545_v61, %v1426_v45  ;;  %v1160_v58 = vadd.f32 %v18997_v38, %v18911_v30  ;;  %v23731_v30 = vld [vmem:[#allocation12_spill] sm:$0xff] }
 0x1fc   : > { %v19114_v56 = vadd.f32 %v1679_v52, %v1560_v13  ;;  %v19116_v1 = vadd.f32 %v1678_v49, %v1559_v41  ;;  %v1429_v35 = vadd.f32 %v1413_v7, %v1294_v27  ;;  %v1428_v2 = vadd.f32 %v1412_v43, %v1293_v60  ;;  %v17821_v27 = vld [vmem:[%s17993_s0 + $0x75] sm:$0xff]  ;;  %v17822_v13 = vld [vmem:[%s17993_s0 + $0x6d] sm:$0xff]  ;;  %v17823_v60 = vld [vmem:[%s17993_s0 + $0x85] sm:$0xff] }
 0x1fd   : > { %v1636_v33 = vpop.permute.xlu1 %1635  ;;  %v1631_v5 = vpop.permute.xlu0 %1630  ;;  %v1415_v59 = vmul.f32 %v18981_v26, %v23728_v47  ;;  %v1296_v21 = vadd.f32 %v1280_v10, %v23729_v46  ;;  %v1414_v3 = vmul.f32 %v18981_v26, %v23730_v19  ;;  %v1295_v24 = vadd.f32 %v1279_v22, %v1160_v58  ;;  %v17825_v22 = vld [vmem:[%s17993_s0 + $0x95] sm:$0xff] }
 0x1fe   : > { %v1681_v48 = vmul.f32 %v19029_v51, %v1636_v33  ;;  %v1680_v28 = vmul.f32 %v19029_v51, %v1631_v5  ;;  %2165 = vperm.xlu1 %17810, %v17819_v4   ;;  %2160 = vperm.xlu0 %17809, %v17820_v44   ;;  %v1564_v39 = vadd.f32 %v1548_v40, %v1429_v35  ;;  %v13755_v40 = vld [vmem:[%s23577_s30 + $0xc] ss:$0 sm:$0xff]  ;;  %v13807_v33 = vld [vmem:[%s17993_s0 + $0x9d] sm:$0xff] }
 0x1ff   : > { %v1563_v34 = vadd.f32 %v1547_v23, %v1428_v2  ;;  %v1550_v38 = vmul.f32 %v19002_v42, %v23731_v30  ;;  %v1549_v63 = vmul.f32 %v19002_v42, %v23732_v14  ;;  %v1431_v41 = vadd.f32 %v1415_v59, %v1296_v21  ;;  %v13808_v23 = vld [vmem:[%s17993_s0 + $0xa5] sm:$0xff] }
 0x200   : > { %v19135_v29 = vadd.f32 %v1681_v48, %v1562_v36  ;;  %v19137_v57 = vadd.f32 %v1680_v28, %v1561_v8  ;;  %v1430_v32 = vadd.f32 %v1414_v3, %v1295_v24  ;;  %v17826_v36 = vld [vmem:[%s17993_s0 + $0x8d] sm:$0xff] }
 0x201   : > { %v1646_v55 = vpop.permute.xlu1 %1645  ;;  %v1641_v25 = vpop.permute.xlu0 %1640  ;;  %v1566_v61 = vadd.f32 %v1550_v38, %v1431_v41 }
 0x202   : > { %v1683_v6 = vmul.f32 %v19029_v51, %v1646_v55  ;;  %v1682_v26 = vmul.f32 %v19029_v51, %v1641_v25  ;;  %2175 = vperm.xlu1 %17810, %v17821_v27   ;;  %2170 = vperm.xlu0 %17809, %v17822_v13   ;;  %v1565_v49 = vadd.f32 %v1549_v63, %v1430_v32 }
 0x204   : > { %v19147_v50 = vadd.f32 %v1683_v6, %v1564_v39  ;;  %v19149_v37 = vadd.f32 %v1682_v26, %v1563_v34 }
 0x205   : > { %v1656_v52 = vpop.permute.xlu1 %1655  ;;  %v1651_v42 = vpop.permute.xlu0 %1650 }
 0x206   : > { %v1685_v12 = vmul.f32 %v19029_v51, %v1656_v52  ;;  %v1684_v62 = vmul.f32 %v19029_v51, %v1651_v42  ;;  %2185 = vperm.xlu1 %17810, %v17823_v60   ;;  %2180 = vperm.xlu0 %17809, %v17824_v18  }
 0x208   : > { %v1701_v7 = vadd.f32 %v1685_v12, %v1566_v61  ;;  %v1700_v43 = vadd.f32 %v1684_v62, %v1565_v49 }
 0x209   : > { %v1666_v17 = vpop.permute.xlu1 %1665  ;;  %v1661_v10 = vpop.permute.xlu0 %1660 }
 0x20a   : > { %v1687_v45 = vmul.f32 %v19029_v51, %v1666_v17  ;;  %v1686_v15 = vmul.f32 %v19029_v51, %v1661_v10  ;;  %2195 = vperm.xlu1 %17810, %v17825_v22   ;;  %2190 = vperm.xlu0 %17809, %v17826_v36  }
 0x20c   : > { %v1703_v5 = vadd.f32 %v1687_v45, %v19034_v9  ;;  %v1702_v8 = vadd.f32 %v1686_v15, %v19036_v16 }
 0x20d   : > { %v1731_v48 = vpop.permute.xlu1 %1730  ;;  %v1726_v28 = vpop.permute.xlu0 %1725 }
 0x20e   : > { %v1808_v4 = vmul.f32 %v13755_v40, %v1731_v48  ;;  %v1807_v44 = vmul.f32 %v13755_v40, %v1726_v28  ;;  %2205 = vperm.xlu1 %17810, %v13808_v23   ;;  %2200 = vperm.xlu0 %17809, %v13807_v33  }
 0x210   : > { %v19167_v51 = vadd.f32 %v1808_v4, %v19053_v31  ;;  %v19170_v58 = vadd.f32 %v1807_v44, %v19055_v54 }
 0x211   : > { %v1741_v35 = vpop.permute.xlu1 %1740  ;;  %v1736_v2 = vpop.permute.xlu0 %1735 }
 0x212   : > { %v1810_v47 = vmul.f32 %v13755_v40, %v1741_v35  ;;  %v1809_v59 = vmul.f32 %v13755_v40, %v1736_v2 }
 0x214   : > { %v19173_v9 = vadd.f32 %v1810_v47, %v19073_v11  ;;  %v19176_v16 = vadd.f32 %v1809_v59, %v19075_v0 }
 0x215   : > { %v1751_v46 = vpop.permute.xlu1 %1750  ;;  %v1746_v21 = vpop.permute.xlu0 %1745 }
 0x216   : > { %v1812_v19 = vmul.f32 %v13755_v40, %v1751_v46  ;;  %v1811_v3 = vmul.f32 %v13755_v40, %v1746_v21 }
 0x218   : > { %v19179_v31 = vadd.f32 %v1812_v19, %v19094_v53  ;;  %v19182_v54 = vadd.f32 %v1811_v3, %v19096_v20 }
 0x219   : > { %v1761_v24 = vpop.permute.xlu1 %1760  ;;  %v1756_v39 = vpop.permute.xlu0 %1755 }
 0x21a   : > { %v1814_v34 = vmul.f32 %v13755_v40, %v1761_v24  ;;  %v1813_v30 = vmul.f32 %v13755_v40, %v1756_v39  ;;  %v19241_v24 = vld [vmem:[%s23577_s30 + $0xd] ss:$0 sm:$0xff] }
 0x21c   : > { %v19185_v11 = vadd.f32 %v1814_v34, %v19114_v56  ;;  %v19188_v0 = vadd.f32 %v1813_v30, %v19116_v1  ;;  %v19250_v30 = vld [vmem:[%s23577_s30 + $0xe] ss:$0 sm:$0xff] }
 0x21d   : > { %v1771_v38 = vpop.permute.xlu1 %1770  ;;  %v1766_v55 = vpop.permute.xlu0 %1765 }
 0x21e   : > { %v1816_v25 = vmul.f32 %v13755_v40, %v1771_v38  ;;  %v1815_v14 = vmul.f32 %v13755_v40, %v1766_v55 }
 0x220   : > { %v19191_v53 = vadd.f32 %v1816_v25, %v19135_v29  ;;  %v19194_v20 = vadd.f32 %v1815_v14, %v19137_v57 }
 0x221   : > { %v1781_v63 = vpop.permute.xlu1 %1780  ;;  %v1776_v6 = vpop.permute.xlu0 %1775 }
 0x222   : > { %v1818_v26 = vmul.f32 %v13755_v40, %v1781_v63  ;;  %v1817_v27 = vmul.f32 %v13755_v40, %v1776_v6 }
 0x224   : > { %v19197_v56 = vadd.f32 %v1818_v26, %v19147_v50  ;;  %v19200_v1 = vadd.f32 %v1817_v27, %v19149_v37 }
 0x225   : > { %v1791_v13 = vpop.permute.xlu1 %1790  ;;  %v1786_v41 = vpop.permute.xlu0 %1785 }
 0x226   : > { %v1820_v32 = vmul.f32 %v13755_v40, %v1791_v13  ;;  %v1819_v61 = vmul.f32 %v13755_v40, %v1786_v41  ;;  %v19265_v13 = vld [vmem:[%s23577_s30 + $0xf] ss:$0 sm:$0xff] }
 0x228   : > { %v19202_v52 = vadd.f32 %v1820_v32, %v1701_v7  ;;  %v19204_v29 = vadd.f32 %v1819_v61, %v1700_v43 }
 0x229   : > { %v1801_v57 = vpop.permute.xlu1 %1800  ;;  %v1796_v42 = vpop.permute.xlu0 %1795 }
 0x22a   : > { %v1822_v49 = vmul.f32 %v13755_v40, %v1801_v57  ;;  %v1821_v12 = vmul.f32 %v13755_v40, %v1796_v42 }
 0x22c   : > { %v19206_v62 = vadd.f32 %v1822_v49, %v1703_v5  ;;  %v19208_v60 = vadd.f32 %v1821_v12, %v1702_v8 }
 0x22d   : > { %v1866_v50 = vpop.permute.xlu1 %1865  ;;  %v1861_v18 = vpop.permute.xlu0 %1860 }
 0x22e   : > { %v1943_v38 = vmul.f32 %v19241_v24, %v1866_v50  ;;  %v1942_v55 = vmul.f32 %v19241_v24, %v1861_v18 }
 0x230   : > { %v1959_v41 = vadd.f32 %v1943_v38, %v19167_v51  ;;  %v1958_v32 = vadd.f32 %v1942_v55, %v19170_v58 }
 0x231   : > { %v1876_v37 = vpop.permute.xlu1 %1875  ;;  %v1871_v17 = vpop.permute.xlu0 %1870 }
 0x232   : > { %v1945_v26 = vmul.f32 %v19241_v24, %v1876_v37  ;;  %v1944_v27 = vmul.f32 %v19241_v24, %v1871_v17 }
 0x234   : > { %v1961_v17 = vadd.f32 %v1945_v26, %v19173_v9 }
 0x235   : > { %v1886_v10 = vpop.permute.xlu1 %1885  ;;  %v1881_v45 = vpop.permute.xlu0 %1880 }
 0x236   : > { %v1947_v51 = vmul.f32 %v19241_v24, %v1886_v10  ;;  %v1946_v58 = vmul.f32 %v19241_v24, %v1881_v45 }
 0x239   : > { %v19210_v15 = vpop.permute.xlu1 %1895  ;;  %v19212_v7 = vpop.permute.xlu0 %1890 }
 0x23d   : > { %v19214_v43 = vpop.permute.xlu1 %1905  ;;  %v19216_v22 = vpop.permute.xlu0 %1900 }
 0x241   : > { %v19218_v36 = vpop.permute.xlu1 %1915  ;;  %v19220_v40 = vpop.permute.xlu0 %1910 }
 0x245   : > { %v19222_v23 = vpop.permute.xlu1 %1925  ;;  %v19224_v33 = vpop.permute.xlu0 %1920 }
 0x249   : > { %v19226_v5 = vpop.permute.xlu1 %1935  ;;  %v19228_v8 = vpop.permute.xlu0 %1930 }
 0x24d   : > { %v2001_v48 = vpop.permute.xlu1 %2000  ;;  %v1996_v28 = vpop.permute.xlu0 %1995 }
 0x24e   : > { %v2078_v63 = vmul.f32 %v19250_v30, %v2001_v48  ;;  %v2077_v6 = vmul.f32 %v19250_v30, %v1996_v28  ;;  %v1960_v48 = vadd.f32 %v1944_v27, %v19176_v16  ;;  %v19280_v28 = vld [vmem:[%s23733_s6] ss:$0 sm:$0xff] }
 0x250   : > { %v2094_v12 = vadd.f32 %v2078_v63, %v1959_v41  ;;  %v2093_v50 = vadd.f32 %v2077_v6, %v1958_v32  ;;  %v1963_v41 = vadd.f32 %v1947_v51, %v19179_v31  ;;  %v1962_v32 = vadd.f32 %v1946_v58, %v19182_v54 }
 0x251   : > { %v2011_v4 = vpop.permute.xlu1 %2010  ;;  %v2006_v44 = vpop.permute.xlu0 %2005  ;;  %v1951_v51 = vmul.f32 %v19241_v24, %v19214_v43  ;;  %v1950_v58 = vmul.f32 %v19241_v24, %v19216_v22 }
 0x252   : > { %v2080_v61 = vmul.f32 %v19250_v30, %v2011_v4  ;;  %v2079_v57 = vmul.f32 %v19250_v30, %v2006_v44 }
 0x254   : > { %v2096_v38 = vadd.f32 %v2080_v61, %v1961_v17  ;;  %v2095_v55 = vadd.f32 %v2079_v57, %v1960_v48 }
 0x255   : > { %v2021_v35 = vpop.permute.xlu1 %2020  ;;  %v2016_v2 = vpop.permute.xlu0 %2015 }
 0x256   : > { %v2082_v63 = vmul.f32 %v19250_v30, %v2021_v35  ;;  %v2081_v9 = vmul.f32 %v19250_v30, %v2016_v2  ;;  %v1949_v35 = vmul.f32 %v19241_v24, %v19210_v15  ;;  %v1948_v2 = vmul.f32 %v19241_v24, %v19212_v7 }
 0x258   : > { %v1964_v48 = vadd.f32 %v1948_v2, %v19188_v0 }
 0x259   : > { %v2031_v47 = vpop.permute.xlu1 %2030  ;;  %v2026_v59 = vpop.permute.xlu0 %2025 }
 0x25d   : > { %v19230_v46 = vpop.permute.xlu1 %2040  ;;  %v19232_v21 = vpop.permute.xlu0 %2035 }
 0x261   : > { %v19234_v19 = vpop.permute.xlu1 %2050  ;;  %v19236_v3 = vpop.permute.xlu0 %2045 }
 0x265   : > { %v19243_v39 = vpop.permute.xlu1 %2060  ;;  %v19245_v34 = vpop.permute.xlu0 %2055 }
 0x269   : > { %v19254_v25 = vpop.permute.xlu1 %2070  ;;  %v19256_v14 = vpop.permute.xlu0 %2065 }
 0x26d   : > { %v2136_v42 = vpop.permute.xlu1 %2135  ;;  %v2131_v49 = vpop.permute.xlu0 %2130 }
 0x26e   : > { %v2213_v18 = vmul.f32 %v19265_v13, %v2136_v42  ;;  %v2212_v37 = vmul.f32 %v19265_v13, %v2131_v49 }
 0x270   : > { %v2229_v4 = vadd.f32 %v2213_v18, %v2094_v12  ;;  %v2228_v44 = vadd.f32 %v2212_v37, %v2093_v50  ;;  %v2098_v12 = vadd.f32 %v2082_v63, %v1963_v41  ;;  %v2097_v50 = vadd.f32 %v2081_v9, %v1962_v32 }
 0x271   : > { %v2146_v6 = vpop.permute.xlu1 %2145  ;;  %v2141_v16 = vpop.permute.xlu0 %2140  ;;  %v2084_v18 = vmul.f32 %v19250_v30, %v2031_v47  ;;  %v2083_v37 = vmul.f32 %v19250_v30, %v2026_v59  ;;  %v1965_v59 = vadd.f32 %v1949_v35, %v19185_v11  ;;  %v2085_v11 = vmul.f32 %v19250_v30, %v19232_v21 }
 0x272   : > { %v2252_v10 = vadd.f32 %v19280_v28, %v2229_v4  ;;  %v2251_v45 = vadd.f32 %v19280_v28, %v2228_v44  ;;  %v2215_v26 = vmul.f32 %v19265_v13, %v2146_v6  ;;  %v2214_v27 = vmul.f32 %v19265_v13, %v2141_v16 }
 0x273   : > { %v2100_v63 = vadd.f32 %v2084_v18, %v1965_v59  ;;  %v2099_v9 = vadd.f32 %v2083_v37, %v1964_v48  ;;  %v2086_v6 = vmul.f32 %v19250_v30, %v19230_v46  ;;  %v1967_v46 = vadd.f32 %v1951_v51, %v19191_v53 }
 0x274   : > { %v2268_v61 = vmax.f32 %v2252_v10, 0.0  ;;  %v2267_v57 = vmax.f32 %v2251_v45, 0.0  ;;  %v2231_v42 = vadd.f32 %v2215_v26, %v2096_v38  ;;  %v2230_v49 = vadd.f32 %v2214_v27, %v2095_v55 }
 0x275   : > { %v2156_v17 = vpop.permute.xlu1 %2155  ;;  %v2151_v31 = vpop.permute.xlu0 %2150  ;;  %v1966_v21 = vadd.f32 %v1950_v58, %v19194_v20  ;;  %v1953_v26 = vmul.f32 %v19241_v24, %v19218_v36  ;;  %v1952_v27 = vmul.f32 %v19241_v24, %v19220_v40  ;;  %v2087_v53 = vmul.f32 %v19250_v30, %v19236_v3 }
 0x276   : > { %2286 = vst.msk [vmem:[%s19298_s2 + $0x8] sm:$0xff] %vm2284_vm0, %v2268_v61  ;;  %2285 = vst.msk [vmem:[%s19298_s2] sm:$0xff] %vm2284_vm0, %v2267_v57  ;;  %v2254_v54 = vadd.f32 %v19280_v28, %v2231_v42  ;;  %v2253_v15 = vadd.f32 %v19280_v28, %v2230_v49  ;;  %v2217_v7 = vmul.f32 %v19265_v13, %v2156_v17 }
 0x277   : > { %v2216_v47 = vmul.f32 %v19265_v13, %v2151_v31  ;;  %v2102_v61 = vadd.f32 %v2086_v6, %v1967_v46  ;;  %v2101_v57 = vadd.f32 %v2085_v11, %v1966_v21  ;;  %v2088_v42 = vmul.f32 %v19250_v30, %v19234_v19 }
 0x278   : > { %v2270_v4 = vmax.f32 %v2254_v54, 0.0  ;;  %v2269_v44 = vmax.f32 %v2253_v15, 0.0  ;;  %v2233_v38 = vadd.f32 %v2217_v7, %v2098_v12  ;;  %v1969_v19 = vadd.f32 %v1953_v26, %v19197_v56 }
 0x279   : > { %v2232_v55 = vadd.f32 %v2216_v47, %v2097_v50  ;;  %v2166_v16 = vpop.permute.xlu1 %2165  ;;  %v2161_v0 = vpop.permute.xlu0 %2160  ;;  %v1968_v3 = vadd.f32 %v1952_v27, %v19200_v1  ;;  %v1955_v18 = vmul.f32 %v19241_v24, %v19222_v23  ;;  %v1954_v37 = vmul.f32 %v19241_v24, %v19224_v33 }
 0x27a   : > { %2288 = vst.msk [vmem:[%s19298_s2 + $0x18] sm:$0xff] %vm2284_vm0, %v2270_v4  ;;  %2287 = vst.msk [vmem:[%s19298_s2 + $0x10] sm:$0xff] %vm2284_vm0, %v2269_v44  ;;  %v2256_v43 = vadd.f32 %v19280_v28, %v2233_v38  ;;  %v2219_v10 = vmul.f32 %v19265_v13, %v2166_v16  ;;  %v2218_v45 = vmul.f32 %v19265_v13, %v2161_v0 }
 0x27b   : > { %v2255_v22 = vadd.f32 %v19280_v28, %v2232_v55  ;;  %v2104_v7 = vadd.f32 %v2088_v42, %v1969_v19  ;;  %v2103_v47 = vadd.f32 %v2087_v53, %v1968_v3  ;;  %v2090_v59 = vmul.f32 %v19250_v30, %v19243_v39 }
 0x27c   : > { %v2272_v41 = vmax.f32 %v2256_v43, 0.0  ;;  %v2235_v35 = vadd.f32 %v2219_v10, %v2100_v63  ;;  %v2234_v2 = vadd.f32 %v2218_v45, %v2099_v9  ;;  %v2089_v56 = vmul.f32 %v19250_v30, %v19245_v34 }
 0x27d   : > { %v2271_v32 = vmax.f32 %v2255_v22, 0.0  ;;  %v2176_v49 = vpop.permute.xlu1 %2175  ;;  %v2171_v20 = vpop.permute.xlu0 %2170  ;;  %v1971_v39 = vadd.f32 %v1955_v18, %v19202_v52  ;;  %v1970_v34 = vadd.f32 %v1954_v37, %v19204_v29  ;;  %v1957_v4 = vmul.f32 %v19241_v24, %v19226_v5 }
 0x27e   : > { %2290 = vst.msk [vmem:[%s19298_s2 + $0x28] sm:$0xff] %vm2284_vm0, %v2272_v41  ;;  %v2258_v36 = vadd.f32 %v19280_v28, %v2235_v35  ;;  %v2257_v40 = vadd.f32 %v19280_v28, %v2234_v2  ;;  %v2221_v12 = vmul.f32 %v19265_v13, %v2176_v49  ;;  %v2220_v50 = vmul.f32 %v19265_v13, %v2171_v20 }
 0x27f   : > { %2289 = vst.msk [vmem:[%s19298_s2 + $0x20] sm:$0xff] %vm2284_vm0, %v2271_v32  ;;  %v1956_v44 = vmul.f32 %v19241_v24, %v19228_v8  ;;  %v2106_v6 = vadd.f32 %v2090_v59, %v1971_v39  ;;  %v2105_v11 = vadd.f32 %v2089_v56, %v1970_v34  ;;  %v2092_v16 = vmul.f32 %v19250_v30, %v19254_v25 }
 0x280   : > { %v2274_v17 = vmax.f32 %v2258_v36, 0.0  ;;  %v2273_v31 = vmax.f32 %v2257_v40, 0.0  ;;  %v2237_v54 = vadd.f32 %v2221_v12, %v2102_v61  ;;  %v2236_v15 = vadd.f32 %v2220_v50, %v2101_v57 }
 0x281   : > { %v2186_v48 = vpop.permute.xlu1 %2185  ;;  %v2181_v1 = vpop.permute.xlu0 %2180  ;;  %v2091_v52 = vmul.f32 %v19250_v30, %v19256_v14  ;;  %v1973_v25 = vadd.f32 %v1957_v4, %v19206_v62  ;;  %v1972_v30 = vadd.f32 %v1956_v44, %v19208_v60 }
 0x282   : > { %2292 = vst.msk [vmem:[%s19298_s2 + $0x38] sm:$0xff] %vm2284_vm0, %v2274_v17  ;;  %2291 = vst.msk [vmem:[%s19298_s2 + $0x30] sm:$0xff] %vm2284_vm0, %v2273_v31  ;;  %v2260_v23 = vadd.f32 %v19280_v28, %v2237_v54  ;;  %v2259_v33 = vadd.f32 %v19280_v28, %v2236_v15  ;;  %v2223_v51 = vmul.f32 %v19265_v13, %v2186_v48 }
 0x283   : > { %v2222_v58 = vmul.f32 %v19265_v13, %v2181_v1  ;;  %v2108_v46 = vadd.f32 %v2092_v16, %v1973_v25  ;;  %v2107_v21 = vadd.f32 %v2091_v52, %v1972_v30 }
 0x284   : > { %v2276_v38 = vmax.f32 %v2260_v23, 0.0  ;;  %v2275_v55 = vmax.f32 %v2259_v33, 0.0  ;;  %v2239_v63 = vadd.f32 %v2223_v51, %v2104_v7 }
 0x285   : > { %v2238_v9 = vadd.f32 %v2222_v58, %v2103_v47  ;;  %v2196_v0 = vpop.permute.xlu1 %2195  ;;  %v2191_v29 = vpop.permute.xlu0 %2190 }
 0x286   : > { %2294 = vst.msk [vmem:[%s19298_s2 + $0x48] sm:$0xff] %vm2284_vm0, %v2276_v38  ;;  %2293 = vst.msk [vmem:[%s19298_s2 + $0x40] sm:$0xff] %vm2284_vm0, %v2275_v55  ;;  %v2262_v5 = vadd.f32 %v19280_v28, %v2239_v63  ;;  %v2225_v24 = vmul.f32 %v19265_v13, %v2196_v0  ;;  %v2224_v43 = vmul.f32 %v19265_v13, %v2191_v29 }
 0x287   : > { %v2261_v8 = vadd.f32 %v19280_v28, %v2238_v9 }
 0x288   : > { %v2278_v14 = vmax.f32 %v2262_v5, 0.0  ;;  %v2241_v10 = vadd.f32 %v2225_v24, %v2106_v6  ;;  %v2240_v45 = vadd.f32 %v2224_v43, %v2105_v11 }
 0x289   : > { %v2277_v22 = vmax.f32 %v2261_v8, 0.0  ;;  %v2206_v26 = vpop.permute.xlu1 %2205  ;;  %v2201_v27 = vpop.permute.xlu0 %2200 }
 0x28a   : > { %2296 = vst.msk [vmem:[%s19298_s2 + $0x58] sm:$0xff] %vm2284_vm0, %v2278_v14  ;;  %v2264_v62 = vadd.f32 %v19280_v28, %v2241_v10  ;;  %v2263_v60 = vadd.f32 %v19280_v28, %v2240_v45  ;;  %v2227_v41 = vmul.f32 %v19265_v13, %v2206_v26  ;;  %v2226_v32 = vmul.f32 %v19265_v13, %v2201_v27 }
 0x28b   : > { %2295 = vst.msk [vmem:[%s19298_s2 + $0x50] sm:$0xff] %vm2284_vm0, %v2277_v22 }
 0x28c   : > { %v2280_v35 = vmax.f32 %v2264_v62, 0.0  ;;  %v2279_v2 = vmax.f32 %v2263_v60, 0.0  ;;  %v2243_v61 = vadd.f32 %v2227_v41, %v2108_v46  ;;  %v2242_v57 = vadd.f32 %v2226_v32, %v2107_v21 }
 0x28e   : > { %2298 = vst.msk [vmem:[%s19298_s2 + $0x68] sm:$0xff] %vm2284_vm0, %v2280_v35  ;;  %2297 = vst.msk [vmem:[%s19298_s2 + $0x60] sm:$0xff] %vm2284_vm0, %v2279_v2  ;;  %v2266_v42 = vadd.f32 %v19280_v28, %v2243_v61  ;;  %v2265_v53 = vadd.f32 %v19280_v28, %v2242_v57  ;;  %82 = sbr.rel (!%p80_p0) target bundleno = 10 (0xa), region = 246 }
 0x290   : > { %v2282_v49 = vmax.f32 %v2266_v42, 0.0  ;;  %v2281_v20 = vmax.f32 %v2265_v53, 0.0 }
 0x292   : > { %2300 = vst.msk [vmem:[%s19298_s2 + $0x78] sm:$0xff] %vm2284_vm0, %v2282_v49  ;;  %2299 = vst.msk [vmem:[%s19298_s2 + $0x70] sm:$0xff] %vm2284_vm0, %v2281_v20 }
 0x293 LB: > { %s23734_s7 = sld [smem:[#allocation181_spill]]  ;;  %s13811_s4 = sshll.u32 %s17845_s28, 7  ;;  %vm5995_vm1 = vcmask 261120   ;;  %s17845_s28 = sphi %s19403_s28, %s2306_s28  }
 0x294   : > { %s19426_s26 = scalar_lea.vmem [#allocation2], %s13811_s4  ;;  %s23790_s27 = sld [smem:[#allocation182_spill]] }
 0x295   : > { %s20594_s30 = scalar_lea.vmem [#allocation3], %s13811_s4  ;;  %s2306_s28 = sadd.s32 1, %s17845_s28  }
 0x296   : > { %p2303_p1 = scmp.ge.s32.totalorder %s2306_s28, 7  }
 0x297   :  { %s20680_s4 = smov (%p2303_p1), 0  }
 0x299   : > { %v13830_v13 = vld [vmem:[%s23734_s7 + $0x18] sm:$0xff]  ;;  %v2326_v28 = vld [vmem:[%s23734_s7 + $0x8] sm:$0xff]  ;;  %v13829_v36 = vld [vmem:[%s23734_s7 + $0x10] sm:$0xff] }
 0x29a   : > { %16022 = vmatprep.subr.mxu0 %v13830_v13  ;;  %16050 = vmatprep.subr.mxu1 %v2326_v28  ;;  %v2325_v40 = vld [vmem:[%s23734_s7] sm:$0xff]  ;;  %v13881_v12 = vld [vmem:[%s23734_s7 + $0x28] sm:$0xff]  ;;  %v13916_v37 = vld [vmem:[%s23734_s7 + $0x38] sm:$0xff] }
 0x29b   : > { %16023 = vmatpush3.msra.mxu0 %v13830_v13  ;;  %16051 = vmatpush3.msra.mxu1 %v2326_v28  ;;  %v13813_v50 = vld [vmem:[%s19426_s26 + $0x1] sm:$0xff]  ;;  %v13814_v3 = vld [vmem:[%s19426_s26 + $0x9] sm:$0xff]  ;;  %v19438_v17 = vld [vmem:[%s19426_s26 + $0x11] sm:$0xff] }
 0x29c   : > { %16024 = vmatprep.subr.mxu0 %v13829_v36  ;;  %16052 = vmatprep.subr.mxu1 %v2325_v40  ;;  %v2309_v19 = vld [vmem:[%s19426_s26] sm:$0xff]  ;;  %v2310_v18 = vld [vmem:[%s19426_s26 + $0x8] sm:$0xff]  ;;  %v19442_v31 = vld [vmem:[%s19426_s26 + $0x10] sm:$0xff] }
 0x29d   : > { %16025 = vmatpush3.msra.mxu0 %v13829_v36  ;;  %16053 = vmatpush3.msra.mxu1 %v2325_v40  ;;  %v19446_v54 = vld [vmem:[%s19426_s26 + $0x19] sm:$0xff]  ;;  %v19457_v47 = vld [vmem:[%s19426_s26 + $0x21] sm:$0xff]  ;;  %v13915_v56 = vld [vmem:[%s23734_s7 + $0x30] sm:$0xff] }
 0x29e   : > { %16026 = vmatprep.mubr.msk.f32.mxu0 %vm2284_vm0, %v13813_v50  ;;  %16054 = vmatprep.mubr.msk.f32.mxu1 %vm2284_vm0, %v2309_v19  ;;  %v13880_v15 = vld [vmem:[%s23734_s7 + $0x20] sm:$0xff]  ;;  %v19454_v7 = vld [vmem:[%s19426_s26 + $0x18] sm:$0xff]  ;;  %v19472_v48 = vld [vmem:[%s23734_s7 + $0x48] sm:$0xff] }
 0x29f   : > { %16078 = vmatprep.subr.mxu0 %v13881_v12  ;;  %16027 = vmatmul.mubr.msk.f32.vlgmr.msra.gmra.mxu0 %vm2284_vm0, %v13814_v3  ;;  %v19462_v59 = vld [vmem:[%s19426_s26 + $0x20] sm:$0xff]  ;;  %v19479_v1 = vld [vmem:[%s19426_s26 + $0x29] sm:$0xff]  ;;  %v19487_v33 = vld [vmem:[%s19426_s26 + $0x31] sm:$0xff] }
 0x2a0   : > { %16055 = vmatmul.mubr.msk.f32.vlgmr.msra.gmra.mxu1 %vm2284_vm0, %v2310_v18  ;;  %16079 = vmatpush3.msra.mxu0 %v13881_v12  ;;  %v19484_v23 = vld [vmem:[%s19426_s26 + $0x28] sm:$0xff]  ;;  %v19490_v51 = vld [vmem:[%s19426_s26 + $0x30] sm:$0xff]  ;;  %v13986_v58 = vld [vmem:[%s23734_s7 + $0x58] sm:$0xff] }
 0x2a1   : > { %16106 = vmatprep.subr.mxu1 %v13916_v37  ;;  %16029 = vmatprep.mubr.msk.f32.mxu0 %vm2284_vm0, %v19438_v17  ;;  %v19503_v39 = vld [vmem:[%s19426_s26 + $0x39] sm:$0xff]  ;;  %v19511_v4 = vld [vmem:[%s19426_s26 + $0x41] sm:$0xff]  ;;  %v19523_v38 = vld [vmem:[%s19426_s26 + $0x49] sm:$0xff] }
 0x2a2   : > { %16107 = vmatpush3.msra.mxu1 %v13916_v37  ;;  %16057 = vmatprep.mubr.msk.f32.mxu1 %vm2284_vm0, %v19442_v31  ;;  %v19508_v34 = vld [vmem:[%s19426_s26 + $0x38] sm:$0xff]  ;;  %v19514_v44 = vld [vmem:[%s19426_s26 + $0x40] sm:$0xff]  ;;  %v19528_v55 = vld [vmem:[%s19426_s26 + $0x48] sm:$0xff] }
 0x2a3   : > { %16030 = vmatmul.mubr.msk.f32.gmra.mxu0 %vm2284_vm0, %v19446_v54  ;;  %16080 = vmatprep.subr.mxu0 %v13880_v15  ;;  %v19531_v63 = vld [vmem:[%s19426_s26 + $0x51] sm:$0xff]  ;;  %v19543_v6 = vld [vmem:[%s19426_s26 + $0x59] sm:$0xff]  ;;  %v19551_v16 = vld [vmem:[%s19426_s26 + $0x61] sm:$0xff] }
 0x2a4   : > { %16058 = vmatmul.mubr.msk.f32.gmra.mxu1 %vm2284_vm0, %v19454_v7  ;;  %16032 = vmatprep.mubr.msk.f32.mxu0 %vm2284_vm0, %v19457_v47  ;;  %v19534_v9 = vld [vmem:[%s19426_s26 + $0x50] sm:$0xff]  ;;  %v19548_v11 = vld [vmem:[%s19426_s26 + $0x58] sm:$0xff]  ;;  %v19554_v52 = vld [vmem:[%s19426_s26 + $0x60] sm:$0xff] }
 0x2a5   : > { %16060 = vmatprep.mubr.msk.f32.mxu1 %vm2284_vm0, %v19462_v59  ;;  %16081 = vmatpush3.msra.mxu0 %v13880_v15  ;;  %v19563_v0 = vld [vmem:[%s19426_s26 + $0x69] sm:$0xff]  ;;  %v19571_v5 = vld [vmem:[%s19426_s26 + $0x71] sm:$0xff]  ;;  %v19583_v24 = vld [vmem:[%s19426_s26 + $0x79] sm:$0xff] }
 0x2a6   : > { %16108 = vmatprep.subr.mxu1 %v13915_v56  ;;  %16134 = vmatprep.subr.mxu0 %v19472_v48  ;;  %v19568_v29 = vld [vmem:[%s19426_s26 + $0x68] sm:$0xff]  ;;  %v19574_v8 = vld [vmem:[%s19426_s26 + $0x70] sm:$0xff]  ;;  %v19588_v43 = vld [vmem:[%s19426_s26 + $0x78] sm:$0xff] }
 0x2a7   : > { %16033 = vmatmul.mubr.msk.f32.gmra.mxu0 %vm2284_vm0, %v19479_v1  ;;  %16109 = vmatpush3.msra.mxu1 %v13915_v56  ;;  %v13864_v25 = vld [vmem:[%s19426_s26 + $0x2] sm:$0xff]  ;;  %v13865_v14 = vld [vmem:[%s19426_s26 + $0xa] sm:$0xff]  ;;  %v13866_v10 = vld [vmem:[%s19426_s26 + $0x12] sm:$0xff] }
 0x2a8   : > { %16061 = vmatmul.mubr.msk.f32.gmra.mxu1 %vm2284_vm0, %v19484_v23  ;;  %16035 = vmatprep.mubr.msk.f32.mxu0 %vm2284_vm0, %v19487_v33  ;;  %v13899_v30 = vld [vmem:[%s19426_s26 + $0x3] sm:$0xff]  ;;  %v13900_v22 = vld [vmem:[%s19426_s26 + $0xb] sm:$0xff]  ;;  %v13901_v45 = vld [vmem:[%s19426_s26 + $0x13] sm:$0xff] }
 0x2a9   : > { %16063 = vmatprep.mubr.msk.f32.mxu1 %vm2284_vm0, %v19490_v51  ;;  %16162 = vmatprep.subr.mxu1 %v13986_v58  ;;  %v13950_v46 = vld [vmem:[%s23734_s7 + $0x40] sm:$0xff]  ;;  %v13985_v26 = vld [vmem:[%s23734_s7 + $0x50] sm:$0xff]  ;;  %v19621_v41 = vld [vmem:[%s23734_s7 + $0x68] sm:$0xff] }
 0x2aa   : > { %v13867_v21 = vld [vmem:[%s19426_s26 + $0x1a] sm:$0xff]  ;;  %v13868_v62 = vld [vmem:[%s19426_s26 + $0x22] sm:$0xff]  ;;  %v19626_v32 = vld [vmem:[%s19426_s26 + $0x2a] sm:$0xff] }
 0x2ab   : > { %16036 = vmatmul.mubr.msk.f32.gmra.mxu0 %vm2284_vm0, %v19503_v39  ;;  %v13902_v27 = vld [vmem:[%s19426_s26 + $0x1b] sm:$0xff]  ;;  %v13903_v60 = vld [vmem:[%s19426_s26 + $0x23] sm:$0xff]  ;;  %v19633_v2 = vld [vmem:[%s19426_s26 + $0x2b] sm:$0xff] }
 0x2ac   : > { %16064 = vmatmul.mubr.msk.f32.gmra.mxu1 %vm2284_vm0, %v19508_v34  ;;  %16038 = vmatprep.mubr.msk.f32.mxu0 %vm2284_vm0, %v19511_v4  ;;  %v14056_v35 = vld [vmem:[%s23734_s7 + $0x78] sm:$0xff]  ;;  %v19657_v49 = vld [vmem:[%s19426_s26 + $0x42] sm:$0xff]  ;;  %v19669_v13 = vld [vmem:[%s19426_s26 + $0x4a] sm:$0xff] }
 0x2ad   : > { %16066 = vmatprep.mubr.msk.f32.mxu1 %vm2284_vm0, %v19514_v44  ;;  %v19636_v61 = vld [vmem:[%s19426_s26 + $0x32] sm:$0xff]  ;;  %v19649_v42 = vld [vmem:[%s19426_s26 + $0x3a] sm:$0xff]  ;;  %23737 = vst [vmem:[#allocation141_spill] sm:$0xff] %v19657_v49  ;;  %v19660_v20 = vld [vmem:[%s19426_s26 + $0x43] sm:$0xff] }
 0x2ae   : > { %v19639_v57 = vld [vmem:[%s19426_s26 + $0x33] sm:$0xff]  ;;  %23735 = vst [vmem:[#allocation139_spill] sm:$0xff] %v19649_v42  ;;  %v19654_v53 = vld [vmem:[%s19426_s26 + $0x3b] sm:$0xff]  ;;  %23738 = vst [vmem:[#allocation142_spill] sm:$0xff] %v19660_v20 }
 0x2af   : > { %16039 = vmatmul.mubr.msk.f32.gmra.mxu0 %vm2284_vm0, %v19523_v38  ;;  %23736 = vst [vmem:[#allocation140_spill] sm:$0xff] %v19654_v53  ;;  %23739 = vst [vmem:[#allocation143_spill] sm:$0xff] %v19669_v13  ;;  %v19674_v28 = vld [vmem:[%s19426_s26 + $0x4b] sm:$0xff]  ;;  %v19680_v40 = vld [vmem:[%s19426_s26 + $0x53] sm:$0xff] }
 0x2b0   : > { %16067 = vmatmul.mubr.msk.f32.gmra.mxu1 %vm2284_vm0, %v19528_v55  ;;  %16041 = vmatprep.mubr.msk.f32.mxu0 %vm2284_vm0, %v19531_v63  ;;  %23740 = vst [vmem:[#allocation144_spill] sm:$0xff] %v19674_v28  ;;  %v19677_v36 = vld [vmem:[%s19426_s26 + $0x52] sm:$0xff]  ;;  %23742 = vst [vmem:[#allocation146_spill] sm:$0xff] %v19680_v40  ;;  %v19689_v12 = vld [vmem:[%s19426_s26 + $0x5a] sm:$0xff] }
 0x2b1   : > { %16069 = vmatprep.mubr.msk.f32.mxu1 %vm2284_vm0, %v19534_v9  ;;  %23741 = vst [vmem:[#allocation145_spill] sm:$0xff] %v19677_v36  ;;  %23743 = vst [vmem:[#allocation147_spill] sm:$0xff] %v19689_v12  ;;  %v19694_v50 = vld [vmem:[%s19426_s26 + $0x5b] sm:$0xff]  ;;  %v19700_v3 = vld [vmem:[%s19426_s26 + $0x63] sm:$0xff] }
 0x2b2   : > { %23744 = vst [vmem:[#allocation148_spill] sm:$0xff] %v19694_v50  ;;  %v19697_v19 = vld [vmem:[%s19426_s26 + $0x62] sm:$0xff]  ;;  %23746 = vst [vmem:[#allocation150_spill] sm:$0xff] %v19700_v3  ;;  %v19709_v18 = vld [vmem:[%s19426_s26 + $0x6a] sm:$0xff] }
 0x2b3   : > { %16042 = vmatmul.mubr.msk.f32.gmra.mxu0 %vm2284_vm0, %v19543_v6  ;;  %23745 = vst [vmem:[#allocation149_spill] sm:$0xff] %v19697_v19  ;;  %23747 = vst [vmem:[#allocation151_spill] sm:$0xff] %v19709_v18  ;;  %v19714_v37 = vld [vmem:[%s19426_s26 + $0x6b] sm:$0xff]  ;;  %v19720_v56 = vld [vmem:[%s19426_s26 + $0x73] sm:$0xff] }
 0x2b4   : > { %16070 = vmatmul.mubr.msk.f32.gmra.mxu1 %vm2284_vm0, %v19548_v11  ;;  %16044 = vmatprep.mubr.msk.f32.mxu0 %vm2284_vm0, %v19551_v16  ;;  %23748 = vst [vmem:[#allocation152_spill] sm:$0xff] %v19714_v37  ;;  %v19717_v15 = vld [vmem:[%s19426_s26 + $0x72] sm:$0xff]  ;;  %23750 = vst [vmem:[#allocation154_spill] sm:$0xff] %v19720_v56 }
 0x2b5   : > { %16072 = vmatprep.mubr.msk.f32.mxu1 %vm2284_vm0, %v19554_v52  ;;  %23749 = vst [vmem:[#allocation153_spill] sm:$0xff] %v19717_v15 }
 0x2b7   : > { %16045 = vmatmul.mubr.msk.f32.gmra.mxu0 %vm2284_vm0, %v19563_v0 }
 0x2b8   : > { %16073 = vmatmul.mubr.msk.f32.gmra.mxu1 %vm2284_vm0, %v19568_v29  ;;  %16047 = vmatprep.mubr.msk.f32.mxu0 %vm2284_vm0, %v19571_v5 }
 0x2b9   : > { %16075 = vmatprep.mubr.msk.f32.mxu1 %vm2284_vm0, %v19574_v8 }
 0x2bb   : > { %16048 = vmatmul.mubr.msk.f32.gmra.mxu0 %vm2284_vm0, %v19583_v24 }
 0x2bc   : > { %16076 = vmatmul.mubr.msk.f32.gmra.mxu1 %vm2284_vm0, %v19588_v43  ;;  %16082 = vmatprep.mubr.msk.f32.mxu0 %vm2284_vm0, %v13864_v25  ;;  %v13934_v25 = vld [vmem:[%s19426_s26 + $0xe] sm:$0xff] }
 0x2bd   : > { %16110 = vmatprep.mubr.msk.f32.mxu1 %vm2284_vm0, %v13899_v30  ;;  %v13969_v30 = vld [vmem:[%s19426_s26 + $0xf] sm:$0xff] }
 0x2bf   : > { %16083 = vmatmul.mubr.msk.f32.vlgmr.msra.gmra.mxu0 %vm2284_vm0, %v13865_v14  ;;  %v13935_v14 = vld [vmem:[%s19426_s26 + $0x16] sm:$0xff] }
 0x2c0   : > { %16111 = vmatmul.mubr.msk.f32.vlgmr.msra.gmra.mxu1 %vm2284_vm0, %v13900_v22  ;;  %16135 = vmatpush3.msra.mxu0 %v19472_v48  ;;  %v19729_v48 = vld [vmem:[%s19426_s26 + $0x7a] sm:$0xff] }
 0x2c1   : > { %16163 = vmatpush3.msra.mxu1 %v13986_v58  ;;  %16085 = vmatprep.mubr.msk.f32.mxu0 %vm2284_vm0, %v13866_v10  ;;  %23751 = vst [vmem:[#allocation155_spill] sm:$0xff] %v19729_v48  ;;  %v19734_v58 = vld [vmem:[%s19426_s26 + $0x7b] sm:$0xff] }
 0x2c2   : > { %16113 = vmatprep.mubr.msk.f32.mxu1 %vm2284_vm0, %v13901_v45  ;;  %16136 = vmatprep.subr.mxu0 %v13950_v46  ;;  %23752 = vst [vmem:[#allocation156_spill] sm:$0xff] %v19734_v58  ;;  %v13970_v22 = vld [vmem:[%s19426_s26 + $0x17] sm:$0xff]  ;;  %v19751_v45 = vld [vmem:[%s19426_s26 + $0x1f] sm:$0xff] }
 0x2c3   : > { %16086 = vmatmul.mubr.msk.f32.gmra.mxu0 %vm2284_vm0, %v13867_v21  ;;  %16164 = vmatprep.subr.mxu1 %v13985_v26  ;;  %v19747_v10 = vld [vmem:[%s19426_s26 + $0x1e] sm:$0xff]  ;;  %v19759_v21 = vld [vmem:[%s19426_s26 + $0x26] sm:$0xff] }
 0x2c4   : > { %16114 = vmatmul.mubr.msk.f32.gmra.mxu1 %vm2284_vm0, %v13902_v27  ;;  %16088 = vmatprep.mubr.msk.f32.mxu0 %vm2284_vm0, %v13868_v62  ;;  %v19767_v27 = vld [vmem:[%s19426_s26 + $0x27] sm:$0xff] }
 0x2c5   : > { %16116 = vmatprep.mubr.msk.f32.mxu1 %vm2284_vm0, %v13903_v60  ;;  %16137 = vmatpush3.msra.mxu0 %v13950_v46  ;;  %v14020_v46 = vld [vmem:[%s23734_s7 + $0x60] sm:$0xff]  ;;  %v19770_v62 = vld [vmem:[%s19426_s26 + $0x2e] sm:$0xff] }
 0x2c6   : > { %16165 = vmatpush3.msra.mxu1 %v13985_v26  ;;  %16190 = vmatprep.subr.mxu0 %v19621_v41  ;;  %v14055_v26 = vld [vmem:[%s23734_s7 + $0x70] sm:$0xff] }
 0x2c7   : > { %16089 = vmatmul.mubr.msk.f32.gmra.mxu0 %vm2284_vm0, %v19626_v32  ;;  %16218 = vmatprep.subr.mxu1 %v14056_v35  ;;  %v19775_v60 = vld [vmem:[%s19426_s26 + $0x2f] sm:$0xff] }
 0x2c8   : > { %16117 = vmatmul.mubr.msk.f32.gmra.mxu1 %vm2284_vm0, %v19633_v2  ;;  %16091 = vmatprep.mubr.msk.f32.mxu0 %vm2284_vm0, %v19636_v61 }
 0x2c9   : > { %16119 = vmatprep.mubr.msk.f32.mxu1 %vm2284_vm0, %v19639_v57 }
 0x2cb   : > { %16092 = vmatmul.mubr.msk.f32.gmra.mxu0 %vm2284_vm0, %v19649_v42  ;;  %v14125_v42 = vld [vmem:[%s23734_s7 + $0x90] sm:$0xff] }
 0x2cc   : > { %16120 = vmatmul.mubr.msk.f32.gmra.mxu1 %vm2284_vm0, %v19654_v53  ;;  %16094 = vmatprep.mubr.msk.f32.mxu0 %vm2284_vm0, %v19657_v49  ;;  %v19895_v49 = vld [vmem:[%s19426_s26 + $0x87] sm:$0xff] }
 0x2cd   : > { %16122 = vmatprep.mubr.msk.f32.mxu1 %vm2284_vm0, %v19660_v20  ;;  %v19890_v20 = vld [vmem:[%s19426_s26 + $0x86] sm:$0xff] }
 0x2ce   : > { %v14090_v53 = vld [vmem:[%s23734_s7 + $0x80] sm:$0xff] }
 0x2cf   : > { %16095 = vmatmul.mubr.msk.f32.gmra.mxu0 %vm2284_vm0, %v19669_v13  ;;  %v19881_v13 = vld [vmem:[%s19426_s26 + $0x7f] sm:$0xff] }
 0x2d0   : > { %16123 = vmatmul.mubr.msk.f32.gmra.mxu1 %vm2284_vm0, %v19674_v28  ;;  %16097 = vmatprep.mubr.msk.f32.mxu0 %vm2284_vm0, %v19677_v36  ;;  %v19875_v36 = vld [vmem:[%s19426_s26 + $0x77] sm:$0xff] }
 0x2d1   : > { %16125 = vmatprep.mubr.msk.f32.mxu1 %vm2284_vm0, %v19680_v40  ;;  %v19870_v40 = vld [vmem:[%s19426_s26 + $0x76] sm:$0xff]  ;;  %v19878_v28 = vld [vmem:[%s19426_s26 + $0x7e] sm:$0xff] }
 0x2d3   : > { %16098 = vmatmul.mubr.msk.f32.gmra.mxu0 %vm2284_vm0, %v19689_v12  ;;  %v19861_v12 = vld [vmem:[%s19426_s26 + $0x6f] sm:$0xff] }
 0x2d4   : > { %16126 = vmatmul.mubr.msk.f32.gmra.mxu1 %vm2284_vm0, %v19694_v50  ;;  %16100 = vmatprep.mubr.msk.f32.mxu0 %vm2284_vm0, %v19697_v19  ;;  %v19855_v19 = vld [vmem:[%s19426_s26 + $0x67] sm:$0xff] }
 0x2d5   : > { %16128 = vmatprep.mubr.msk.f32.mxu1 %vm2284_vm0, %v19700_v3  ;;  %v19850_v3 = vld [vmem:[%s19426_s26 + $0x66] sm:$0xff]  ;;  %v19858_v50 = vld [vmem:[%s19426_s26 + $0x6e] sm:$0xff] }
 0x2d7   : > { %16101 = vmatmul.mubr.msk.f32.gmra.mxu0 %vm2284_vm0, %v19709_v18  ;;  %v19841_v18 = vld [vmem:[%s19426_s26 + $0x5f] sm:$0xff] }
 0x2d8   : > { %16129 = vmatmul.mubr.msk.f32.gmra.mxu1 %vm2284_vm0, %v19714_v37  ;;  %16103 = vmatprep.mubr.msk.f32.mxu0 %vm2284_vm0, %v19717_v15  ;;  %v19835_v15 = vld [vmem:[%s19426_s26 + $0x57] sm:$0xff] }
 0x2d9   : > { %16131 = vmatprep.mubr.msk.f32.mxu1 %vm2284_vm0, %v19720_v56  ;;  %v19830_v56 = vld [vmem:[%s19426_s26 + $0x56] sm:$0xff]  ;;  %v19838_v37 = vld [vmem:[%s19426_s26 + $0x5e] sm:$0xff] }
 0x2db   : > { %16104 = vmatmul.mubr.msk.f32.gmra.mxu0 %vm2284_vm0, %v19729_v48  ;;  %v19821_v48 = vld [vmem:[%s19426_s26 + $0x4f] sm:$0xff] }
 0x2dc   : > { %16132 = vmatmul.mubr.msk.f32.gmra.mxu1 %vm2284_vm0, %v19734_v58  ;;  %16138 = vmatprep.mubr.msk.f32.mxu0 %vm2284_vm0, %v13934_v25  ;;  %v14126_v25 = vld [vmem:[%s23734_s7 + $0x98] sm:$0xff]  ;;  %v19810_v58 = vld [vmem:[%s19426_s26 + $0x46] sm:$0xff] }
 0x2dd   : > { %16166 = vmatprep.mubr.msk.f32.mxu1 %vm2284_vm0, %v13969_v30  ;;  %v19795_v30 = vld [vmem:[%s19426_s26 + $0x37] sm:$0xff] }
 0x2df   : > { %16139 = vmatmul.mubr.msk.f32.vlgmr.msra.gmra.mxu0 %vm2284_vm0, %v13935_v14  ;;  %v19798_v14 = vld [vmem:[%s19426_s26 + $0x3e] sm:$0xff] }
 0x2e0   : > { %16167 = vmatmul.mubr.msk.f32.vlgmr.msra.gmra.mxu1 %vm2284_vm0, %v13970_v22  ;;  %16191 = vmatpush3.msra.mxu0 %v19621_v41  ;;  %v14091_v41 = vld [vmem:[%s23734_s7 + $0x88] sm:$0xff]  ;;  %v19801_v22 = vld [vmem:[%s19426_s26 + $0x3f] sm:$0xff] }
 0x2e1   : > { %16219 = vmatpush3.msra.mxu1 %v14056_v35  ;;  %16141 = vmatprep.mubr.msk.f32.mxu0 %vm2284_vm0, %v19747_v10  ;;  %v19787_v35 = vld [vmem:[%s19426_s26 + $0x36] sm:$0xff] }
 0x2e2   : > { %16169 = vmatprep.mubr.msk.f32.mxu1 %vm2284_vm0, %v19751_v45  ;;  %16192 = vmatprep.subr.mxu0 %v14020_v46 }
 0x2e3   : > { %16142 = vmatmul.mubr.msk.f32.gmra.mxu0 %vm2284_vm0, %v19759_v21  ;;  %16220 = vmatprep.subr.mxu1 %v14055_v26 }
 0x2e4   : > { %16170 = vmatmul.mubr.msk.f32.gmra.mxu1 %vm2284_vm0, %v19767_v27  ;;  %16144 = vmatprep.mubr.msk.f32.mxu0 %vm2284_vm0, %v19770_v62 }
 0x2e5   : > { %16172 = vmatprep.mubr.msk.f32.mxu1 %vm2284_vm0, %v19775_v60  ;;  %16193 = vmatpush3.msra.mxu0 %v14020_v46  ;;  %v19815_v46 = vld [vmem:[%s19426_s26 + $0x47] sm:$0xff] }
 0x2e6   : > { %16221 = vmatpush3.msra.mxu1 %v14055_v26  ;;  %16246 = vmatprep.subr.mxu0 %v14091_v41  ;;  %v19818_v26 = vld [vmem:[%s19426_s26 + $0x4e] sm:$0xff] }
 0x2e7   : > { %16145 = vmatmul.mubr.msk.f32.gmra.mxu0 %vm2284_vm0, %v19787_v35  ;;  %16274 = vmatprep.subr.mxu1 %v14126_v25 }
 0x2e8   : > { %16173 = vmatmul.mubr.msk.f32.gmra.mxu1 %vm2284_vm0, %v19795_v30  ;;  %16147 = vmatprep.mubr.msk.f32.mxu0 %vm2284_vm0, %v19798_v14 }
 0x2e9   : > { %16175 = vmatprep.mubr.msk.f32.mxu1 %vm2284_vm0, %v19801_v22 }
 0x2eb   : > { %16148 = vmatmul.mubr.msk.f32.gmra.mxu0 %vm2284_vm0, %v19810_v58 }
 0x2ec   : > { %16176 = vmatmul.mubr.msk.f32.gmra.mxu1 %vm2284_vm0, %v19815_v46  ;;  %16150 = vmatprep.mubr.msk.f32.mxu0 %vm2284_vm0, %v19818_v26 }
 0x2ed   : > { %16178 = vmatprep.mubr.msk.f32.mxu1 %vm2284_vm0, %v19821_v48 }
 0x2ef   : > { %16151 = vmatmul.mubr.msk.f32.gmra.mxu0 %vm2284_vm0, %v19830_v56 }
 0x2f0   : > { %16179 = vmatmul.mubr.msk.f32.gmra.mxu1 %vm2284_vm0, %v19835_v15  ;;  %16153 = vmatprep.mubr.msk.f32.mxu0 %vm2284_vm0, %v19838_v37 }
 0x2f1   : > { %16181 = vmatprep.mubr.msk.f32.mxu1 %vm2284_vm0, %v19841_v18 }
 0x2f3   : > { %16154 = vmatmul.mubr.msk.f32.gmra.mxu0 %vm2284_vm0, %v19850_v3 }
 0x2f4   : > { %16182 = vmatmul.mubr.msk.f32.gmra.mxu1 %vm2284_vm0, %v19855_v19  ;;  %16156 = vmatprep.mubr.msk.f32.mxu0 %vm2284_vm0, %v19858_v50 }
 0x2f5   : > { %16184 = vmatprep.mubr.msk.f32.mxu1 %vm2284_vm0, %v19861_v12 }
 0x2f7   : > { %16157 = vmatmul.mubr.msk.f32.gmra.mxu0 %vm2284_vm0, %v19870_v40 }
 0x2f8   : > { %16185 = vmatmul.mubr.msk.f32.gmra.mxu1 %vm2284_vm0, %v19875_v36  ;;  %16159 = vmatprep.mubr.msk.f32.mxu0 %vm2284_vm0, %v19878_v28 }
 0x2f9   : > { %16187 = vmatprep.mubr.msk.f32.mxu1 %vm2284_vm0, %v19881_v13 }
 0x2fb   : > { %16160 = vmatmul.mubr.msk.f32.gmra.mxu0 %vm2284_vm0, %v19890_v20 }
 0x2fc   : > { %16188 = vmatmul.mubr.msk.f32.gmra.mxu1 %vm2284_vm0, %v19895_v49  ;;  %16194 = vmatprep.mubr.msk.f32.mxu0 %vm2284_vm0, %v19442_v31  ;;  %v14196_v31 = vld [vmem:[%s23734_s7 + $0xb8] sm:$0xff] }
 0x2fd   : > { %16222 = vmatprep.mubr.msk.f32.mxu1 %vm2284_vm0, %v19438_v17  ;;  %v14161_v17 = vld [vmem:[%s23734_s7 + $0xa8] sm:$0xff] }
 0x2ff   : > { %16195 = vmatmul.mubr.msk.f32.vlgmr.msra.gmra.mxu0 %vm2284_vm0, %v19454_v7  ;;  %v14053_v7 = vld [vmem:[%s19426_s26 + $0x81] sm:$0xff] }
 0x300   : > { %16223 = vmatmul.mubr.msk.f32.vlgmr.msra.gmra.mxu1 %vm2284_vm0, %v19446_v54  ;;  %16247 = vmatpush3.msra.mxu0 %v14091_v41  ;;  %v14018_v54 = vld [vmem:[%s19426_s26 + $0x80] sm:$0xff]  ;;  %v20074_v41 = vld [vmem:[%s19426_s26 + $0x6c] sm:$0xff] }
 0x301   : > { %16275 = vmatpush3.msra.mxu1 %v14126_v25  ;;  %16197 = vmatprep.mubr.msk.f32.mxu0 %vm2284_vm0, %v19462_v59  ;;  %v14054_v59 = vld [vmem:[%s19426_s26 + $0x89] sm:$0xff] }
 0x302   : > { %16225 = vmatprep.mubr.msk.f32.mxu1 %vm2284_vm0, %v19457_v47  ;;  %16248 = vmatprep.subr.mxu0 %v14090_v53  ;;  %v14019_v47 = vld [vmem:[%s19426_s26 + $0x88] sm:$0xff] }
 0x303   : > { %16198 = vmatmul.mubr.msk.f32.gmra.mxu0 %vm2284_vm0, %v19484_v23  ;;  %16276 = vmatprep.subr.mxu1 %v14125_v42  ;;  %v14109_v23 = vld [vmem:[%s19426_s26 + $0x1d] sm:$0xff]  ;;  %v20077_v25 = vld [vmem:[%s19426_s26 + $0x6d] sm:$0xff] }
 0x304   : > { %16226 = vmatmul.mubr.msk.f32.gmra.mxu1 %vm2284_vm0, %v19479_v1  ;;  %16200 = vmatprep.mubr.msk.f32.mxu0 %vm2284_vm0, %v19490_v51  ;;  %v14074_v1 = vld [vmem:[%s19426_s26 + $0x1c] sm:$0xff]  ;;  %v14110_v51 = vld [vmem:[%s19426_s26 + $0x25] sm:$0xff] }
 0x305   : > { %16228 = vmatprep.mubr.msk.f32.mxu1 %vm2284_vm0, %v19487_v33  ;;  %16249 = vmatpush3.msra.mxu0 %v14090_v53  ;;  %v14075_v33 = vld [vmem:[%s19426_s26 + $0x24] sm:$0xff] }
 0x306   : > { %16277 = vmatpush3.msra.mxu1 %v14125_v42  ;;  %16302 = vmatprep.subr.mxu0 %v14161_v17  ;;  %v20066_v42 = vld [vmem:[%s19426_s26 + $0x64] sm:$0xff] }
 0x307   : > { %16201 = vmatmul.mubr.msk.f32.gmra.mxu0 %vm2284_vm0, %v19508_v34  ;;  %16330 = vmatprep.subr.mxu1 %v14196_v31  ;;  %v19988_v34 = vld [vmem:[%s19426_s26 + $0x2d] sm:$0xff]  ;;  %v20071_v53 = vld [vmem:[%s19426_s26 + $0x65] sm:$0xff] }
 0x308   : > { %16229 = vmatmul.mubr.msk.f32.gmra.mxu1 %vm2284_vm0, %v19503_v39  ;;  %16203 = vmatprep.mubr.msk.f32.mxu0 %vm2284_vm0, %v19514_v44  ;;  %v19984_v39 = vld [vmem:[%s19426_s26 + $0x2c] sm:$0xff]  ;;  %v19995_v44 = vld [vmem:[%s19426_s26 + $0x34] sm:$0xff] }
 0x309   : > { %16231 = vmatprep.mubr.msk.f32.mxu1 %vm2284_vm0, %v19511_v4  ;;  %v14160_v4 = vld [vmem:[%s23734_s7 + $0xa0] sm:$0xff] }
 0x30b   : > { %16204 = vmatmul.mubr.msk.f32.gmra.mxu0 %vm2284_vm0, %v19528_v55  ;;  %v20003_v55 = vld [vmem:[%s19426_s26 + $0x35] sm:$0xff] }
 0x30c   : > { %16232 = vmatmul.mubr.msk.f32.gmra.mxu1 %vm2284_vm0, %v19523_v38  ;;  %16206 = vmatprep.mubr.msk.f32.mxu0 %vm2284_vm0, %v19534_v9  ;;  %v14195_v38 = vld [vmem:[%s23734_s7 + $0xb0] sm:$0xff]  ;;  %v20011_v9 = vld [vmem:[%s19426_s26 + $0x3d] sm:$0xff] }
 0x30d   : > { %16234 = vmatprep.mubr.msk.f32.mxu1 %vm2284_vm0, %v19531_v63  ;;  %v20006_v63 = vld [vmem:[%s19426_s26 + $0x3c] sm:$0xff] }
 0x30f   : > { %16207 = vmatmul.mubr.msk.f32.gmra.mxu0 %vm2284_vm0, %v19548_v11  ;;  %v20023_v11 = vld [vmem:[%s19426_s26 + $0x44] sm:$0xff] }
 0x310   : > { %16235 = vmatmul.mubr.msk.f32.gmra.mxu1 %vm2284_vm0, %v19543_v6  ;;  %16209 = vmatprep.mubr.msk.f32.mxu0 %vm2284_vm0, %v19554_v52  ;;  %v14231_v6 = vld [vmem:[%s23734_s7 + $0xc8] sm:$0xff] }
 0x311   : > { %16237 = vmatprep.mubr.msk.f32.mxu1 %vm2284_vm0, %v19551_v16  ;;  %v14266_v16 = vld [vmem:[%s23734_s7 + $0xd8] sm:$0xff]  ;;  %v20031_v52 = vld [vmem:[%s19426_s26 + $0x45] sm:$0xff] }
 0x313   : > { %16210 = vmatmul.mubr.msk.f32.gmra.mxu0 %vm2284_vm0, %v19568_v29  ;;  %v20037_v29 = vld [vmem:[%s19426_s26 + $0x4d] sm:$0xff] }
 0x314   : > { %16238 = vmatmul.mubr.msk.f32.gmra.mxu1 %vm2284_vm0, %v19563_v0  ;;  %16212 = vmatprep.mubr.msk.f32.mxu0 %vm2284_vm0, %v19574_v8  ;;  %v20034_v0 = vld [vmem:[%s19426_s26 + $0x4c] sm:$0xff]  ;;  %v20051_v8 = vld [vmem:[%s19426_s26 + $0x55] sm:$0xff] }
 0x315   : > { %16240 = vmatprep.mubr.msk.f32.mxu1 %vm2284_vm0, %v19571_v5  ;;  %v20046_v5 = vld [vmem:[%s19426_s26 + $0x54] sm:$0xff] }
 0x317   : > { %16213 = vmatmul.mubr.msk.f32.gmra.mxu0 %vm2284_vm0, %v19588_v43  ;;  %v20057_v43 = vld [vmem:[%s19426_s26 + $0x5d] sm:$0xff] }
 0x318   : > { %16241 = vmatmul.mubr.msk.f32.gmra.mxu1 %vm2284_vm0, %v19583_v24  ;;  %16215 = vmatprep.mubr.msk.f32.mxu0 %vm2284_vm0, %v14018_v54  ;;  %v20054_v24 = vld [vmem:[%s19426_s26 + $0x5c] sm:$0xff] }
 0x319   : > { %16243 = vmatprep.mubr.msk.f32.mxu1 %vm2284_vm0, %v14053_v7  ;;  %v20094_v54 = vld [vmem:[%s19426_s26 + $0x7c] sm:$0xff] }
 0x31a   : > { %v20097_v7 = vld [vmem:[%s19426_s26 + $0x7d] sm:$0xff] }
 0x31b   : > { %16216 = vmatmul.mubr.msk.f32.gmra.mxu0 %vm2284_vm0, %v14019_v47  ;;  %v20106_v47 = vld [vmem:[%s19426_s26 + $0x84] sm:$0xff] }
 0x31c   : > { %16244 = vmatmul.mubr.msk.f32.gmra.mxu1 %vm2284_vm0, %v14054_v59  ;;  %16250 = vmatprep.mubr.msk.f32.mxu0 %vm2284_vm0, %v14074_v1  ;;  %v20111_v59 = vld [vmem:[%s19426_s26 + $0x85] sm:$0xff] }
 0x31d   : > { %16278 = vmatprep.mubr.msk.f32.mxu1 %vm2284_vm0, %v14109_v23  ;;  %v20114_v1 = vld [vmem:[%s19426_s26 + $0x8c] sm:$0xff] }
 0x31e   : > { %v20117_v23 = vld [vmem:[%s19426_s26 + $0x8d] sm:$0xff] }
 0x31f   : > { %16251 = vmatmul.mubr.msk.f32.vlgmr.msra.gmra.mxu0 %vm2284_vm0, %v14075_v33  ;;  %v20126_v33 = vld [vmem:[%s19426_s26 + $0x94] sm:$0xff] }
 0x320   : > { %16279 = vmatmul.mubr.msk.f32.vlgmr.msra.gmra.mxu1 %vm2284_vm0, %v14110_v51  ;;  %16303 = vmatpush3.msra.mxu0 %v14161_v17  ;;  %v20086_v17 = vld [vmem:[%s19426_s26 + $0x74] sm:$0xff] }
 0x321   : > { %16331 = vmatpush3.msra.mxu1 %v14196_v31  ;;  %16253 = vmatprep.mubr.msk.f32.mxu0 %vm2284_vm0, %v19984_v39  ;;  %v20091_v31 = vld [vmem:[%s19426_s26 + $0x75] sm:$0xff] }
 0x322   : > { %16281 = vmatprep.mubr.msk.f32.mxu1 %vm2284_vm0, %v19988_v34  ;;  %16304 = vmatprep.subr.mxu0 %v14160_v4  ;;  %v20131_v51 = vld [vmem:[%s19426_s26 + $0x95] sm:$0xff] }
 0x323   : > { %16254 = vmatmul.mubr.msk.f32.gmra.mxu0 %vm2284_vm0, %v19995_v44  ;;  %16332 = vmatprep.subr.mxu1 %v14195_v38 }
 0x324   : > { %16282 = vmatmul.mubr.msk.f32.gmra.mxu1 %vm2284_vm0, %v20003_v55  ;;  %16256 = vmatprep.mubr.msk.f32.mxu0 %vm2284_vm0, %v20006_v63 }
 0x325   : > { %16284 = vmatprep.mubr.msk.f32.mxu1 %vm2284_vm0, %v20011_v9  ;;  %16305 = vmatpush3.msra.mxu0 %v14160_v4  ;;  %v14230_v4 = vld [vmem:[%s23734_s7 + $0xc0] sm:$0xff] }
 0x326   : > { %16333 = vmatpush3.msra.mxu1 %v14195_v38  ;;  %16358 = vmatprep.subr.mxu0 %v14231_v6  ;;  %v14265_v38 = vld [vmem:[%s23734_s7 + $0xd0] sm:$0xff] }
 0x327   : > { %16257 = vmatmul.mubr.msk.f32.gmra.mxu0 %vm2284_vm0, %v20023_v11  ;;  %16386 = vmatprep.subr.mxu1 %v14266_v16 }
 0x328   : > { %16285 = vmatmul.mubr.msk.f32.gmra.mxu1 %vm2284_vm0, %v20031_v52  ;;  %16259 = vmatprep.mubr.msk.f32.mxu0 %vm2284_vm0, %v20034_v0 }
 0x329   : > { %16287 = vmatprep.mubr.msk.f32.mxu1 %vm2284_vm0, %v20037_v29 }
 0x32b   : > { %16260 = vmatmul.mubr.msk.f32.gmra.mxu0 %vm2284_vm0, %v20046_v5 }
 0x32c   : > { %16288 = vmatmul.mubr.msk.f32.gmra.mxu1 %vm2284_vm0, %v20051_v8  ;;  %16262 = vmatprep.mubr.msk.f32.mxu0 %vm2284_vm0, %v20054_v24 }
 0x32d   : > { %16290 = vmatprep.mubr.msk.f32.mxu1 %vm2284_vm0, %v20057_v43 }
 0x32f   : > { %16263 = vmatmul.mubr.msk.f32.gmra.mxu0 %vm2284_vm0, %v20066_v42 }
 0x330   : > { %16291 = vmatmul.mubr.msk.f32.gmra.mxu1 %vm2284_vm0, %v20071_v53  ;;  %16265 = vmatprep.mubr.msk.f32.mxu0 %vm2284_vm0, %v20074_v41 }
 0x331   : > { %16293 = vmatprep.mubr.msk.f32.mxu1 %vm2284_vm0, %v20077_v25 }
 0x333   : > { %16266 = vmatmul.mubr.msk.f32.gmra.mxu0 %vm2284_vm0, %v20086_v17 }
 0x334   : > { %16294 = vmatmul.mubr.msk.f32.gmra.mxu1 %vm2284_vm0, %v20091_v31  ;;  %16268 = vmatprep.mubr.msk.f32.mxu0 %vm2284_vm0, %v20094_v54 }
 0x335   : > { %16296 = vmatprep.mubr.msk.f32.mxu1 %vm2284_vm0, %v20097_v7 }
 0x337   : > { %16269 = vmatmul.mubr.msk.f32.gmra.mxu0 %vm2284_vm0, %v20106_v47 }
 0x338   : > { %16297 = vmatmul.mubr.msk.f32.gmra.mxu1 %vm2284_vm0, %v20111_v59  ;;  %16271 = vmatprep.mubr.msk.f32.mxu0 %vm2284_vm0, %v20114_v1 }
 0x339   : > { %16299 = vmatprep.mubr.msk.f32.mxu1 %vm2284_vm0, %v20117_v23 }
 0x33b   : > { %16272 = vmatmul.mubr.msk.f32.gmra.mxu0 %vm2284_vm0, %v20126_v33 }
 0x33c   : > { %16300 = vmatmul.mubr.msk.f32.gmra.mxu1 %vm2284_vm0, %v20131_v51  ;;  %16306 = vmatprep.mubr.msk.f32.mxu0 %vm2284_vm0, %v19747_v10  ;;  %v14301_v10 = vld [vmem:[%s23734_s7 + $0xe8] sm:$0xff] }
 0x33d   : > { %16334 = vmatprep.mubr.msk.f32.mxu1 %vm2284_vm0, %v19751_v45  ;;  %v14336_v45 = vld [vmem:[%s23734_s7 + $0xf8] sm:$0xff] }
 0x33f   : > { %16307 = vmatmul.mubr.msk.f32.vlgmr.msra.gmra.mxu0 %vm2284_vm0, %v19759_v21 }
 0x340   : > { %16335 = vmatmul.mubr.msk.f32.vlgmr.msra.gmra.mxu1 %vm2284_vm0, %v19767_v27  ;;  %16359 = vmatpush3.msra.mxu0 %v14231_v6  ;;  %v23758_v27 = vld [vmem:[#allocation144_spill] sm:$0xff] }
 0x341   : > { %16387 = vmatpush3.msra.mxu1 %v14266_v16  ;;  %16309 = vmatprep.mubr.msk.f32.mxu0 %vm2284_vm0, %v19770_v62  ;;  %v23762_v16 = vld [vmem:[#allocation148_spill] sm:$0xff] }
 0x342   : > { %16337 = vmatprep.mubr.msk.f32.mxu1 %vm2284_vm0, %v19775_v60  ;;  %16360 = vmatprep.subr.mxu0 %v14230_v4 }
 0x343   : > { %16310 = vmatmul.mubr.msk.f32.gmra.mxu0 %vm2284_vm0, %v19787_v35  ;;  %16388 = vmatprep.subr.mxu1 %v14265_v38 }
 0x344   : > { %16338 = vmatmul.mubr.msk.f32.gmra.mxu1 %vm2284_vm0, %v19795_v30  ;;  %16312 = vmatprep.mubr.msk.f32.mxu0 %vm2284_vm0, %v19798_v14  ;;  %v23759_v30 = vld [vmem:[#allocation145_spill] sm:$0xff] }
 0x345   : > { %16340 = vmatprep.mubr.msk.f32.mxu1 %vm2284_vm0, %v19801_v22  ;;  %16361 = vmatpush3.msra.mxu0 %v14230_v4  ;;  %v23760_v22 = vld [vmem:[#allocation146_spill] sm:$0xff] }
 0x346   : > { %16389 = vmatpush3.msra.mxu1 %v14265_v38  ;;  %16414 = vmatprep.subr.mxu0 %v14301_v10 }
 0x347   : > { %16313 = vmatmul.mubr.msk.f32.gmra.mxu0 %vm2284_vm0, %v19810_v58  ;;  %16442 = vmatprep.subr.mxu1 %v14336_v45 }
 0x348   : > { %16341 = vmatmul.mubr.msk.f32.gmra.mxu1 %vm2284_vm0, %v19815_v46  ;;  %16315 = vmatprep.mubr.msk.f32.mxu0 %vm2284_vm0, %v19818_v26  ;;  %v23761_v46 = vld [vmem:[#allocation147_spill] sm:$0xff] }
 0x349   : > { %16343 = vmatprep.mubr.msk.f32.mxu1 %vm2284_vm0, %v19821_v48  ;;  %v23757_v48 = vld [vmem:[#allocation143_spill] sm:$0xff] }
 0x34b   : > { %16316 = vmatmul.mubr.msk.f32.gmra.mxu0 %vm2284_vm0, %v19830_v56  ;;  %v23756_v56 = vld [vmem:[#allocation142_spill] sm:$0xff] }
 0x34c   : > { %16344 = vmatmul.mubr.msk.f32.gmra.mxu1 %vm2284_vm0, %v19835_v15  ;;  %16318 = vmatprep.mubr.msk.f32.mxu0 %vm2284_vm0, %v19838_v37  ;;  %v23755_v37 = vld [vmem:[#allocation141_spill] sm:$0xff] }
 0x34d   : > { %16346 = vmatprep.mubr.msk.f32.mxu1 %vm2284_vm0, %v19841_v18 }
 0x34f   : > { %16319 = vmatmul.mubr.msk.f32.gmra.mxu0 %vm2284_vm0, %v19850_v3  ;;  %v14158_v3 = vld [vmem:[%s19426_s26 + $0x8e] sm:$0xff] }
 0x350   : > { %16347 = vmatmul.mubr.msk.f32.gmra.mxu1 %vm2284_vm0, %v19855_v19  ;;  %16321 = vmatprep.mubr.msk.f32.mxu0 %vm2284_vm0, %v19858_v50  ;;  %v14193_v19 = vld [vmem:[%s19426_s26 + $0x8f] sm:$0xff] }
 0x351   : > { %16349 = vmatprep.mubr.msk.f32.mxu1 %vm2284_vm0, %v19861_v12  ;;  %v23753_v12 = vld [vmem:[#allocation139_spill] sm:$0xff]  ;;  %v23754_v50 = vld [vmem:[#allocation140_spill] sm:$0xff] }
 0x353   : > { %16322 = vmatmul.mubr.msk.f32.gmra.mxu0 %vm2284_vm0, %v19870_v40  ;;  %v14159_v40 = vld [vmem:[%s19426_s26 + $0x96] sm:$0xff] }
 0x354   : > { %16350 = vmatmul.mubr.msk.f32.gmra.mxu1 %vm2284_vm0, %v19875_v36  ;;  %16324 = vmatprep.mubr.msk.f32.mxu0 %vm2284_vm0, %v19878_v28  ;;  %v14194_v36 = vld [vmem:[%s19426_s26 + $0x97] sm:$0xff] }
 0x355   : > { %16352 = vmatprep.mubr.msk.f32.mxu1 %vm2284_vm0, %v19881_v13 }
 0x357   : > { %16325 = vmatmul.mubr.msk.f32.gmra.mxu0 %vm2284_vm0, %v19890_v20 }
 0x358   : > { %16353 = vmatmul.mubr.msk.f32.gmra.mxu1 %vm2284_vm0, %v19895_v49  ;;  %16327 = vmatprep.mubr.msk.f32.mxu0 %vm2284_vm0, %v14158_v3  ;;  %v14300_v49 = vld [vmem:[%s23734_s7 + $0xe0] sm:$0xff] }
 0x359   : > { %16355 = vmatprep.mubr.msk.f32.mxu1 %vm2284_vm0, %v14193_v19  ;;  %v23764_v19 = vld [vmem:[#allocation150_spill] sm:$0xff] }
 0x35b   : > { %16328 = vmatmul.mubr.msk.f32.gmra.mxu0 %vm2284_vm0, %v14159_v40  ;;  %v23765_v40 = vld [vmem:[#allocation151_spill] sm:$0xff] }
 0x35c   : > { %16356 = vmatmul.mubr.msk.f32.gmra.mxu1 %vm2284_vm0, %v14194_v36  ;;  %16362 = vmatprep.mubr.msk.f32.mxu0 %vm2284_vm0, %v19626_v32  ;;  %v14335_v32 = vld [vmem:[%s23734_s7 + $0xf0] sm:$0xff] }
 0x35d   : > { %16390 = vmatprep.mubr.msk.f32.mxu1 %vm2284_vm0, %v19633_v2 }
 0x35f   : > { %v16028_v20 = vpop.f32.mrf.mxu0  ;;  %16363 = vmatmul.mubr.msk.f32.vlgmr.msra.gmra.mxu0 %vm2284_vm0, %v19636_v61 }
 0x360   : > { %v16056_v13 = vpop.f32.mrf.mxu1  ;;  %16391 = vmatmul.mubr.msk.f32.vlgmr.msra.gmra.mxu1 %vm2284_vm0, %v19639_v57  ;;  %16415 = vmatpush3.msra.mxu0 %v14301_v10 }
 0x361   : > { %v20227_v28 = vadd.f32 %v16056_v13, %v16028_v20  ;;  %v2463_v2 = vpop.f32.mrf.mxu0  ;;  %16443 = vmatpush3.msra.mxu1 %v14336_v45  ;;  %16365 = vmatprep.mubr.msk.f32.mxu0 %vm2284_vm0, %v23753_v12  ;;  %v23763_v45 = vld [vmem:[#allocation149_spill] sm:$0xff] }
 0x362   : > { %v2656_v61 = vpop.f32.mrf.mxu1  ;;  %16393 = vmatprep.mubr.msk.f32.mxu1 %vm2284_vm0, %v23754_v50  ;;  %16416 = vmatprep.subr.mxu0 %v14300_v49  ;;  %v23767_v12 = vld [vmem:[#allocation153_spill] sm:$0xff]  ;;  %v23768_v50 = vld [vmem:[#allocation154_spill] sm:$0xff] }
 0x363   : > { %v20233_v18 = vadd.f32 %v2656_v61, %v2463_v2  ;;  %v16031_v57 = vpop.f32.mrf.mxu0  ;;  %16366 = vmatmul.mubr.msk.f32.gmra.mxu0 %vm2284_vm0, %v23755_v37  ;;  %16444 = vmatprep.subr.mxu1 %v14335_v32  ;;  %v14225_v37 = vld [vmem:[%s19426_s26 + $0x82] sm:$0xff] }
 0x364   : > { %v16059_v15 = vpop.f32.mrf.mxu1  ;;  %16394 = vmatmul.mubr.msk.f32.gmra.mxu1 %vm2284_vm0, %v23756_v56  ;;  %16368 = vmatprep.mubr.msk.f32.mxu0 %vm2284_vm0, %v23757_v48  ;;  %v23770_v48 = vld [vmem:[#allocation156_spill] sm:$0xff] }
 0x365   : > { %v20241_v58 = vadd.f32 %v16059_v15, %v16031_v57  ;;  %v2473_v21 = vpop.f32.mrf.mxu0  ;;  %16396 = vmatprep.mubr.msk.f32.mxu1 %vm2284_vm0, %v23758_v27  ;;  %16417 = vmatpush3.msra.mxu0 %v14300_v49  ;;  %v23766_v49 = vld [vmem:[#allocation152_spill] sm:$0xff]  ;;  %v23769_v57 = vld [vmem:[#allocation155_spill] sm:$0xff] }
 0x366   : > { %v2666_v62 = vpop.f32.mrf.mxu1  ;;  %16445 = vmatpush3.msra.mxu1 %v14335_v32  ;;  %v14226_v27 = vld [vmem:[%s19426_s26 + $0x8a] sm:$0xff] }
 0x367   : > { %v20245_v60 = vadd.f32 %v2666_v62, %v2473_v21  ;;  %v16034_v35 = vpop.f32.mrf.mxu0  ;;  %16369 = vmatmul.mubr.msk.f32.gmra.mxu0 %vm2284_vm0, %v23759_v30  ;;  %v14260_v21 = vld [vmem:[%s19426_s26 + $0x83] sm:$0xff] }
 0x368   : > { %v16062_v14 = vpop.f32.mrf.mxu1  ;;  %16397 = vmatmul.mubr.msk.f32.gmra.mxu1 %vm2284_vm0, %v23760_v22  ;;  %16371 = vmatprep.mubr.msk.f32.mxu0 %vm2284_vm0, %v23761_v46  ;;  %v14227_v46 = vld [vmem:[%s19426_s26 + $0x92] sm:$0xff] }
 0x369   : > { %v20253_v26 = vadd.f32 %v16062_v14, %v16034_v35  ;;  %v2483_v6 = vpop.f32.mrf.mxu0  ;;  %16399 = vmatprep.mubr.msk.f32.mxu1 %vm2284_vm0, %v23762_v16  ;;  %v14261_v35 = vld [vmem:[%s19426_s26 + $0x8b] sm:$0xff] }
 0x36a   : > { %v2676_v4 = vpop.f32.mrf.mxu1 }
 0x36b   : > { %v20257_v38 = vadd.f32 %v2676_v4, %v2483_v6  ;;  %v16037_v10 = vpop.f32.mrf.mxu0  ;;  %16372 = vmatmul.mubr.msk.f32.gmra.mxu0 %vm2284_vm0, %v23763_v45  ;;  %v14262_v4 = vld [vmem:[%s19426_s26 + $0x93] sm:$0xff] }
 0x36c   : > { %v16065_v3 = vpop.f32.mrf.mxu1  ;;  %16400 = vmatmul.mubr.msk.f32.gmra.mxu1 %vm2284_vm0, %v23764_v19  ;;  %16374 = vmatprep.mubr.msk.f32.mxu0 %vm2284_vm0, %v23765_v40 }
 0x36d   : > { %v20265_v36 = vadd.f32 %v16065_v3, %v16037_v10  ;;  %v2493_v20 = vpop.f32.mrf.mxu0  ;;  %16402 = vmatprep.mubr.msk.f32.mxu1 %vm2284_vm0, %v23766_v49  ;;  %v14228_v10 = vld [vmem:[%s19426_s26 + $0x9a] sm:$0xff]  ;;  %v14229_v49 = vld [vmem:[%s19426_s26 + $0xa2] sm:$0xff] }
 0x36e   : > { %v2686_v13 = vpop.f32.mrf.mxu1  ;;  %v14263_v3 = vld [vmem:[%s19426_s26 + $0x9b] sm:$0xff] }
 0x36f   : > { %v20269_v32 = vadd.f32 %v2686_v13, %v2493_v20  ;;  %v16040_v2 = vpop.f32.mrf.mxu0  ;;  %16375 = vmatmul.mubr.msk.f32.gmra.mxu0 %vm2284_vm0, %v23767_v12  ;;  %v14264_v12 = vld [vmem:[%s19426_s26 + $0xa3] sm:$0xff] }
 0x370   : > { %v16068_v61 = vpop.f32.mrf.mxu1  ;;  %16403 = vmatmul.mubr.msk.f32.gmra.mxu1 %vm2284_vm0, %v23768_v50  ;;  %16377 = vmatprep.mubr.msk.f32.mxu0 %vm2284_vm0, %v23769_v57 }
 0x371   : > { %v20278_v15 = vadd.f32 %v16068_v61, %v16040_v2  ;;  %v2503_v56 = vpop.f32.mrf.mxu0  ;;  %16405 = vmatprep.mubr.msk.f32.mxu1 %vm2284_vm0, %v23770_v48 }
 0x372   : > { %v2696_v62 = vpop.f32.mrf.mxu1 }
 0x373   : > { %v20285_v30 = vadd.f32 %v2696_v62, %v2503_v56  ;;  %v16043_v14 = vpop.f32.mrf.mxu0  ;;  %16378 = vmatmul.mubr.msk.f32.gmra.mxu0 %vm2284_vm0, %v14225_v37 }
 0x374   : > { %v16071_v22 = vpop.f32.mrf.mxu1  ;;  %16406 = vmatmul.mubr.msk.f32.gmra.mxu1 %vm2284_vm0, %v14260_v21  ;;  %16380 = vmatprep.mubr.msk.f32.mxu0 %vm2284_vm0, %v14226_v27 }
 0x375   : > { %v20291_v6 = vadd.f32 %v16071_v22, %v16043_v14  ;;  %v2513_v16 = vpop.f32.mrf.mxu0  ;;  %16408 = vmatprep.mubr.msk.f32.mxu1 %vm2284_vm0, %v14261_v35 }
 0x376   : > { %v2706_v45 = vpop.f32.mrf.mxu1 }
 0x377   : > { %v20297_v19 = vadd.f32 %v2706_v45, %v2513_v16  ;;  %v16046_v40 = vpop.f32.mrf.mxu0  ;;  %16381 = vmatmul.mubr.msk.f32.gmra.mxu0 %vm2284_vm0, %v14227_v46 }
 0x378   : > { %v16074_v20 = vpop.f32.mrf.mxu1  ;;  %16409 = vmatmul.mubr.msk.f32.gmra.mxu1 %vm2284_vm0, %v14262_v4  ;;  %16383 = vmatprep.mubr.msk.f32.mxu0 %vm2284_vm0, %v14228_v10 }
 0x379   : > { %v20303_v13 = vadd.f32 %v16074_v20, %v16046_v40  ;;  %v2523_v2 = vpop.f32.mrf.mxu0  ;;  %16411 = vmatprep.mubr.msk.f32.mxu1 %vm2284_vm0, %v14263_v3 }
 0x37a   : > { %v2716_v61 = vpop.f32.mrf.mxu1 }
 0x37b   : > { %v20307_v50 = vadd.f32 %v2716_v61, %v2523_v2  ;;  %v16049_v57 = vpop.f32.mrf.mxu0  ;;  %16384 = vmatmul.mubr.msk.f32.gmra.mxu0 %vm2284_vm0, %v14229_v49 }
 0x37c   : > { %v16077_v37 = vpop.f32.mrf.mxu1  ;;  %16412 = vmatmul.mubr.msk.f32.gmra.mxu1 %vm2284_vm0, %v14264_v12  ;;  %16418 = vmatprep.mubr.msk.f32.mxu0 %vm2284_vm0, %v19984_v39 }
 0x37d   : > { %v20313_v56 = vadd.f32 %v16077_v37, %v16049_v57  ;;  %v2533_v48 = vpop.f32.mrf.mxu0  ;;  %16446 = vmatprep.mubr.msk.f32.mxu1 %vm2284_vm0, %v19988_v34 }
 0x37e   : > { %v2726_v21 = vpop.f32.mrf.mxu1 }
 0x37f   : > { %v20317_v27 = vadd.f32 %v2726_v21, %v2533_v48  ;;  %v16084_v62 = vpop.f32.mrf.mxu0  ;;  %16419 = vmatmul.mubr.msk.f32.vlgmr.msra.gmra.mxu0 %vm2284_vm0, %v19995_v44 }
 0x380   : > { %v2950_v35 = vadd.f32 %v16084_v62, %v20227_v28  ;;  %v16112_v14 = vpop.f32.mrf.mxu1  ;;  %16447 = vmatmul.mubr.msk.f32.vlgmr.msra.gmra.mxu1 %vm2284_vm0, %v20003_v55  ;;  %16421 = vmatprep.mubr.msk.f32.mxu0 %vm2284_vm0, %v20006_v63 }
 0x381   : > { %v2870_v39 = vpop.f32.mrf.mxu0  ;;  %16449 = vmatprep.mubr.msk.f32.mxu1 %vm2284_vm0, %v20011_v9 }
 0x382   : > { %v20328_v34 = vadd.f32 %v16112_v14, %v2950_v35  ;;  %v2949_v22 = vadd.f32 %v2870_v39, %v20233_v18  ;;  %v3100_v46 = vpop.f32.mrf.mxu1 }
 0x383   : > { %v16087_v16 = vpop.f32.mrf.mxu0  ;;  %16422 = vmatmul.mubr.msk.f32.gmra.mxu0 %vm2284_vm0, %v20023_v11 }
 0x384   : > { %v20333_v44 = vadd.f32 %v3100_v46, %v2949_v22  ;;  %v2952_v55 = vadd.f32 %v16087_v16, %v20241_v58  ;;  %v16115_v28 = vpop.f32.mrf.mxu1  ;;  %16450 = vmatmul.mubr.msk.f32.gmra.mxu1 %vm2284_vm0, %v20031_v52  ;;  %16424 = vmatprep.mubr.msk.f32.mxu0 %vm2284_vm0, %v20034_v0 }
 0x385   : > { %v2880_v63 = vpop.f32.mrf.mxu0  ;;  %16452 = vmatprep.mubr.msk.f32.mxu1 %vm2284_vm0, %v20037_v29 }
 0x386   : > { %v20342_v9 = vadd.f32 %v16115_v28, %v2952_v55  ;;  %v2951_v18 = vadd.f32 %v2880_v63, %v20245_v60  ;;  %v3110_v11 = vpop.f32.mrf.mxu1 }
 0x387   : > { %v16090_v4 = vpop.f32.mrf.mxu0  ;;  %16425 = vmatmul.mubr.msk.f32.gmra.mxu0 %vm2284_vm0, %v20046_v5 }
 0x388   : > { %v20347_v58 = vadd.f32 %v3110_v11, %v2951_v18  ;;  %v2954_v52 = vadd.f32 %v16090_v4, %v20253_v26  ;;  %v16118_v10 = vpop.f32.mrf.mxu1  ;;  %16453 = vmatmul.mubr.msk.f32.gmra.mxu1 %vm2284_vm0, %v20051_v8  ;;  %16427 = vmatprep.mubr.msk.f32.mxu0 %vm2284_vm0, %v20054_v24 }
 0x389   : > { %v2890_v0 = vpop.f32.mrf.mxu0  ;;  %16455 = vmatprep.mubr.msk.f32.mxu1 %vm2284_vm0, %v20057_v43 }
 0x38a   : > { %v20356_v29 = vadd.f32 %v16118_v10, %v2954_v52  ;;  %v2953_v60 = vadd.f32 %v2890_v0, %v20257_v38  ;;  %v3120_v5 = vpop.f32.mrf.mxu1 }
 0x38b   : > { %v16093_v45 = vpop.f32.mrf.mxu0  ;;  %16428 = vmatmul.mubr.msk.f32.gmra.mxu0 %vm2284_vm0, %v20066_v42 }
 0x38c   : > { %v20361_v26 = vadd.f32 %v3120_v5, %v2953_v60  ;;  %v2956_v8 = vadd.f32 %v16093_v45, %v20265_v36  ;;  %v16121_v3 = vpop.f32.mrf.mxu1  ;;  %16456 = vmatmul.mubr.msk.f32.gmra.mxu1 %vm2284_vm0, %v20071_v53  ;;  %16430 = vmatprep.mubr.msk.f32.mxu0 %vm2284_vm0, %v20074_v41 }
 0x38d   : > { %v2900_v24 = vpop.f32.mrf.mxu0  ;;  %16458 = vmatprep.mubr.msk.f32.mxu1 %vm2284_vm0, %v20077_v25 }
 0x38e   : > { %v20370_v43 = vadd.f32 %v16121_v3, %v2956_v8  ;;  %v2955_v38 = vadd.f32 %v2900_v24, %v20269_v32  ;;  %v3130_v42 = vpop.f32.mrf.mxu1 }
 0x38f   : > { %v16096_v40 = vpop.f32.mrf.mxu0  ;;  %16431 = vmatmul.mubr.msk.f32.gmra.mxu0 %vm2284_vm0, %v20086_v17 }
 0x390   : > { %v20375_v36 = vadd.f32 %v3130_v42, %v2955_v38  ;;  %v2958_v53 = vadd.f32 %v16096_v40, %v20278_v15  ;;  %v16124_v20 = vpop.f32.mrf.mxu1  ;;  %16459 = vmatmul.mubr.msk.f32.gmra.mxu1 %vm2284_vm0, %v20091_v31  ;;  %16433 = vmatprep.mubr.msk.f32.mxu0 %vm2284_vm0, %v20094_v54 }
 0x391   : > { %v2910_v41 = vpop.f32.mrf.mxu0  ;;  %16461 = vmatprep.mubr.msk.f32.mxu1 %vm2284_vm0, %v20097_v7  ;;  %v14298_v7 = vld [vmem:[%s19426_s26 + $0x9c] sm:$0xff] }
 0x392   : > { %v20384_v25 = vadd.f32 %v16124_v20, %v2958_v53  ;;  %v2957_v17 = vadd.f32 %v2910_v41, %v20285_v30  ;;  %v3140_v32 = vpop.f32.mrf.mxu1 }
 0x393   : > { %v16099_v49 = vpop.f32.mrf.mxu0  ;;  %16434 = vmatmul.mubr.msk.f32.gmra.mxu0 %vm2284_vm0, %v20106_v47 }
 0x394   : > { %v20389_v15 = vadd.f32 %v3140_v32, %v2957_v17  ;;  %v2960_v31 = vadd.f32 %v16099_v49, %v20291_v6  ;;  %v16127_v2 = vpop.f32.mrf.mxu1  ;;  %16462 = vmatmul.mubr.msk.f32.gmra.mxu1 %vm2284_vm0, %v20111_v59  ;;  %16436 = vmatprep.mubr.msk.f32.mxu0 %vm2284_vm0, %v20114_v1  ;;  %v14333_v6 = vld [vmem:[%s19426_s26 + $0x9d] sm:$0xff] }
 0x395   : > { %v2920_v54 = vpop.f32.mrf.mxu0  ;;  %16464 = vmatprep.mubr.msk.f32.mxu1 %vm2284_vm0, %v20117_v23  ;;  %v14299_v23 = vld [vmem:[%s19426_s26 + $0xa4] sm:$0xff] }
 0x396   : > { %v20399_v30 = vadd.f32 %v16127_v2, %v2960_v31  ;;  %v2959_v47 = vadd.f32 %v2920_v54, %v20297_v19  ;;  %v3150_v12 = vpop.f32.mrf.mxu1  ;;  %v14334_v19 = vld [vmem:[%s19426_s26 + $0xa5] sm:$0xff] }
 0x397   : > { %v16102_v61 = vpop.f32.mrf.mxu0  ;;  %16437 = vmatmul.mubr.msk.f32.gmra.mxu0 %vm2284_vm0, %v20126_v33 }
 0x398   : > { %v20405_v59 = vadd.f32 %v3150_v12, %v2959_v47  ;;  %v2962_v1 = vadd.f32 %v16102_v61, %v20303_v13  ;;  %v16130_v57 = vpop.f32.mrf.mxu1  ;;  %16465 = vmatmul.mubr.msk.f32.gmra.mxu1 %vm2284_vm0, %v20131_v51  ;;  %16439 = vmatprep.mubr.msk.f32.mxu0 %vm2284_vm0, %v14298_v7 }
 0x399   : > { %v2930_v37 = vpop.f32.mrf.mxu0  ;;  %16467 = vmatprep.mubr.msk.f32.mxu1 %vm2284_vm0, %v14333_v6 }
 0x39a   : > { %v20414_v48 = vadd.f32 %v16130_v57, %v2962_v1  ;;  %v2961_v21 = vadd.f32 %v2930_v37, %v20307_v50  ;;  %v3160_v33 = vpop.f32.mrf.mxu1 }
 0x39b   : > { %v16105_v62 = vpop.f32.mrf.mxu0  ;;  %16440 = vmatmul.mubr.msk.f32.gmra.mxu0 %vm2284_vm0, %v14299_v23 }
 0x39c   : > { %v3191_v13 = vadd.f32 %v3160_v33, %v2961_v21  ;;  %v2964_v35 = vadd.f32 %v16105_v62, %v20313_v56  ;;  %v16133_v14 = vpop.f32.mrf.mxu1  ;;  %16468 = vmatmul.mubr.msk.f32.gmra.mxu1 %vm2284_vm0, %v14334_v19 }
 0x39d   : > { %v2940_v51 = vpop.f32.mrf.mxu0 }
 0x39e   : > { %v3194_v39 = vadd.f32 %v16133_v14, %v2964_v35  ;;  %v2963_v22 = vadd.f32 %v2940_v51, %v20317_v27  ;;  %v3170_v46 = vpop.f32.mrf.mxu1 }
 0x39f   : > { %v16140_v16 = vpop.f32.mrf.mxu0 }
 0x3a0   : > { %v3193_v55 = vadd.f32 %v3170_v46, %v2963_v22  ;;  %v3410_v28 = vadd.f32 %v16140_v16, %v20328_v34  ;;  %v16168_v50 = vpop.f32.mrf.mxu1 }
 0x3a1   : > { %v3330_v63 = vpop.f32.mrf.mxu0 }
 0x3a2   : > { %v3640_v18 = vadd.f32 %v16168_v50, %v3410_v28  ;;  %v3409_v11 = vadd.f32 %v3330_v63, %v20333_v44  ;;  %v3560_v4 = vpop.f32.mrf.mxu1 }
 0x3a3   : > { %v16143_v52 = vpop.f32.mrf.mxu0 }
 0x3a4   : > { %v3639_v56 = vadd.f32 %v3560_v4, %v3409_v11  ;;  %v3412_v10 = vadd.f32 %v16143_v52, %v20342_v9  ;;  %v16171_v0 = vpop.f32.mrf.mxu1 }
 0x3a5   : > { %v3340_v60 = vpop.f32.mrf.mxu0 }
 0x3a6   : > { %v3642_v5 = vadd.f32 %v16171_v0, %v3412_v10  ;;  %v3411_v27 = vadd.f32 %v3340_v60, %v20347_v58  ;;  %v3570_v45 = vpop.f32.mrf.mxu1 }
 0x3a7   : > { %v16146_v8 = vpop.f32.mrf.mxu0 }
 0x3a8   : > { %v3641_v3 = vadd.f32 %v3570_v45, %v3411_v27  ;;  %v3414_v34 = vadd.f32 %v16146_v8, %v20356_v29  ;;  %v16174_v24 = vpop.f32.mrf.mxu1 }
 0x3a9   : > { %v3350_v38 = vpop.f32.mrf.mxu0 }
 0x3aa   : > { %v3644_v42 = vadd.f32 %v16174_v24, %v3414_v34  ;;  %v3413_v44 = vadd.f32 %v3350_v38, %v20361_v26  ;;  %v3580_v40 = vpop.f32.mrf.mxu1 }
 0x3ab   : > { %v16149_v53 = vpop.f32.mrf.mxu0 }
 0x3ac   : > { %v3643_v20 = vadd.f32 %v3580_v40, %v3413_v44  ;;  %v3416_v9 = vadd.f32 %v16149_v53, %v20370_v43  ;;  %v16177_v41 = vpop.f32.mrf.mxu1 }
 0x3ad   : > { %v3360_v17 = vpop.f32.mrf.mxu0 }
 0x3ae   : > { %v3646_v32 = vadd.f32 %v16177_v41, %v3416_v9  ;;  %v3415_v58 = vadd.f32 %v3360_v17, %v20375_v36  ;;  %v3590_v49 = vpop.f32.mrf.mxu1 }
 0x3af   : > { %v16152_v31 = vpop.f32.mrf.mxu0 }
 0x3b0   : > { %v3645_v2 = vadd.f32 %v3590_v49, %v3415_v58  ;;  %v3418_v29 = vadd.f32 %v16152_v31, %v20384_v25  ;;  %v16180_v54 = vpop.f32.mrf.mxu1 }
 0x3b1   : > { %v3370_v7 = vpop.f32.mrf.mxu0 }
 0x3b2   : > { %v3648_v47 = vadd.f32 %v16180_v54, %v3418_v29  ;;  %v3417_v26 = vadd.f32 %v3370_v7, %v20389_v15  ;;  %v3600_v12 = vpop.f32.mrf.mxu1 }
 0x3b3   : > { %v16155_v6 = vpop.f32.mrf.mxu0 }
 0x3b4   : > { %v3647_v61 = vadd.f32 %v3600_v12, %v3417_v26  ;;  %v3420_v43 = vadd.f32 %v16155_v6, %v20399_v30  ;;  %v16183_v1 = vpop.f32.mrf.mxu1 }
 0x3b5   : > { %v3380_v57 = vpop.f32.mrf.mxu0 }
 0x3b6   : > { %v3650_v23 = vadd.f32 %v16183_v1, %v3420_v43  ;;  %v3419_v36 = vadd.f32 %v3380_v57, %v20405_v59  ;;  %v3610_v37 = vpop.f32.mrf.mxu1 }
 0x3b7   : > { %v16158_v19 = vpop.f32.mrf.mxu0 }
 0x3b8   : > { %v3649_v21 = vadd.f32 %v3610_v37, %v3419_v36  ;;  %v3422_v25 = vadd.f32 %v16158_v19, %v20414_v48  ;;  %v16186_v33 = vpop.f32.mrf.mxu1 }
 0x3b9   : > { %v3390_v62 = vpop.f32.mrf.mxu0 }
 0x3ba   : > { %v3652_v35 = vadd.f32 %v16186_v33, %v3422_v25  ;;  %v3421_v14 = vadd.f32 %v3390_v62, %v3191_v13  ;;  %v3620_v15 = vpop.f32.mrf.mxu1 }
 0x3bb   : > { %v16161_v51 = vpop.f32.mrf.mxu0 }
 0x3bc   : > { %v3651_v22 = vadd.f32 %v3620_v15, %v3421_v14  ;;  %v3424_v46 = vadd.f32 %v16161_v51, %v3194_v39  ;;  %v16189_v16 = vpop.f32.mrf.mxu1 }
 0x3bd   : > { %v3400_v30 = vpop.f32.mrf.mxu0 }
 0x3be   : > { %v3654_v28 = vadd.f32 %v16189_v16, %v3424_v46  ;;  %v3423_v50 = vadd.f32 %v3400_v30, %v3193_v55  ;;  %v3630_v63 = vpop.f32.mrf.mxu1 }
 0x3bf   : > { %v16196_v11 = vpop.f32.mrf.mxu0 }
 0x3c0   : > { %v3653_v59 = vadd.f32 %v3630_v63, %v3423_v50  ;;  %v3870_v4 = vadd.f32 %v16196_v11, %v3640_v18  ;;  %v16224_v52 = vpop.f32.mrf.mxu1 }
 0x3c1   : > { %v3790_v10 = vpop.f32.mrf.mxu0 }
 0x3c2   : > { %v4100_v0 = vadd.f32 %v16224_v52, %v3870_v4  ;;  %v3869_v48 = vadd.f32 %v3790_v10, %v3639_v56  ;;  %v4020_v60 = vpop.f32.mrf.mxu1 }
 0x3c3   : > { %v16199_v27 = vpop.f32.mrf.mxu0 }
 0x3c4   : > { %v4099_v45 = vadd.f32 %v4020_v60, %v3869_v48  ;;  %v3872_v13 = vadd.f32 %v16199_v27, %v3642_v5  ;;  %v16227_v8 = vpop.f32.mrf.mxu1 }
 0x3c5   : > { %v3800_v34 = vpop.f32.mrf.mxu0 }
 0x3c6   : > { %v4102_v24 = vadd.f32 %v16227_v8, %v3872_v13  ;;  %v3871_v39 = vadd.f32 %v3800_v34, %v3641_v3  ;;  %v4030_v38 = vpop.f32.mrf.mxu1 }
 0x3c7   : > { %v16202_v44 = vpop.f32.mrf.mxu0 }
 0x3c8   : > { %v4101_v40 = vadd.f32 %v4030_v38, %v3871_v39  ;;  %v3874_v55 = vadd.f32 %v16202_v44, %v3644_v42  ;;  %v16230_v53 = vpop.f32.mrf.mxu1 }
 0x3c9   : > { %v3810_v9 = vpop.f32.mrf.mxu0 }
 0x3ca   : > { %v4104_v41 = vadd.f32 %v16230_v53, %v3874_v55  ;;  %v3873_v18 = vadd.f32 %v3810_v9, %v3643_v20  ;;  %v4040_v17 = vpop.f32.mrf.mxu1 }
 0x3cb   : > { %v16205_v58 = vpop.f32.mrf.mxu0 }
 0x3cc   : > { %v4103_v49 = vadd.f32 %v4040_v17, %v3873_v18  ;;  %v3876_v56 = vadd.f32 %v16205_v58, %v3646_v32  ;;  %v16233_v31 = vpop.f32.mrf.mxu1 }
 0x3cd   : > { %v3820_v29 = vpop.f32.mrf.mxu0 }
 0x3ce   : > { %v4106_v54 = vadd.f32 %v16233_v31, %v3876_v56  ;;  %v3875_v5 = vadd.f32 %v3820_v29, %v3645_v2  ;;  %v4050_v7 = vpop.f32.mrf.mxu1 }
 0x3cf   : > { %v16208_v26 = vpop.f32.mrf.mxu0 }
 0x3d0   : > { %v4105_v12 = vadd.f32 %v4050_v7, %v3875_v5  ;;  %v3878_v3 = vadd.f32 %v16208_v26, %v3648_v47  ;;  %v16236_v6 = vpop.f32.mrf.mxu1 }
 0x3d1   : > { %v3830_v43 = vpop.f32.mrf.mxu0 }
 0x3d2   : > { %v4108_v1 = vadd.f32 %v16236_v6, %v3878_v3  ;;  %v3877_v42 = vadd.f32 %v3830_v43, %v3647_v61  ;;  %v4060_v57 = vpop.f32.mrf.mxu1 }
 0x3d3   : > { %v16211_v36 = vpop.f32.mrf.mxu0 }
 0x3d4   : > { %v4107_v37 = vadd.f32 %v4060_v57, %v3877_v42  ;;  %v3880_v20 = vadd.f32 %v16211_v36, %v3650_v23  ;;  %v16239_v19 = vpop.f32.mrf.mxu1 }
 0x3d5   : > { %v3840_v25 = vpop.f32.mrf.mxu0 }
 0x3d6   : > { %v4110_v33 = vadd.f32 %v16239_v19, %v3880_v20  ;;  %v3879_v32 = vadd.f32 %v3840_v25, %v3649_v21  ;;  %v4070_v62 = vpop.f32.mrf.mxu1 }
 0x3d7   : > { %v16214_v14 = vpop.f32.mrf.mxu0 }
 0x3d8   : > { %v4109_v15 = vadd.f32 %v4070_v62, %v3879_v32  ;;  %v3882_v2 = vadd.f32 %v16214_v14, %v3652_v35  ;;  %v16242_v51 = vpop.f32.mrf.mxu1 }
 0x3d9   : > { %v3850_v46 = vpop.f32.mrf.mxu0 }
 0x3da   : > { %v4112_v16 = vadd.f32 %v16242_v51, %v3882_v2  ;;  %v3881_v47 = vadd.f32 %v3850_v46, %v3651_v22  ;;  %v4080_v30 = vpop.f32.mrf.mxu1 }
 0x3db   : > { %v16217_v50 = vpop.f32.mrf.mxu0 }
 0x3dc   : > { %v4111_v63 = vadd.f32 %v4080_v30, %v3881_v47  ;;  %v3884_v61 = vadd.f32 %v16217_v50, %v3654_v28  ;;  %v16245_v11 = vpop.f32.mrf.mxu1 }
 0x3dd   : > { %v3860_v4 = vpop.f32.mrf.mxu0 }
 0x3de   : > { %v4114_v52 = vadd.f32 %v16245_v11, %v3884_v61  ;;  %v3883_v23 = vadd.f32 %v3860_v4, %v3653_v59  ;;  %v4090_v10 = vpop.f32.mrf.mxu1 }
 0x3df   : > { %v16252_v48 = vpop.f32.mrf.mxu0 }
 0x3e0   : > { %v4113_v60 = vadd.f32 %v4090_v10, %v3883_v23  ;;  %v4330_v21 = vadd.f32 %v16252_v48, %v4100_v0  ;;  %v16280_v27 = vpop.f32.mrf.mxu1 }
 0x3e1   : > { %v4250_v13 = vpop.f32.mrf.mxu0 }
 0x3e2   : > { %v20434_v8 = vadd.f32 %v16280_v27, %v4330_v21  ;;  %v4329_v35 = vadd.f32 %v4250_v13, %v4099_v45  ;;  %v4480_v34 = vpop.f32.mrf.mxu1 }
 0x3e3   : > { %v16255_v39 = vpop.f32.mrf.mxu0 }
 0x3e4   : > { %v20436_v22 = vadd.f32 %v4480_v34, %v4329_v35  ;;  %v4332_v38 = vadd.f32 %v16255_v39, %v4102_v24  ;;  %v16283_v44 = vpop.f32.mrf.mxu1 }
 0x3e5   : > { %v4260_v28 = vpop.f32.mrf.mxu0 }
 0x3e6   : > { %v20438_v55 = vadd.f32 %v16283_v44, %v4332_v38  ;;  %v4331_v53 = vadd.f32 %v4260_v28, %v4101_v40  ;;  %v4490_v59 = vpop.f32.mrf.mxu1 }
 0x3e7   : > { %v16258_v9 = vpop.f32.mrf.mxu0 }
 0x3e8   : > { %v20440_v18 = vadd.f32 %v4490_v59, %v4331_v53  ;;  %v4334_v0 = vadd.f32 %v16258_v9, %v4104_v41  ;;  %v16286_v17 = vpop.f32.mrf.mxu1 }
 0x3e9   : > { %v4270_v58 = vpop.f32.mrf.mxu0 }
 0x3ea   : > { %v20442_v56 = vadd.f32 %v16286_v17, %v4334_v0  ;;  %v4333_v45 = vadd.f32 %v4270_v58, %v4103_v49  ;;  %v4500_v31 = vpop.f32.mrf.mxu1 }
 0x3eb   : > { %v16261_v29 = vpop.f32.mrf.mxu0 }
 0x3ec   : > { %v20444_v5 = vadd.f32 %v4500_v31, %v4333_v45  ;;  %v4336_v24 = vadd.f32 %v16261_v29, %v4106_v54  ;;  %v16289_v7 = vpop.f32.mrf.mxu1 }
 0x3ed   : > { %v4280_v26 = vpop.f32.mrf.mxu0 }
 0x3ee   : > { %v20446_v3 = vadd.f32 %v16289_v7, %v4336_v24  ;;  %v4335_v40 = vadd.f32 %v4280_v26, %v4105_v12  ;;  %v4510_v6 = vpop.f32.mrf.mxu1 }
 0x3ef   : > { %v16264_v43 = vpop.f32.mrf.mxu0 }
 0x3f0   : > { %v20448_v42 = vadd.f32 %v4510_v6, %v4335_v40  ;;  %v4338_v41 = vadd.f32 %v16264_v43, %v4108_v1  ;;  %v16292_v57 = vpop.f32.mrf.mxu1 }
 0x3f1   : > { %v4290_v36 = vpop.f32.mrf.mxu0 }
 0x3f2   : > { %v20450_v20 = vadd.f32 %v16292_v57, %v4338_v41  ;;  %v4337_v49 = vadd.f32 %v4290_v36, %v4107_v37  ;;  %v4520_v19 = vpop.f32.mrf.mxu1 }
 0x3f3   : > { %v16267_v25 = vpop.f32.mrf.mxu0 }
 0x3f4   : > { %v20452_v32 = vadd.f32 %v4520_v19, %v4337_v49  ;;  %v4340_v54 = vadd.f32 %v16267_v25, %v4110_v33  ;;  %v16295_v62 = vpop.f32.mrf.mxu1 }
 0x3f5   : > { %v4300_v14 = vpop.f32.mrf.mxu0 }
 0x3f6   : > { %v20454_v2 = vadd.f32 %v16295_v62, %v4340_v54  ;;  %v4339_v12 = vadd.f32 %v4300_v14, %v4109_v15  ;;  %v4530_v51 = vpop.f32.mrf.mxu1 }
 0x3f7   : > { %v16270_v46 = vpop.f32.mrf.mxu0 }
 0x3f8   : > { %v20456_v47 = vadd.f32 %v4530_v51, %v4339_v12  ;;  %v4342_v1 = vadd.f32 %v16270_v46, %v4112_v16  ;;  %v16298_v30 = vpop.f32.mrf.mxu1 }
 0x3f9   : > { %v4310_v50 = vpop.f32.mrf.mxu0 }
 0x3fa   : > { %v20458_v61 = vadd.f32 %v16298_v30, %v4342_v1  ;;  %v4341_v37 = vadd.f32 %v4310_v50, %v4111_v63  ;;  %v4540_v11 = vpop.f32.mrf.mxu1 }
 0x3fb   : > { %v16273_v4 = vpop.f32.mrf.mxu0 }
 0x3fc   : > { %v20460_v23 = vadd.f32 %v4540_v11, %v4341_v37  ;;  %v4344_v33 = vadd.f32 %v16273_v4, %v4114_v52  ;;  %v16301_v10 = vpop.f32.mrf.mxu1 }
 0x3fd   : > { %v4320_v48 = vpop.f32.mrf.mxu0 }
 0x3fe   : > { %23771 = vst [vmem:[#allocation139_spill] sm:$0xff] %v20460_v23  ;;  %v20462_v21 = vadd.f32 %v16301_v10, %v4344_v33  ;;  %v4343_v15 = vadd.f32 %v4320_v48, %v4113_v60  ;;  %v4550_v27 = vpop.f32.mrf.mxu1 }
 0x3ff   : > { %v16308_v13 = vpop.f32.mrf.mxu0 }
 0x400   : > { %23772 = vst [vmem:[#allocation140_spill] sm:$0xff] %v20462_v21  ;;  %v20464_v35 = vadd.f32 %v4550_v27, %v4343_v15  ;;  %v16336_v16 = vpop.f32.mrf.mxu1 }
 0x401   : > { %v4710_v34 = vpop.f32.mrf.mxu0 }
 0x402   : > { %23773 = vst [vmem:[#allocation141_spill] sm:$0xff] %v20464_v35  ;;  %v4940_v39 = vpop.f32.mrf.mxu1 }
 0x403   : > { %v16311_v38 = vpop.f32.mrf.mxu0 }
 0x404   : > { %v20466_v44 = vpop.f32.mrf.mxu1 }
 0x405   : > { %v4720_v63 = vpop.f32.mrf.mxu0 }
 0x406   : > { %v20468_v28 = vpop.f32.mrf.mxu1 }
 0x407   : > { %v16314_v53 = vpop.f32.mrf.mxu0 }
 0x408   : > { %v20470_v52 = vpop.f32.mrf.mxu1 }
 0x409   : > { %v4730_v59 = vpop.f32.mrf.mxu0 }
 0x40a   : > { %v20472_v9 = vpop.f32.mrf.mxu1 }
 0x40b   : > { %v20474_v60 = vpop.f32.mrf.mxu0 }
 0x40c   : > { %v20476_v0 = vpop.f32.mrf.mxu1 }
 0x40d   : > { %v20478_v17 = vpop.f32.mrf.mxu0 }
 0x40e   : > { %v20480_v58 = vpop.f32.mrf.mxu1 }
 0x40f   : > { %v20482_v45 = vpop.f32.mrf.mxu0 }
 0x410   : > { %v20484_v31 = vpop.f32.mrf.mxu1 }
 0x411   : > { %v20486_v29 = vpop.f32.mrf.mxu0 }
 0x412   : > { %v20488_v24 = vpop.f32.mrf.mxu1 }
 0x413   : > { %v20490_v7 = vpop.f32.mrf.mxu0 }
 0x414   : > { %v20492_v26 = vpop.f32.mrf.mxu1 }
 0x415   : > { %v20494_v40 = vpop.f32.mrf.mxu0 }
 0x416   : > { %v20496_v6 = vpop.f32.mrf.mxu1 }
 0x417   : > { %23774 = vst [vmem:[#allocation142_spill] sm:$0xff] %v20496_v6  ;;  %v20498_v43 = vpop.f32.mrf.mxu0 }
 0x418   : > { %v20500_v41 = vpop.f32.mrf.mxu1 }
 0x419   : > { %23775 = vst [vmem:[#allocation143_spill] sm:$0xff] %v20500_v41  ;;  %v20502_v57 = vpop.f32.mrf.mxu0 }
 0x41a   : > { %23776 = vst [vmem:[#allocation144_spill] sm:$0xff] %v20502_v57  ;;  %v20504_v36 = vpop.f32.mrf.mxu1  ;;  %v4789_v57 = vadd.f32 %v4710_v34, %v20436_v22 }
 0x41b   : > { %23777 = vst [vmem:[#allocation145_spill] sm:$0xff] %v20504_v36  ;;  %v20506_v49 = vpop.f32.mrf.mxu0 }
 0x41c   : > { %23778 = vst [vmem:[#allocation146_spill] sm:$0xff] %v20506_v49  ;;  %v20508_v19 = vpop.f32.mrf.mxu1  ;;  %v4790_v49 = vadd.f32 %v16308_v13, %v20434_v8  ;;  %v4791_v8 = vadd.f32 %v4720_v63, %v20440_v18 }
 0x41d   : > { %23779 = vst [vmem:[#allocation147_spill] sm:$0xff] %v20508_v19  ;;  %v20510_v25 = vpop.f32.mrf.mxu0 }
 0x41e   : > { %23780 = vst [vmem:[#allocation148_spill] sm:$0xff] %v20510_v25  ;;  %v20512_v54 = vpop.f32.mrf.mxu1 }
 0x41f   : > { %23781 = vst [vmem:[#allocation149_spill] sm:$0xff] %v20512_v54  ;;  %v16364_v62 = vpop.f32.mrf.mxu0 }
 0x420   : > { %v16392_v14 = vpop.f32.mrf.mxu1 }
 0x421   : > { %v5170_v12 = vpop.f32.mrf.mxu0 }
 0x422   : > { %v5400_v51 = vpop.f32.mrf.mxu1 }
 0x423   : > { %v16367_v46 = vpop.f32.mrf.mxu0 }
 0x424   : > { %v16395_v1 = vpop.f32.mrf.mxu1 }
 0x425   : > { %v5180_v30 = vpop.f32.mrf.mxu0 }
 0x426   : > { %v5410_v50 = vpop.f32.mrf.mxu1 }
 0x427   : > { %v16370_v37 = vpop.f32.mrf.mxu0 }
 0x428   : > { %v20514_v11 = vpop.f32.mrf.mxu1 }
 0x429   : > { %v5190_v4 = vpop.f32.mrf.mxu0 }
 0x42a   : > { %v20516_v33 = vpop.f32.mrf.mxu1 }
 0x42b   : > { %v20518_v10 = vpop.f32.mrf.mxu0 }
 0x42c   : > { %v20520_v48 = vpop.f32.mrf.mxu1 }
 0x42d   : > { %v20522_v15 = vpop.f32.mrf.mxu0 }
 0x42e   : > { %v20524_v27 = vpop.f32.mrf.mxu1 }
 0x42f   : > { %23782 = vst [vmem:[#allocation150_spill] sm:$0xff] %v20524_v27  ;;  %v20526_v54 = vpop.f32.mrf.mxu0  ;;  %v5020_v27 = vadd.f32 %v16336_v16, %v4790_v49 }
 0x430   : > { %v20528_v19 = vpop.f32.mrf.mxu1 }
 0x431   : > { %23783 = vst [vmem:[#allocation151_spill] sm:$0xff] %v20528_v19  ;;  %v20530_v25 = vpop.f32.mrf.mxu0  ;;  %v4792_v19 = vadd.f32 %v16311_v38, %v20438_v55  ;;  %v5250_v13 = vadd.f32 %v16364_v62, %v5020_v27  ;;  %v4793_v55 = vadd.f32 %v4730_v59, %v20444_v5  ;;  %v4795_v59 = vadd.f32 %v20478_v17, %v20448_v42 }
 0x432   : > { %23784 = vst [vmem:[#allocation152_spill] sm:$0xff] %v20530_v25  ;;  %v20532_v35 = vpop.f32.mrf.mxu1 }
 0x433   : > { %23785 = vst [vmem:[#allocation153_spill] sm:$0xff] %v20532_v35  ;;  %v20534_v36 = vpop.f32.mrf.mxu0  ;;  %v5022_v34 = vadd.f32 %v20466_v44, %v4792_v19  ;;  %v5023_v5 = vadd.f32 %v20472_v9, %v4793_v55 }
 0x434   : > { %23786 = vst [vmem:[#allocation154_spill] sm:$0xff] %v20534_v36  ;;  %v20537_v21 = vpop.f32.mrf.mxu1  ;;  %v5019_v36 = vadd.f32 %v4940_v39, %v4789_v57  ;;  %v5021_v39 = vadd.f32 %v20468_v28, %v4791_v8  ;;  %v5480_v57 = vadd.f32 %v16392_v14, %v5250_v13  ;;  %v20575_v14 = vld [vmem:[%s23790_s27] ss:$0 sm:$0xff]  ;;  %v4797_v8 = vadd.f32 %v20486_v29, %v20452_v32 }
 0x435   : > { %23787 = vst [vmem:[#allocation155_spill] sm:$0xff] %v20537_v21  ;;  %v20539_v41 = vpop.f32.mrf.mxu0  ;;  %v5252_v18 = vadd.f32 %v16367_v46, %v5022_v34  ;;  %v5253_v9 = vadd.f32 %v5190_v4, %v5023_v5 }
 0x436   : > { %23788 = vst [vmem:[#allocation156_spill] sm:$0xff] %v20539_v41  ;;  %v20542_v23 = vpop.f32.mrf.mxu1  ;;  %v4794_v41 = vadd.f32 %v16314_v53, %v20442_v56  ;;  %v4796_v56 = vadd.f32 %v20474_v60, %v20446_v3 }
 0x437   : > { %23789 = vst [vmem:[#allocation157_spill] sm:$0xff] %v20542_v23  ;;  %v20544_v6 = vpop.f32.mrf.mxu0  ;;  %v5249_v23 = vadd.f32 %v5170_v12, %v5019_v36  ;;  %v5251_v36 = vadd.f32 %v5180_v30, %v5021_v39 }
 0x438   : > { %v20547_v25 = vpop.f32.mrf.mxu1  ;;  %v5024_v49 = vadd.f32 %v20470_v52, %v4794_v41  ;;  %v5482_v41 = vadd.f32 %v16395_v1, %v5252_v18  ;;  %v5025_v1 = vadd.f32 %v20480_v58, %v4795_v59  ;;  %v5483_v58 = vadd.f32 %v20516_v33, %v5253_v9 }
 0x439   : > { %v20549_v35 = vpop.f32.mrf.mxu0  ;;  %v5479_v44 = vadd.f32 %v5400_v51, %v5249_v23  ;;  %v5026_v23 = vadd.f32 %v20476_v0, %v4796_v56  ;;  %v4798_v51 = vadd.f32 %v20482_v45, %v20450_v20  ;;  %v5481_v42 = vadd.f32 %v5410_v50, %v5251_v36 }
 0x43a   : > { %v20552_v21 = vpop.f32.mrf.mxu1  ;;  %v5254_v28 = vadd.f32 %v16370_v37, %v5024_v49  ;;  %v5255_v32 = vadd.f32 %v20522_v15, %v5025_v1 }
 0x43b   : > { %v20555_v22 = vpop.f32.mrf.mxu0  ;;  %v5256_v13 = vadd.f32 %v20518_v10, %v5026_v23  ;;  %v5028_v39 = vadd.f32 %v20484_v31, %v4798_v51  ;;  %v23795_v51 = vld [vmem:[#allocation144_spill] sm:$0xff] }
 0x43c   : > { %v20558_v16 = vpop.f32.mrf.mxu1  ;;  %v5484_v0 = vadd.f32 %v20514_v11, %v5254_v28 }
 0x43d   : > { %v20561_v38 = vpop.f32.mrf.mxu0  ;;  %v5486_v33 = vadd.f32 %v20520_v48, %v5256_v13  ;;  %v5258_v15 = vadd.f32 %v20526_v54, %v5028_v39  ;;  %v23792_v48 = vld [vmem:[#allocation152_spill] sm:$0xff] }
 0x43e   : > { %v20564_v63 = vpop.f32.mrf.mxu1 }
 0x43f   : > { %v16420_v53 = vpop.f32.mrf.mxu0 }
 0x440   : > { %v5710_v19 = vadd.f32 %v16420_v53, %v5480_v57  ;;  %v16448_v62 = vpop.f32.mrf.mxu1  ;;  %v4800_v57 = vadd.f32 %v20490_v7, %v20454_v2  ;;  %v5027_v2 = vadd.f32 %v20488_v24, %v4797_v8  ;;  %v4799_v7 = vadd.f32 %v20494_v40, %v20456_v47  ;;  %v23791_v47 = vld [vmem:[#allocation150_spill] sm:$0xff] }
 0x441   : > { %v5630_v52 = vpop.f32.mrf.mxu0  ;;  %v4802_v24 = vadd.f32 %v20498_v43, %v20458_v61  ;;  %v5485_v40 = vadd.f32 %v23791_v47, %v5255_v32  ;;  %v23796_v61 = vld [vmem:[#allocation151_spill] sm:$0xff] }
 0x442   : > { %v5940_v12 = vadd.f32 %v16448_v62, %v5710_v19  ;;  %v5709_v3 = vadd.f32 %v5630_v52, %v5479_v44  ;;  %v5860_v60 = vpop.f32.mrf.mxu1  ;;  %v5030_v5 = vadd.f32 %v20492_v26, %v4800_v57  ;;  %v5257_v59 = vadd.f32 %v23792_v48, %v5027_v2  ;;  %v23794_v26 = vld [vmem:[#allocation139_spill] sm:$0xff]  ;;  %v23805_v2 = vld [vmem:[#allocation148_spill] sm:$0xff] }
 0x443   : > { %v16423_v46 = vpop.f32.mrf.mxu0  ;;  %v4801_v9 = vadd.f32 %v23795_v51, %v23794_v26  ;;  %v5488_v43 = vadd.f32 %v23796_v61, %v5258_v15 }
 0x444   : > { %v5963_v17 = vadd.f32 %v20575_v14, %v5940_v12  ;;  %v5939_v30 = vadd.f32 %v5860_v60, %v5709_v3  ;;  %v5712_v37 = vadd.f32 %v16423_v46, %v5482_v41  ;;  %v16451_v27 = vpop.f32.mrf.mxu1  ;;  %v23793_v60 = vld [vmem:[#allocation142_spill] sm:$0xff] }
 0x445   : > { %v5640_v20 = vpop.f32.mrf.mxu0  ;;  %v5029_v23 = vadd.f32 %v23793_v60, %v4799_v7  ;;  %v23797_v46 = vld [vmem:[#allocation154_spill] sm:$0xff] }
 0x446   : > { %v5979_v45 = vmax.f32 %v5963_v17, 0.0  ;;  %v5962_v4 = vadd.f32 %v20575_v14, %v5939_v30  ;;  %v5942_v50 = vadd.f32 %v16451_v27, %v5712_v37  ;;  %v5711_v34 = vadd.f32 %v5640_v20, %v5481_v42  ;;  %v5870_v55 = vpop.f32.mrf.mxu1  ;;  %v23799_v20 = vld [vmem:[#allocation140_spill] sm:$0xff] }
 0x447   : > { %v16426_v29 = vpop.f32.mrf.mxu0  ;;  %v5260_v42 = vadd.f32 %v23797_v46, %v5030_v5 }
 0x448   : > { %5997 = vst.msk [vmem:[%s20594_s30 + $0x8] sm:$0xff] %vm5995_vm1, %v5979_v45  ;;  %v5978_v11 = vmax.f32 %v5962_v4, 0.0  ;;  %v5965_v10 = vadd.f32 %v20575_v14, %v5942_v50  ;;  %v5941_v18 = vadd.f32 %v5870_v55, %v5711_v34  ;;  %v5714_v31 = vadd.f32 %v16426_v29, %v5484_v0  ;;  %v16454_v49 = vpop.f32.mrf.mxu1  ;;  %v23798_v0 = vld [vmem:[#allocation143_spill] sm:$0xff]  ;;  %v23800_v45 = vld [vmem:[#allocation146_spill] sm:$0xff]  ;;  %v23801_v50 = vld [vmem:[#allocation153_spill] sm:$0xff] }
 0x449   : > { %v5650_v56 = vpop.f32.mrf.mxu0  ;;  %v5032_v13 = vadd.f32 %v23798_v0, %v4802_v24  ;;  %v4804_v4 = vadd.f32 %v23800_v45, %v23799_v20  ;;  %v5487_v34 = vadd.f32 %v23801_v50, %v5257_v59  ;;  %v23802_v55 = vld [vmem:[#allocation156_spill] sm:$0xff]  ;;  %v23807_v24 = vld [vmem:[#allocation147_spill] sm:$0xff] }
 0x44a   : > { %5996 = vst.msk [vmem:[%s20594_s30] sm:$0xff] %vm5995_vm1, %v5978_v11  ;;  %v5981_v53 = vmax.f32 %v5965_v10, 0.0  ;;  %v5964_v44 = vadd.f32 %v20575_v14, %v5941_v18  ;;  %v5944_v36 = vadd.f32 %v16454_v49, %v5714_v31  ;;  %v5713_v19 = vadd.f32 %v5650_v56, %v5483_v58  ;;  %v5880_v62 = vpop.f32.mrf.mxu1  ;;  %v23803_v18 = vld [vmem:[#allocation145_spill] sm:$0xff] }
 0x44b   : > { %v16429_v54 = vpop.f32.mrf.mxu0  ;;  %v5259_v39 = vadd.f32 %v23802_v55, %v5029_v23  ;;  %v5031_v31 = vadd.f32 %v23803_v18, %v4801_v9  ;;  %v23804_v49 = vld [vmem:[#allocation141_spill] sm:$0xff]  ;;  %v5262_v56 = vadd.f32 %v20544_v6, %v5032_v13  ;;  %v5034_v47 = vadd.f32 %v23807_v24, %v4804_v4 }
 0x44c   : > { %5999 = vst.msk [vmem:[%s20594_s30 + $0x18] sm:$0xff] %vm5995_vm1, %v5981_v53  ;;  %v5980_v28 = vmax.f32 %v5964_v44, 0.0  ;;  %v5967_v52 = vadd.f32 %v20575_v14, %v5944_v36  ;;  %v5943_v41 = vadd.f32 %v5880_v62, %v5713_v19  ;;  %v5716_v12 = vadd.f32 %v16429_v54, %v5486_v33  ;;  %v16457_v3 = vpop.f32.mrf.mxu1  ;;  %v23806_v33 = vld [vmem:[#allocation155_spill] sm:$0xff] }
 0x44d   : > { %v5660_v17 = vpop.f32.mrf.mxu0  ;;  %v4803_v7 = vadd.f32 %v23805_v2, %v23804_v49  ;;  %v5490_v15 = vadd.f32 %v23806_v33, %v5260_v42  ;;  %v5261_v59 = vadd.f32 %v20549_v35, %v5031_v31  ;;  %v5492_v23 = vadd.f32 %v20547_v25, %v5262_v56 }
 0x44e   : > { %5998 = vst.msk [vmem:[%s20594_s30 + $0x10] sm:$0xff] %vm5995_vm1, %v5980_v28  ;;  %v5983_v30 = vmax.f32 %v5967_v52, 0.0  ;;  %v5966_v37 = vadd.f32 %v20575_v14, %v5943_v41  ;;  %v5946_v27 = vadd.f32 %v16457_v3, %v5716_v12  ;;  %v5715_v1 = vadd.f32 %v5660_v17, %v5485_v40  ;;  %v5890_v8 = vpop.f32.mrf.mxu1  ;;  %v23808_v40 = vld [vmem:[#allocation157_spill] sm:$0xff] }
 0x44f   : > { %v16432_v57 = vpop.f32.mrf.mxu0  ;;  %v5489_v48 = vadd.f32 %v23808_v40, %v5259_v39  ;;  %v23809_v3 = vld [vmem:[#allocation149_spill] sm:$0xff]  ;;  %v5264_v26 = vadd.f32 %v20555_v22, %v5034_v47  ;;  %v5491_v42 = vadd.f32 %v20552_v21, %v5261_v59 }
 0x450   : > { %6001 = vst.msk [vmem:[%s20594_s30 + $0x28] sm:$0xff] %vm5995_vm1, %v5983_v30  ;;  %v5982_v58 = vmax.f32 %v5966_v37, 0.0  ;;  %v5969_v32 = vadd.f32 %v20575_v14, %v5946_v27  ;;  %v5945_v29 = vadd.f32 %v5890_v8, %v5715_v1  ;;  %v5718_v11 = vadd.f32 %v16432_v57, %v5488_v43  ;;  %v16460_v10 = vpop.f32.mrf.mxu1 }
 0x451   : > { %v5670_v53 = vpop.f32.mrf.mxu0  ;;  %v5033_v60 = vadd.f32 %v23809_v3, %v4803_v7  ;;  %v5494_v8 = vadd.f32 %v20558_v16, %v5264_v26 }
 0x452   : > { %6000 = vst.msk [vmem:[%s20594_s30 + $0x20] sm:$0xff] %vm5995_vm1, %v5982_v58  ;;  %v5985_v44 = vmax.f32 %v5969_v32, 0.0  ;;  %v5968_v36 = vadd.f32 %v20575_v14, %v5945_v29  ;;  %v5948_v19 = vadd.f32 %v16460_v10, %v5718_v11  ;;  %v5717_v62 = vadd.f32 %v5670_v53, %v5487_v34  ;;  %v5900_v5 = vpop.f32.mrf.mxu1 }
 0x453   : > { %v16435_v54 = vpop.f32.mrf.mxu0  ;;  %v5263_v17 = vadd.f32 %v20561_v38, %v5033_v60 }
 0x454   : > { %6003 = vst.msk [vmem:[%s20594_s30 + $0x38] sm:$0xff] %vm5995_vm1, %v5985_v44  ;;  %v5984_v6 = vmax.f32 %v5968_v36, 0.0  ;;  %v5971_v28 = vadd.f32 %v20575_v14, %v5948_v19  ;;  %v5947_v52 = vadd.f32 %v5900_v5, %v5717_v62  ;;  %v5720_v41 = vadd.f32 %v16435_v54, %v5490_v15  ;;  %v16463_v12 = vpop.f32.mrf.mxu1 }
 0x455   : > { %v5680_v51 = vpop.f32.mrf.mxu0  ;;  %v5493_v4 = vadd.f32 %v20564_v63, %v5263_v17 }
 0x456   : > { %6002 = vst.msk [vmem:[%s20594_s30 + $0x30] sm:$0xff] %vm5995_vm1, %v5984_v6  ;;  %v5987_v35 = vmax.f32 %v5971_v28, 0.0  ;;  %v5970_v9 = vadd.f32 %v20575_v14, %v5947_v52  ;;  %v5950_v61 = vadd.f32 %v16463_v12, %v5720_v41  ;;  %v5719_v43 = vadd.f32 %v5680_v51, %v5489_v48  ;;  %v5910_v46 = vpop.f32.mrf.mxu1 }
 0x457   : > { %v16438_v30 = vpop.f32.mrf.mxu0 }
 0x458   : > { %6005 = vst.msk [vmem:[%s20594_s30 + $0x48] sm:$0xff] %vm5995_vm1, %v5987_v35  ;;  %v5986_v25 = vmax.f32 %v5970_v9, 0.0  ;;  %v5973_v22 = vadd.f32 %v20575_v14, %v5950_v61  ;;  %v5949_v37 = vadd.f32 %v5910_v46, %v5719_v43  ;;  %v5722_v27 = vadd.f32 %v16438_v30, %v5492_v23  ;;  %v16466_v1 = vpop.f32.mrf.mxu1 }
 0x459   : > { %v5690_v0 = vpop.f32.mrf.mxu0 }
 0x45a   : > { %6004 = vst.msk [vmem:[%s20594_s30 + $0x40] sm:$0xff] %vm5995_vm1, %v5986_v25  ;;  %v5989_v13 = vmax.f32 %v5973_v22, 0.0  ;;  %v5972_v21 = vadd.f32 %v20575_v14, %v5949_v37  ;;  %v5952_v38 = vadd.f32 %v16466_v1, %v5722_v27  ;;  %v5721_v20 = vadd.f32 %v5690_v0, %v5491_v42  ;;  %v5920_v45 = vpop.f32.mrf.mxu1 }
 0x45b   : > { %v16441_v50 = vpop.f32.mrf.mxu0 }
 0x45c   : > { %6007 = vst.msk [vmem:[%s20594_s30 + $0x58] sm:$0xff] %vm5995_vm1, %v5989_v13  ;;  %v5988_v34 = vmax.f32 %v5972_v21, 0.0  ;;  %v5975_v16 = vadd.f32 %v20575_v14, %v5952_v38  ;;  %v5951_v55 = vadd.f32 %v5920_v45, %v5721_v20  ;;  %v5724_v39 = vadd.f32 %v16441_v50, %v5494_v8  ;;  %v16469_v57 = vpop.f32.mrf.mxu1 }
 0x45d   : > { %v5700_v58 = vpop.f32.mrf.mxu0 }
 0x45e   : > { %6006 = vst.msk [vmem:[%s20594_s30 + $0x50] sm:$0xff] %vm5995_vm1, %v5988_v34  ;;  %v5991_v32 = vmax.f32 %v5975_v16, 0.0  ;;  %v5974_v29 = vadd.f32 %v20575_v14, %v5951_v55  ;;  %v5954_v11 = vadd.f32 %v16469_v57, %v5724_v39  ;;  %v5723_v63 = vadd.f32 %v5700_v58, %v5493_v4  ;;  %v5930_v10 = vpop.f32.mrf.mxu1 }
 0x460   : > { %6009 = vst.msk [vmem:[%s20594_s30 + $0x68] sm:$0xff] %vm5995_vm1, %v5991_v32  ;;  %v5990_v18 = vmax.f32 %v5974_v29, 0.0  ;;  %v5977_v31 = vadd.f32 %v20575_v14, %v5954_v11  ;;  %v5953_v49 = vadd.f32 %v5930_v10, %v5723_v63 }
 0x462   : > { %6008 = vst.msk [vmem:[%s20594_s30 + $0x60] sm:$0xff] %vm5995_vm1, %v5990_v18  ;;  %v5993_v2 = vmax.f32 %v5977_v31, 0.0  ;;  %v5976_v7 = vadd.f32 %v20575_v14, %v5953_v49  ;;  %2305 = sbr.rel (!%p2303_p1) target bundleno = 659 (0x293), region = 257 }
 0x464   : > { %6011 = vst.msk [vmem:[%s20594_s30 + $0x78] sm:$0xff] %vm5995_vm1, %v5993_v2  ;;  %v5992_v33 = vmax.f32 %v5976_v7, 0.0 }
 0x466   : > { %6010 = vst.msk [vmem:[%s20594_s30 + $0x70] sm:$0xff] %vm5995_vm1, %v5992_v33 }
 0x467 LB: > { %s23810_s5 = sld [smem:[#allocation183_spill]]  ;;  %s14354_s27 = sshll.u32 %s17849_s4, 7  ;;  %s17849_s4 = sphi %s20680_s4, %s6017_s4  }
 0x468   : > { %s20712_s2 = scalar_lea.vmem [#allocation3], %s14354_s27  ;;  %s23867_s3 = sld [smem:[#allocation184_spill]] }
 0x469   : > { %s21956_s26 = scalar_lea.vmem [#allocation4], %s14354_s27  ;;  %s6017_s4 = sadd.s32 1, %s17849_s4  }
 0x46a   : > { %p6014_p2 = scmp.ge.s32.totalorder %s6017_s4, 6  }
 0x46b   :  { %s23888_s27 = sld [smem:[#allocation185_spill]] (%p6014_p2)  ;;  %vm17853_vm2 = vmmov (%p6014_p2), 0   ;;  %vm12760_vm3 = vcmask (%p6014_p2), 1041408   ;;  %vm12756_vm4 = vcmask (%p6014_p2), 408576   ;;  %vm12925_vm5 = vcmask (%p6014_p2), 76800  }
 0x46c   :  { %s23889_s6 = sld [smem:[#allocation186_spill]] (%p6014_p2)  ;;  %vm12934_vm6 = vcmask (%p6014_p2), 80896   ;;  %vm13366_vm7 = vcmask (%p6014_p2), 1024  }
 0x46d   : > { %v14375_v14 = vld [vmem:[%s23810_s5 + $0x38] sm:$0xff]  ;;  %v14374_v56 = vld [vmem:[%s23810_s5 + $0x30] sm:$0xff]  ;;  %v14373_v44 = vld [vmem:[%s23810_s5 + $0x28] sm:$0xff] }
 0x46e   : > { %v6039_v15 = vld [vmem:[%s23810_s5 + $0x18] sm:$0xff]  ;;  %16470 = vmatprep.subr.mxu0 %v14375_v14  ;;  %v6038_v53 = vld [vmem:[%s23810_s5 + $0x10] sm:$0xff]  ;;  %v6037_v36 = vld [vmem:[%s23810_s5 + $0x8] sm:$0xff] }
 0x46f   : > { %16502 = vmatprep.subr.mxu1 %v6039_v15  ;;  %16471 = vmatpush3.msra.mxu0 %v14375_v14  ;;  %v14372_v19 = vld [vmem:[%s23810_s5 + $0x20] sm:$0xff]  ;;  %v14357_v47 = vld [vmem:[%s20712_s2 + $0x9] sm:$0xff]  ;;  %v14428_v48 = vld [vmem:[%s23810_s5 + $0x58] sm:$0xff] }
 0x470   : > { %16503 = vmatpush3.msra.mxu1 %v6039_v15  ;;  %16472 = vmatprep.subr.mxu0 %v14374_v56  ;;  %v6036_v62 = vld [vmem:[%s23810_s5] sm:$0xff]  ;;  %v6021_v40 = vld [vmem:[%s20712_s2 + $0x8] sm:$0xff]  ;;  %v14465_v59 = vld [vmem:[%s23810_s5 + $0x78] sm:$0xff] }
 0x471   : > { %16504 = vmatprep.subr.mxu1 %v6038_v53  ;;  %16473 = vmatpush3.msra.mxu0 %v14374_v56  ;;  %v14356_v5 = vld [vmem:[%s20712_s2 + $0x1] sm:$0xff]  ;;  %v20727_v54 = vld [vmem:[%s20712_s2 + $0x11] sm:$0xff]  ;;  %v20735_v28 = vld [vmem:[%s20712_s2 + $0x19] sm:$0xff] }
 0x472   : > { %16505 = vmatpush3.msra.mxu1 %v6038_v53  ;;  %16474 = vmatprep.subr.mxu0 %v14373_v44  ;;  %v6020_v24 = vld [vmem:[%s20712_s2] sm:$0xff]  ;;  %v20732_v6 = vld [vmem:[%s20712_s2 + $0x10] sm:$0xff]  ;;  %v20738_v52 = vld [vmem:[%s20712_s2 + $0x18] sm:$0xff] }
 0x473   : > { %16506 = vmatprep.subr.mxu1 %v6037_v36  ;;  %16475 = vmatpush3.msra.mxu0 %v14373_v44  ;;  %v20743_v41 = vld [vmem:[%s20712_s2 + $0x21] sm:$0xff]  ;;  %v14427_v3 = vld [vmem:[%s23810_s5 + $0x50] sm:$0xff]  ;;  %v20791_v43 = vld [vmem:[%s20712_s2 + $0x39] sm:$0xff] }
 0x474   : > { %16507 = vmatpush3.msra.mxu1 %v6037_v36  ;;  %16476 = vmatprep.subr.mxu0 %v14372_v19  ;;  %v20746_v12 = vld [vmem:[%s20712_s2 + $0x20] sm:$0xff]  ;;  %v14464_v60 = vld [vmem:[%s23810_s5 + $0x70] sm:$0xff]  ;;  %v20768_v26 = vld [vmem:[%s20712_s2 + $0x28] sm:$0xff] }
 0x475   : > { %16508 = vmatprep.subr.mxu1 %v6036_v62  ;;  %16477 = vmatpush3.msra.mxu0 %v14372_v19  ;;  %v20765_v23 = vld [vmem:[%s20712_s2 + $0x29] sm:$0xff]  ;;  %v20771_v51 = vld [vmem:[%s20712_s2 + $0x31] sm:$0xff]  ;;  %v20797_v42 = vld [vmem:[%s20712_s2 + $0x41] sm:$0xff] }
 0x476   : > { %16478 = vmatprep.mubr.msk.f32.mxu0 %vm5995_vm1, %v14356_v5  ;;  %16509 = vmatpush3.msra.mxu1 %v6036_v62  ;;  %v20774_v35 = vld [vmem:[%s20712_s2 + $0x30] sm:$0xff]  ;;  %v14426_v9 = vld [vmem:[%s23810_s5 + $0x48] sm:$0xff]  ;;  %v20794_v46 = vld [vmem:[%s20712_s2 + $0x38] sm:$0xff] }
 0x477   : > { %16510 = vmatprep.mubr.msk.f32.mxu1 %vm5995_vm1, %v6020_v24  ;;  %16479 = vmatmul.mubr.msk.f32.vlgmr.msra.gmra.mxu0 %vm5995_vm1, %v14357_v47  ;;  %v14463_v61 = vld [vmem:[%s23810_s5 + $0x68] sm:$0xff]  ;;  %v20800_v17 = vld [vmem:[%s20712_s2 + $0x40] sm:$0xff]  ;;  %v20823_v27 = vld [vmem:[%s20712_s2 + $0x51] sm:$0xff] }
 0x478   : > { %16511 = vmatmul.mubr.msk.f32.vlgmr.msra.gmra.mxu1 %vm5995_vm1, %v6021_v40  ;;  %16534 = vmatprep.subr.mxu0 %v14428_v48  ;;  %v14425_v30 = vld [vmem:[%s23810_s5 + $0x40] sm:$0xff]  ;;  %v20817_v22 = vld [vmem:[%s20712_s2 + $0x49] sm:$0xff]  ;;  %v14502_v8 = vld [vmem:[%s23810_s5 + $0x98] sm:$0xff] }
 0x479   : > { %16566 = vmatprep.subr.mxu1 %v14465_v59  ;;  %16535 = vmatpush3.msra.mxu0 %v14428_v48  ;;  %v14462_v25 = vld [vmem:[%s23810_s5 + $0x60] sm:$0xff]  ;;  %v20820_v37 = vld [vmem:[%s20712_s2 + $0x48] sm:$0xff]  ;;  %v20826_v1 = vld [vmem:[%s20712_s2 + $0x50] sm:$0xff] }
 0x47a   : > { %16481 = vmatprep.mubr.msk.f32.mxu0 %vm5995_vm1, %v20727_v54  ;;  %16513 = vmatprep.mubr.msk.f32.mxu1 %vm5995_vm1, %v20732_v6  ;;  %v14539_v0 = vld [vmem:[%s23810_s5 + $0xb8] sm:$0xff]  ;;  %v20849_v38 = vld [vmem:[%s20712_s2 + $0x61] sm:$0xff]  ;;  %v20863_v45 = vld [vmem:[%s20712_s2 + $0x69] sm:$0xff] }
 0x47b   : > { %16567 = vmatpush3.msra.mxu1 %v14465_v59  ;;  %16482 = vmatmul.mubr.msk.f32.gmra.mxu0 %vm5995_vm1, %v20735_v28  ;;  %v20843_v13 = vld [vmem:[%s20712_s2 + $0x59] sm:$0xff]  ;;  %v20866_v4 = vld [vmem:[%s20712_s2 + $0x68] sm:$0xff]  ;;  %v20869_v50 = vld [vmem:[%s20712_s2 + $0x71] sm:$0xff] }
 0x47c   : > { %16514 = vmatmul.mubr.msk.f32.gmra.mxu1 %vm5995_vm1, %v20738_v52  ;;  %16484 = vmatprep.mubr.msk.f32.mxu0 %vm5995_vm1, %v20743_v41  ;;  %v20846_v21 = vld [vmem:[%s20712_s2 + $0x58] sm:$0xff]  ;;  %v20852_v20 = vld [vmem:[%s20712_s2 + $0x60] sm:$0xff]  ;;  %v20872_v34 = vld [vmem:[%s20712_s2 + $0x70] sm:$0xff] }
 0x47d   : > { %16516 = vmatprep.mubr.msk.f32.mxu1 %vm5995_vm1, %v20746_v12  ;;  %16536 = vmatprep.subr.mxu0 %v14427_v3  ;;  %v20883_v16 = vld [vmem:[%s20712_s2 + $0x79] sm:$0xff]  ;;  %v14409_v39 = vld [vmem:[%s20712_s2 + $0x2] sm:$0xff]  ;;  %v14410_v58 = vld [vmem:[%s20712_s2 + $0xa] sm:$0xff] }
 0x47e   : > { %16568 = vmatprep.subr.mxu1 %v14464_v60  ;;  %16537 = vmatpush3.msra.mxu0 %v14427_v3  ;;  %v20886_v55 = vld [vmem:[%s20712_s2 + $0x78] sm:$0xff]  ;;  %v14446_v57 = vld [vmem:[%s20712_s2 + $0x3] sm:$0xff]  ;;  %v14447_v32 = vld [vmem:[%s20712_s2 + $0xb] sm:$0xff] }
 0x47f   : > { %16569 = vmatpush3.msra.mxu1 %v14464_v60  ;;  %16485 = vmatmul.mubr.msk.f32.gmra.mxu0 %vm5995_vm1, %v20765_v23  ;;  %v14411_v29 = vld [vmem:[%s20712_s2 + $0x12] sm:$0xff]  ;;  %v14412_v18 = vld [vmem:[%s20712_s2 + $0x1a] sm:$0xff]  ;;  %v14413_v49 = vld [vmem:[%s20712_s2 + $0x22] sm:$0xff] }
 0x480   : > { %16517 = vmatmul.mubr.msk.f32.gmra.mxu1 %vm5995_vm1, %v20768_v26  ;;  %16487 = vmatprep.mubr.msk.f32.mxu0 %vm5995_vm1, %v20771_v51  ;;  %v14448_v11 = vld [vmem:[%s20712_s2 + $0x13] sm:$0xff]  ;;  %v14449_v31 = vld [vmem:[%s20712_s2 + $0x1b] sm:$0xff]  ;;  %v14450_v2 = vld [vmem:[%s20712_s2 + $0x23] sm:$0xff] }
 0x481   : > { %16519 = vmatprep.mubr.msk.f32.mxu1 %vm5995_vm1, %v20774_v35  ;;  %16538 = vmatprep.subr.mxu0 %v14426_v9  ;;  %v14501_v63 = vld [vmem:[%s23810_s5 + $0x90] sm:$0xff]  ;;  %v14500_v7 = vld [vmem:[%s23810_s5 + $0x88] sm:$0xff]  ;;  %v14499_v44 = vld [vmem:[%s23810_s5 + $0x80] sm:$0xff] }
 0x482   : > { %16570 = vmatprep.subr.mxu1 %v14463_v61  ;;  %16539 = vmatpush3.msra.mxu0 %v14426_v9  ;;  %v14538_v10 = vld [vmem:[%s23810_s5 + $0xb0] sm:$0xff]  ;;  %v14537_v33 = vld [vmem:[%s23810_s5 + $0xa8] sm:$0xff]  ;;  %v14536_v36 = vld [vmem:[%s23810_s5 + $0xa0] sm:$0xff] }
 0x483   : > { %16571 = vmatpush3.msra.mxu1 %v14463_v61  ;;  %16488 = vmatmul.mubr.msk.f32.gmra.mxu0 %vm5995_vm1, %v20791_v43  ;;  %v20924_v14 = vld [vmem:[%s20712_s2 + $0x2a] sm:$0xff]  ;;  %v20931_v56 = vld [vmem:[%s20712_s2 + $0x32] sm:$0xff]  ;;  %v20949_v19 = vld [vmem:[%s20712_s2 + $0x3a] sm:$0xff] }
 0x484   : > { %16520 = vmatmul.mubr.msk.f32.gmra.mxu1 %vm5995_vm1, %v20794_v46  ;;  %16490 = vmatprep.mubr.msk.f32.mxu0 %vm5995_vm1, %v20797_v42  ;;  %v20928_v15 = vld [vmem:[%s20712_s2 + $0x2b] sm:$0xff]  ;;  %v20934_v53 = vld [vmem:[%s20712_s2 + $0x33] sm:$0xff]  ;;  %23811 = vst [vmem:[#allocation158_spill] sm:$0xff] %v20949_v19  ;;  %v20954_v62 = vld [vmem:[%s20712_s2 + $0x3b] sm:$0xff] }
 0x485   : > { %16522 = vmatprep.mubr.msk.f32.mxu1 %vm5995_vm1, %v20800_v17  ;;  %16540 = vmatprep.subr.mxu0 %v14425_v30  ;;  %23812 = vst [vmem:[#allocation159_spill] sm:$0xff] %v20954_v62  ;;  %v20957_v5 = vld [vmem:[%s20712_s2 + $0x42] sm:$0xff]  ;;  %v14576_v47 = vld [vmem:[%s23810_s5 + $0xd8] sm:$0xff]  ;;  %v20975_v48 = vld [vmem:[%s20712_s2 + $0x4a] sm:$0xff] }
 0x486   : > { %16572 = vmatprep.subr.mxu1 %v14462_v25  ;;  %16541 = vmatpush3.msra.mxu0 %v14425_v30  ;;  %23813 = vst [vmem:[#allocation160_spill] sm:$0xff] %v20957_v5  ;;  %v20960_v24 = vld [vmem:[%s20712_s2 + $0x43] sm:$0xff]  ;;  %v14613_v40 = vld [vmem:[%s23810_s5 + $0xf8] sm:$0xff]  ;;  %23815 = vst [vmem:[#allocation162_spill] sm:$0xff] %v20975_v48 }
 0x487   : > { %16573 = vmatpush3.msra.mxu1 %v14462_v25  ;;  %16491 = vmatmul.mubr.msk.f32.gmra.mxu0 %vm5995_vm1, %v20817_v22  ;;  %23814 = vst [vmem:[#allocation161_spill] sm:$0xff] %v20960_v24  ;;  %v20980_v59 = vld [vmem:[%s20712_s2 + $0x4b] sm:$0xff]  ;;  %v20986_v60 = vld [vmem:[%s20712_s2 + $0x53] sm:$0xff]  ;;  %v21000_v61 = vld [vmem:[%s20712_s2 + $0x5b] sm:$0xff] }
 0x488   : > { %16523 = vmatmul.mubr.msk.f32.gmra.mxu1 %vm5995_vm1, %v20820_v37  ;;  %16493 = vmatprep.mubr.msk.f32.mxu0 %vm5995_vm1, %v20823_v27  ;;  %23816 = vst [vmem:[#allocation163_spill] sm:$0xff] %v20980_v59  ;;  %v20983_v3 = vld [vmem:[%s20712_s2 + $0x52] sm:$0xff]  ;;  %23818 = vst [vmem:[#allocation165_spill] sm:$0xff] %v20986_v60  ;;  %v20995_v9 = vld [vmem:[%s20712_s2 + $0x5a] sm:$0xff] }
 0x489   : > { %16525 = vmatprep.mubr.msk.f32.mxu1 %vm5995_vm1, %v20826_v1  ;;  %16598 = vmatprep.subr.mxu0 %v14502_v8  ;;  %23817 = vst [vmem:[#allocation164_spill] sm:$0xff] %v20983_v3  ;;  %23819 = vst [vmem:[#allocation166_spill] sm:$0xff] %v20995_v9  ;;  %v21003_v30 = vld [vmem:[%s20712_s2 + $0x62] sm:$0xff] }
 0x48a   : > { %16630 = vmatprep.subr.mxu1 %v14539_v0  ;;  %23820 = vst [vmem:[#allocation167_spill] sm:$0xff] %v21000_v61  ;;  %23821 = vst [vmem:[#allocation168_spill] sm:$0xff] %v21003_v30  ;;  %v21006_v25 = vld [vmem:[%s20712_s2 + $0x63] sm:$0xff] }
 0x48b   : > { %16494 = vmatmul.mubr.msk.f32.gmra.mxu0 %vm5995_vm1, %v20843_v13  ;;  %23822 = vst [vmem:[#allocation169_spill] sm:$0xff] %v21006_v25 }
 0x48c   : > { %16526 = vmatmul.mubr.msk.f32.gmra.mxu1 %vm5995_vm1, %v20846_v21  ;;  %16496 = vmatprep.mubr.msk.f32.mxu0 %vm5995_vm1, %v20849_v38 }
 0x48d   : > { %16528 = vmatprep.mubr.msk.f32.mxu1 %vm5995_vm1, %v20852_v20 }
 0x48f   : > { %16497 = vmatmul.mubr.msk.f32.gmra.mxu0 %vm5995_vm1, %v20863_v45 }
 0x490   : > { %16529 = vmatmul.mubr.msk.f32.gmra.mxu1 %vm5995_vm1, %v20866_v4  ;;  %16499 = vmatprep.mubr.msk.f32.mxu0 %vm5995_vm1, %v20869_v50 }
 0x491   : > { %16531 = vmatprep.mubr.msk.f32.mxu1 %vm5995_vm1, %v20872_v34 }
 0x493   : > { %16500 = vmatmul.mubr.msk.f32.gmra.mxu0 %vm5995_vm1, %v20883_v16 }
 0x494   : > { %16532 = vmatmul.mubr.msk.f32.gmra.mxu1 %vm5995_vm1, %v20886_v55  ;;  %16542 = vmatprep.mubr.msk.f32.mxu0 %vm5995_vm1, %v14409_v39  ;;  %v21023_v39 = vld [vmem:[%s20712_s2 + $0x72] sm:$0xff] }
 0x495   : > { %16574 = vmatprep.mubr.msk.f32.mxu1 %vm5995_vm1, %v14446_v57  ;;  %23825 = vst [vmem:[#allocation172_spill] sm:$0xff] %v21023_v39  ;;  %v21026_v57 = vld [vmem:[%s20712_s2 + $0x73] sm:$0xff] }
 0x496   : > { %23826 = vst [vmem:[#allocation173_spill] sm:$0xff] %v21026_v57 }
 0x497   : > { %16543 = vmatmul.mubr.msk.f32.vlgmr.msra.gmra.mxu0 %vm5995_vm1, %v14410_v58  ;;  %v21035_v58 = vld [vmem:[%s20712_s2 + $0x7a] sm:$0xff] }
 0x498   : > { %16575 = vmatmul.mubr.msk.f32.vlgmr.msra.gmra.mxu1 %vm5995_vm1, %v14447_v32  ;;  %16599 = vmatpush3.msra.mxu0 %v14502_v8  ;;  %v21015_v8 = vld [vmem:[%s20712_s2 + $0x6a] sm:$0xff]  ;;  %23827 = vst [vmem:[#allocation174_spill] sm:$0xff] %v21035_v58  ;;  %v21040_v32 = vld [vmem:[%s20712_s2 + $0x7b] sm:$0xff] }
 0x499   : > { %16545 = vmatprep.mubr.msk.f32.mxu0 %vm5995_vm1, %v14411_v29  ;;  %16631 = vmatpush3.msra.mxu1 %v14539_v0  ;;  %23823 = vst [vmem:[#allocation170_spill] sm:$0xff] %v21015_v8  ;;  %v21020_v0 = vld [vmem:[%s20712_s2 + $0x6b] sm:$0xff]  ;;  %23828 = vst [vmem:[#allocation175_spill] sm:$0xff] %v21040_v32 }
 0x49a   : > { %16577 = vmatprep.mubr.msk.f32.mxu1 %vm5995_vm1, %v14448_v11  ;;  %16600 = vmatprep.subr.mxu0 %v14501_v63  ;;  %23824 = vst [vmem:[#allocation171_spill] sm:$0xff] %v21020_v0  ;;  %v14483_v29 = vld [vmem:[%s20712_s2 + $0xe] sm:$0xff] }
 0x49b   : > { %16632 = vmatprep.subr.mxu1 %v14538_v10  ;;  %16546 = vmatmul.mubr.msk.f32.gmra.mxu0 %vm5995_vm1, %v14412_v18  ;;  %v14520_v11 = vld [vmem:[%s20712_s2 + $0xf] sm:$0xff]  ;;  %v21053_v18 = vld [vmem:[%s20712_s2 + $0x1e] sm:$0xff] }
 0x49c   : > { %16578 = vmatmul.mubr.msk.f32.gmra.mxu1 %vm5995_vm1, %v14449_v31  ;;  %16548 = vmatprep.mubr.msk.f32.mxu0 %vm5995_vm1, %v14413_v49  ;;  %v21056_v31 = vld [vmem:[%s20712_s2 + $0x1f] sm:$0xff]  ;;  %v14575_v49 = vld [vmem:[%s23810_s5 + $0xd0] sm:$0xff] }
 0x49d   : > { %16580 = vmatprep.mubr.msk.f32.mxu1 %vm5995_vm1, %v14450_v2  ;;  %16601 = vmatpush3.msra.mxu0 %v14501_v63  ;;  %v14484_v63 = vld [vmem:[%s20712_s2 + $0x16] sm:$0xff] }
 0x49e   : > { %16633 = vmatpush3.msra.mxu1 %v14538_v10  ;;  %16602 = vmatprep.subr.mxu0 %v14500_v7  ;;  %v14521_v10 = vld [vmem:[%s20712_s2 + $0x17] sm:$0xff] }
 0x49f   : > { %16634 = vmatprep.subr.mxu1 %v14537_v33  ;;  %16549 = vmatmul.mubr.msk.f32.gmra.mxu0 %vm5995_vm1, %v20924_v14  ;;  %v14612_v2 = vld [vmem:[%s23810_s5 + $0xf0] sm:$0xff] }
 0x4a0   : > { %16581 = vmatmul.mubr.msk.f32.gmra.mxu1 %vm5995_vm1, %v20928_v15  ;;  %16551 = vmatprep.mubr.msk.f32.mxu0 %vm5995_vm1, %v20931_v56 }
 0x4a1   : > { %16583 = vmatprep.mubr.msk.f32.mxu1 %vm5995_vm1, %v20934_v53  ;;  %16603 = vmatpush3.msra.mxu0 %v14500_v7  ;;  %v21069_v7 = vld [vmem:[%s20712_s2 + $0x26] sm:$0xff] }
 0x4a2   : > { %16635 = vmatpush3.msra.mxu1 %v14537_v33  ;;  %16604 = vmatprep.subr.mxu0 %v14499_v44  ;;  %v21072_v33 = vld [vmem:[%s20712_s2 + $0x27] sm:$0xff] }
 0x4a3   : > { %16636 = vmatprep.subr.mxu1 %v14536_v36  ;;  %16552 = vmatmul.mubr.msk.f32.gmra.mxu0 %vm5995_vm1, %v20949_v19  ;;  %v14686_v19 = vld [vmem:[%s23810_s5 + $0x130] sm:$0xff] }
 0x4a4   : > { %16584 = vmatmul.mubr.msk.f32.gmra.mxu1 %vm5995_vm1, %v20954_v62  ;;  %16554 = vmatprep.mubr.msk.f32.mxu0 %vm5995_vm1, %v20957_v5  ;;  %v21212_v5 = vld [vmem:[%s20712_s2 + $0x87] sm:$0xff]  ;;  %v14649_v62 = vld [vmem:[%s23810_s5 + $0x110] sm:$0xff] }
 0x4a5   : > { %16586 = vmatprep.mubr.msk.f32.mxu1 %vm5995_vm1, %v20960_v24  ;;  %16605 = vmatpush3.msra.mxu0 %v14499_v44  ;;  %v21077_v44 = vld [vmem:[%s20712_s2 + $0x2e] sm:$0xff]  ;;  %v21207_v24 = vld [vmem:[%s20712_s2 + $0x86] sm:$0xff] }
 0x4a6   : > { %16637 = vmatpush3.msra.mxu1 %v14536_v36  ;;  %16662 = vmatprep.subr.mxu0 %v14576_v47  ;;  %v21080_v36 = vld [vmem:[%s20712_s2 + $0x2f] sm:$0xff] }
 0x4a7   : > { %16694 = vmatprep.subr.mxu1 %v14613_v40  ;;  %16555 = vmatmul.mubr.msk.f32.gmra.mxu0 %vm5995_vm1, %v20975_v48  ;;  %v21198_v48 = vld [vmem:[%s20712_s2 + $0x7f] sm:$0xff] }
 0x4a8   : > { %16587 = vmatmul.mubr.msk.f32.gmra.mxu1 %vm5995_vm1, %v20980_v59  ;;  %16557 = vmatprep.mubr.msk.f32.mxu0 %vm5995_vm1, %v20983_v3  ;;  %v21192_v3 = vld [vmem:[%s20712_s2 + $0x77] sm:$0xff] }
 0x4a9   : > { %16589 = vmatprep.mubr.msk.f32.mxu1 %vm5995_vm1, %v20986_v60  ;;  %v21187_v60 = vld [vmem:[%s20712_s2 + $0x76] sm:$0xff]  ;;  %v21195_v59 = vld [vmem:[%s20712_s2 + $0x7e] sm:$0xff] }
 0x4ab   : > { %16558 = vmatmul.mubr.msk.f32.gmra.mxu0 %vm5995_vm1, %v20995_v9  ;;  %v21178_v9 = vld [vmem:[%s20712_s2 + $0x6f] sm:$0xff] }
 0x4ac   : > { %16590 = vmatmul.mubr.msk.f32.gmra.mxu1 %vm5995_vm1, %v21000_v61  ;;  %16560 = vmatprep.mubr.msk.f32.mxu0 %vm5995_vm1, %v21003_v30  ;;  %v21158_v30 = vld [vmem:[%s20712_s2 + $0x5f] sm:$0xff] }
 0x4ad   : > { %16592 = vmatprep.mubr.msk.f32.mxu1 %vm5995_vm1, %v21006_v25  ;;  %v21155_v25 = vld [vmem:[%s20712_s2 + $0x5e] sm:$0xff]  ;;  %v21167_v61 = vld [vmem:[%s20712_s2 + $0x66] sm:$0xff] }
 0x4af   : > { %16561 = vmatmul.mubr.msk.f32.gmra.mxu0 %vm5995_vm1, %v21015_v8  ;;  %v14687_v8 = vld [vmem:[%s23810_s5 + $0x138] sm:$0xff] }
 0x4b0   : > { %16593 = vmatmul.mubr.msk.f32.gmra.mxu1 %vm5995_vm1, %v21020_v0  ;;  %16563 = vmatprep.mubr.msk.f32.mxu0 %vm5995_vm1, %v21023_v39  ;;  %v21132_v39 = vld [vmem:[%s20712_s2 + $0x4f] sm:$0xff]  ;;  %v14650_v0 = vld [vmem:[%s23810_s5 + $0x118] sm:$0xff] }
 0x4b1   : > { %16595 = vmatprep.mubr.msk.f32.mxu1 %vm5995_vm1, %v21026_v57  ;;  %v21129_v57 = vld [vmem:[%s20712_s2 + $0x4e] sm:$0xff] }
 0x4b3   : > { %16564 = vmatmul.mubr.msk.f32.gmra.mxu0 %vm5995_vm1, %v21035_v58  ;;  %v21126_v58 = vld [vmem:[%s20712_s2 + $0x47] sm:$0xff] }
 0x4b4   : > { %16596 = vmatmul.mubr.msk.f32.gmra.mxu1 %vm5995_vm1, %v21040_v32  ;;  %16606 = vmatprep.mubr.msk.f32.mxu0 %vm5995_vm1, %v14483_v29  ;;  %v21095_v29 = vld [vmem:[%s20712_s2 + $0x36] sm:$0xff]  ;;  %v14573_v32 = vld [vmem:[%s23810_s5 + $0xc0] sm:$0xff] }
 0x4b5   : > { %16638 = vmatprep.mubr.msk.f32.mxu1 %vm5995_vm1, %v14520_v11  ;;  %v21100_v11 = vld [vmem:[%s20712_s2 + $0x37] sm:$0xff] }
 0x4b7   : > { %16607 = vmatmul.mubr.msk.f32.vlgmr.msra.gmra.mxu0 %vm5995_vm1, %v14484_v63  ;;  %v21103_v63 = vld [vmem:[%s20712_s2 + $0x3e] sm:$0xff] }
 0x4b8   : > { %16639 = vmatmul.mubr.msk.f32.vlgmr.msra.gmra.mxu1 %vm5995_vm1, %v14521_v10  ;;  %16663 = vmatpush3.msra.mxu0 %v14576_v47  ;;  %v14574_v47 = vld [vmem:[%s23810_s5 + $0xc8] sm:$0xff]  ;;  %v21106_v10 = vld [vmem:[%s20712_s2 + $0x3f] sm:$0xff] }
 0x4b9   : > { %16609 = vmatprep.mubr.msk.f32.mxu0 %vm5995_vm1, %v21053_v18  ;;  %16695 = vmatpush3.msra.mxu1 %v14613_v40  ;;  %v14611_v40 = vld [vmem:[%s23810_s5 + $0xe8] sm:$0xff] }
 0x4ba   : > { %16641 = vmatprep.mubr.msk.f32.mxu1 %vm5995_vm1, %v21056_v31  ;;  %16664 = vmatprep.subr.mxu0 %v14575_v49 }
 0x4bb   : > { %16696 = vmatprep.subr.mxu1 %v14612_v2  ;;  %16610 = vmatmul.mubr.msk.f32.gmra.mxu0 %vm5995_vm1, %v21069_v7 }
 0x4bc   : > { %16642 = vmatmul.mubr.msk.f32.gmra.mxu1 %vm5995_vm1, %v21072_v33  ;;  %16612 = vmatprep.mubr.msk.f32.mxu0 %vm5995_vm1, %v21077_v44 }
 0x4bd   : > { %16644 = vmatprep.mubr.msk.f32.mxu1 %vm5995_vm1, %v21080_v36  ;;  %16665 = vmatpush3.msra.mxu0 %v14575_v49  ;;  %v14610_v49 = vld [vmem:[%s23810_s5 + $0xe0] sm:$0xff] }
 0x4be   : > { %16697 = vmatpush3.msra.mxu1 %v14612_v2  ;;  %16666 = vmatprep.subr.mxu0 %v14574_v47  ;;  %v21121_v2 = vld [vmem:[%s20712_s2 + $0x46] sm:$0xff] }
 0x4bf   : > { %16698 = vmatprep.subr.mxu1 %v14611_v40  ;;  %16613 = vmatmul.mubr.msk.f32.gmra.mxu0 %vm5995_vm1, %v21095_v29 }
 0x4c0   : > { %16645 = vmatmul.mubr.msk.f32.gmra.mxu1 %vm5995_vm1, %v21100_v11  ;;  %16615 = vmatprep.mubr.msk.f32.mxu0 %vm5995_vm1, %v21103_v63 }
 0x4c1   : > { %16647 = vmatprep.mubr.msk.f32.mxu1 %vm5995_vm1, %v21106_v10  ;;  %16667 = vmatpush3.msra.mxu0 %v14574_v47  ;;  %v21147_v47 = vld [vmem:[%s20712_s2 + $0x56] sm:$0xff] }
 0x4c2   : > { %16699 = vmatpush3.msra.mxu1 %v14611_v40  ;;  %16668 = vmatprep.subr.mxu0 %v14573_v32  ;;  %v21152_v40 = vld [vmem:[%s20712_s2 + $0x57] sm:$0xff] }
 0x4c3   : > { %16700 = vmatprep.subr.mxu1 %v14610_v49  ;;  %16616 = vmatmul.mubr.msk.f32.gmra.mxu0 %vm5995_vm1, %v21121_v2 }
 0x4c4   : > { %16648 = vmatmul.mubr.msk.f32.gmra.mxu1 %vm5995_vm1, %v21126_v58  ;;  %16618 = vmatprep.mubr.msk.f32.mxu0 %vm5995_vm1, %v21129_v57 }
 0x4c5   : > { %16650 = vmatprep.mubr.msk.f32.mxu1 %vm5995_vm1, %v21132_v39  ;;  %16669 = vmatpush3.msra.mxu0 %v14573_v32  ;;  %v21172_v32 = vld [vmem:[%s20712_s2 + $0x67] sm:$0xff] }
 0x4c6   : > { %16701 = vmatpush3.msra.mxu1 %v14610_v49  ;;  %16726 = vmatprep.subr.mxu0 %v14650_v0  ;;  %v21175_v49 = vld [vmem:[%s20712_s2 + $0x6e] sm:$0xff] }
 0x4c7   : > { %16758 = vmatprep.subr.mxu1 %v14687_v8  ;;  %16619 = vmatmul.mubr.msk.f32.gmra.mxu0 %vm5995_vm1, %v21147_v47 }
 0x4c8   : > { %16651 = vmatmul.mubr.msk.f32.gmra.mxu1 %vm5995_vm1, %v21152_v40  ;;  %16621 = vmatprep.mubr.msk.f32.mxu0 %vm5995_vm1, %v21155_v25 }
 0x4c9   : > { %16653 = vmatprep.mubr.msk.f32.mxu1 %vm5995_vm1, %v21158_v30 }
 0x4cb   : > { %16622 = vmatmul.mubr.msk.f32.gmra.mxu0 %vm5995_vm1, %v21167_v61 }
 0x4cc   : > { %16654 = vmatmul.mubr.msk.f32.gmra.mxu1 %vm5995_vm1, %v21172_v32  ;;  %16624 = vmatprep.mubr.msk.f32.mxu0 %vm5995_vm1, %v21175_v49 }
 0x4cd   : > { %16656 = vmatprep.mubr.msk.f32.mxu1 %vm5995_vm1, %v21178_v9 }
 0x4cf   : > { %16625 = vmatmul.mubr.msk.f32.gmra.mxu0 %vm5995_vm1, %v21187_v60 }
 0x4d0   : > { %16657 = vmatmul.mubr.msk.f32.gmra.mxu1 %vm5995_vm1, %v21192_v3  ;;  %16627 = vmatprep.mubr.msk.f32.mxu0 %vm5995_vm1, %v21195_v59 }
 0x4d1   : > { %16659 = vmatprep.mubr.msk.f32.mxu1 %vm5995_vm1, %v21198_v48 }
 0x4d3   : > { %16628 = vmatmul.mubr.msk.f32.gmra.mxu0 %vm5995_vm1, %v21207_v24 }
 0x4d4   : > { %16660 = vmatmul.mubr.msk.f32.gmra.mxu1 %vm5995_vm1, %v21212_v5  ;;  %16670 = vmatprep.mubr.msk.f32.mxu0 %vm5995_vm1, %v20732_v6  ;;  %v14685_v6 = vld [vmem:[%s23810_s5 + $0x128] sm:$0xff] }
 0x4d5   : > { %16702 = vmatprep.mubr.msk.f32.mxu1 %vm5995_vm1, %v20727_v54  ;;  %v14648_v54 = vld [vmem:[%s23810_s5 + $0x108] sm:$0xff] }
 0x4d7   : > { %16671 = vmatmul.mubr.msk.f32.vlgmr.msra.gmra.mxu0 %vm5995_vm1, %v20738_v52  ;;  %v14684_v52 = vld [vmem:[%s23810_s5 + $0x120] sm:$0xff] }
 0x4d8   : > { %16703 = vmatmul.mubr.msk.f32.vlgmr.msra.gmra.mxu1 %vm5995_vm1, %v20735_v28  ;;  %16727 = vmatpush3.msra.mxu0 %v14650_v0  ;;  %v14647_v28 = vld [vmem:[%s23810_s5 + $0x100] sm:$0xff]  ;;  %v21386_v0 = vld [vmem:[%s20712_s2 + $0x55] sm:$0xff] }
 0x4d9   : > { %16673 = vmatprep.mubr.msk.f32.mxu0 %vm5995_vm1, %v20746_v12  ;;  %16759 = vmatpush3.msra.mxu1 %v14687_v8  ;;  %v14761_v12 = vld [vmem:[%s23810_s5 + $0x178] sm:$0xff] }
 0x4da   : > { %16705 = vmatprep.mubr.msk.f32.mxu1 %vm5995_vm1, %v20743_v41  ;;  %16728 = vmatprep.subr.mxu0 %v14649_v62  ;;  %v14724_v41 = vld [vmem:[%s23810_s5 + $0x158] sm:$0xff] }
 0x4db   : > { %16760 = vmatprep.subr.mxu1 %v14686_v19  ;;  %16674 = vmatmul.mubr.msk.f32.gmra.mxu0 %vm5995_vm1, %v20768_v26  ;;  %v14608_v26 = vld [vmem:[%s20712_s2 + $0x81] sm:$0xff]  ;;  %v21381_v8 = vld [vmem:[%s20712_s2 + $0x54] sm:$0xff] }
 0x4dc   : > { %16706 = vmatmul.mubr.msk.f32.gmra.mxu1 %vm5995_vm1, %v20765_v23  ;;  %16676 = vmatprep.mubr.msk.f32.mxu0 %vm5995_vm1, %v20774_v35  ;;  %v14571_v23 = vld [vmem:[%s20712_s2 + $0x80] sm:$0xff]  ;;  %v14609_v35 = vld [vmem:[%s20712_s2 + $0x89] sm:$0xff] }
 0x4dd   : > { %16708 = vmatprep.mubr.msk.f32.mxu1 %vm5995_vm1, %v20771_v51  ;;  %16729 = vmatpush3.msra.mxu0 %v14649_v62  ;;  %v14572_v51 = vld [vmem:[%s20712_s2 + $0x88] sm:$0xff]  ;;  %v14758_v62 = vld [vmem:[%s23810_s5 + $0x160] sm:$0xff] }
 0x4de   : > { %16761 = vmatpush3.msra.mxu1 %v14686_v19  ;;  %16730 = vmatprep.subr.mxu0 %v14648_v54  ;;  %v14721_v19 = vld [vmem:[%s23810_s5 + $0x140] sm:$0xff] }
 0x4df   : > { %16762 = vmatprep.subr.mxu1 %v14685_v6  ;;  %16677 = vmatmul.mubr.msk.f32.gmra.mxu0 %vm5995_vm1, %v20794_v46  ;;  %v14668_v46 = vld [vmem:[%s20712_s2 + $0x1d] sm:$0xff] }
 0x4e0   : > { %16709 = vmatmul.mubr.msk.f32.gmra.mxu1 %vm5995_vm1, %v20791_v43  ;;  %16679 = vmatprep.mubr.msk.f32.mxu0 %vm5995_vm1, %v20800_v17  ;;  %v14631_v43 = vld [vmem:[%s20712_s2 + $0x1c] sm:$0xff]  ;;  %v14669_v17 = vld [vmem:[%s20712_s2 + $0x25] sm:$0xff] }
 0x4e1   : > { %16711 = vmatprep.mubr.msk.f32.mxu1 %vm5995_vm1, %v20797_v42  ;;  %16731 = vmatpush3.msra.mxu0 %v14648_v54  ;;  %v14632_v42 = vld [vmem:[%s20712_s2 + $0x24] sm:$0xff]  ;;  %v21389_v54 = vld [vmem:[%s20712_s2 + $0x5c] sm:$0xff] }
 0x4e2   : > { %16763 = vmatpush3.msra.mxu1 %v14685_v6  ;;  %16732 = vmatprep.subr.mxu0 %v14647_v28  ;;  %v21392_v6 = vld [vmem:[%s20712_s2 + $0x5d] sm:$0xff] }
 0x4e3   : > { %16764 = vmatprep.subr.mxu1 %v14684_v52  ;;  %16680 = vmatmul.mubr.msk.f32.gmra.mxu0 %vm5995_vm1, %v20820_v37  ;;  %v21316_v37 = vld [vmem:[%s20712_s2 + $0x2d] sm:$0xff] }
 0x4e4   : > { %16712 = vmatmul.mubr.msk.f32.gmra.mxu1 %vm5995_vm1, %v20817_v22  ;;  %16682 = vmatprep.mubr.msk.f32.mxu0 %vm5995_vm1, %v20826_v1  ;;  %v21313_v22 = vld [vmem:[%s20712_s2 + $0x2c] sm:$0xff] }
 0x4e5   : > { %16714 = vmatprep.mubr.msk.f32.mxu1 %vm5995_vm1, %v20823_v27  ;;  %16733 = vmatpush3.msra.mxu0 %v14647_v28  ;;  %v14723_v27 = vld [vmem:[%s23810_s5 + $0x150] sm:$0xff]  ;;  %v14798_v28 = vld [vmem:[%s23810_s5 + $0x198] sm:$0xff] }
 0x4e6   : > { %16765 = vmatpush3.msra.mxu1 %v14684_v52  ;;  %16790 = vmatprep.subr.mxu0 %v14724_v41  ;;  %v14760_v1 = vld [vmem:[%s23810_s5 + $0x170] sm:$0xff]  ;;  %v14835_v52 = vld [vmem:[%s23810_s5 + $0x1b8] sm:$0xff] }
 0x4e7   : > { %16822 = vmatprep.subr.mxu1 %v14761_v12  ;;  %16683 = vmatmul.mubr.msk.f32.gmra.mxu0 %vm5995_vm1, %v20846_v21  ;;  %v21332_v21 = vld [vmem:[%s20712_s2 + $0x35] sm:$0xff] }
 0x4e8   : > { %16715 = vmatmul.mubr.msk.f32.gmra.mxu1 %vm5995_vm1, %v20843_v13  ;;  %16685 = vmatprep.mubr.msk.f32.mxu0 %vm5995_vm1, %v20852_v20  ;;  %v21329_v13 = vld [vmem:[%s20712_s2 + $0x34] sm:$0xff]  ;;  %v21340_v20 = vld [vmem:[%s20712_s2 + $0x3d] sm:$0xff] }
 0x4e9   : > { %16717 = vmatprep.mubr.msk.f32.mxu1 %vm5995_vm1, %v20849_v38  ;;  %v21337_v38 = vld [vmem:[%s20712_s2 + $0x3c] sm:$0xff] }
 0x4eb   : > { %16686 = vmatmul.mubr.msk.f32.gmra.mxu0 %vm5995_vm1, %v20866_v4  ;;  %v14759_v4 = vld [vmem:[%s23810_s5 + $0x168] sm:$0xff] }
 0x4ec   : > { %16718 = vmatmul.mubr.msk.f32.gmra.mxu1 %vm5995_vm1, %v20863_v45  ;;  %16688 = vmatprep.mubr.msk.f32.mxu0 %vm5995_vm1, %v20872_v34  ;;  %v14722_v45 = vld [vmem:[%s23810_s5 + $0x148] sm:$0xff] }
 0x4ed   : > { %16720 = vmatprep.mubr.msk.f32.mxu1 %vm5995_vm1, %v20869_v50  ;;  %v21355_v50 = vld [vmem:[%s20712_s2 + $0x44] sm:$0xff] }
 0x4ee   : > { %v21360_v34 = vld [vmem:[%s20712_s2 + $0x45] sm:$0xff] }
 0x4ef   : > { %16689 = vmatmul.mubr.msk.f32.gmra.mxu0 %vm5995_vm1, %v20886_v55  ;;  %v21366_v55 = vld [vmem:[%s20712_s2 + $0x4d] sm:$0xff] }
 0x4f0   : > { %16721 = vmatmul.mubr.msk.f32.gmra.mxu1 %vm5995_vm1, %v20883_v16  ;;  %16691 = vmatprep.mubr.msk.f32.mxu0 %vm5995_vm1, %v14571_v23  ;;  %v21363_v16 = vld [vmem:[%s20712_s2 + $0x4c] sm:$0xff] }
 0x4f1   : > { %16723 = vmatprep.mubr.msk.f32.mxu1 %vm5995_vm1, %v14608_v26  ;;  %v21415_v23 = vld [vmem:[%s20712_s2 + $0x6c] sm:$0xff] }
 0x4f2   : > { %v21418_v26 = vld [vmem:[%s20712_s2 + $0x6d] sm:$0xff] }
 0x4f3   : > { %16692 = vmatmul.mubr.msk.f32.gmra.mxu0 %vm5995_vm1, %v14572_v51  ;;  %v21427_v51 = vld [vmem:[%s20712_s2 + $0x74] sm:$0xff] }
 0x4f4   : > { %16724 = vmatmul.mubr.msk.f32.gmra.mxu1 %vm5995_vm1, %v14609_v35  ;;  %16734 = vmatprep.mubr.msk.f32.mxu0 %vm5995_vm1, %v14631_v43  ;;  %v21432_v35 = vld [vmem:[%s20712_s2 + $0x75] sm:$0xff] }
 0x4f5   : > { %16766 = vmatprep.mubr.msk.f32.mxu1 %vm5995_vm1, %v14668_v46  ;;  %v21435_v43 = vld [vmem:[%s20712_s2 + $0x7c] sm:$0xff] }
 0x4f6   : > { %v21438_v46 = vld [vmem:[%s20712_s2 + $0x7d] sm:$0xff] }
 0x4f7   : > { %16735 = vmatmul.mubr.msk.f32.vlgmr.msra.gmra.mxu0 %vm5995_vm1, %v14632_v42  ;;  %v21447_v42 = vld [vmem:[%s20712_s2 + $0x84] sm:$0xff] }
 0x4f8   : > { %16767 = vmatmul.mubr.msk.f32.vlgmr.msra.gmra.mxu1 %vm5995_vm1, %v14669_v17  ;;  %16791 = vmatpush3.msra.mxu0 %v14724_v41  ;;  %v21407_v41 = vld [vmem:[%s20712_s2 + $0x64] sm:$0xff] }
 0x4f9   : > { %16737 = vmatprep.mubr.msk.f32.mxu0 %vm5995_vm1, %v21313_v22  ;;  %16823 = vmatpush3.msra.mxu1 %v14761_v12  ;;  %v21412_v12 = vld [vmem:[%s20712_s2 + $0x65] sm:$0xff] }
 0x4fa   : > { %16769 = vmatprep.mubr.msk.f32.mxu1 %vm5995_vm1, %v21316_v37  ;;  %16792 = vmatprep.subr.mxu0 %v14723_v27  ;;  %v21452_v17 = vld [vmem:[%s20712_s2 + $0x85] sm:$0xff] }
 0x4fb   : > { %16824 = vmatprep.subr.mxu1 %v14760_v1  ;;  %16738 = vmatmul.mubr.msk.f32.gmra.mxu0 %vm5995_vm1, %v21329_v13 }
 0x4fc   : > { %16770 = vmatmul.mubr.msk.f32.gmra.mxu1 %vm5995_vm1, %v21332_v21  ;;  %16740 = vmatprep.mubr.msk.f32.mxu0 %vm5995_vm1, %v21337_v38 }
 0x4fd   : > { %16772 = vmatprep.mubr.msk.f32.mxu1 %vm5995_vm1, %v21340_v20  ;;  %16793 = vmatpush3.msra.mxu0 %v14723_v27  ;;  %v21455_v27 = vld [vmem:[%s20712_s2 + $0x8c] sm:$0xff] }
 0x4fe   : > { %16825 = vmatpush3.msra.mxu1 %v14760_v1  ;;  %16794 = vmatprep.subr.mxu0 %v14722_v45  ;;  %v21458_v1 = vld [vmem:[%s20712_s2 + $0x8d] sm:$0xff] }
 0x4ff   : > { %16826 = vmatprep.subr.mxu1 %v14759_v4  ;;  %16741 = vmatmul.mubr.msk.f32.gmra.mxu0 %vm5995_vm1, %v21355_v50 }
 0x500   : > { %16773 = vmatmul.mubr.msk.f32.gmra.mxu1 %vm5995_vm1, %v21360_v34  ;;  %16743 = vmatprep.mubr.msk.f32.mxu0 %vm5995_vm1, %v21363_v16 }
 0x501   : > { %16775 = vmatprep.mubr.msk.f32.mxu1 %vm5995_vm1, %v21366_v55  ;;  %16795 = vmatpush3.msra.mxu0 %v14722_v45  ;;  %v21467_v45 = vld [vmem:[%s20712_s2 + $0x94] sm:$0xff] }
 0x502   : > { %16827 = vmatpush3.msra.mxu1 %v14759_v4  ;;  %16796 = vmatprep.subr.mxu0 %v14721_v19  ;;  %v21472_v4 = vld [vmem:[%s20712_s2 + $0x95] sm:$0xff] }
 0x503   : > { %16828 = vmatprep.subr.mxu1 %v14758_v62  ;;  %16744 = vmatmul.mubr.msk.f32.gmra.mxu0 %vm5995_vm1, %v21381_v8 }
 0x504   : > { %16776 = vmatmul.mubr.msk.f32.gmra.mxu1 %vm5995_vm1, %v21386_v0  ;;  %16746 = vmatprep.mubr.msk.f32.mxu0 %vm5995_vm1, %v21389_v54 }
 0x505   : > { %16778 = vmatprep.mubr.msk.f32.mxu1 %vm5995_vm1, %v21392_v6  ;;  %16797 = vmatpush3.msra.mxu0 %v14721_v19  ;;  %v14797_v19 = vld [vmem:[%s23810_s5 + $0x190] sm:$0xff] }
 0x506   : > { %16829 = vmatpush3.msra.mxu1 %v14758_v62  ;;  %16854 = vmatprep.subr.mxu0 %v14798_v28  ;;  %v14834_v62 = vld [vmem:[%s23810_s5 + $0x1b0] sm:$0xff] }
 0x507   : > { %16886 = vmatprep.subr.mxu1 %v14835_v52  ;;  %16747 = vmatmul.mubr.msk.f32.gmra.mxu0 %vm5995_vm1, %v21407_v41 }
 0x508   : > { %16779 = vmatmul.mubr.msk.f32.gmra.mxu1 %vm5995_vm1, %v21412_v12  ;;  %16749 = vmatprep.mubr.msk.f32.mxu0 %vm5995_vm1, %v21415_v23 }
 0x509   : > { %16781 = vmatprep.mubr.msk.f32.mxu1 %vm5995_vm1, %v21418_v26 }
 0x50b   : > { %16750 = vmatmul.mubr.msk.f32.gmra.mxu0 %vm5995_vm1, %v21427_v51 }
 0x50c   : > { %16782 = vmatmul.mubr.msk.f32.gmra.mxu1 %vm5995_vm1, %v21432_v35  ;;  %16752 = vmatprep.mubr.msk.f32.mxu0 %vm5995_vm1, %v21435_v43 }
 0x50d   : > { %16784 = vmatprep.mubr.msk.f32.mxu1 %vm5995_vm1, %v21438_v46 }
 0x50f   : > { %16753 = vmatmul.mubr.msk.f32.gmra.mxu0 %vm5995_vm1, %v21447_v42 }
 0x510   : > { %16785 = vmatmul.mubr.msk.f32.gmra.mxu1 %vm5995_vm1, %v21452_v17  ;;  %16755 = vmatprep.mubr.msk.f32.mxu0 %vm5995_vm1, %v21455_v27 }
 0x511   : > { %16787 = vmatprep.mubr.msk.f32.mxu1 %vm5995_vm1, %v21458_v1 }
 0x513   : > { %16756 = vmatmul.mubr.msk.f32.gmra.mxu0 %vm5995_vm1, %v21467_v45 }
 0x514   : > { %16788 = vmatmul.mubr.msk.f32.gmra.mxu1 %vm5995_vm1, %v21472_v4  ;;  %16798 = vmatprep.mubr.msk.f32.mxu0 %vm5995_vm1, %v21053_v18  ;;  %v14796_v18 = vld [vmem:[%s23810_s5 + $0x188] sm:$0xff] }
 0x515   : > { %16830 = vmatprep.mubr.msk.f32.mxu1 %vm5995_vm1, %v21056_v31  ;;  %v14833_v31 = vld [vmem:[%s23810_s5 + $0x1a8] sm:$0xff] }
 0x517   : > { %16799 = vmatmul.mubr.msk.f32.vlgmr.msra.gmra.mxu0 %vm5995_vm1, %v21069_v7  ;;  %v14795_v7 = vld [vmem:[%s23810_s5 + $0x180] sm:$0xff] }
 0x518   : > { %16831 = vmatmul.mubr.msk.f32.vlgmr.msra.gmra.mxu1 %vm5995_vm1, %v21072_v33  ;;  %16855 = vmatpush3.msra.mxu0 %v14798_v28  ;;  %v14832_v33 = vld [vmem:[%s23810_s5 + $0x1a0] sm:$0xff] }
 0x519   : > { %16801 = vmatprep.mubr.msk.f32.mxu0 %vm5995_vm1, %v21077_v44  ;;  %16887 = vmatpush3.msra.mxu1 %v14835_v52 }
 0x51a   : > { %16833 = vmatprep.mubr.msk.f32.mxu1 %vm5995_vm1, %v21080_v36  ;;  %16856 = vmatprep.subr.mxu0 %v14797_v19  ;;  %v23831_v36 = vld [vmem:[#allocation160_spill] sm:$0xff] }
 0x51b   : > { %16888 = vmatprep.subr.mxu1 %v14834_v62  ;;  %16802 = vmatmul.mubr.msk.f32.gmra.mxu0 %vm5995_vm1, %v21095_v29  ;;  %v23832_v29 = vld [vmem:[#allocation161_spill] sm:$0xff] }
 0x51c   : > { %16834 = vmatmul.mubr.msk.f32.gmra.mxu1 %vm5995_vm1, %v21100_v11  ;;  %16804 = vmatprep.mubr.msk.f32.mxu0 %vm5995_vm1, %v21103_v63  ;;  %v14870_v11 = vld [vmem:[%s23810_s5 + $0x1c8] sm:$0xff] }
 0x51d   : > { %16836 = vmatprep.mubr.msk.f32.mxu1 %vm5995_vm1, %v21106_v10  ;;  %16857 = vmatpush3.msra.mxu0 %v14797_v19  ;;  %v14907_v63 = vld [vmem:[%s23810_s5 + $0x1e8] sm:$0xff]  ;;  %v23835_v19 = vld [vmem:[#allocation164_spill] sm:$0xff] }
 0x51e   : > { %16889 = vmatpush3.msra.mxu1 %v14834_v62  ;;  %16858 = vmatprep.subr.mxu0 %v14796_v18  ;;  %v23836_v62 = vld [vmem:[#allocation165_spill] sm:$0xff] }
 0x51f   : > { %16890 = vmatprep.subr.mxu1 %v14833_v31  ;;  %16805 = vmatmul.mubr.msk.f32.gmra.mxu0 %vm5995_vm1, %v21121_v2  ;;  %v23833_v2 = vld [vmem:[#allocation162_spill] sm:$0xff] }
 0x520   : > { %16837 = vmatmul.mubr.msk.f32.gmra.mxu1 %vm5995_vm1, %v21126_v58  ;;  %16807 = vmatprep.mubr.msk.f32.mxu0 %vm5995_vm1, %v21129_v57  ;;  %v14872_v58 = vld [vmem:[%s23810_s5 + $0x1d8] sm:$0xff] }
 0x521   : > { %16839 = vmatprep.mubr.msk.f32.mxu1 %vm5995_vm1, %v21132_v39  ;;  %16859 = vmatpush3.msra.mxu0 %v14796_v18  ;;  %v14909_v57 = vld [vmem:[%s23810_s5 + $0x1f8] sm:$0xff]  ;;  %v14869_v18 = vld [vmem:[%s23810_s5 + $0x1c0] sm:$0xff] }
 0x522   : > { %16891 = vmatpush3.msra.mxu1 %v14833_v31  ;;  %16860 = vmatprep.subr.mxu0 %v14795_v7  ;;  %v14906_v31 = vld [vmem:[%s23810_s5 + $0x1e0] sm:$0xff] }
 0x523   : > { %16892 = vmatprep.subr.mxu1 %v14832_v33  ;;  %16808 = vmatmul.mubr.msk.f32.gmra.mxu0 %vm5995_vm1, %v21147_v47  ;;  %v23834_v47 = vld [vmem:[#allocation163_spill] sm:$0xff] }
 0x524   : > { %16840 = vmatmul.mubr.msk.f32.gmra.mxu1 %vm5995_vm1, %v21152_v40  ;;  %16810 = vmatprep.mubr.msk.f32.mxu0 %vm5995_vm1, %v21155_v25 }
 0x525   : > { %16842 = vmatprep.mubr.msk.f32.mxu1 %vm5995_vm1, %v21158_v30  ;;  %16861 = vmatpush3.msra.mxu0 %v14795_v7  ;;  %v14756_v30 = vld [vmem:[%s20712_s2 + $0x8f] sm:$0xff] }
 0x526   : > { %16893 = vmatpush3.msra.mxu1 %v14832_v33  ;;  %16918 = vmatprep.subr.mxu0 %v14872_v58  ;;  %v23837_v33 = vld [vmem:[#allocation166_spill] sm:$0xff] }
 0x527   : > { %16950 = vmatprep.subr.mxu1 %v14909_v57  ;;  %16811 = vmatmul.mubr.msk.f32.gmra.mxu0 %vm5995_vm1, %v21167_v61  ;;  %v14719_v61 = vld [vmem:[%s20712_s2 + $0x8e] sm:$0xff] }
 0x528   : > { %16843 = vmatmul.mubr.msk.f32.gmra.mxu1 %vm5995_vm1, %v21172_v32  ;;  %16813 = vmatprep.mubr.msk.f32.mxu0 %vm5995_vm1, %v21175_v49 }
 0x529   : > { %16845 = vmatprep.mubr.msk.f32.mxu1 %vm5995_vm1, %v21178_v9 }
 0x52b   : > { %16814 = vmatmul.mubr.msk.f32.gmra.mxu0 %vm5995_vm1, %v21187_v60  ;;  %v14720_v60 = vld [vmem:[%s20712_s2 + $0x96] sm:$0xff] }
 0x52c   : > { %16846 = vmatmul.mubr.msk.f32.gmra.mxu1 %vm5995_vm1, %v21192_v3  ;;  %16816 = vmatprep.mubr.msk.f32.mxu0 %vm5995_vm1, %v21195_v59  ;;  %v14757_v3 = vld [vmem:[%s20712_s2 + $0x97] sm:$0xff] }
 0x52d   : > { %16848 = vmatprep.mubr.msk.f32.mxu1 %vm5995_vm1, %v21198_v48  ;;  %v14908_v59 = vld [vmem:[%s23810_s5 + $0x1f0] sm:$0xff] }
 0x52f   : > { %16817 = vmatmul.mubr.msk.f32.gmra.mxu0 %vm5995_vm1, %v21207_v24 }
 0x530   : > { %16849 = vmatmul.mubr.msk.f32.gmra.mxu1 %vm5995_vm1, %v21212_v5  ;;  %16819 = vmatprep.mubr.msk.f32.mxu0 %vm5995_vm1, %v14719_v61  ;;  %v14871_v5 = vld [vmem:[%s23810_s5 + $0x1d0] sm:$0xff] }
 0x531   : > { %16851 = vmatprep.mubr.msk.f32.mxu1 %vm5995_vm1, %v14756_v30 }
 0x533   : > { %16820 = vmatmul.mubr.msk.f32.gmra.mxu0 %vm5995_vm1, %v14720_v60 }
 0x534   : > { %16852 = vmatmul.mubr.msk.f32.gmra.mxu1 %vm5995_vm1, %v14757_v3  ;;  %16862 = vmatprep.mubr.msk.f32.mxu0 %vm5995_vm1, %v20924_v14 }
 0x535   : > { %16894 = vmatprep.mubr.msk.f32.mxu1 %vm5995_vm1, %v20928_v15  ;;  %v23829_v15 = vld [vmem:[#allocation158_spill] sm:$0xff] }
 0x537   : > { %v16480_v24 = vpop.f32.mrf.mxu0  ;;  %16863 = vmatmul.mubr.msk.f32.vlgmr.msra.gmra.mxu0 %vm5995_vm1, %v20931_v56  ;;  %v23830_v56 = vld [vmem:[#allocation159_spill] sm:$0xff] }
 0x538   : > { %v16512_v48 = vpop.f32.mrf.mxu1  ;;  %16895 = vmatmul.mubr.msk.f32.vlgmr.msra.gmra.mxu1 %vm5995_vm1, %v20934_v53  ;;  %16919 = vmatpush3.msra.mxu0 %v14872_v58  ;;  %v23838_v58 = vld [vmem:[#allocation167_spill] sm:$0xff] }
 0x539   : > { %v21580_v14 = vadd.f32 %v16512_v48, %v16480_v24  ;;  %16865 = vmatprep.mubr.msk.f32.mxu0 %vm5995_vm1, %v23829_v15  ;;  %v6178_v9 = vpop.f32.mrf.mxu0  ;;  %16951 = vmatpush3.msra.mxu1 %v14909_v57  ;;  %v23839_v24 = vld [vmem:[#allocation168_spill] sm:$0xff]  ;;  %v23840_v48 = vld [vmem:[#allocation169_spill] sm:$0xff]  ;;  %v23842_v15 = vld [vmem:[#allocation171_spill] sm:$0xff] }
 0x53a   : > { %v6371_v25 = vpop.f32.mrf.mxu1  ;;  %16897 = vmatprep.mubr.msk.f32.mxu1 %vm5995_vm1, %v23830_v56  ;;  %16920 = vmatprep.subr.mxu0 %v14871_v5 }
 0x53b   : > { %v21586_v53 = vadd.f32 %v6371_v25, %v6178_v9  ;;  %16952 = vmatprep.subr.mxu1 %v14908_v59  ;;  %v16483_v39 = vpop.f32.mrf.mxu0  ;;  %16866 = vmatmul.mubr.msk.f32.gmra.mxu0 %vm5995_vm1, %v23831_v36  ;;  %v23843_v36 = vld [vmem:[#allocation172_spill] sm:$0xff] }
 0x53c   : > { %v16515_v44 = vpop.f32.mrf.mxu1  ;;  %16898 = vmatmul.mubr.msk.f32.gmra.mxu1 %vm5995_vm1, %v23832_v29  ;;  %16868 = vmatprep.mubr.msk.f32.mxu0 %vm5995_vm1, %v23833_v2  ;;  %v23844_v29 = vld [vmem:[#allocation173_spill] sm:$0xff]  ;;  %v14790_v2 = vld [vmem:[%s20712_s2 + $0x82] sm:$0xff] }
 0x53d   : > { %v21598_v10 = vadd.f32 %v16515_v44, %v16483_v39  ;;  %16900 = vmatprep.mubr.msk.f32.mxu1 %vm5995_vm1, %v23834_v47  ;;  %v6188_v40 = vpop.f32.mrf.mxu0  ;;  %16921 = vmatpush3.msra.mxu0 %v14871_v5  ;;  %v23846_v47 = vld [vmem:[#allocation175_spill] sm:$0xff] }
 0x53e   : > { %v6381_v32 = vpop.f32.mrf.mxu1  ;;  %16953 = vmatpush3.msra.mxu1 %v14908_v59  ;;  %16922 = vmatprep.subr.mxu0 %v14870_v11  ;;  %v23841_v59 = vld [vmem:[#allocation170_spill] sm:$0xff] }
 0x53f   : > { %v21604_v49 = vadd.f32 %v6381_v32, %v6188_v40  ;;  %16954 = vmatprep.subr.mxu1 %v14907_v63  ;;  %v16486_v28 = vpop.f32.mrf.mxu0  ;;  %16869 = vmatmul.mubr.msk.f32.gmra.mxu0 %vm5995_vm1, %v23835_v19  ;;  %v14827_v40 = vld [vmem:[%s20712_s2 + $0x83] sm:$0xff]  ;;  %v14828_v19 = vld [vmem:[%s20712_s2 + $0x8b] sm:$0xff] }
 0x540   : > { %v16518_v52 = vpop.f32.mrf.mxu1  ;;  %16901 = vmatmul.mubr.msk.f32.gmra.mxu1 %vm5995_vm1, %v23836_v62  ;;  %16871 = vmatprep.mubr.msk.f32.mxu0 %vm5995_vm1, %v23837_v33 }
 0x541   : > { %v21616_v7 = vadd.f32 %v16518_v52, %v16486_v28  ;;  %16903 = vmatprep.mubr.msk.f32.mxu1 %vm5995_vm1, %v23838_v58  ;;  %v6198_v57 = vpop.f32.mrf.mxu0  ;;  %16923 = vmatpush3.msra.mxu0 %v14870_v11  ;;  %v14791_v52 = vld [vmem:[%s20712_s2 + $0x8a] sm:$0xff]  ;;  %v14792_v58 = vld [vmem:[%s20712_s2 + $0x92] sm:$0xff] }
 0x542   : > { %v6391_v61 = vpop.f32.mrf.mxu1  ;;  %16955 = vmatpush3.msra.mxu1 %v14907_v63  ;;  %16924 = vmatprep.subr.mxu0 %v14869_v18  ;;  %v23845_v63 = vld [vmem:[#allocation174_spill] sm:$0xff] }
 0x543   : > { %v21622_v30 = vadd.f32 %v6391_v61, %v6198_v57  ;;  %16956 = vmatprep.subr.mxu1 %v14906_v31  ;;  %v16489_v60 = vpop.f32.mrf.mxu0  ;;  %16872 = vmatmul.mubr.msk.f32.gmra.mxu0 %vm5995_vm1, %v23839_v24  ;;  %v14829_v57 = vld [vmem:[%s20712_s2 + $0x93] sm:$0xff]  ;;  %v14830_v24 = vld [vmem:[%s20712_s2 + $0x9b] sm:$0xff] }
 0x544   : > { %v16521_v3 = vpop.f32.mrf.mxu1  ;;  %16904 = vmatmul.mubr.msk.f32.gmra.mxu1 %vm5995_vm1, %v23840_v48  ;;  %16874 = vmatprep.mubr.msk.f32.mxu0 %vm5995_vm1, %v23841_v59 }
 0x545   : > { %v21628_v5 = vadd.f32 %v16521_v3, %v16489_v60  ;;  %16906 = vmatprep.mubr.msk.f32.mxu1 %vm5995_vm1, %v23842_v15  ;;  %v6208_v9 = vpop.f32.mrf.mxu0  ;;  %16925 = vmatpush3.msra.mxu0 %v14869_v18  ;;  %v14793_v3 = vld [vmem:[%s20712_s2 + $0x9a] sm:$0xff] }
 0x546   : > { %v6401_v25 = vpop.f32.mrf.mxu1  ;;  %16957 = vmatpush3.msra.mxu1 %v14906_v31 }
 0x547   : > { %v21634_v56 = vadd.f32 %v6401_v25, %v6208_v9  ;;  %v16492_v39 = vpop.f32.mrf.mxu0  ;;  %16875 = vmatmul.mubr.msk.f32.gmra.mxu0 %vm5995_vm1, %v23843_v36  ;;  %v14794_v25 = vld [vmem:[%s20712_s2 + $0xa2] sm:$0xff] }
 0x548   : > { %v16524_v44 = vpop.f32.mrf.mxu1  ;;  %16907 = vmatmul.mubr.msk.f32.gmra.mxu1 %vm5995_vm1, %v23844_v29  ;;  %16877 = vmatprep.mubr.msk.f32.mxu0 %vm5995_vm1, %v23845_v63 }
 0x549   : > { %v21640_v11 = vadd.f32 %v16524_v44, %v16492_v39  ;;  %16909 = vmatprep.mubr.msk.f32.mxu1 %vm5995_vm1, %v23846_v47  ;;  %v6218_v32 = vpop.f32.mrf.mxu0  ;;  %v14831_v39 = vld [vmem:[%s20712_s2 + $0xa3] sm:$0xff] }
 0x54a   : > { %v6411_v28 = vpop.f32.mrf.mxu1 }
 0x54b   : > { %v21650_v62 = vadd.f32 %v6411_v28, %v6218_v32  ;;  %v16495_v18 = vpop.f32.mrf.mxu0  ;;  %16878 = vmatmul.mubr.msk.f32.gmra.mxu0 %vm5995_vm1, %v14790_v2 }
 0x54c   : > { %v16527_v31 = vpop.f32.mrf.mxu1  ;;  %16910 = vmatmul.mubr.msk.f32.gmra.mxu1 %vm5995_vm1, %v14827_v40  ;;  %16880 = vmatprep.mubr.msk.f32.mxu0 %vm5995_vm1, %v14791_v52 }
 0x54d   : > { %v21654_v33 = vadd.f32 %v16527_v31, %v16495_v18  ;;  %16912 = vmatprep.mubr.msk.f32.mxu1 %vm5995_vm1, %v14828_v19  ;;  %v6228_v61 = vpop.f32.mrf.mxu0 }
 0x54e   : > { %v6421_v60 = vpop.f32.mrf.mxu1 }
 0x54f   : > { %v21662_v48 = vadd.f32 %v6421_v60, %v6228_v61  ;;  %v16498_v59 = vpop.f32.mrf.mxu0  ;;  %16881 = vmatmul.mubr.msk.f32.gmra.mxu0 %vm5995_vm1, %v14792_v58 }
 0x550   : > { %v16530_v15 = vpop.f32.mrf.mxu1  ;;  %16913 = vmatmul.mubr.msk.f32.gmra.mxu1 %vm5995_vm1, %v14829_v57  ;;  %16883 = vmatprep.mubr.msk.f32.mxu0 %vm5995_vm1, %v14793_v3 }
 0x551   : > { %v21666_v9 = vadd.f32 %v16530_v15, %v16498_v59  ;;  %16915 = vmatprep.mubr.msk.f32.mxu1 %vm5995_vm1, %v14830_v24  ;;  %v6238_v44 = vpop.f32.mrf.mxu0 }
 0x552   : > { %v6431_v36 = vpop.f32.mrf.mxu1 }
 0x553   : > { %v21672_v29 = vadd.f32 %v6431_v36, %v6238_v44  ;;  %v16501_v63 = vpop.f32.mrf.mxu0  ;;  %16884 = vmatmul.mubr.msk.f32.gmra.mxu0 %vm5995_vm1, %v14794_v25 }
 0x554   : > { %v16533_v2 = vpop.f32.mrf.mxu1  ;;  %16916 = vmatmul.mubr.msk.f32.gmra.mxu1 %vm5995_vm1, %v14831_v39  ;;  %16926 = vmatprep.mubr.msk.f32.mxu0 %vm5995_vm1, %v21313_v22  ;;  %v14867_v39 = vld [vmem:[%s20712_s2 + $0x9c] sm:$0xff] }
 0x555   : > { %v21676_v47 = vadd.f32 %v16533_v2, %v16501_v63  ;;  %16958 = vmatprep.mubr.msk.f32.mxu1 %vm5995_vm1, %v21316_v37  ;;  %v6248_v40 = vpop.f32.mrf.mxu0  ;;  %v14868_v63 = vld [vmem:[%s20712_s2 + $0xa4] sm:$0xff] }
 0x556   : > { %v6441_v32 = vpop.f32.mrf.mxu1  ;;  %v14905_v2 = vld [vmem:[%s20712_s2 + $0xa5] sm:$0xff] }
 0x557   : > { %v21682_v28 = vadd.f32 %v6441_v32, %v6248_v40  ;;  %v16544_v52 = vpop.f32.mrf.mxu0  ;;  %16927 = vmatmul.mubr.msk.f32.vlgmr.msra.gmra.mxu0 %vm5995_vm1, %v21329_v13 }
 0x558   : > { %v16576_v19 = vpop.f32.mrf.mxu1  ;;  %16959 = vmatmul.mubr.msk.f32.vlgmr.msra.gmra.mxu1 %vm5995_vm1, %v21332_v21  ;;  %v6667_v18 = vadd.f32 %v16544_v52, %v21580_v14  ;;  %16929 = vmatprep.mubr.msk.f32.mxu0 %vm5995_vm1, %v21337_v38 }
 0x559   : > { %16961 = vmatprep.mubr.msk.f32.mxu1 %vm5995_vm1, %v21340_v20  ;;  %v6587_v22 = vpop.f32.mrf.mxu0 }
 0x55a   : > { %v6819_v37 = vpop.f32.mrf.mxu1  ;;  %v21693_v31 = vadd.f32 %v16576_v19, %v6667_v18  ;;  %v6666_v58 = vadd.f32 %v6587_v22, %v21586_v53 }
 0x55b   : > { %v16547_v57 = vpop.f32.mrf.mxu0  ;;  %16930 = vmatmul.mubr.msk.f32.gmra.mxu0 %vm5995_vm1, %v21355_v50 }
 0x55c   : > { %v16579_v13 = vpop.f32.mrf.mxu1  ;;  %16962 = vmatmul.mubr.msk.f32.gmra.mxu1 %vm5995_vm1, %v21360_v34  ;;  %v21700_v21 = vadd.f32 %v6819_v37, %v6666_v58  ;;  %v6669_v38 = vadd.f32 %v16547_v57, %v21598_v10  ;;  %16932 = vmatprep.mubr.msk.f32.mxu0 %vm5995_vm1, %v21363_v16 }
 0x55d   : > { %16964 = vmatprep.mubr.msk.f32.mxu1 %vm5995_vm1, %v21366_v55  ;;  %v6597_v20 = vpop.f32.mrf.mxu0 }
 0x55e   : > { %v6829_v14 = vpop.f32.mrf.mxu1  ;;  %v21707_v53 = vadd.f32 %v16579_v13, %v6669_v38  ;;  %v6668_v50 = vadd.f32 %v6597_v20, %v21604_v49 }
 0x55f   : > { %v16550_v61 = vpop.f32.mrf.mxu0  ;;  %16933 = vmatmul.mubr.msk.f32.gmra.mxu0 %vm5995_vm1, %v21381_v8 }
 0x560   : > { %v16582_v34 = vpop.f32.mrf.mxu1  ;;  %16965 = vmatmul.mubr.msk.f32.gmra.mxu1 %vm5995_vm1, %v21386_v0  ;;  %v21714_v10 = vadd.f32 %v6829_v14, %v6668_v50  ;;  %v6671_v16 = vadd.f32 %v16550_v61, %v21616_v7  ;;  %16935 = vmatprep.mubr.msk.f32.mxu0 %vm5995_vm1, %v21389_v54 }
 0x561   : > { %16967 = vmatprep.mubr.msk.f32.mxu1 %vm5995_vm1, %v21392_v6  ;;  %v6607_v55 = vpop.f32.mrf.mxu0 }
 0x562   : > { %v6839_v49 = vpop.f32.mrf.mxu1  ;;  %v21721_v60 = vadd.f32 %v16582_v34, %v6671_v16  ;;  %v6670_v8 = vadd.f32 %v6607_v55, %v21622_v30 }
 0x563   : > { %v16553_v3 = vpop.f32.mrf.mxu0  ;;  %16936 = vmatmul.mubr.msk.f32.gmra.mxu0 %vm5995_vm1, %v21407_v41 }
 0x564   : > { %v16585_v0 = vpop.f32.mrf.mxu1  ;;  %16968 = vmatmul.mubr.msk.f32.gmra.mxu1 %vm5995_vm1, %v21412_v12  ;;  %v21728_v7 = vadd.f32 %v6839_v49, %v6670_v8  ;;  %v6673_v54 = vadd.f32 %v16553_v3, %v21628_v5  ;;  %16938 = vmatprep.mubr.msk.f32.mxu0 %vm5995_vm1, %v21415_v23 }
 0x565   : > { %16970 = vmatprep.mubr.msk.f32.mxu1 %vm5995_vm1, %v21418_v26  ;;  %v6617_v6 = vpop.f32.mrf.mxu0 }
 0x566   : > { %v6849_v30 = vpop.f32.mrf.mxu1  ;;  %v21735_v24 = vadd.f32 %v16585_v0, %v6673_v54  ;;  %v6672_v41 = vadd.f32 %v6617_v6, %v21634_v56 }
 0x567   : > { %v16556_v59 = vpop.f32.mrf.mxu0  ;;  %16939 = vmatmul.mubr.msk.f32.gmra.mxu0 %vm5995_vm1, %v21427_v51 }
 0x568   : > { %v16588_v12 = vpop.f32.mrf.mxu1  ;;  %16971 = vmatmul.mubr.msk.f32.gmra.mxu1 %vm5995_vm1, %v21432_v35  ;;  %v21742_v5 = vadd.f32 %v6849_v30, %v6672_v41  ;;  %v6675_v23 = vadd.f32 %v16556_v59, %v21640_v11  ;;  %16941 = vmatprep.mubr.msk.f32.mxu0 %vm5995_vm1, %v21435_v43 }
 0x569   : > { %16973 = vmatprep.mubr.msk.f32.mxu1 %vm5995_vm1, %v21438_v46  ;;  %v6627_v26 = vpop.f32.mrf.mxu0 }
 0x56a   : > { %v6859_v56 = vpop.f32.mrf.mxu1  ;;  %v21749_v15 = vadd.f32 %v16588_v12, %v6675_v23  ;;  %v6674_v51 = vadd.f32 %v6627_v26, %v21650_v62 }
 0x56b   : > { %v16559_v25 = vpop.f32.mrf.mxu0  ;;  %16942 = vmatmul.mubr.msk.f32.gmra.mxu0 %vm5995_vm1, %v21447_v42  ;;  %v14904_v42 = vld [vmem:[%s20712_s2 + $0x9d] sm:$0xff] }
 0x56c   : > { %v16591_v35 = vpop.f32.mrf.mxu1  ;;  %16974 = vmatmul.mubr.msk.f32.gmra.mxu1 %vm5995_vm1, %v21452_v17  ;;  %v21756_v43 = vadd.f32 %v6859_v56, %v6674_v51  ;;  %v6677_v11 = vadd.f32 %v16559_v25, %v21654_v33  ;;  %16944 = vmatprep.mubr.msk.f32.mxu0 %vm5995_vm1, %v21455_v27 }
 0x56d   : > { %16976 = vmatprep.mubr.msk.f32.mxu1 %vm5995_vm1, %v21458_v1  ;;  %v6637_v46 = vpop.f32.mrf.mxu0 }
 0x56e   : > { %v6869_v62 = vpop.f32.mrf.mxu1  ;;  %v21765_v44 = vadd.f32 %v16591_v35, %v6677_v11  ;;  %v6676_v17 = vadd.f32 %v6637_v46, %v21662_v48 }
 0x56f   : > { %v16562_v36 = vpop.f32.mrf.mxu0  ;;  %16945 = vmatmul.mubr.msk.f32.gmra.mxu0 %vm5995_vm1, %v21467_v45 }
 0x570   : > { %v16594_v33 = vpop.f32.mrf.mxu1  ;;  %16977 = vmatmul.mubr.msk.f32.gmra.mxu1 %vm5995_vm1, %v21472_v4  ;;  %v21772_v27 = vadd.f32 %v6869_v62, %v6676_v17  ;;  %v6679_v1 = vadd.f32 %v16562_v36, %v21666_v9  ;;  %16947 = vmatprep.mubr.msk.f32.mxu0 %vm5995_vm1, %v14867_v39 }
 0x571   : > { %16979 = vmatprep.mubr.msk.f32.mxu1 %vm5995_vm1, %v14904_v42  ;;  %v6647_v40 = vpop.f32.mrf.mxu0 }
 0x572   : > { %v6879_v48 = vpop.f32.mrf.mxu1  ;;  %v21779_v32 = vadd.f32 %v16594_v33, %v6679_v1  ;;  %v6678_v45 = vadd.f32 %v6647_v40, %v21672_v29 }
 0x573   : > { %v16565_v52 = vpop.f32.mrf.mxu0  ;;  %16948 = vmatmul.mubr.msk.f32.gmra.mxu0 %vm5995_vm1, %v14868_v63 }
 0x574   : > { %v16597_v4 = vpop.f32.mrf.mxu1  ;;  %16980 = vmatmul.mubr.msk.f32.gmra.mxu1 %vm5995_vm1, %v14905_v2  ;;  %v6910_v19 = vadd.f32 %v6879_v48, %v6678_v45  ;;  %v6681_v9 = vadd.f32 %v16565_v52, %v21676_v47 }
 0x575   : > { %v6657_v18 = vpop.f32.mrf.mxu0 }
 0x576   : > { %v6889_v22 = vpop.f32.mrf.mxu1  ;;  %v6913_v37 = vadd.f32 %v16597_v4, %v6681_v9  ;;  %v6680_v58 = vadd.f32 %v6657_v18, %v21682_v28 }
 0x577   : > { %v16608_v57 = vpop.f32.mrf.mxu0 }
 0x578   : > { %v16640_v13 = vpop.f32.mrf.mxu1  ;;  %v6912_v38 = vadd.f32 %v6889_v22, %v6680_v58  ;;  %v7131_v20 = vadd.f32 %v16608_v57, %v21693_v31 }
 0x579   : > { %v7051_v29 = vpop.f32.mrf.mxu0 }
 0x57a   : > { %v7283_v14 = vpop.f32.mrf.mxu1  ;;  %v7363_v50 = vadd.f32 %v16640_v13, %v7131_v20  ;;  %v7130_v61 = vadd.f32 %v7051_v29, %v21700_v21 }
 0x57b   : > { %v16611_v34 = vpop.f32.mrf.mxu0 }
 0x57c   : > { %v16643_v16 = vpop.f32.mrf.mxu1  ;;  %v7362_v55 = vadd.f32 %v7283_v14, %v7130_v61  ;;  %v7133_v47 = vadd.f32 %v16611_v34, %v21707_v53 }
 0x57d   : > { %v7061_v49 = vpop.f32.mrf.mxu0 }
 0x57e   : > { %v7293_v8 = vpop.f32.mrf.mxu1  ;;  %v7365_v3 = vadd.f32 %v16643_v16, %v7133_v47  ;;  %v7132_v28 = vadd.f32 %v7061_v49, %v21714_v10 }
 0x57f   : > { %v16614_v0 = vpop.f32.mrf.mxu0 }
 0x580   : > { %v16646_v54 = vpop.f32.mrf.mxu1  ;;  %v7364_v6 = vadd.f32 %v7293_v8, %v7132_v28  ;;  %v7135_v31 = vadd.f32 %v16614_v0, %v21721_v60 }
 0x581   : > { %v7071_v30 = vpop.f32.mrf.mxu0 }
 0x582   : > { %v7303_v41 = vpop.f32.mrf.mxu1  ;;  %v7367_v59 = vadd.f32 %v16646_v54, %v7135_v31  ;;  %v7134_v21 = vadd.f32 %v7071_v30, %v21728_v7 }
 0x583   : > { %v16617_v12 = vpop.f32.mrf.mxu0 }
 0x584   : > { %v16649_v23 = vpop.f32.mrf.mxu1  ;;  %v7366_v26 = vadd.f32 %v7303_v41, %v7134_v21  ;;  %v7137_v53 = vadd.f32 %v16617_v12, %v21735_v24 }
 0x585   : > { %v7081_v56 = vpop.f32.mrf.mxu0 }
 0x586   : > { %v7313_v51 = vpop.f32.mrf.mxu1  ;;  %v7369_v25 = vadd.f32 %v16649_v23, %v7137_v53  ;;  %v7136_v10 = vadd.f32 %v7081_v56, %v21742_v5 }
 0x587   : > { %v16620_v35 = vpop.f32.mrf.mxu0 }
 0x588   : > { %v16652_v11 = vpop.f32.mrf.mxu1  ;;  %v7368_v46 = vadd.f32 %v7313_v51, %v7136_v10  ;;  %v7139_v60 = vadd.f32 %v16620_v35, %v21749_v15 }
 0x589   : > { %v7091_v62 = vpop.f32.mrf.mxu0 }
 0x58a   : > { %v7323_v39 = vpop.f32.mrf.mxu1  ;;  %v7371_v42 = vadd.f32 %v16652_v11, %v7139_v60  ;;  %v7138_v7 = vadd.f32 %v7091_v62, %v21756_v43 }
 0x58b   : > { %v16623_v17 = vpop.f32.mrf.mxu0 }
 0x58c   : > { %v16655_v36 = vpop.f32.mrf.mxu1  ;;  %v7370_v33 = vadd.f32 %v7323_v39, %v7138_v7  ;;  %v7141_v24 = vadd.f32 %v16623_v17, %v21765_v44 }
 0x58d   : > { %v7101_v1 = vpop.f32.mrf.mxu0 }
 0x58e   : > { %v7333_v63 = vpop.f32.mrf.mxu1  ;;  %v7373_v2 = vadd.f32 %v16655_v36, %v7141_v24  ;;  %v7140_v5 = vadd.f32 %v7101_v1, %v21772_v27 }
 0x58f   : > { %v16626_v40 = vpop.f32.mrf.mxu0 }
 0x590   : > { %v16658_v48 = vpop.f32.mrf.mxu1  ;;  %v7372_v45 = vadd.f32 %v7333_v63, %v7140_v5  ;;  %v7143_v15 = vadd.f32 %v16626_v40, %v21779_v32 }
 0x591   : > { %v7111_v52 = vpop.f32.mrf.mxu0 }
 0x592   : > { %v7343_v4 = vpop.f32.mrf.mxu1  ;;  %v7375_v9 = vadd.f32 %v16658_v48, %v7143_v15  ;;  %v7142_v18 = vadd.f32 %v7111_v52, %v6910_v19 }
 0x593   : > { %v16629_v43 = vpop.f32.mrf.mxu0 }
 0x594   : > { %v16661_v22 = vpop.f32.mrf.mxu1  ;;  %v7374_v58 = vadd.f32 %v7343_v4, %v7142_v18  ;;  %v7145_v57 = vadd.f32 %v16629_v43, %v6913_v37 }
 0x595   : > { %v7121_v13 = vpop.f32.mrf.mxu0 }
 0x596   : > { %v7353_v44 = vpop.f32.mrf.mxu1  ;;  %v7377_v20 = vadd.f32 %v16661_v22, %v7145_v57  ;;  %v7144_v29 = vadd.f32 %v7121_v13, %v6912_v38 }
 0x597   : > { %v16672_v14 = vpop.f32.mrf.mxu0 }
 0x598   : > { %v16704_v61 = vpop.f32.mrf.mxu1  ;;  %v7376_v27 = vadd.f32 %v7353_v44, %v7144_v29  ;;  %v7595_v34 = vadd.f32 %v16672_v14, %v7363_v50 }
 0x599   : > { %v7515_v16 = vpop.f32.mrf.mxu0 }
 0x59a   : > { %v7747_v47 = vpop.f32.mrf.mxu1  ;;  %v7827_v49 = vadd.f32 %v16704_v61, %v7595_v34  ;;  %v7594_v32 = vadd.f32 %v7515_v16, %v7362_v55 }
 0x59b   : > { %v16675_v8 = vpop.f32.mrf.mxu0 }
 0x59c   : > { %v16707_v28 = vpop.f32.mrf.mxu1  ;;  %v7826_v0 = vadd.f32 %v7747_v47, %v7594_v32  ;;  %v7597_v19 = vadd.f32 %v16675_v8, %v7365_v3 }
 0x59d   : > { %v7525_v54 = vpop.f32.mrf.mxu0 }
 0x59e   : > { %v7757_v31 = vpop.f32.mrf.mxu1  ;;  %v7829_v30 = vadd.f32 %v16707_v28, %v7597_v19  ;;  %v7596_v37 = vadd.f32 %v7525_v54, %v7364_v6 }
 0x59f   : > { %v16678_v41 = vpop.f32.mrf.mxu0 }
 0x5a0   : > { %v16710_v21 = vpop.f32.mrf.mxu1  ;;  %v7828_v12 = vadd.f32 %v7757_v31, %v7596_v37  ;;  %v7599_v38 = vadd.f32 %v16678_v41, %v7367_v59 }
 0x5a1   : > { %v7535_v23 = vpop.f32.mrf.mxu0 }
 0x5a2   : > { %v7767_v53 = vpop.f32.mrf.mxu1  ;;  %v7831_v56 = vadd.f32 %v16710_v21, %v7599_v38  ;;  %v7598_v50 = vadd.f32 %v7535_v23, %v7366_v26 }
 0x5a3   : > { %v16681_v51 = vpop.f32.mrf.mxu0 }
 0x5a4   : > { %v16713_v10 = vpop.f32.mrf.mxu1  ;;  %v7830_v35 = vadd.f32 %v7767_v53, %v7598_v50  ;;  %v7601_v55 = vadd.f32 %v16681_v51, %v7369_v25 }
 0x5a5   : > { %v7545_v11 = vpop.f32.mrf.mxu0 }
 0x5a6   : > { %v7777_v60 = vpop.f32.mrf.mxu1  ;;  %v7833_v62 = vadd.f32 %v16713_v10, %v7601_v55  ;;  %v7600_v3 = vadd.f32 %v7545_v11, %v7368_v46 }
 0x5a7   : > { %v16684_v39 = vpop.f32.mrf.mxu0 }
 0x5a8   : > { %v16716_v7 = vpop.f32.mrf.mxu1  ;;  %v7832_v17 = vadd.f32 %v7777_v60, %v7600_v3  ;;  %v7603_v6 = vadd.f32 %v16684_v39, %v7371_v42 }
 0x5a9   : > { %v7555_v36 = vpop.f32.mrf.mxu0 }
 0x5aa   : > { %v7787_v24 = vpop.f32.mrf.mxu1  ;;  %v7835_v1 = vadd.f32 %v16716_v7, %v7603_v6  ;;  %v7602_v59 = vadd.f32 %v7555_v36, %v7370_v33 }
 0x5ab   : > { %v16687_v63 = vpop.f32.mrf.mxu0 }
 0x5ac   : > { %v16719_v5 = vpop.f32.mrf.mxu1  ;;  %v7834_v40 = vadd.f32 %v7787_v24, %v7602_v59  ;;  %v7605_v26 = vadd.f32 %v16687_v63, %v7373_v2 }
 0x5ad   : > { %v7565_v48 = vpop.f32.mrf.mxu0 }
 0x5ae   : > { %v7797_v15 = vpop.f32.mrf.mxu1  ;;  %v7837_v52 = vadd.f32 %v16719_v5, %v7605_v26  ;;  %v7604_v25 = vadd.f32 %v7565_v48, %v7372_v45 }
 0x5af   : > { %v16690_v4 = vpop.f32.mrf.mxu0 }
 0x5b0   : > { %v16722_v18 = vpop.f32.mrf.mxu1  ;;  %v7836_v43 = vadd.f32 %v7797_v15, %v7604_v25  ;;  %v7607_v46 = vadd.f32 %v16690_v4, %v7375_v9 }
 0x5b1   : > { %v7575_v22 = vpop.f32.mrf.mxu0 }
 0x5b2   : > { %v7807_v57 = vpop.f32.mrf.mxu1  ;;  %v7839_v13 = vadd.f32 %v16722_v18, %v7607_v46  ;;  %v7606_v42 = vadd.f32 %v7575_v22, %v7374_v58 }
 0x5b3   : > { %v16693_v44 = vpop.f32.mrf.mxu0 }
 0x5b4   : > { %v16725_v29 = vpop.f32.mrf.mxu1  ;;  %v7838_v14 = vadd.f32 %v7807_v57, %v7606_v42  ;;  %v7609_v33 = vadd.f32 %v16693_v44, %v7377_v20 }
 0x5b5   : > { %v7585_v61 = vpop.f32.mrf.mxu0 }
 0x5b6   : > { %v7817_v34 = vpop.f32.mrf.mxu1  ;;  %v7841_v16 = vadd.f32 %v16725_v29, %v7609_v33  ;;  %v7608_v2 = vadd.f32 %v7585_v61, %v7376_v27 }
 0x5b7   : > { %v16736_v47 = vpop.f32.mrf.mxu0 }
 0x5b8   : > { %v16768_v32 = vpop.f32.mrf.mxu1  ;;  %v7840_v8 = vadd.f32 %v7817_v34, %v7608_v2  ;;  %v8059_v45 = vadd.f32 %v16736_v47, %v7827_v49 }
 0x5b9   : > { %v7979_v28 = vpop.f32.mrf.mxu0 }
 0x5ba   : > { %v8211_v19 = vpop.f32.mrf.mxu1  ;;  %v21799_v54 = vadd.f32 %v16768_v32, %v8059_v45  ;;  %v8058_v9 = vadd.f32 %v7979_v28, %v7826_v0 }
 0x5bb   : > { %v16739_v31 = vpop.f32.mrf.mxu0 }
 0x5bc   : > { %v16771_v37 = vpop.f32.mrf.mxu1  ;;  %v21801_v58 = vadd.f32 %v8211_v19, %v8058_v9  ;;  %v8061_v41 = vadd.f32 %v16739_v31, %v7829_v30 }
 0x5bd   : > { %v7989_v21 = vpop.f32.mrf.mxu0 }
 0x5be   : > { %v8221_v20 = vpop.f32.mrf.mxu1  ;;  %v21803_v38 = vadd.f32 %v16771_v37, %v8061_v41  ;;  %v8060_v23 = vadd.f32 %v7989_v21, %v7828_v12 }
 0x5bf   : > { %v16742_v27 = vpop.f32.mrf.mxu0 }
 0x5c0   : > { %v16774_v53 = vpop.f32.mrf.mxu1  ;;  %v21805_v50 = vadd.f32 %v8221_v20, %v8060_v23  ;;  %v8063_v49 = vadd.f32 %v16742_v27, %v7831_v56 }
 0x5c1   : > { %v7999_v51 = vpop.f32.mrf.mxu0 }
 0x5c2   : > { %v8231_v10 = vpop.f32.mrf.mxu1  ;;  %v21807_v55 = vadd.f32 %v16774_v53, %v8063_v49  ;;  %v8062_v0 = vadd.f32 %v7999_v51, %v7830_v35 }
 0x5c3   : > { %v16745_v11 = vpop.f32.mrf.mxu0 }
 0x5c4   : > { %v16777_v60 = vpop.f32.mrf.mxu1  ;;  %v21809_v3 = vadd.f32 %v8231_v10, %v8062_v0  ;;  %v8065_v30 = vadd.f32 %v16745_v11, %v7833_v62 }
 0x5c5   : > { %v8009_v39 = vpop.f32.mrf.mxu0 }
 0x5c6   : > { %v8241_v7 = vpop.f32.mrf.mxu1  ;;  %v21811_v6 = vadd.f32 %v16777_v60, %v8065_v30  ;;  %v8064_v12 = vadd.f32 %v8009_v39, %v7832_v17 }
 0x5c7   : > { %v16748_v36 = vpop.f32.mrf.mxu0 }
 0x5c8   : > { %v16780_v24 = vpop.f32.mrf.mxu1  ;;  %v21813_v59 = vadd.f32 %v8241_v7, %v8064_v12  ;;  %v8067_v56 = vadd.f32 %v16748_v36, %v7835_v1 }
 0x5c9   : > { %v8019_v63 = vpop.f32.mrf.mxu0 }
 0x5ca   : > { %v8251_v5 = vpop.f32.mrf.mxu1  ;;  %v21815_v26 = vadd.f32 %v16780_v24, %v8067_v56  ;;  %v8066_v35 = vadd.f32 %v8019_v63, %v7834_v40 }
 0x5cb   : > { %v16751_v48 = vpop.f32.mrf.mxu0 }
 0x5cc   : > { %v16783_v15 = vpop.f32.mrf.mxu1  ;;  %v21817_v25 = vadd.f32 %v8251_v5, %v8066_v35  ;;  %v8069_v62 = vadd.f32 %v16751_v48, %v7837_v52 }
 0x5cd   : > { %v8029_v4 = vpop.f32.mrf.mxu0 }
 0x5ce   : > { %v8261_v18 = vpop.f32.mrf.mxu1  ;;  %v21819_v46 = vadd.f32 %v16783_v15, %v8069_v62  ;;  %v8068_v17 = vadd.f32 %v8029_v4, %v7836_v43 }
 0x5cf   : > { %v16754_v22 = vpop.f32.mrf.mxu0 }
 0x5d0   : > { %v16786_v57 = vpop.f32.mrf.mxu1  ;;  %v21821_v42 = vadd.f32 %v8261_v18, %v8068_v17  ;;  %v8071_v1 = vadd.f32 %v16754_v22, %v7839_v13 }
 0x5d1   : > { %v8039_v44 = vpop.f32.mrf.mxu0 }
 0x5d2   : > { %v8271_v29 = vpop.f32.mrf.mxu1  ;;  %v21823_v33 = vadd.f32 %v16786_v57, %v8071_v1  ;;  %v8070_v40 = vadd.f32 %v8039_v44, %v7838_v14 }
 0x5d3   : > { %v16757_v61 = vpop.f32.mrf.mxu0 }
 0x5d4   : > { %v16789_v34 = vpop.f32.mrf.mxu1  ;;  %v21825_v2 = vadd.f32 %v8271_v29, %v8070_v40  ;;  %v8073_v52 = vadd.f32 %v16757_v61, %v7841_v16 }
 0x5d5   : > { %v8049_v47 = vpop.f32.mrf.mxu0 }
 0x5d6   : > { %23847 = vst [vmem:[#allocation158_spill] sm:$0xff] %v21825_v2  ;;  %v8281_v32 = vpop.f32.mrf.mxu1  ;;  %v21827_v45 = vadd.f32 %v16789_v34, %v8073_v52  ;;  %v8072_v43 = vadd.f32 %v8049_v47, %v7840_v8 }
 0x5d7   : > { %v16800_v28 = vpop.f32.mrf.mxu0 }
 0x5d8   : > { %23848 = vst [vmem:[#allocation159_spill] sm:$0xff] %v21827_v45  ;;  %v16832_v19 = vpop.f32.mrf.mxu1  ;;  %v21829_v9 = vadd.f32 %v8281_v32, %v8072_v43  ;;  %v8523_v45 = vadd.f32 %v16800_v28, %v21799_v54 }
 0x5d9   : > { %v8443_v13 = vpop.f32.mrf.mxu0 }
 0x5da   : > { %23849 = vst [vmem:[#allocation160_spill] sm:$0xff] %v21829_v9  ;;  %v8675_v31 = vpop.f32.mrf.mxu1  ;;  %v8522_v2 = vadd.f32 %v8443_v13, %v21801_v58 }
 0x5db   : > { %v16803_v37 = vpop.f32.mrf.mxu0 }
 0x5dc   : > { %v21831_v41 = vpop.f32.mrf.mxu1 }
 0x5dd   : > { %v8453_v14 = vpop.f32.mrf.mxu0 }
 0x5de   : > { %v21833_v21 = vpop.f32.mrf.mxu1  ;;  %v8524_v54 = vadd.f32 %v8453_v14, %v21805_v50 }
 0x5df   : > { %v16806_v20 = vpop.f32.mrf.mxu0 }
 0x5e0   : > { %v21835_v23 = vpop.f32.mrf.mxu1 }
 0x5e1   : > { %v8463_v16 = vpop.f32.mrf.mxu0 }
 0x5e2   : > { %v21837_v27 = vpop.f32.mrf.mxu1 }
 0x5e3   : > { %v21839_v53 = vpop.f32.mrf.mxu0 }
 0x5e4   : > { %v21841_v8 = vpop.f32.mrf.mxu1 }
 0x5e5   : > { %v21843_v49 = vpop.f32.mrf.mxu0 }
 0x5e6   : > { %v21845_v51 = vpop.f32.mrf.mxu1 }
 0x5e7   : > { %v21847_v10 = vpop.f32.mrf.mxu0 }
 0x5e8   : > { %v21849_v0 = vpop.f32.mrf.mxu1 }
 0x5e9   : > { %v21851_v11 = vpop.f32.mrf.mxu0 }
 0x5ea   : > { %v21853_v60 = vpop.f32.mrf.mxu1 }
 0x5eb   : > { %v21855_v30 = vpop.f32.mrf.mxu0 }
 0x5ec   : > { %v21857_v39 = vpop.f32.mrf.mxu1 }
 0x5ed   : > { %v21859_v7 = vpop.f32.mrf.mxu0 }
 0x5ee   : > { %v21861_v12 = vpop.f32.mrf.mxu1 }
 0x5ef   : > { %23850 = vst [vmem:[#allocation161_spill] sm:$0xff] %v21861_v12  ;;  %v21863_v36 = vpop.f32.mrf.mxu0 }
 0x5f0   : > { %v21865_v24 = vpop.f32.mrf.mxu1 }
 0x5f1   : > { %23851 = vst [vmem:[#allocation162_spill] sm:$0xff] %v21865_v24  ;;  %v21867_v56 = vpop.f32.mrf.mxu0 }
 0x5f2   : > { %23852 = vst [vmem:[#allocation163_spill] sm:$0xff] %v21867_v56  ;;  %v21869_v63 = vpop.f32.mrf.mxu1 }
 0x5f3   : > { %23853 = vst [vmem:[#allocation164_spill] sm:$0xff] %v21869_v63  ;;  %v21871_v5 = vpop.f32.mrf.mxu0 }
 0x5f4   : > { %23854 = vst [vmem:[#allocation165_spill] sm:$0xff] %v21871_v5  ;;  %v21873_v35 = vpop.f32.mrf.mxu1 }
 0x5f5   : > { %23855 = vst [vmem:[#allocation166_spill] sm:$0xff] %v21873_v35  ;;  %v21875_v48 = vpop.f32.mrf.mxu0 }
 0x5f6   : > { %23856 = vst [vmem:[#allocation167_spill] sm:$0xff] %v21875_v48  ;;  %v21877_v15 = vpop.f32.mrf.mxu1 }
 0x5f7   : > { %23857 = vst [vmem:[#allocation168_spill] sm:$0xff] %v21877_v15  ;;  %v16864_v62 = vpop.f32.mrf.mxu0 }
 0x5f8   : > { %v16896_v4 = vpop.f32.mrf.mxu1 }
 0x5f9   : > { %v8907_v18 = vpop.f32.mrf.mxu0 }
 0x5fa   : > { %v9139_v17 = vpop.f32.mrf.mxu1 }
 0x5fb   : > { %v16867_v22 = vpop.f32.mrf.mxu0 }
 0x5fc   : > { %v16899_v57 = vpop.f32.mrf.mxu1 }
 0x5fd   : > { %v8917_v1 = vpop.f32.mrf.mxu0 }
 0x5fe   : > { %v9149_v44 = vpop.f32.mrf.mxu1 }
 0x5ff   : > { %v16870_v29 = vpop.f32.mrf.mxu0 }
 0x600   : > { %v21879_v40 = vpop.f32.mrf.mxu1 }
 0x601   : > { %v8927_v61 = vpop.f32.mrf.mxu0 }
 0x602   : > { %v21881_v34 = vpop.f32.mrf.mxu1 }
 0x603   : > { %v16873_v52 = vpop.f32.mrf.mxu0 }
 0x604   : > { %v21883_v47 = vpop.f32.mrf.mxu1 }
 0x605   : > { %v21885_v32 = vpop.f32.mrf.mxu0 }
 0x606   : > { %v21887_v43 = vpop.f32.mrf.mxu1 }
 0x607   : > { %23858 = vst [vmem:[#allocation169_spill] sm:$0xff] %v21887_v43  ;;  %v21889_v15 = vpop.f32.mrf.mxu0 }
 0x608   : > { %v21891_v35 = vpop.f32.mrf.mxu1 }
 0x609   : > { %23859 = vst [vmem:[#allocation170_spill] sm:$0xff] %v21891_v35  ;;  %v21893_v48 = vpop.f32.mrf.mxu0  ;;  %v8755_v35 = vadd.f32 %v16832_v19, %v8523_v45  ;;  %v8526_v45 = vadd.f32 %v8463_v16, %v21809_v3  ;;  %v8528_v16 = vadd.f32 %v21843_v49, %v21813_v59 }
 0x60a   : > { %23860 = vst [vmem:[#allocation171_spill] sm:$0xff] %v21893_v48  ;;  %v21895_v9 = vpop.f32.mrf.mxu1  ;;  %v8525_v48 = vadd.f32 %v16803_v37, %v21803_v38 }
 0x60b   : > { %23861 = vst [vmem:[#allocation172_spill] sm:$0xff] %v21895_v9  ;;  %v21897_v63 = vpop.f32.mrf.mxu0  ;;  %v8987_v28 = vadd.f32 %v16864_v62, %v8755_v35  ;;  %v8758_v3 = vadd.f32 %v21837_v27, %v8526_v45 }
 0x60c   : > { %23862 = vst [vmem:[#allocation173_spill] sm:$0xff] %v21897_v63  ;;  %v21899_v5 = vpop.f32.mrf.mxu1  ;;  %v8757_v13 = vadd.f32 %v21831_v41, %v8525_v48 }
 0x60d   : > { %23863 = vst [vmem:[#allocation174_spill] sm:$0xff] %v21899_v5  ;;  %v21902_v24 = vpop.f32.mrf.mxu0  ;;  %v8754_v5 = vadd.f32 %v8675_v31, %v8522_v2  ;;  %v8756_v2 = vadd.f32 %v21833_v21, %v8524_v54  ;;  %v9219_v31 = vadd.f32 %v16896_v4, %v8987_v28  ;;  %v21938_v21 = vld [vmem:[%s23867_s3] ss:$0 sm:$0xff]  ;;  %v8990_v27 = vadd.f32 %v8927_v61, %v8758_v3 }
 0x60e   : > { %23864 = vst [vmem:[#allocation175_spill] sm:$0xff] %v21902_v24  ;;  %v21904_v56 = vpop.f32.mrf.mxu1  ;;  %v8527_v24 = vadd.f32 %v16806_v20, %v21807_v55  ;;  %v8989_v50 = vadd.f32 %v16867_v22, %v8757_v13  ;;  %v8529_v55 = vadd.f32 %v21839_v53, %v21811_v6 }
 0x60f   : > { %23865 = vst [vmem:[#allocation176_spill] sm:$0xff] %v21904_v56  ;;  %v21907_v12 = vpop.f32.mrf.mxu0  ;;  %v8988_v41 = vadd.f32 %v8917_v1, %v8756_v2  ;;  %v8533_v2 = vadd.f32 %v21855_v30, %v21819_v46  ;;  %v8532_v30 = vadd.f32 %v21859_v7, %v21821_v42  ;;  %v23868_v42 = vld [vmem:[#allocation169_spill] sm:$0xff] }
 0x610   : > { %v21909_v43 = vpop.f32.mrf.mxu1  ;;  %v8759_v37 = vadd.f32 %v21835_v23, %v8527_v24  ;;  %v9221_v62 = vadd.f32 %v16899_v57, %v8989_v50  ;;  %v8761_v4 = vadd.f32 %v21841_v8, %v8529_v55  ;;  %v8530_v57 = vadd.f32 %v21851_v11, %v21817_v25 }
 0x611   : > { %23866 = vst [vmem:[#allocation177_spill] sm:$0xff] %v21909_v43  ;;  %v21912_v9 = vpop.f32.mrf.mxu0  ;;  %v8986_v43 = vadd.f32 %v8907_v18, %v8754_v5  ;;  %v8531_v18 = vadd.f32 %v21847_v10, %v21815_v26  ;;  %v9220_v59 = vadd.f32 %v9149_v44, %v8988_v41 }
 0x612   : > { %v21914_v63 = vpop.f32.mrf.mxu1  ;;  %v8991_v48 = vadd.f32 %v16870_v29, %v8759_v37  ;;  %v8993_v8 = vadd.f32 %v16873_v52, %v8761_v4  ;;  %v8762_v46 = vadd.f32 %v21853_v60, %v8530_v57  ;;  %v8535_v60 = vadd.f32 %v21863_v36, %v21823_v33  ;;  %v23872_v4 = vld [vmem:[#allocation163_spill] sm:$0xff]  ;;  %v23873_v33 = vld [vmem:[#allocation170_spill] sm:$0xff] }
 0x613   : > { %v21918_v56 = vpop.f32.mrf.mxu0  ;;  %v9218_v35 = vadd.f32 %v9139_v17, %v8986_v43  ;;  %v8760_v43 = vadd.f32 %v21845_v51, %v8528_v16  ;;  %v8763_v45 = vadd.f32 %v21849_v0, %v8531_v18  ;;  %v9222_v51 = vadd.f32 %v21881_v34, %v8990_v27  ;;  %v23874_v27 = vld [vmem:[#allocation173_spill] sm:$0xff]  ;;  %v23875_v57 = vld [vmem:[#allocation162_spill] sm:$0xff] }
 0x614   : > { %v21920_v58 = vpop.f32.mrf.mxu1  ;;  %v9223_v54 = vadd.f32 %v21879_v40, %v8991_v48  ;;  %v9225_v34 = vadd.f32 %v21883_v47, %v8993_v8  ;;  %v23869_v47 = vld [vmem:[#allocation171_spill] sm:$0xff] }
 0x615   : > { %v21924_v38 = vpop.f32.mrf.mxu0  ;;  %v8994_v3 = vadd.f32 %v23869_v47, %v8762_v46  ;;  %v23876_v8 = vld [vmem:[#allocation159_spill] sm:$0xff] }
 0x616   : > { %v21926_v19 = vpop.f32.mrf.mxu1 }
 0x617   : > { %v16928_v14 = vpop.f32.mrf.mxu0 }
 0x618   : > { %v16960_v20 = vpop.f32.mrf.mxu1  ;;  %v9451_v5 = vadd.f32 %v16928_v14, %v9219_v31  ;;  %v8992_v31 = vadd.f32 %v21885_v32, %v8760_v43  ;;  %v8995_v32 = vadd.f32 %v21889_v15, %v8763_v45 }
 0x619   : > { %v9371_v23 = vpop.f32.mrf.mxu0 }
 0x61a   : > { %v9603_v24 = vpop.f32.mrf.mxu1  ;;  %v9683_v6 = vadd.f32 %v16960_v20, %v9451_v5  ;;  %v9450_v53 = vadd.f32 %v9371_v23, %v9218_v35  ;;  %v8765_v5 = vadd.f32 %v21857_v39, %v8533_v2  ;;  %v9224_v7 = vadd.f32 %v23868_v42, %v8992_v31  ;;  %v23871_v39 = vld [vmem:[#allocation158_spill] sm:$0xff]  ;;  %v23885_v42 = vld [vmem:[#allocation176_spill] sm:$0xff] }
 0x61b   : > { %v16931_v17 = vpop.f32.mrf.mxu0  ;;  %v8534_v18 = vadd.f32 %v23872_v4, %v23871_v39  ;;  %v9227_v36 = vadd.f32 %v23873_v33, %v8995_v32 }
 0x61c   : > { %v16963_v22 = vpop.f32.mrf.mxu1  ;;  %v9706_v49 = vadd.f32 %v21938_v21, %v9683_v6  ;;  %v9682_v1 = vadd.f32 %v9603_v24, %v9450_v53  ;;  %v9453_v29 = vadd.f32 %v16931_v17, %v9221_v62  ;;  %v23870_v6 = vld [vmem:[#allocation161_spill] sm:$0xff]  ;;  %v8997_v17 = vadd.f32 %v23874_v27, %v8765_v5  ;;  %v23884_v5 = vld [vmem:[#allocation166_spill] sm:$0xff] }
 0x61d   : > { %v9381_v28 = vpop.f32.mrf.mxu0  ;;  %v8764_v53 = vadd.f32 %v23870_v6, %v8532_v30  ;;  %v23883_v30 = vld [vmem:[#allocation174_spill] sm:$0xff]  ;;  %v23887_v6 = vld [vmem:[#allocation177_spill] sm:$0xff] }
 0x61e   : > { %v9613_v13 = vpop.f32.mrf.mxu1  ;;  %v9722_v26 = vmax.f32 %v9706_v49, 0.0  ;;  %v9705_v10 = vadd.f32 %v21938_v21, %v9682_v1  ;;  %v9685_v61 = vadd.f32 %v16963_v22, %v9453_v29  ;;  %v9452_v44 = vadd.f32 %v9381_v28, %v9220_v59  ;;  %v23877_v28 = vld [vmem:[#allocation165_spill] sm:$0xff] }
 0x61f   : > { %v16934_v25 = vpop.f32.mrf.mxu0 }
 0x620   : > { %v16966_v11 = vpop.f32.mrf.mxu1  ;;  %9739 = vst.msk [vmem:[%s21956_s26 + $0x8] sm:$0xff] %vm5995_vm1, %v9722_v26  ;;  %v9721_v40 = vmax.f32 %v9705_v10, 0.0  ;;  %v9708_v52 = vadd.f32 %v21938_v21, %v9685_v61  ;;  %v9684_v0 = vadd.f32 %v9613_v13, %v9452_v44  ;;  %v9455_v50 = vadd.f32 %v16934_v25, %v9223_v54  ;;  %v23878_v26 = vld [vmem:[#allocation172_spill] sm:$0xff]  ;;  %v23879_v61 = vld [vmem:[#allocation175_spill] sm:$0xff] }
 0x621   : > { %v9391_v37 = vpop.f32.mrf.mxu0  ;;  %v8767_v54 = vadd.f32 %v23875_v57, %v8535_v60  ;;  %v8537_v13 = vadd.f32 %v23877_v28, %v23876_v8  ;;  %v9226_v10 = vadd.f32 %v23878_v26, %v8994_v3  ;;  %v8996_v44 = vadd.f32 %v23879_v61, %v8764_v53 }
 0x622   : > { %v9623_v55 = vpop.f32.mrf.mxu1  ;;  %9738 = vst.msk [vmem:[%s21956_s26] sm:$0xff] %vm5995_vm1, %v9721_v40  ;;  %v9724_v14 = vmax.f32 %v9708_v52, 0.0  ;;  %v9707_v20 = vadd.f32 %v21938_v21, %v9684_v0  ;;  %v9687_v35 = vadd.f32 %v16966_v11, %v9455_v50  ;;  %v9454_v41 = vadd.f32 %v9391_v37, %v9222_v51  ;;  %v23880_v40 = vld [vmem:[#allocation164_spill] sm:$0xff]  ;;  %v23882_v50 = vld [vmem:[#allocation167_spill] sm:$0xff] }
 0x623   : > { %v16937_v15 = vpop.f32.mrf.mxu0  ;;  %v8766_v52 = vadd.f32 %v23880_v40, %v8534_v18  ;;  %v23881_v0 = vld [vmem:[#allocation160_spill] sm:$0xff]  ;;  %v8999_v32 = vadd.f32 %v21907_v12, %v8767_v54  ;;  %v8769_v60 = vadd.f32 %v23884_v5, %v8537_v13 }
 0x624   : > { %v16969_v16 = vpop.f32.mrf.mxu1  ;;  %9741 = vst.msk [vmem:[%s21956_s26 + $0x18] sm:$0xff] %vm5995_vm1, %v9724_v14  ;;  %v9723_v48 = vmax.f32 %v9707_v20, 0.0  ;;  %v9710_v23 = vadd.f32 %v21938_v21, %v9687_v35  ;;  %v9686_v24 = vadd.f32 %v9623_v55, %v9454_v41  ;;  %v9457_v62 = vadd.f32 %v16937_v15, %v9225_v34 }
 0x625   : > { %v9401_v22 = vpop.f32.mrf.mxu0  ;;  %v8536_v46 = vadd.f32 %v23882_v50, %v23881_v0  ;;  %v9229_v34 = vadd.f32 %v23883_v30, %v8997_v17  ;;  %v8998_v47 = vadd.f32 %v21912_v9, %v8766_v52  ;;  %v9231_v53 = vadd.f32 %v23887_v6, %v8999_v32 }
 0x626   : > { %v9633_v59 = vpop.f32.mrf.mxu1  ;;  %9740 = vst.msk [vmem:[%s21956_s26 + $0x10] sm:$0xff] %vm5995_vm1, %v9723_v48  ;;  %v9726_v49 = vmax.f32 %v9710_v23, 0.0  ;;  %v9709_v1 = vadd.f32 %v21938_v21, %v9686_v24  ;;  %v9689_v29 = vadd.f32 %v16969_v16, %v9457_v62  ;;  %v9456_v43 = vadd.f32 %v9401_v22, %v9224_v7  ;;  %v23886_v24 = vld [vmem:[#allocation168_spill] sm:$0xff] }
 0x627   : > { %v16940_v45 = vpop.f32.mrf.mxu0  ;;  %v9228_v7 = vadd.f32 %v23885_v42, %v8996_v44  ;;  %v8768_v62 = vadd.f32 %v23886_v24, %v8536_v46  ;;  %v9001_v39 = vadd.f32 %v21918_v56, %v8769_v60  ;;  %v9230_v17 = vadd.f32 %v21914_v63, %v8998_v47 }
 0x628   : > { %v16972_v2 = vpop.f32.mrf.mxu1  ;;  %9743 = vst.msk [vmem:[%s21956_s26 + $0x28] sm:$0xff] %vm5995_vm1, %v9726_v49  ;;  %v9725_v51 = vmax.f32 %v9709_v1, 0.0  ;;  %v9712_v31 = vadd.f32 %v21938_v21, %v9689_v29  ;;  %v9688_v25 = vadd.f32 %v9633_v59, %v9456_v43  ;;  %v9459_v11 = vadd.f32 %v16940_v45, %v9227_v36 }
 0x629   : > { %v9411_v37 = vpop.f32.mrf.mxu0  ;;  %v9000_v22 = vadd.f32 %v21924_v38, %v8768_v62  ;;  %v9233_v57 = vadd.f32 %v21920_v58, %v9001_v39 }
 0x62a   : > { %v9643_v55 = vpop.f32.mrf.mxu1  ;;  %9742 = vst.msk [vmem:[%s21956_s26 + $0x20] sm:$0xff] %vm5995_vm1, %v9725_v51  ;;  %v9728_v14 = vmax.f32 %v9712_v31, 0.0  ;;  %v9711_v20 = vadd.f32 %v21938_v21, %v9688_v25  ;;  %v9691_v35 = vadd.f32 %v16972_v2, %v9459_v11  ;;  %v9458_v41 = vadd.f32 %v9411_v37, %v9226_v10 }
 0x62b   : > { %v16943_v3 = vpop.f32.mrf.mxu0  ;;  %v9232_v26 = vadd.f32 %v21926_v19, %v9000_v22 }
 0x62c   : > { %v16975_v15 = vpop.f32.mrf.mxu1  ;;  %9745 = vst.msk [vmem:[%s21956_s26 + $0x38] sm:$0xff] %vm5995_vm1, %v9728_v14  ;;  %v9727_v12 = vmax.f32 %v9711_v20, 0.0  ;;  %v9714_v16 = vadd.f32 %v21938_v21, %v9691_v35  ;;  %v9690_v48 = vadd.f32 %v9643_v55, %v9458_v41  ;;  %v9461_v23 = vadd.f32 %v16943_v3, %v9229_v34 }
 0x62d   : > { %v9421_v4 = vpop.f32.mrf.mxu0  ;;  %v17852_v55 = vmov (%p6014_p2), 0.0  }
 0x62e   : > { %v9653_v18 = vpop.f32.mrf.mxu1  ;;  %9744 = vst.msk [vmem:[%s21956_s26 + $0x30] sm:$0xff] %vm5995_vm1, %v9727_v12  ;;  %v9730_v9 = vmax.f32 %v9714_v16, 0.0  ;;  %v9713_v33 = vadd.f32 %v21938_v21, %v9690_v48  ;;  %v9693_v36 = vadd.f32 %v16975_v15, %v9461_v23  ;;  %v9460_v27 = vadd.f32 %v9421_v4, %v9228_v7  ;;  %16982 = vmatprep.subr.mxu0 (%p6014_p2), %v17852_v55 }
 0x62f   : > { %v16946_v59 = vpop.f32.mrf.mxu0  ;;  %17053 = vmatprep.subr.mxu1 (%p6014_p2), %v17852_v55  ;;  %17014 = vmatprep.mubr.msk.f32.mxu0 (%p6014_p2), %vm17853_vm2, %v17852_v55 }
 0x630   : > { %v16978_v49 = vpop.f32.mrf.mxu1  ;;  %9747 = vst.msk [vmem:[%s21956_s26 + $0x48] sm:$0xff] %vm5995_vm1, %v9730_v9  ;;  %v9729_v56 = vmax.f32 %v9713_v33, 0.0  ;;  %v9716_v1 = vadd.f32 %v21938_v21, %v9693_v36  ;;  %v9692_v29 = vadd.f32 %v9653_v18, %v9460_v27  ;;  %v9463_v43 = vadd.f32 %v16946_v59, %v9231_v53  ;;  %v9783_v59 = vld [vmem:[%s23888_s27 + $0x8] sm:$0xff] (%p6014_p2)  ;;  %17085 = vmatprep.mubr.msk.f32.mxu1 (%p6014_p2), %vm17853_vm2, %v17852_v55 }
 0x631   : > { %v9431_v54 = vpop.f32.mrf.mxu0 }
 0x632   : > { %v9663_v8 = vpop.f32.mrf.mxu1  ;;  %9746 = vst.msk [vmem:[%s21956_s26 + $0x40] sm:$0xff] %vm5995_vm1, %v9729_v56  ;;  %v9732_v63 = vmax.f32 %v9716_v1, 0.0  ;;  %v9715_v38 = vadd.f32 %v21938_v21, %v9692_v29  ;;  %v9695_v28 = vadd.f32 %v16978_v49, %v9463_v43  ;;  %v9462_v13 = vadd.f32 %v9431_v54, %v9230_v17  ;;  %v9754_v56 = vld [vmem:[%s23888_s27] sm:$0xff] (%p6014_p2)  ;;  %v9784_v43 = vld [vmem:[%s23888_s27 + $0x38] sm:$0xff] (%p6014_p2) }
 0x633   : > { %v16949_v10 = vpop.f32.mrf.mxu0 }
 0x634   : > { %v16981_v61 = vpop.f32.mrf.mxu1  ;;  %9749 = vst.msk [vmem:[%s21956_s26 + $0x58] sm:$0xff] %vm5995_vm1, %v9732_v63  ;;  %v9731_v44 = vmax.f32 %v9715_v38, 0.0  ;;  %v9718_v58 = vadd.f32 %v21938_v21, %v9695_v28  ;;  %v9694_v45 = vadd.f32 %v9663_v8, %v9462_v13  ;;  %v9465_v2 = vadd.f32 %v16949_v10, %v9233_v57  ;;  %v9755_v57 = vld [vmem:[%s23888_s27 + $0x30] sm:$0xff] (%p6014_p2)  ;;  %v9785_v63 = vld [vmem:[%s23888_s27 + $0x68] sm:$0xff] (%p6014_p2)  ;;  %v9756_v28 = vld [vmem:[%s23888_s27 + $0x60] sm:$0xff] (%p6014_p2) }
 0x635   : > { %v9441_v51 = vpop.f32.mrf.mxu0  ;;  %v9786_v10 = vld [vmem:[%s23888_s27 + $0x98] sm:$0xff] (%p6014_p2) }
 0x636   : > { %9748 = vst.msk [vmem:[%s21956_s26 + $0x50] sm:$0xff] %vm5995_vm1, %v9731_v44  ;;  %v9734_v31 = vmax.f32 %v9718_v58, 0.0  ;;  %v9717_v25 = vadd.f32 %v21938_v21, %v9694_v45  ;;  %v9697_v11 = vadd.f32 %v16981_v61, %v9465_v2  ;;  %v9464_v19 = vadd.f32 %v9441_v51, %v9232_v26  ;;  %v9673_v40 = vpop.f32.mrf.mxu1  ;;  %v9757_v61 = vld [vmem:[%s23888_s27 + $0x90] sm:$0xff] (%p6014_p2)  ;;  %v9787_v45 = vld [vmem:[%s23888_s27 + $0xc8] sm:$0xff] (%p6014_p2)  ;;  %v9758_v51 = vld [vmem:[%s23888_s27 + $0xc0] sm:$0xff] (%p6014_p2) }
 0x638   : > { %9751 = vst.msk [vmem:[%s21956_s26 + $0x68] sm:$0xff] %vm5995_vm1, %v9734_v31  ;;  %v9733_v52 = vmax.f32 %v9717_v25, 0.0  ;;  %v9720_v0 = vadd.f32 %v21938_v21, %v9697_v11  ;;  %v9696_v50 = vadd.f32 %v9673_v40, %v9464_v19  ;;  %v9788_v25 = vld [vmem:[%s23888_s27 + $0xf8] sm:$0xff] (%p6014_p2)  ;;  %v9759_v19 = vld [vmem:[%s23888_s27 + $0xf0] sm:$0xff] (%p6014_p2) }
 0x63a   : > { %9750 = vst.msk [vmem:[%s21956_s26 + $0x60] sm:$0xff] %vm5995_vm1, %v9733_v52  ;;  %v9736_v46 = vmax.f32 %v9720_v0, 0.0  ;;  %v9719_v30 = vadd.f32 %v21938_v21, %v9696_v50  ;;  %6016 = sbr.rel (!%p6014_p2) target bundleno = 1127 (0x467), region = 268  ;;  %v9789_v0 = vld [vmem:[%s23888_s27 + $0x128] sm:$0xff] (%p6014_p2) }
 0x63c   : > { %9753 = vst.msk [vmem:[%s21956_s26 + $0x78] sm:$0xff] %vm5995_vm1, %v9736_v46  ;;  %v9735_v34 = vmax.f32 %v9719_v30, 0.0  ;;  %v9760_v46 = vld [vmem:[%s23888_s27 + $0x120] sm:$0xff] (%p6014_p2) }
 0x63e   : > { %9752 = vst.msk [vmem:[%s21956_s26 + $0x70] sm:$0xff] %vm5995_vm1, %v9735_v34 }
 0x645   :  { %v9811_v32 = vld [vmem:[#allocation4 + $0xf8] sm:$0xff]  ;;  %v9810_v14 = vld [vmem:[#allocation4 + $0xf0] sm:$0xff]  ;;  %v9809_v20 = vld [vmem:[#allocation4 + $0xe8] sm:$0xff] }
 0x646   :  { %v9782_v37 = vld [vmem:[#allocation4 + $0x78] sm:$0xff]  ;;  %v9781_v21 = vld [vmem:[#allocation4 + $0x70] sm:$0xff]  ;;  %16983 = vmatpush3.msra.mxu0 %v9811_v32  ;;  %v9780_v35 = vld [vmem:[#allocation4 + $0x68] sm:$0xff] }
 0x647   :  { %17054 = vmatpush3.msra.mxu1 %v9782_v37  ;;  %16984 = vmatprep.subr.mxu0 %v17852_v55  ;;  %v9808_v41 = vld [vmem:[#allocation4 + $0xe0] sm:$0xff]  ;;  %v9807_v60 = vld [vmem:[#allocation4 + $0xd8] sm:$0xff]  ;;  %v9806_v7 = vld [vmem:[#allocation4 + $0xd0] sm:$0xff] }
 0x648   :  { %17055 = vmatprep.subr.mxu1 %v17852_v55  ;;  %16985 = vmatpush3.msra.mxu0 %v9810_v14  ;;  %v9779_v5 = vld [vmem:[#allocation4 + $0x60] sm:$0xff]  ;;  %v9778_v42 = vld [vmem:[#allocation4 + $0x58] sm:$0xff]  ;;  %v9777_v47 = vld [vmem:[#allocation4 + $0x50] sm:$0xff] }
 0x649   :  { %17056 = vmatpush3.msra.mxu1 %v9781_v21  ;;  %16986 = vmatprep.subr.mxu0 %v17852_v55  ;;  %v9805_v3 = vld [vmem:[#allocation4 + $0xc8] sm:$0xff]  ;;  %v9804_v12 = vld [vmem:[#allocation4 + $0xc0] sm:$0xff]  ;;  %v9803_v48 = vld [vmem:[#allocation4 + $0xb8] sm:$0xff] }
 0x64a   :  { %17057 = vmatprep.subr.mxu1 %v17852_v55  ;;  %16987 = vmatpush3.msra.mxu0 %v9809_v20  ;;  %v9776_v15 = vld [vmem:[#allocation4 + $0x48] sm:$0xff]  ;;  %v9775_v16 = vld [vmem:[#allocation4 + $0x40] sm:$0xff]  ;;  %v9774_v23 = vld [vmem:[#allocation4 + $0x38] sm:$0xff] }
 0x64b   :  { %17058 = vmatpush3.msra.mxu1 %v9780_v35  ;;  %16988 = vmatprep.subr.mxu0 %v17852_v55  ;;  %v9802_v24 = vld [vmem:[#allocation4 + $0xb0] sm:$0xff]  ;;  %v9801_v6 = vld [vmem:[#allocation4 + $0xa8] sm:$0xff]  ;;  %v9800_v39 = vld [vmem:[#allocation4 + $0xa0] sm:$0xff] }
 0x64c   :  { %17059 = vmatprep.subr.mxu1 %v17852_v55  ;;  %16989 = vmatpush3.msra.mxu0 %v9808_v41  ;;  %v9773_v62 = vld [vmem:[#allocation4 + $0x30] sm:$0xff]  ;;  %v9772_v53 = vld [vmem:[#allocation4 + $0x28] sm:$0xff]  ;;  %v9771_v4 = vld [vmem:[#allocation4 + $0x20] sm:$0xff] }
 0x64d   :  { %17060 = vmatpush3.msra.mxu1 %v9779_v5  ;;  %16990 = vmatprep.subr.mxu0 %v17852_v55  ;;  %v9799_v18 = vld [vmem:[#allocation4 + $0x98] sm:$0xff]  ;;  %v9798_v33 = vld [vmem:[#allocation4 + $0x90] sm:$0xff]  ;;  %v9797_v27 = vld [vmem:[#allocation4 + $0x88] sm:$0xff] }
 0x64e   :  { %17061 = vmatprep.subr.mxu1 %v17852_v55  ;;  %16991 = vmatpush3.msra.mxu0 %v9807_v60  ;;  %v9770_v9 = vld [vmem:[#allocation4 + $0x18] sm:$0xff]  ;;  %v9769_v36 = vld [vmem:[#allocation4 + $0x10] sm:$0xff]  ;;  %v9768_v17 = vld [vmem:[#allocation4 + $0x8] sm:$0xff] }
 0x64f   :  { %17062 = vmatpush3.msra.mxu1 %v9778_v42  ;;  %16992 = vmatprep.subr.mxu0 %v17852_v55  ;;  %v9796_v22 = vld [vmem:[#allocation4 + $0x80] sm:$0xff]  ;;  %v10100_v1 = vld [vmem:[#allocation4 + $0x178] sm:$0xff]  ;;  %v10099_v54 = vld [vmem:[#allocation4 + $0x170] sm:$0xff] }
 0x650   :  { %17063 = vmatprep.subr.mxu1 %v17852_v55  ;;  %16993 = vmatpush3.msra.mxu0 %v9806_v7  ;;  %v9767_v49 = vld [vmem:[#allocation4] sm:$0xff]  ;;  %v10272_v29 = vld [vmem:[#allocation4 + $0x1f8] sm:$0xff]  ;;  %v10271_v8 = vld [vmem:[#allocation4 + $0x1f0] sm:$0xff] }
 0x651   :  { %17064 = vmatpush3.msra.mxu1 %v9777_v47  ;;  %16994 = vmatprep.subr.mxu0 %v17852_v55  ;;  %v10098_v38 = vld [vmem:[#allocation4 + $0x168] sm:$0xff]  ;;  %v10097_v26 = vld [vmem:[#allocation4 + $0x160] sm:$0xff]  ;;  %v10096_v58 = vld [vmem:[#allocation4 + $0x158] sm:$0xff] }
 0x652   :  { %17065 = vmatprep.subr.mxu1 %v17852_v55  ;;  %16995 = vmatpush3.msra.mxu0 %v9805_v3  ;;  %v10270_v13 = vld [vmem:[#allocation4 + $0x1e8] sm:$0xff]  ;;  %v10269_v44 = vld [vmem:[#allocation4 + $0x1e0] sm:$0xff]  ;;  %v10268_v2 = vld [vmem:[#allocation4 + $0x1d8] sm:$0xff] }
 0x653   :  { %17066 = vmatpush3.msra.mxu1 %v9776_v15  ;;  %16996 = vmatprep.subr.mxu0 %v17852_v55  ;;  %v10095_v31 = vld [vmem:[#allocation4 + $0x150] sm:$0xff]  ;;  %v10094_v40 = vld [vmem:[#allocation4 + $0x148] sm:$0xff]  ;;  %v10093_v50 = vld [vmem:[#allocation4 + $0x140] sm:$0xff] }
 0x654   :  { %17067 = vmatprep.subr.mxu1 %v17852_v55  ;;  %16997 = vmatpush3.msra.mxu0 %v9804_v12  ;;  %v10267_v11 = vld [vmem:[#allocation4 + $0x1d0] sm:$0xff]  ;;  %v10266_v52 = vld [vmem:[#allocation4 + $0x1c8] sm:$0xff]  ;;  %v10265_v30 = vld [vmem:[#allocation4 + $0x1c0] sm:$0xff] }
 0x655   :  { %17068 = vmatpush3.msra.mxu1 %v9775_v16  ;;  %16998 = vmatprep.subr.mxu0 %v17852_v55  ;;  %v10092_v34 = vld [vmem:[#allocation4 + $0x138] sm:$0xff]  ;;  %v9761_v37 = vld [vmem:[%s23888_s27 + $0x150] sm:$0xff]  ;;  %v9791_v20 = vld [vmem:[%s23888_s27 + $0x188] sm:$0xff] }
 0x656   :  { %17069 = vmatprep.subr.mxu1 %v17852_v55  ;;  %16999 = vmatpush3.msra.mxu0 %v9803_v48  ;;  %v9790_v32 = vld [vmem:[%s23888_s27 + $0x158] sm:$0xff]  ;;  %v10091_v21 = vld [vmem:[#allocation4 + $0x130] sm:$0xff]  ;;  %v9762_v35 = vld [vmem:[%s23888_s27 + $0x180] sm:$0xff] }
 0x657   :  { %17070 = vmatpush3.msra.mxu1 %v9774_v23  ;;  %17000 = vmatprep.subr.mxu0 %v17852_v55  ;;  %v10264_v14 = vld [vmem:[#allocation4 + $0x1b8] sm:$0xff]  ;;  %v10263_v41 = vld [vmem:[#allocation4 + $0x1b0] sm:$0xff]  ;;  %v10090_v5 = vld [vmem:[#allocation4 + $0x128] sm:$0xff] }
 0x658   :  { %17071 = vmatprep.subr.mxu1 %v17852_v55  ;;  %17001 = vmatpush3.msra.mxu0 %v9802_v24  ;;  %v9792_v60 = vld [vmem:[%s23888_s27 + $0x1b8] sm:$0xff]  ;;  %v10262_v42 = vld [vmem:[#allocation4 + $0x1a8] sm:$0xff]  ;;  %v9763_v7 = vld [vmem:[%s23888_s27 + $0x1b0] sm:$0xff] }
 0x659   :  { %17072 = vmatpush3.msra.mxu1 %v9773_v62  ;;  %17002 = vmatprep.subr.mxu0 %v17852_v55  ;;  %v10089_v47 = vld [vmem:[#allocation4 + $0x120] sm:$0xff]  ;;  %v9793_v15 = vld [vmem:[%s23888_s27 + $0x1e8] sm:$0xff]  ;;  %v10088_v12 = vld [vmem:[#allocation4 + $0x118] sm:$0xff] }
 0x65a   :  { %17073 = vmatprep.subr.mxu1 %v17852_v55  ;;  %17003 = vmatpush3.msra.mxu0 %v9801_v6  ;;  %v10261_v3 = vld [vmem:[#allocation4 + $0x1a0] sm:$0xff]  ;;  %v10260_v48 = vld [vmem:[#allocation4 + $0x198] sm:$0xff]  ;;  %v10087_v24 = vld [vmem:[#allocation4 + $0x110] sm:$0xff] }
 0x65b   :  { %17074 = vmatpush3.msra.mxu1 %v9772_v53  ;;  %17004 = vmatprep.subr.mxu0 %v17852_v55  ;;  %v9764_v16 = vld [vmem:[%s23888_s27 + $0x1e0] sm:$0xff]  ;;  %v9794_v23 = vld [vmem:[%s23888_s27 + $0x218] sm:$0xff]  ;;  %v9765_v62 = vld [vmem:[%s23888_s27 + $0x210] sm:$0xff] }
 0x65c   :  { %17075 = vmatprep.subr.mxu1 %v17852_v55  ;;  %17005 = vmatpush3.msra.mxu0 %v9800_v39  ;;  %v10259_v6 = vld [vmem:[#allocation4 + $0x190] sm:$0xff]  ;;  %v10086_v53 = vld [vmem:[#allocation4 + $0x108] sm:$0xff] }
 0x65d   :  { %17076 = vmatpush3.msra.mxu1 %v9771_v4  ;;  %17006 = vmatprep.subr.mxu0 %v17852_v55  ;;  %v9795_v39 = vld [vmem:[%s23888_s27 + $0x248] sm:$0xf]  ;;  %v9766_v4 = vld [vmem:[%s23888_s27 + $0x240] sm:$0xf] }
 0x65e   :  { %17077 = vmatprep.subr.mxu1 %v17852_v55  ;;  %17007 = vmatpush3.msra.mxu0 %v9799_v18  ;;  %v10258_v18 = vld [vmem:[#allocation4 + $0x188] sm:$0xff] }
 0x65f   :  { %17078 = vmatpush3.msra.mxu1 %v9770_v9  ;;  %17008 = vmatprep.subr.mxu0 %v17852_v55  ;;  %v10085_v9 = vld [vmem:[#allocation4 + $0x100] sm:$0xff] }
 0x660   :  { %17079 = vmatprep.subr.mxu1 %v17852_v55  ;;  %17009 = vmatpush3.msra.mxu0 %v9798_v33  ;;  %v10072_v33 = vld [vmem:[%s23888_s27 + $0x10] sm:$0xff] }
 0x661   :  { %17080 = vmatpush3.msra.mxu1 %v9769_v36  ;;  %17010 = vmatprep.subr.mxu0 %v17852_v55  ;;  %v10257_v36 = vld [vmem:[#allocation4 + $0x180] sm:$0xff] }
 0x662   :  { %17081 = vmatprep.subr.mxu1 %v17852_v55  ;;  %17011 = vmatpush3.msra.mxu0 %v9797_v27  ;;  %v10244_v27 = vld [vmem:[%s23888_s27 + $0x18] sm:$0xff] }
 0x663   :  { %17082 = vmatpush3.msra.mxu1 %v9768_v17  ;;  %17012 = vmatprep.subr.mxu0 %v17852_v55  ;;  %v10444_v17 = vld [vmem:[#allocation4 + $0x278] sm:$0xff] }
 0x664   :  { %17013 = vmatpush3.msra.mxu0 %v9796_v22  ;;  %17083 = vmatprep.subr.mxu1 %v17852_v55  ;;  %v10616_v22 = vld [vmem:[#allocation4 + $0x2f8] sm:$0xff] }
 0x665   :  { %17015 = vmatmul.mubr.f32.vlgmr.msra.gmra.mxu0 %v9783_v59  ;;  %17084 = vmatpush3.msra.mxu1 %v9767_v49  ;;  %v10073_v59 = vld [vmem:[%s23888_s27 + $0x40] sm:$0xff]  ;;  %v10245_v49 = vld [vmem:[%s23888_s27 + $0x48] sm:$0xff] }
 0x666   :  { %17124 = vmatprep.subr.mxu0 %v17852_v55  ;;  %17086 = vmatmul.mubr.f32.vlgmr.msra.gmra.mxu1 %v9754_v56  ;;  %v10443_v56 = vld [vmem:[#allocation4 + $0x270] sm:$0xff] }
 0x667   :  { %17125 = vmatpush3.msra.mxu0 %v10100_v1  ;;  %17195 = vmatprep.subr.mxu1 %v17852_v55  ;;  %v10615_v1 = vld [vmem:[#allocation4 + $0x2f0] sm:$0xff] }
 0x668   :  { %17017 = vmatprep.mubr.msk.f32.mxu0 %vm17853_vm2, %v17852_v55  ;;  %17196 = vmatpush3.msra.mxu1 %v10272_v29  ;;  %v10074_v29 = vld [vmem:[%s23888_s27 + $0x70] sm:$0xff] }
 0x669   :  { %17018 = vmatmul.mubr.f32.gmra.mxu0 %v9784_v43  ;;  %17088 = vmatprep.mubr.msk.f32.mxu1 %vm17853_vm2, %v17852_v55  ;;  %v10442_v43 = vld [vmem:[#allocation4 + $0x268] sm:$0xff] }
 0x66a   :  { %17126 = vmatprep.subr.mxu0 %v17852_v55  ;;  %17089 = vmatmul.mubr.f32.gmra.mxu1 %v9755_v57  ;;  %v10246_v57 = vld [vmem:[%s23888_s27 + $0x78] sm:$0xff] }
 0x66b   :  { %17127 = vmatpush3.msra.mxu0 %v10099_v54  ;;  %17197 = vmatprep.subr.mxu1 %v17852_v55  ;;  %v10614_v54 = vld [vmem:[#allocation4 + $0x2e8] sm:$0xff] }
 0x66c   :  { %17020 = vmatprep.mubr.msk.f32.mxu0 %vm17853_vm2, %v17852_v55  ;;  %17128 = vmatprep.subr.mxu0 %v17852_v55 }
 0x66d   :  { %17198 = vmatpush3.msra.mxu1 %v10271_v8  ;;  %17021 = vmatmul.mubr.f32.gmra.mxu0 %v9785_v63  ;;  %v10441_v8 = vld [vmem:[#allocation4 + $0x260] sm:$0xff] }
 0x66e   :  { %17091 = vmatprep.mubr.msk.f32.mxu1 %vm17853_vm2, %v17852_v55  ;;  %17129 = vmatpush3.msra.mxu0 %v10098_v38  ;;  %v10075_v63 = vld [vmem:[%s23888_s27 + $0xa0] sm:$0xff]  ;;  %v10247_v38 = vld [vmem:[%s23888_s27 + $0xa8] sm:$0xff] }
 0x66f   :  { %17092 = vmatmul.mubr.f32.gmra.mxu1 %v9756_v28  ;;  %17199 = vmatprep.subr.mxu1 %v17852_v55  ;;  %v10613_v28 = vld [vmem:[#allocation4 + $0x2e0] sm:$0xff] }
 0x670   :  { %17130 = vmatprep.subr.mxu0 %v17852_v55  ;;  %17200 = vmatpush3.msra.mxu1 %v10270_v13  ;;  %v10440_v13 = vld [vmem:[#allocation4 + $0x258] sm:$0xff] }
 0x671   :  { %17023 = vmatprep.mubr.msk.f32.mxu0 %vm17853_vm2, %v17852_v55  ;;  %17131 = vmatpush3.msra.mxu0 %v10097_v26  ;;  %v10076_v26 = vld [vmem:[%s23888_s27 + $0xd0] sm:$0xff] }
 0x672   :  { %17094 = vmatprep.mubr.msk.f32.mxu1 %vm17853_vm2, %v17852_v55  ;;  %17024 = vmatmul.mubr.f32.gmra.mxu0 %v9786_v10  ;;  %v10612_v10 = vld [vmem:[#allocation4 + $0x2d8] sm:$0xff] }
 0x673   :  { %17201 = vmatprep.subr.mxu1 %v17852_v55  ;;  %17095 = vmatmul.mubr.f32.gmra.mxu1 %v9757_v61  ;;  %v10248_v61 = vld [vmem:[%s23888_s27 + $0xd8] sm:$0xff] }
 0x674   :  { %17132 = vmatprep.subr.mxu0 %v17852_v55  ;;  %17202 = vmatpush3.msra.mxu1 %v10269_v44  ;;  %v10439_v44 = vld [vmem:[#allocation4 + $0x250] sm:$0xff] }
 0x675   :  { %17133 = vmatpush3.msra.mxu0 %v10096_v58  ;;  %17026 = vmatprep.mubr.msk.f32.mxu0 %vm17853_vm2, %v17852_v55  ;;  %v10077_v58 = vld [vmem:[%s23888_s27 + $0x100] sm:$0xff] }
 0x676   :  { %17203 = vmatprep.subr.mxu1 %v17852_v55  ;;  %17027 = vmatmul.mubr.f32.gmra.mxu0 %v9787_v45  ;;  %v10611_v45 = vld [vmem:[#allocation4 + $0x2d0] sm:$0xff] }
 0x677   :  { %17097 = vmatprep.mubr.msk.f32.mxu1 %vm17853_vm2, %v17852_v55  ;;  %17204 = vmatpush3.msra.mxu1 %v10268_v2  ;;  %v10249_v2 = vld [vmem:[%s23888_s27 + $0x108] sm:$0xff] }
 0x678   :  { %17134 = vmatprep.subr.mxu0 %v17852_v55  ;;  %17098 = vmatmul.mubr.f32.gmra.mxu1 %v9758_v51  ;;  %v10438_v51 = vld [vmem:[#allocation4 + $0x248] sm:$0xff] }
 0x679   :  { %17135 = vmatpush3.msra.mxu0 %v10095_v31  ;;  %17029 = vmatprep.mubr.msk.f32.mxu0 %vm17853_vm2, %v17852_v55  ;;  %v10610_v31 = vld [vmem:[#allocation4 + $0x2c8] sm:$0xff] }
 0x67a   :  { %17205 = vmatprep.subr.mxu1 %v17852_v55  ;;  %17030 = vmatmul.mubr.f32.gmra.mxu0 %v9788_v25  ;;  %v10078_v25 = vld [vmem:[%s23888_s27 + $0x130] sm:$0xff] }
 0x67b   :  { %17100 = vmatprep.mubr.msk.f32.mxu1 %vm17853_vm2, %v17852_v55  ;;  %17136 = vmatprep.subr.mxu0 %v17852_v55 }
 0x67c   :  { %17206 = vmatpush3.msra.mxu1 %v10267_v11  ;;  %17137 = vmatpush3.msra.mxu0 %v10094_v40  ;;  %v10437_v11 = vld [vmem:[#allocation4 + $0x240] sm:$0xff] }
 0x67d   :  { %17101 = vmatmul.mubr.f32.gmra.mxu1 %v9759_v19  ;;  %17207 = vmatprep.subr.mxu1 %v17852_v55  ;;  %v10250_v19 = vld [vmem:[%s23888_s27 + $0x138] sm:$0xff]  ;;  %v10609_v40 = vld [vmem:[#allocation4 + $0x2c0] sm:$0xff] }
 0x67e   :  { %17032 = vmatprep.mubr.msk.f32.mxu0 %vm17853_vm2, %v17852_v55  ;;  %17138 = vmatprep.subr.mxu0 %v17852_v55 }
 0x67f   :  { %17208 = vmatpush3.msra.mxu1 %v10266_v52  ;;  %17033 = vmatmul.mubr.f32.gmra.mxu0 %v9789_v0  ;;  %v10436_v52 = vld [vmem:[#allocation4 + $0x238] sm:$0xff]  ;;  %v10079_v0 = vld [vmem:[%s23888_s27 + $0x160] sm:$0xff] }
 0x680   :  { %17103 = vmatprep.mubr.msk.f32.mxu1 %vm17853_vm2, %v17852_v55  ;;  %17139 = vmatpush3.msra.mxu0 %v10093_v50  ;;  %v10251_v50 = vld [vmem:[%s23888_s27 + $0x168] sm:$0xff] }
 0x681   :  { %17104 = vmatmul.mubr.f32.gmra.mxu1 %v9760_v46  ;;  %17209 = vmatprep.subr.mxu1 %v17852_v55  ;;  %v10608_v46 = vld [vmem:[#allocation4 + $0x2b8] sm:$0xff] }
 0x682   :  { %17140 = vmatprep.subr.mxu0 %v17852_v55  ;;  %17210 = vmatpush3.msra.mxu1 %v10265_v30  ;;  %v10435_v30 = vld [vmem:[#allocation4 + $0x230] sm:$0xff] }
 0x683   :  { %17035 = vmatprep.mubr.msk.f32.mxu0 %vm17853_vm2, %v17852_v55  ;;  %17141 = vmatpush3.msra.mxu0 %v10092_v34  ;;  %v10080_v34 = vld [vmem:[%s23888_s27 + $0x190] sm:$0xff] }
 0x684   :  { %17106 = vmatprep.mubr.msk.f32.mxu1 %vm17853_vm2, %v17852_v55  ;;  %17036 = vmatmul.mubr.f32.gmra.mxu0 %v9790_v32  ;;  %v10252_v32 = vld [vmem:[%s23888_s27 + $0x198] sm:$0xff] }
 0x685   :  { %17211 = vmatprep.subr.mxu1 %v17852_v55  ;;  %17107 = vmatmul.mubr.f32.gmra.mxu1 %v9761_v37  ;;  %v10607_v37 = vld [vmem:[#allocation4 + $0x2b0] sm:$0xff] }
 0x686   :  { %17142 = vmatprep.subr.mxu0 %v17852_v55  ;;  %17212 = vmatpush3.msra.mxu1 %v10264_v14  ;;  %v10434_v14 = vld [vmem:[#allocation4 + $0x228] sm:$0xff] }
 0x687   :  { %17038 = vmatprep.mubr.msk.f32.mxu0 %vm17853_vm2, %v17852_v55  ;;  %17143 = vmatpush3.msra.mxu0 %v10091_v21  ;;  %v10081_v21 = vld [vmem:[%s23888_s27 + $0x1c0] sm:$0xff] }
 0x688   :  { %17109 = vmatprep.mubr.msk.f32.mxu1 %vm17853_vm2, %v17852_v55  ;;  %17039 = vmatmul.mubr.f32.gmra.mxu0 %v9791_v20  ;;  %v10606_v20 = vld [vmem:[#allocation4 + $0x2a8] sm:$0xff] }
 0x689   :  { %17213 = vmatprep.subr.mxu1 %v17852_v55  ;;  %17110 = vmatmul.mubr.f32.gmra.mxu1 %v9762_v35  ;;  %v10253_v35 = vld [vmem:[%s23888_s27 + $0x1c8] sm:$0xff] }
 0x68a   :  { %17144 = vmatprep.subr.mxu0 %v17852_v55  ;;  %17214 = vmatpush3.msra.mxu1 %v10263_v41  ;;  %v10433_v41 = vld [vmem:[#allocation4 + $0x220] sm:$0xff] }
 0x68b   :  { %17145 = vmatpush3.msra.mxu0 %v10090_v5  ;;  %17041 = vmatprep.mubr.msk.f32.mxu0 %vm17853_vm2, %v17852_v55  ;;  %v10605_v5 = vld [vmem:[#allocation4 + $0x2a0] sm:$0xff] }
 0x68c   :  { %17215 = vmatprep.subr.mxu1 %v17852_v55  ;;  %17042 = vmatmul.mubr.f32.gmra.mxu0 %v9792_v60  ;;  %v10082_v60 = vld [vmem:[%s23888_s27 + $0x1f0] sm:$0xff] }
 0x68d   :  { %17112 = vmatprep.mubr.msk.f32.mxu1 %vm17853_vm2, %v17852_v55  ;;  %17146 = vmatprep.subr.mxu0 %v17852_v55 }
 0x68e   :  { %17216 = vmatpush3.msra.mxu1 %v10262_v42  ;;  %17147 = vmatpush3.msra.mxu0 %v10089_v47  ;;  %v10432_v42 = vld [vmem:[#allocation4 + $0x218] sm:$0xff] }
 0x68f   :  { %17113 = vmatmul.mubr.f32.gmra.mxu1 %v9763_v7  ;;  %17217 = vmatprep.subr.mxu1 %v17852_v55  ;;  %v10254_v7 = vld [vmem:[%s23888_s27 + $0x1f8] sm:$0xff] }
 0x690   :  { %17044 = vmatprep.mubr.msk.f32.mxu0 %vm17853_vm2, %v17852_v55  ;;  %17148 = vmatprep.subr.mxu0 %v17852_v55  ;;  %v10604_v47 = vld [vmem:[#allocation4 + $0x298] sm:$0xff] }
 0x691   :  { %17218 = vmatpush3.msra.mxu1 %v10261_v3  ;;  %17045 = vmatmul.mubr.f32.gmra.mxu0 %v9793_v15  ;;  %v10083_v3 = vld [vmem:[%s23888_s27 + $0x220] sm:$0xff]  ;;  %v10431_v15 = vld [vmem:[#allocation4 + $0x210] sm:$0xff] }
 0x692   :  { %17115 = vmatprep.mubr.msk.f32.mxu1 %vm17853_vm2, %v17852_v55  ;;  %17149 = vmatpush3.msra.mxu0 %v10088_v12  ;;  %v10255_v12 = vld [vmem:[%s23888_s27 + $0x228] sm:$0xff] }
 0x693   :  { %17116 = vmatmul.mubr.f32.gmra.mxu1 %v9764_v16  ;;  %17219 = vmatprep.subr.mxu1 %v17852_v55  ;;  %v10603_v16 = vld [vmem:[#allocation4 + $0x290] sm:$0xff] }
 0x694   :  { %17047 = vmatprep.mubr.msk.f32.mxu0 %vm17853_vm2, %v17852_v55  ;;  %17220 = vmatpush3.msra.mxu1 %v10260_v48  ;;  %v10430_v48 = vld [vmem:[#allocation4 + $0x208] sm:$0xff] }
 0x695   :  { %17150 = vmatprep.subr.mxu0 %v17852_v55  ;;  %17048 = vmatmul.mubr.f32.gmra.mxu0 %v9794_v23  ;;  %v10084_v23 = vld [vmem:[%s23888_s27 + $0x250] sm:$0xf] }
 0x696   :  { %17118 = vmatprep.mubr.msk.f32.mxu1 %vm17853_vm2, %v17852_v55  ;;  %17151 = vmatpush3.msra.mxu0 %v10087_v24  ;;  %v10256_v24 = vld [vmem:[%s23888_s27 + $0x258] sm:$0xf] }
 0x697   :  { %17119 = vmatmul.mubr.f32.gmra.mxu1 %v9765_v62  ;;  %17221 = vmatprep.subr.mxu1 %v17852_v55  ;;  %v10602_v62 = vld [vmem:[#allocation4 + $0x288] sm:$0xff] }
 0x698   :  { %17152 = vmatprep.subr.mxu0 %v17852_v55  ;;  %17222 = vmatpush3.msra.mxu1 %v10259_v6  ;;  %v10429_v6 = vld [vmem:[#allocation4 + $0x200] sm:$0xff] }
 0x699   :  { %17050 = vmatprep.mubr.msk.f32.mxu0 %vm17853_vm2, %v17852_v55  ;;  %17153 = vmatpush3.msra.mxu0 %v10086_v53  ;;  %v10416_v53 = vld [vmem:[%s23888_s27 + $0x20] sm:$0xff] }
 0x69a   :  { %17121 = vmatprep.mubr.msk.f32.mxu1 %vm17853_vm2, %v17852_v55  ;;  %17051 = vmatmul.mubr.f32.gmra.mxu0 %v9795_v39  ;;  %v10601_v39 = vld [vmem:[#allocation4 + $0x280] sm:$0xff] }
 0x69b   :  { %17223 = vmatprep.subr.mxu1 %v17852_v55  ;;  %17122 = vmatmul.mubr.f32.gmra.mxu1 %v9766_v4  ;;  %v10588_v4 = vld [vmem:[%s23888_s27 + $0x28] sm:$0xff] }
 0x69c   :  { %17154 = vmatprep.subr.mxu0 %v17852_v55  ;;  %17224 = vmatpush3.msra.mxu1 %v10258_v18  ;;  %v10417_v18 = vld [vmem:[%s23888_s27 + $0x50] sm:$0xff] }
 0x69d   :  { %17155 = vmatpush3.msra.mxu0 %v10085_v9  ;;  %17156 = vmatprep.mubr.msk.f32.mxu0 %vm17853_vm2, %v17852_v55  ;;  %v10589_v9 = vld [vmem:[%s23888_s27 + $0x58] sm:$0xff] }
 0x69e   :  { %17225 = vmatprep.subr.mxu1 %v17852_v55  ;;  %17157 = vmatmul.mubr.f32.vlgmr.msra.gmra.mxu0 %v10072_v33  ;;  %v10418_v33 = vld [vmem:[%s23888_s27 + $0x80] sm:$0xff] }
 0x69f   :  { %17226 = vmatpush3.msra.mxu1 %v10257_v36  ;;  %17227 = vmatprep.mubr.msk.f32.mxu1 %vm17853_vm2, %v17852_v55  ;;  %v10590_v36 = vld [vmem:[%s23888_s27 + $0x88] sm:$0xff] }
 0x6a0   :  { %17266 = vmatprep.subr.mxu0 %v17852_v55  ;;  %17228 = vmatmul.mubr.f32.vlgmr.msra.gmra.mxu1 %v10244_v27  ;;  %v10419_v27 = vld [vmem:[%s23888_s27 + $0xb0] sm:$0xff] }
 0x6a1   :  { %17267 = vmatpush3.msra.mxu0 %v10444_v17  ;;  %17337 = vmatprep.subr.mxu1 %v17852_v55  ;;  %v10591_v17 = vld [vmem:[%s23888_s27 + $0xb8] sm:$0xff] }
 0x6a2   :  { %17159 = vmatprep.mubr.msk.f32.mxu0 %vm17853_vm2, %v17852_v55  ;;  %17338 = vmatpush3.msra.mxu1 %v10616_v22  ;;  %v10420_v22 = vld [vmem:[%s23888_s27 + $0xe0] sm:$0xff] }
 0x6a3   :  { %17160 = vmatmul.mubr.f32.gmra.mxu0 %v10073_v59  ;;  %17230 = vmatprep.mubr.msk.f32.mxu1 %vm17853_vm2, %v17852_v55  ;;  %v10592_v59 = vld [vmem:[%s23888_s27 + $0xe8] sm:$0xff] }
 0x6a4   :  { %17268 = vmatprep.subr.mxu0 %v17852_v55  ;;  %17231 = vmatmul.mubr.f32.gmra.mxu1 %v10245_v49  ;;  %v14930_v49 = vld [vmem:[%s23889_s6 + $0x38] sm:$0xff] }
 0x6a5   :  { %17269 = vmatpush3.msra.mxu0 %v10443_v56  ;;  %17339 = vmatprep.subr.mxu1 %v17852_v55  ;;  %v10421_v56 = vld [vmem:[%s23888_s27 + $0x110] sm:$0xff] }
 0x6a6   :  { %17162 = vmatprep.mubr.msk.f32.mxu0 %vm17853_vm2, %v17852_v55  ;;  %17270 = vmatprep.subr.mxu0 %v17852_v55 }
 0x6a7   :  { %17340 = vmatpush3.msra.mxu1 %v10615_v1  ;;  %17163 = vmatmul.mubr.f32.gmra.mxu0 %v10074_v29  ;;  %v10593_v1 = vld [vmem:[%s23888_s27 + $0x118] sm:$0xff]  ;;  %v10422_v29 = vld [vmem:[%s23888_s27 + $0x140] sm:$0xff] }
 0x6a8   :  { %17233 = vmatprep.mubr.msk.f32.mxu1 %vm17853_vm2, %v17852_v55  ;;  %17271 = vmatpush3.msra.mxu0 %v10442_v43  ;;  %v10594_v43 = vld [vmem:[%s23888_s27 + $0x148] sm:$0xff] }
 0x6a9   :  { %17234 = vmatmul.mubr.f32.gmra.mxu1 %v10246_v57  ;;  %17341 = vmatprep.subr.mxu1 %v17852_v55  ;;  %v10423_v57 = vld [vmem:[%s23888_s27 + $0x170] sm:$0xff] }
 0x6aa   :  { %17272 = vmatprep.subr.mxu0 %v17852_v55  ;;  %17342 = vmatpush3.msra.mxu1 %v10614_v54  ;;  %v10595_v54 = vld [vmem:[%s23888_s27 + $0x178] sm:$0xff] }
 0x6ab   :  { %17165 = vmatprep.mubr.msk.f32.mxu0 %vm17853_vm2, %v17852_v55  ;;  %17273 = vmatpush3.msra.mxu0 %v10441_v8  ;;  %v14936_v8 = vld [vmem:[%s23889_s6 + $0x58] sm:$0xff] }
 0x6ac   :  { %17236 = vmatprep.mubr.msk.f32.mxu1 %vm17853_vm2, %v17852_v55  ;;  %17166 = vmatmul.mubr.f32.gmra.mxu0 %v10075_v63  ;;  %v10424_v63 = vld [vmem:[%s23888_s27 + $0x1a0] sm:$0xff] }
 0x6ad   :  { %17343 = vmatprep.subr.mxu1 %v17852_v55  ;;  %17237 = vmatmul.mubr.f32.gmra.mxu1 %v10247_v38  ;;  %v10596_v38 = vld [vmem:[%s23888_s27 + $0x1a8] sm:$0xff] }
 0x6ae   :  { %17274 = vmatprep.subr.mxu0 %v17852_v55  ;;  %17344 = vmatpush3.msra.mxu1 %v10613_v28  ;;  %v14929_v28 = vld [vmem:[%s23889_s6 + $0x30] sm:$0xff] }
 0x6af   :  { %17275 = vmatpush3.msra.mxu0 %v10440_v13  ;;  %17168 = vmatprep.mubr.msk.f32.mxu0 %vm17853_vm2, %v17852_v55  ;;  %v10425_v13 = vld [vmem:[%s23888_s27 + $0x1d0] sm:$0xff] }
 0x6b0   :  { %17345 = vmatprep.subr.mxu1 %v17852_v55  ;;  %17169 = vmatmul.mubr.f32.gmra.mxu0 %v10076_v26  ;;  %v10597_v26 = vld [vmem:[%s23888_s27 + $0x1d8] sm:$0xff] }
 0x6b1   :  { %17239 = vmatprep.mubr.msk.f32.mxu1 %vm17853_vm2, %v17852_v55  ;;  %17346 = vmatpush3.msra.mxu1 %v10612_v10  ;;  %v10426_v10 = vld [vmem:[%s23888_s27 + $0x200] sm:$0xff] }
 0x6b2   :  { %17276 = vmatprep.subr.mxu0 %v17852_v55  ;;  %17240 = vmatmul.mubr.f32.gmra.mxu1 %v10248_v61  ;;  %v10598_v61 = vld [vmem:[%s23888_s27 + $0x208] sm:$0xff] }
 0x6b3   :  { %17277 = vmatpush3.msra.mxu0 %v10439_v44  ;;  %17171 = vmatprep.mubr.msk.f32.mxu0 %vm17853_vm2, %v17852_v55  ;;  %v10427_v44 = vld [vmem:[%s23888_s27 + $0x230] sm:$0xff] }
 0x6b4   :  { %17347 = vmatprep.subr.mxu1 %v17852_v55  ;;  %17172 = vmatmul.mubr.f32.gmra.mxu0 %v10077_v58  ;;  %v14935_v58 = vld [vmem:[%s23889_s6 + $0x50] sm:$0xff] }
 0x6b5   :  { %17242 = vmatprep.mubr.msk.f32.mxu1 %vm17853_vm2, %v17852_v55  ;;  %17278 = vmatprep.subr.mxu0 %v17852_v55 }
 0x6b6   :  { %17348 = vmatpush3.msra.mxu1 %v10611_v45  ;;  %17279 = vmatpush3.msra.mxu0 %v10438_v51  ;;  %v10599_v45 = vld [vmem:[%s23888_s27 + $0x238] sm:$0xff]  ;;  %v14928_v51 = vld [vmem:[%s23889_s6 + $0x28] sm:$0xff] }
 0x6b7   :  { %17243 = vmatmul.mubr.f32.gmra.mxu1 %v10249_v2  ;;  %17349 = vmatprep.subr.mxu1 %v17852_v55  ;;  %v10428_v2 = vld [vmem:[%s23888_s27 + $0x260] sm:$0xf] }
 0x6b8   :  { %17174 = vmatprep.mubr.msk.f32.mxu0 %vm17853_vm2, %v17852_v55  ;;  %17280 = vmatprep.subr.mxu0 %v17852_v55 }
 0x6b9   :  { %17350 = vmatpush3.msra.mxu1 %v10610_v31  ;;  %17175 = vmatmul.mubr.f32.gmra.mxu0 %v10078_v25  ;;  %v10600_v31 = vld [vmem:[%s23888_s27 + $0x268] sm:$0xf] }
 0x6ba   :  { %17245 = vmatprep.mubr.msk.f32.mxu1 %vm17853_vm2, %v17852_v55  ;;  %17281 = vmatpush3.msra.mxu0 %v10437_v11  ;;  %v14934_v25 = vld [vmem:[%s23889_s6 + $0x48] sm:$0xff]  ;;  %v14927_v11 = vld [vmem:[%s23889_s6 + $0x20] sm:$0xff] }
 0x6bb   :  { %17246 = vmatmul.mubr.f32.gmra.mxu1 %v10250_v19  ;;  %17351 = vmatprep.subr.mxu1 %v17852_v55  ;;  %v14933_v19 = vld [vmem:[%s23889_s6 + $0x40] sm:$0xff] }
 0x6bc   :  { %17282 = vmatprep.subr.mxu0 %v17852_v55  ;;  %17352 = vmatpush3.msra.mxu1 %v10609_v40 }
 0x6bd   :  { %17177 = vmatprep.mubr.msk.f32.mxu0 %vm17853_vm2, %v17852_v55  ;;  %17283 = vmatpush3.msra.mxu0 %v10436_v52 }
 0x6be   :  { %17248 = vmatprep.mubr.msk.f32.mxu1 %vm17853_vm2, %v17852_v55  ;;  %17178 = vmatmul.mubr.f32.gmra.mxu0 %v10079_v0 }
 0x6bf   :  { %17353 = vmatprep.subr.mxu1 %v17852_v55  ;;  %17249 = vmatmul.mubr.f32.gmra.mxu1 %v10251_v50 }
 0x6c0   :  { %17284 = vmatprep.subr.mxu0 %v17852_v55  ;;  %17354 = vmatpush3.msra.mxu1 %v10608_v46 }
 0x6c1   :  { %17180 = vmatprep.mubr.msk.f32.mxu0 %vm17853_vm2, %v17852_v55  ;;  %17285 = vmatpush3.msra.mxu0 %v10435_v30 }
 0x6c2   :  { %17251 = vmatprep.mubr.msk.f32.mxu1 %vm17853_vm2, %v17852_v55  ;;  %17181 = vmatmul.mubr.f32.gmra.mxu0 %v10080_v34 }
 0x6c3   :  { %17355 = vmatprep.subr.mxu1 %v17852_v55  ;;  %17252 = vmatmul.mubr.f32.gmra.mxu1 %v10252_v32 }
 0x6c4   :  { %17286 = vmatprep.subr.mxu0 %v17852_v55  ;;  %17356 = vmatpush3.msra.mxu1 %v10607_v37 }
 0x6c5   :  { %17287 = vmatpush3.msra.mxu0 %v10434_v14  ;;  %17183 = vmatprep.mubr.msk.f32.mxu0 %vm17853_vm2, %v17852_v55 }
 0x6c6   :  { %17357 = vmatprep.subr.mxu1 %v17852_v55  ;;  %17184 = vmatmul.mubr.f32.gmra.mxu0 %v10081_v21 }
 0x6c7   :  { %17254 = vmatprep.mubr.msk.f32.mxu1 %vm17853_vm2, %v17852_v55  ;;  %17288 = vmatprep.subr.mxu0 %v17852_v55 }
 0x6c8   :  { %17358 = vmatpush3.msra.mxu1 %v10606_v20  ;;  %17289 = vmatpush3.msra.mxu0 %v10433_v41 }
 0x6c9   :  { %17255 = vmatmul.mubr.f32.gmra.mxu1 %v10253_v35  ;;  %17359 = vmatprep.subr.mxu1 %v17852_v55 }
 0x6ca   :  { %17186 = vmatprep.mubr.msk.f32.mxu0 %vm17853_vm2, %v17852_v55  ;;  %17290 = vmatprep.subr.mxu0 %v17852_v55 }
 0x6cb   :  { %17360 = vmatpush3.msra.mxu1 %v10605_v5  ;;  %17187 = vmatmul.mubr.f32.gmra.mxu0 %v10082_v60 }
 0x6cc   :  { %17257 = vmatprep.mubr.msk.f32.mxu1 %vm17853_vm2, %v17852_v55  ;;  %17291 = vmatpush3.msra.mxu0 %v10432_v42 }
 0x6cd   :  { %17258 = vmatmul.mubr.f32.gmra.mxu1 %v10254_v7  ;;  %17361 = vmatprep.subr.mxu1 %v17852_v55 }
 0x6ce   :  { %17189 = vmatprep.mubr.msk.f32.mxu0 %vm17853_vm2, %v17852_v55  ;;  %17362 = vmatpush3.msra.mxu1 %v10604_v47 }
 0x6cf   :  { %17292 = vmatprep.subr.mxu0 %v17852_v55  ;;  %17190 = vmatmul.mubr.f32.gmra.mxu0 %v10083_v3 }
 0x6d0   :  { %17260 = vmatprep.mubr.msk.f32.mxu1 %vm17853_vm2, %v17852_v55  ;;  %17293 = vmatpush3.msra.mxu0 %v10431_v15 }
 0x6d1   :  { %17261 = vmatmul.mubr.f32.gmra.mxu1 %v10255_v12  ;;  %17363 = vmatprep.subr.mxu1 %v17852_v55 }
 0x6d2   :  { %17294 = vmatprep.subr.mxu0 %v17852_v55  ;;  %17364 = vmatpush3.msra.mxu1 %v10603_v16 }
 0x6d3   :  { %17192 = vmatprep.mubr.msk.f32.mxu0 %vm17853_vm2, %v17852_v55  ;;  %17295 = vmatpush3.msra.mxu0 %v10430_v48 }
 0x6d4   :  { %17263 = vmatprep.mubr.msk.f32.mxu1 %vm17853_vm2, %v17852_v55  ;;  %17193 = vmatmul.mubr.f32.gmra.mxu0 %v10084_v23 }
 0x6d5   :  { %17365 = vmatprep.subr.mxu1 %v17852_v55  ;;  %17264 = vmatmul.mubr.f32.gmra.mxu1 %v10256_v24 }
 0x6d6   :  { %17296 = vmatprep.subr.mxu0 %v17852_v55  ;;  %17366 = vmatpush3.msra.mxu1 %v10602_v62 }
 0x6d7   :  { %17297 = vmatpush3.msra.mxu0 %v10429_v6  ;;  %17298 = vmatprep.mubr.msk.f32.mxu0 %vm17853_vm2, %v17852_v55 }
 0x6d8   :  { %17367 = vmatprep.subr.mxu1 %v17852_v55  ;;  %17299 = vmatmul.mubr.f32.vlgmr.msra.gmra.mxu0 %v10416_v53 }
 0x6d9   :  { %17368 = vmatpush3.msra.mxu1 %v10601_v39  ;;  %17369 = vmatprep.mubr.msk.f32.mxu1 %vm17853_vm2, %v17852_v55 }
 0x6da   :  { %17301 = vmatprep.mubr.msk.f32.mxu0 %vm17853_vm2, %v17852_v55  ;;  %17370 = vmatmul.mubr.f32.vlgmr.msra.gmra.mxu1 %v10588_v4 }
 0x6db   :  { %17408 = vmatprep.subr.mxu1 %v17852_v55  ;;  %17372 = vmatprep.mubr.msk.f32.mxu1 %vm17853_vm2, %v17852_v55 }
 0x6dc   :  { %17430 = vmatprep.subr.mxu0 %v17852_v55  ;;  %17302 = vmatmul.mubr.f32.gmra.mxu0 %v10417_v18 }
 0x6dd   :  { %17304 = vmatprep.mubr.msk.f32.mxu0 %vm17853_vm2, %v17852_v55  ;;  %17409 = vmatpush3.msra.mxu1 %v14930_v49 }
 0x6de   :  { %17373 = vmatmul.mubr.f32.gmra.mxu1 %v10589_v9  ;;  %17410 = vmatprep.subr.mxu1 %v17852_v55 }
 0x6df   :  { %17375 = vmatprep.mubr.msk.f32.mxu1 %vm17853_vm2, %v17852_v55  ;;  %17431 = vmatpush3.msra.mxu0 %v14936_v8 }
 0x6e0   :  { %17305 = vmatmul.mubr.f32.gmra.mxu0 %v10418_v33  ;;  %17432 = vmatprep.subr.mxu0 %v17852_v55 }
 0x6e1   :  { %17307 = vmatprep.mubr.msk.f32.mxu0 %vm17853_vm2, %v17852_v55  ;;  %17411 = vmatpush3.msra.mxu1 %v14929_v28 }
 0x6e2   :  { %17376 = vmatmul.mubr.f32.gmra.mxu1 %v10590_v36  ;;  %17412 = vmatprep.subr.mxu1 %v17852_v55 }
 0x6e3   :  { %17378 = vmatprep.mubr.msk.f32.mxu1 %vm17853_vm2, %v17852_v55  ;;  %17433 = vmatpush3.msra.mxu0 %v14935_v58 }
 0x6e4   :  { %17308 = vmatmul.mubr.f32.gmra.mxu0 %v10419_v27  ;;  %17434 = vmatprep.subr.mxu0 %v17852_v55 }
 0x6e5   :  { %17310 = vmatprep.mubr.msk.f32.mxu0 %vm17853_vm2, %v17852_v55  ;;  %17413 = vmatpush3.msra.mxu1 %v14928_v51 }
 0x6e6   :  { %17379 = vmatmul.mubr.f32.gmra.mxu1 %v10591_v17  ;;  %17414 = vmatprep.subr.mxu1 %v17852_v55 }
 0x6e7   :  { %17381 = vmatprep.mubr.msk.f32.mxu1 %vm17853_vm2, %v17852_v55  ;;  %17435 = vmatpush3.msra.mxu0 %v14934_v25 }
 0x6e8   :  { %17311 = vmatmul.mubr.f32.gmra.mxu0 %v10420_v22  ;;  %17436 = vmatprep.subr.mxu0 %v17852_v55 }
 0x6e9   :  { %17313 = vmatprep.mubr.msk.f32.mxu0 %vm17853_vm2, %v17852_v55  ;;  %17415 = vmatpush3.msra.mxu1 %v14927_v11 }
 0x6ea   :  { %17382 = vmatmul.mubr.f32.gmra.mxu1 %v10592_v59  ;;  %17419 = vmatprep.subr.mxu1 %v17852_v55 }
 0x6eb   :  { %17384 = vmatprep.mubr.msk.f32.mxu1 %vm17853_vm2, %v17852_v55  ;;  %17437 = vmatpush3.msra.mxu0 %v14933_v19 }
 0x6ec   :  { %17314 = vmatmul.mubr.f32.gmra.mxu0 %v10421_v56  ;;  %17452 = vmatprep.subr.mxu0 %v17852_v55 }
 0x6ed   :  { %17316 = vmatprep.mubr.msk.f32.mxu0 %vm17853_vm2, %v17852_v55 }
 0x6ee   :  { %17385 = vmatmul.mubr.f32.gmra.mxu1 %v10593_v1 }
 0x6ef   :  { %17387 = vmatprep.mubr.msk.f32.mxu1 %vm17853_vm2, %v17852_v55 }
 0x6f0   :  { %17317 = vmatmul.mubr.f32.gmra.mxu0 %v10422_v29 }
 0x6f1   :  { %17319 = vmatprep.mubr.msk.f32.mxu0 %vm17853_vm2, %v17852_v55 }
 0x6f2   :  { %17388 = vmatmul.mubr.f32.gmra.mxu1 %v10594_v43 }
 0x6f3   :  { %17390 = vmatprep.mubr.msk.f32.mxu1 %vm17853_vm2, %v17852_v55 }
 0x6f4   :  { %17320 = vmatmul.mubr.f32.gmra.mxu0 %v10423_v57 }
 0x6f5   :  { %17322 = vmatprep.mubr.msk.f32.mxu0 %vm17853_vm2, %v17852_v55 }
 0x6f6   :  { %17391 = vmatmul.mubr.f32.gmra.mxu1 %v10595_v54 }
 0x6f7   :  { %17393 = vmatprep.mubr.msk.f32.mxu1 %vm17853_vm2, %v17852_v55 }
 0x6f8   :  { %17323 = vmatmul.mubr.f32.gmra.mxu0 %v10424_v63 }
 0x6f9   :  { %17325 = vmatprep.mubr.msk.f32.mxu0 %vm17853_vm2, %v17852_v55 }
 0x6fa   :  { %17394 = vmatmul.mubr.f32.gmra.mxu1 %v10596_v38 }
 0x6fb   :  { %17396 = vmatprep.mubr.msk.f32.mxu1 %vm17853_vm2, %v17852_v55 }
 0x6fc   :  { %17326 = vmatmul.mubr.f32.gmra.mxu0 %v10425_v13 }
 0x6fd   :  { %17328 = vmatprep.mubr.msk.f32.mxu0 %vm17853_vm2, %v17852_v55 }
 0x6fe   :  { %17397 = vmatmul.mubr.f32.gmra.mxu1 %v10597_v26 }
 0x6ff   :  { %17399 = vmatprep.mubr.msk.f32.mxu1 %vm17853_vm2, %v17852_v55 }
 0x700   :  { %17329 = vmatmul.mubr.f32.gmra.mxu0 %v10426_v10 }
 0x701   :  { %17331 = vmatprep.mubr.msk.f32.mxu0 %vm17853_vm2, %v17852_v55 }
 0x702   :  { %17400 = vmatmul.mubr.f32.gmra.mxu1 %v10598_v61 }
 0x703   :  { %17402 = vmatprep.mubr.msk.f32.mxu1 %vm17853_vm2, %v17852_v55 }
 0x704   :  { %17332 = vmatmul.mubr.f32.gmra.mxu0 %v10427_v44 }
 0x705   :  { %17334 = vmatprep.mubr.msk.f32.mxu0 %vm17853_vm2, %v17852_v55 }
 0x706   :  { %17403 = vmatmul.mubr.f32.gmra.mxu1 %v10599_v45 }
 0x707   :  { %17405 = vmatprep.mubr.msk.f32.mxu1 %vm17853_vm2, %v17852_v55 }
 0x708   :  { %17335 = vmatmul.mubr.f32.gmra.mxu0 %v10428_v2 }
 0x709   :  { %17438 = vmatprep.mubr.msk.f32.mxu0 %vm17853_vm2, %v17852_v55 }
 0x70a   :  { %17406 = vmatmul.mubr.f32.gmra.mxu1 %v10600_v31 }
 0x70b   :  { %17416 = vmatprep.mubr.msk.f32.mxu1 %vm17853_vm2, %v17852_v55 }
 0x725   :  { %v9878_v40 = vpop.f32.mrf.mxu0 }
 0x726   :  { %v10008_v52 = vpop.f32.mrf.mxu1 }
 0x727   :  { %v17016_v0 = vpop.f32.mrf.mxu0  ;;  %v22566_v50 = vadd.f32 %v10008_v52, %v9878_v40 }
 0x728   :  { %v17087_v46 = vpop.f32.mrf.mxu1 }
 0x729   :  { %v9883_v30 = vpop.f32.mrf.mxu0 }
 0x72a   :  { %v10013_v34 = vpop.f32.mrf.mxu1 }
 0x72b   :  { %v17019_v32 = vpop.f32.mrf.mxu0  ;;  %v22568_v37 = vadd.f32 %v10013_v34, %v9883_v30 }
 0x72c   :  { %v17090_v14 = vpop.f32.mrf.mxu1 }
 0x72d   :  { %v9888_v21 = vpop.f32.mrf.mxu0 }
 0x72f   :  { %v10018_v20 = vpop.f32.mrf.mxu1  ;;  %v17022_v41 = vpop.f32.mrf.mxu0 }
 0x730   :  { %v22570_v35 = vadd.f32 %v10018_v20, %v9888_v21 }
 0x731   :  { %v17093_v5 = vpop.f32.mrf.mxu1 }
 0x732   :  { %v9893_v60 = vpop.f32.mrf.mxu0 }
 0x733   :  { %v10023_v42 = vpop.f32.mrf.mxu1 }
 0x734   :  { %v10024_v7 = vadd.f32 %v10023_v42, %v9893_v60  ;;  %v17025_v47 = vpop.f32.mrf.mxu0 }
 0x735   :  { %v17096_v3 = vpop.f32.mrf.mxu1 }
 0x736   :  { %v9898_v15 = vpop.f32.mrf.mxu0 }
 0x738   :  { %v10028_v12 = vpop.f32.mrf.mxu1  ;;  %v17028_v16 = vpop.f32.mrf.mxu0 }
 0x739   :  { %v10029_v48 = vadd.f32 %v10028_v12, %v9898_v15 }
 0x73a   :  { %v17099_v23 = vpop.f32.mrf.mxu1  ;;  %v9903_v24 = vpop.f32.mrf.mxu0 }
 0x73c   :  { %v17031_v6 = vpop.f32.mrf.mxu0 }
 0x73d   :  { %v10033_v62 = vpop.f32.mrf.mxu1 }
 0x73e   :  { %v10034_v53 = vadd.f32 %v10033_v62, %v9903_v24 }
 0x73f   :  { %v17102_v39 = vpop.f32.mrf.mxu1  ;;  %v9908_v4 = vpop.f32.mrf.mxu0 }
 0x741   :  { %v10038_v18 = vpop.f32.mrf.mxu1  ;;  %v17034_v33 = vpop.f32.mrf.mxu0 }
 0x742   :  { %v22572_v9 = vadd.f32 %v10038_v18, %v9908_v4 }
 0x743   :  { %v17105_v36 = vpop.f32.mrf.mxu1 }
 0x744   :  { %v9913_v27 = vpop.f32.mrf.mxu0 }
 0x745   :  { %v10043_v17 = vpop.f32.mrf.mxu1 }
 0x746   :  { %v22574_v22 = vadd.f32 %v10043_v17, %v9913_v27  ;;  %v17037_v59 = vpop.f32.mrf.mxu0 }
 0x747   :  { %v17108_v49 = vpop.f32.mrf.mxu1 }
 0x748   :  { %v9918_v56 = vpop.f32.mrf.mxu0 }
 0x749   :  { %v10048_v1 = vpop.f32.mrf.mxu1 }
 0x74a   :  { %v22576_v29 = vadd.f32 %v10048_v1, %v9918_v56  ;;  %v17040_v43 = vpop.f32.mrf.mxu0 }
 0x74b   :  { %v17111_v57 = vpop.f32.mrf.mxu1 }
 0x74c   :  { %v9923_v54 = vpop.f32.mrf.mxu0 }
 0x74e   :  { %v17043_v63 = vpop.f32.mrf.mxu0 }
 0x74f   :  { %v10053_v8 = vpop.f32.mrf.mxu1 }
 0x750   :  { %v22578_v38 = vadd.f32 %v10053_v8, %v9923_v54 }
 0x751   :  { %v17114_v28 = vpop.f32.mrf.mxu1  ;;  %v9928_v13 = vpop.f32.mrf.mxu0 }
 0x753   :  { %v10058_v26 = vpop.f32.mrf.mxu1  ;;  %v17046_v61 = vpop.f32.mrf.mxu0 }
 0x754   :  { %v22580_v10 = vadd.f32 %v10058_v26, %v9928_v13 }
 0x755   :  { %v17117_v44 = vpop.f32.mrf.mxu1  ;;  %v9933_v58 = vpop.f32.mrf.mxu0 }
 0x757   :  { %v10063_v45 = vpop.f32.mrf.mxu1  ;;  %v17049_v51 = vpop.f32.mrf.mxu0 }
 0x758   :  { %v22582_v2 = vadd.f32 %v10063_v45, %v9933_v58 }
 0x759   :  { %v17120_v31 = vpop.f32.mrf.mxu1 }
 0x75a   :  { %v9938_v25 = vpop.f32.mrf.mxu0 }
 0x75b   :  { %v10068_v11 = vpop.f32.mrf.mxu1 }
 0x75c   :  { %v22584_v19 = vadd.f32 %v10068_v11, %v9938_v25  ;;  %v17052_v40 = vpop.f32.mrf.mxu0 }
 0x75d   :  { %v17123_v52 = vpop.f32.mrf.mxu1 }
 0x75e   :  { %v22586_v0 = vpop.f32.mrf.mxu0 }
 0x760   :  { %v22588_v46 = vpop.f32.mrf.mxu1  ;;  %v17158_v30 = vpop.f32.mrf.mxu0 }
 0x762   :  { %v17229_v34 = vpop.f32.mrf.mxu1 }
 0x763   :  { %v22590_v32 = vpop.f32.mrf.mxu0 }
 0x764   :  { %v22592_v14 = vpop.f32.mrf.mxu1 }
 0x765   :  { %v17161_v21 = vpop.f32.mrf.mxu0 }
 0x766   :  { %v17232_v20 = vpop.f32.mrf.mxu1 }
 0x767   :  { %v22594_v41 = vpop.f32.mrf.mxu0 }
 0x769   :  { %v22596_v5 = vpop.f32.mrf.mxu1  ;;  %v17164_v60 = vpop.f32.mrf.mxu0 }
 0x76b   :  { %v17235_v42 = vpop.f32.mrf.mxu1 }
 0x76c   :  { %v10182_v47 = vpop.f32.mrf.mxu0 }
 0x76d   :  { %v10234_v3 = vadd.f32 %v10182_v47, %v10024_v7  ;;  %v10354_v15 = vpop.f32.mrf.mxu1 }
 0x76e   :  { %v17167_v12 = vpop.f32.mrf.mxu0 }
 0x76f   :  { %v22598_v16 = vadd.f32 %v10354_v15, %v10234_v3  ;;  %v17238_v23 = vpop.f32.mrf.mxu1  ;;  %v10231_v12 = vadd.f32 %v22586_v0, %v22566_v50 }
 0x770   :  { %v10187_v24 = vpop.f32.mrf.mxu0 }
 0x771   :  { %v10235_v62 = vadd.f32 %v10187_v24, %v10029_v48 }
 0x772   :  { %v10359_v6 = vpop.f32.mrf.mxu1  ;;  %v17170_v39 = vpop.f32.mrf.mxu0 }
 0x773   :  { %v22600_v4 = vadd.f32 %v10359_v6, %v10235_v62  ;;  %v10403_v6 = vadd.f32 %v22588_v46, %v10231_v12  ;;  %v10232_v39 = vadd.f32 %v22590_v32, %v22568_v37  ;;  %v10763_v46 = vld [vmem:[%s23889_s6 + $0x18] sm:$0xff]  ;;  %v10233_v37 = vadd.f32 %v22594_v41, %v22570_v35  ;;  %v10761_v35 = vld [vmem:[%s23889_s6 + $0x8] sm:$0xff]  ;;  %v14945_v41 = vld [vmem:[%s23889_s6 + $0x90] sm:$0xff] }
 0x774   :  { %v17241_v18 = vpop.f32.mrf.mxu1  ;;  %v10192_v33 = vpop.f32.mrf.mxu0  ;;  %v14954_v12 = vld [vmem:[%s23889_s6 + $0xc8] sm:$0xff] }
 0x775   :  { %v10236_v36 = vadd.f32 %v10192_v33, %v10034_v53 }
 0x776   :  { %v17173_v17 = vpop.f32.mrf.mxu0 }
 0x777   :  { %v10364_v27 = vpop.f32.mrf.mxu1 }
 0x778   :  { %v22602_v59 = vadd.f32 %v10364_v27, %v10236_v36 }
 0x779   :  { %v17244_v49 = vpop.f32.mrf.mxu1  ;;  %v10197_v7 = vpop.f32.mrf.mxu0 }
 0x77a   :  { %v10237_v56 = vadd.f32 %v10197_v7, %v22572_v9  ;;  %v10404_v49 = vadd.f32 %v22592_v14, %v10232_v39  ;;  %v10762_v14 = vld [vmem:[%s23889_s6 + $0x10] sm:$0xff] }
 0x77b   :  { %v10369_v1 = vpop.f32.mrf.mxu1  ;;  %v17176_v43 = vpop.f32.mrf.mxu0 }
 0x77c   :  { %v22605_v57 = vadd.f32 %v10369_v1, %v10237_v56 }
 0x77d   :  { %v17247_v48 = vpop.f32.mrf.mxu1 }
 0x77e   :  { %v10202_v54 = vpop.f32.mrf.mxu0  ;;  %v14946_v48 = vld [vmem:[%s23889_s6 + $0x98] sm:$0xff] }
 0x77f   :  { %v10238_v8 = vadd.f32 %v10202_v54, %v22574_v22  ;;  %v10374_v63 = vpop.f32.mrf.mxu1 }
 0x780   :  { %v17179_v28 = vpop.f32.mrf.mxu0 }
 0x781   :  { %v22608_v13 = vadd.f32 %v10374_v63, %v10238_v8  ;;  %v17250_v53 = vpop.f32.mrf.mxu1  ;;  %v10405_v63 = vadd.f32 %v22596_v5, %v10233_v37 }
 0x782   :  { %v10207_v26 = vpop.f32.mrf.mxu0 }
 0x783   :  { %v10239_v61 = vadd.f32 %v10207_v26, %v22576_v29  ;;  %v10379_v44 = vpop.f32.mrf.mxu1  ;;  %v10760_v26 = vld [vmem:[%s23889_s6] sm:$0xff] }
 0x784   :  { %v17182_v58 = vpop.f32.mrf.mxu0 }
 0x785   :  { %v22611_v45 = vadd.f32 %v10379_v44, %v10239_v61  ;;  %v17253_v9 = vpop.f32.mrf.mxu1  ;;  %v14944_v61 = vld [vmem:[%s23889_s6 + $0x88] sm:$0xff] }
 0x786   :  { %v10212_v51 = vpop.f32.mrf.mxu0  ;;  %v14941_v9 = vld [vmem:[%s23889_s6 + $0x78] sm:$0xff] }
 0x787   :  { %v10240_v31 = vadd.f32 %v10212_v51, %v22578_v38 }
 0x788   :  { %v17185_v11 = vpop.f32.mrf.mxu0 }
 0x789   :  { %v10384_v25 = vpop.f32.mrf.mxu1 }
 0x78a   :  { %v22614_v40 = vadd.f32 %v10384_v25, %v10240_v31  ;;  %v14943_v25 = vld [vmem:[%s23889_s6 + $0x80] sm:$0xff] }
 0x78b   :  { %v17256_v22 = vpop.f32.mrf.mxu1  ;;  %v10217_v52 = vpop.f32.mrf.mxu0 }
 0x78c   :  { %v10241_v30 = vadd.f32 %v10217_v52, %v22580_v10 }
 0x78d   :  { %v10389_v34 = vpop.f32.mrf.mxu1  ;;  %v17188_v21 = vpop.f32.mrf.mxu0 }
 0x78e   :  { %v22617_v20 = vadd.f32 %v10389_v34, %v10241_v30  ;;  %v14940_v30 = vld [vmem:[%s23889_s6 + $0x70] sm:$0xff]  ;;  %v14956_v34 = vld [vmem:[%s23889_s6 + $0xd8] sm:$0xff] }
 0x78f   :  { %v17259_v29 = vpop.f32.mrf.mxu1  ;;  %v10222_v60 = vpop.f32.mrf.mxu0 }
 0x790   :  { %v10242_v42 = vadd.f32 %v10222_v60, %v22582_v2  ;;  %v14939_v60 = vld [vmem:[%s23889_s6 + $0x68] sm:$0xff] }
 0x791   :  { %v10394_v47 = vpop.f32.mrf.mxu1  ;;  %v17191_v3 = vpop.f32.mrf.mxu0 }
 0x792   :  { %v22620_v15 = vadd.f32 %v10394_v47, %v10242_v42  ;;  %v14955_v42 = vld [vmem:[%s23889_s6 + $0xd0] sm:$0xff] }
 0x793   :  { %v17262_v38 = vpop.f32.mrf.mxu1 }
 0x794   :  { %v10227_v23 = vpop.f32.mrf.mxu0  ;;  %v14938_v38 = vld [vmem:[%s23889_s6 + $0x60] sm:$0xff] }
 0x795   :  { %v10243_v24 = vadd.f32 %v10227_v23, %v22584_v19  ;;  %v10399_v10 = vpop.f32.mrf.mxu1 }
 0x796   :  { %v17194_v62 = vpop.f32.mrf.mxu0 }
 0x797   :  { %v22628_v18 = vadd.f32 %v10399_v10, %v10243_v24  ;;  %v17265_v2 = vpop.f32.mrf.mxu1 }
 0x798   :  { %v10511_v33 = vpop.f32.mrf.mxu0 }
 0x799   :  { %v10575_v36 = vadd.f32 %v10511_v33, %v10403_v6  ;;  %v14951_v6 = vld [vmem:[%s23889_s6 + $0xb8] sm:$0xff] }
 0x79a   :  { %v10683_v27 = vpop.f32.mrf.mxu1  ;;  %v17300_v17 = vpop.f32.mrf.mxu0 }
 0x79b   :  { %v10747_v50 = vadd.f32 %v10683_v27, %v10575_v36  ;;  %v14950_v36 = vld [vmem:[%s23889_s6 + $0xb0] sm:$0xff] }
 0x79c   :  { %v17371_v0 = vpop.f32.mrf.mxu1  ;;  %v10516_v7 = vpop.f32.mrf.mxu0 }
 0x79d   :  { %v10770_v19 = vrot.slane %v10747_v50, 4  ;;  %v10576_v56 = vadd.f32 %v10516_v7, %v10404_v49  ;;  %v14966_v49 = vld [vmem:[%s23889_s6 + $0x118] sm:$0xff] }
 0x79e   :  { %v17303_v32 = vpop.f32.mrf.mxu0  ;;  %v10688_v1 = vpop.f32.mrf.mxu1 }
 0x79f   :  { %v22636_v43 = vadd.f32 %v10688_v1, %v10576_v56  ;;  %17417 = vmatmul.mubr.msk.f32.vlgmr.msra.gmra.mxu1 %vm5995_vm1, %v10770_v19  ;;  %v14965_v19 = vld [vmem:[%s23889_s6 + $0x110] sm:$0xff]  ;;  %v14948_v56 = vld [vmem:[%s23889_s6 + $0xa0] sm:$0xff]  ;;  %v14964_v32 = vld [vmem:[%s23889_s6 + $0x108] sm:$0xff] }
 0x7a0   :  { %17420 = vmatpush3.msra.mxu1 %v10763_v46  ;;  %v10521_v54 = vpop.f32.mrf.mxu0  ;;  %v17374_v8 = vpop.f32.mrf.mxu1  ;;  %17427 = vmatprep.mubr.msk.f32.mxu1 %vm17853_vm2, %v17852_v55 }
 0x7a1   :  { %17421 = vmatprep.subr.mxu1 %v17852_v55  ;;  %17439 = vmatmul.mubr.msk.f32.vlgmr.msra.gmra.mxu0 %vm5995_vm1, %v22636_v43  ;;  %v10577_v44 = vadd.f32 %v10521_v54, %v10405_v63  ;;  %v11000_v62 = vrot.slane %v22636_v43, 4  ;;  %v14961_v54 = vld [vmem:[%s23889_s6 + $0xf8] sm:$0xff]  ;;  %v14960_v63 = vld [vmem:[%s23889_s6 + $0xf0] sm:$0xff] }
 0x7a2   :  { %17422 = vmatpush3.msra.mxu1 %v10762_v14  ;;  %17453 = vmatpush3.msra.mxu0 %v14946_v48  ;;  %v17306_v28 = vpop.f32.mrf.mxu0  ;;  %v10693_v53 = vpop.f32.mrf.mxu1 }
 0x7a3   :  { %17423 = vmatprep.subr.mxu1 %v17852_v55  ;;  %17454 = vmatprep.subr.mxu0 %v17852_v55  ;;  %v22675_v11 = vadd.f32 %v10693_v53, %v10577_v44 }
 0x7a4   :  { %17424 = vmatpush3.msra.mxu1 %v10761_v35  ;;  %17455 = vmatpush3.msra.mxu0 %v14945_v41  ;;  %v10526_v5 = vpop.f32.mrf.mxu0  ;;  %v17377_v58 = vpop.f32.mrf.mxu1 }
 0x7a5   :  { %17425 = vmatprep.subr.mxu1 %v17852_v55  ;;  %17456 = vmatprep.subr.mxu0 %v17852_v55  ;;  %v10578_v23 = vadd.f32 %v10526_v5, %v22598_v16  ;;  %v14953_v16 = vld [vmem:[%s23889_s6 + $0xc0] sm:$0xff]  ;;  %v11158_v48 = vrot.slane %v22675_v11, 4  ;;  %v14975_v58 = vld [vmem:[%s23889_s6 + $0x150] sm:$0xff] }
 0x7a6   :  { %17426 = vmatpush3.msra.mxu1 %v10760_v26  ;;  %17457 = vmatpush3.msra.mxu0 %v14944_v61  ;;  %v17309_v51 = vpop.f32.mrf.mxu0  ;;  %v10698_v31 = vpop.f32.mrf.mxu1  ;;  %v14976_v26 = vld [vmem:[%s23889_s6 + $0x158] sm:$0xff]  ;;  %v14959_v61 = vld [vmem:[%s23889_s6 + $0xe8] sm:$0xff] }
 0x7a7   :  { %17428 = vmatmul.mubr.msk.f32.vlgmr.msra.gmra.mxu1 %vm5995_vm1, %v10747_v50  ;;  %17441 = vmatprep.subr.mxu1 %v17852_v55  ;;  %v22728_v33 = vadd.f32 %v10698_v31, %v10578_v23  ;;  %v14949_v50 = vld [vmem:[%s23889_s6 + $0xa8] sm:$0xff] }
 0x7a8   :  { %17458 = vmatprep.subr.mxu0 %v17852_v55  ;;  %17442 = vmatpush3.msra.mxu1 %v14941_v9  ;;  %v22678_v22 = vpop.f32.mrf.mxu0  ;;  %v17380_v52 = vpop.f32.mrf.mxu1  ;;  %v14958_v9 = vld [vmem:[%s23889_s6 + $0xe0] sm:$0xff] }
 0x7a9   :  { %17459 = vmatpush3.msra.mxu0 %v14943_v25  ;;  %17460 = vmatprep.mubr.msk.f32.mxu0 %vm17853_vm2, %v17852_v55  ;;  %v10579_v1 = vadd.f32 %v22678_v22, %v22600_v4  ;;  %v14963_v4 = vld [vmem:[%s23889_s6 + $0x100] sm:$0xff]  ;;  %v14974_v25 = vld [vmem:[%s23889_s6 + $0x148] sm:$0xff] }
 0x7aa   :  { %17443 = vmatprep.subr.mxu1 %v17852_v55  ;;  %17461 = vmatmul.mubr.msk.f32.vlgmr.msra.gmra.mxu0 %vm5995_vm1, %v22675_v11  ;;  %v17312_v21 = vpop.f32.mrf.mxu0  ;;  %v22691_v29 = vpop.f32.mrf.mxu1 }
 0x7ab   :  { %17474 = vmatprep.subr.mxu0 %v17852_v55  ;;  %17444 = vmatpush3.msra.mxu1 %v14940_v30  ;;  %v22783_v41 = vadd.f32 %v22691_v29, %v10579_v1  ;;  %v11316_v30 = vrot.slane %v22728_v33, 4 }
 0x7ac   :  { %17475 = vmatpush3.msra.mxu0 %v14956_v34  ;;  %17445 = vmatprep.subr.mxu1 %v17852_v55  ;;  %v22701_v47 = vpop.f32.mrf.mxu0  ;;  %v17383_v3 = vpop.f32.mrf.mxu1  ;;  %v14971_v34 = vld [vmem:[%s23889_s6 + $0x138] sm:$0xff] }
 0x7ad   :  { %17476 = vmatprep.subr.mxu0 %v17852_v55  ;;  %17446 = vmatpush3.msra.mxu1 %v14939_v60  ;;  %v10580_v11 = vadd.f32 %v22701_v47, %v22602_v59  ;;  %v14973_v59 = vld [vmem:[%s23889_s6 + $0x140] sm:$0xff] }
 0x7ae   :  { %17477 = vmatpush3.msra.mxu0 %v14955_v42  ;;  %17447 = vmatprep.subr.mxu1 %v17852_v55  ;;  %v17315_v24 = vpop.f32.mrf.mxu0  ;;  %v22712_v10 = vpop.f32.mrf.mxu1  ;;  %v14970_v42 = vld [vmem:[%s23889_s6 + $0x130] sm:$0xff] }
 0x7af   :  { %17478 = vmatprep.subr.mxu0 %v17852_v55  ;;  %17448 = vmatpush3.msra.mxu1 %v14938_v38  ;;  %v22838_v60 = vadd.f32 %v22712_v10, %v10580_v11  ;;  %v14986_v38 = vld [vmem:[%s23889_s6 + $0x198] sm:$0xff]  ;;  %v14985_v10 = vld [vmem:[%s23889_s6 + $0x190] sm:$0xff] }
 0x7b0   :  { %17449 = vmatprep.mubr.msk.f32.mxu1 %vm17853_vm2, %v17852_v55  ;;  %17479 = vmatpush3.msra.mxu0 %v14954_v12  ;;  %v22724_v39 = vpop.f32.mrf.mxu0  ;;  %v17386_v2 = vpop.f32.mrf.mxu1  ;;  %v14969_v12 = vld [vmem:[%s23889_s6 + $0x128] sm:$0xff] }
 0x7b1   :  { %17450 = vmatmul.mubr.msk.f32.vlgmr.msra.gmra.mxu1 %vm5995_vm1, %v11000_v62  ;;  %17463 = vmatprep.subr.mxu1 %v17852_v55 }
 0x7b2   :  { %17480 = vmatprep.subr.mxu0 %v17852_v55  ;;  %17464 = vmatpush3.msra.mxu1 %v14951_v6  ;;  %v17318_v27 = vpop.f32.mrf.mxu0  ;;  %v22734_v17 = vpop.f32.mrf.mxu1  ;;  %v14968_v6 = vld [vmem:[%s23889_s6 + $0x120] sm:$0xff] }
 0x7b3   :  { %17481 = vmatpush3.msra.mxu0 %v14953_v16  ;;  %17482 = vmatprep.mubr.msk.f32.mxu0 %vm17853_vm2, %v17852_v55 }
 0x7b4   :  { %17465 = vmatprep.subr.mxu1 %v17852_v55  ;;  %17483 = vmatmul.mubr.msk.f32.vlgmr.msra.gmra.mxu0 %vm5995_vm1, %v22728_v33  ;;  %v22747_v0 = vpop.f32.mrf.mxu0  ;;  %v17389_v7 = vpop.f32.mrf.mxu1  ;;  %v14984_v33 = vld [vmem:[%s23889_s6 + $0x188] sm:$0xff] }
 0x7b5   :  { %17496 = vmatprep.subr.mxu0 %v17852_v55  ;;  %17466 = vmatpush3.msra.mxu1 %v14950_v36  ;;  %v14980_v7 = vld [vmem:[%s23889_s6 + $0x170] sm:$0xff]  ;;  %v10582_v1 = vadd.f32 %v22747_v0, %v22608_v13  ;;  %v14993_v13 = vld [vmem:[%s23889_s6 + $0x1c0] sm:$0xff] }
 0x7b6   :  { %17497 = vmatpush3.msra.mxu0 %v14966_v49  ;;  %17467 = vmatprep.subr.mxu1 %v17852_v55  ;;  %v17321_v46 = vpop.f32.mrf.mxu0  ;;  %v22757_v37 = vpop.f32.mrf.mxu1  ;;  %v11474_v49 = vrot.slane %v22783_v41, 4 }
 0x7b7   :  { %17498 = vmatprep.subr.mxu0 %v17852_v55  ;;  %17468 = vmatpush3.msra.mxu1 %v14949_v50  ;;  %v14981_v50 = vld [vmem:[%s23889_s6 + $0x178] sm:$0xff]  ;;  %v14978_v46 = vld [vmem:[%s23889_s6 + $0x160] sm:$0xff]  ;;  %v10754_v0 = vadd.f32 %v22757_v37, %v10582_v1  ;;  %v14989_v37 = vld [vmem:[%s23889_s6 + $0x1a8] sm:$0xff] }
 0x7b8   :  { %17499 = vmatpush3.msra.mxu0 %v14965_v19  ;;  %17469 = vmatprep.subr.mxu1 %v17852_v55  ;;  %v22766_v43 = vpop.f32.mrf.mxu0  ;;  %v17392_v14 = vpop.f32.mrf.mxu1  ;;  %v14996_v19 = vld [vmem:[%s23889_s6 + $0x1d8] sm:$0xff]  ;;  %v12747_v1 = vld [vmem:[%s23368_s10 + $0x28] sm:$0xff] }
 0x7b9   :  { %17500 = vmatprep.subr.mxu0 %v17852_v55  ;;  %17470 = vmatpush3.msra.mxu1 %v14948_v56  ;;  %v14995_v56 = vld [vmem:[%s23889_s6 + $0x1d0] sm:$0xff]  ;;  %v11632_v14 = vrot.slane %v22838_v60, 4 }
 0x7ba   :  { %17471 = vmatprep.mubr.msk.f32.mxu1 %vm17853_vm2, %v17852_v55  ;;  %17501 = vmatpush3.msra.mxu0 %v14964_v32  ;;  %v17324_v8 = vpop.f32.mrf.mxu0  ;;  %v22778_v35 = vpop.f32.mrf.mxu1  ;;  %v14994_v32 = vld [vmem:[%s23889_s6 + $0x1c8] sm:$0xff] }
 0x7bb   :  { %17472 = vmatmul.mubr.msk.f32.vlgmr.msra.gmra.mxu1 %vm5995_vm1, %v11158_v48  ;;  %17485 = vmatprep.subr.mxu1 %v17852_v55  ;;  %v14991_v48 = vld [vmem:[%s23889_s6 + $0x1b8] sm:$0xff]  ;;  %v15005_v8 = vld [vmem:[%s23889_s6 + $0x210] sm:$0xff] }
 0x7bc   :  { %17502 = vmatprep.subr.mxu0 %v17852_v55  ;;  %17486 = vmatpush3.msra.mxu1 %v14961_v54  ;;  %v22789_v28 = vpop.f32.mrf.mxu0  ;;  %v17395_v53 = vpop.f32.mrf.mxu1  ;;  %v14990_v54 = vld [vmem:[%s23889_s6 + $0x1b0] sm:$0xff] }
 0x7bd   :  { %17503 = vmatpush3.msra.mxu0 %v14963_v4  ;;  %17504 = vmatprep.mubr.msk.f32.mxu0 %vm17853_vm2, %v17852_v55  ;;  %v15006_v4 = vld [vmem:[%s23889_s6 + $0x218] sm:$0xff]  ;;  %v10583_v53 = vadd.f32 %v22766_v43, %v22611_v45  ;;  %v15000_v43 = vld [vmem:[%s23889_s6 + $0x1f0] sm:$0xff]  ;;  %v10584_v11 = vadd.f32 %v22789_v28, %v22614_v40 }
 0x7be   :  { %17487 = vmatprep.subr.mxu1 %v17852_v55  ;;  %17505 = vmatmul.mubr.msk.f32.vlgmr.msra.gmra.mxu0 %vm5995_vm1, %v22783_v41  ;;  %v17327_v44 = vpop.f32.mrf.mxu0  ;;  %v22802_v5 = vpop.f32.mrf.mxu1  ;;  %v14988_v41 = vld [vmem:[%s23889_s6 + $0x1a0] sm:$0xff]  ;;  %v15010_v28 = vld [vmem:[%s23889_s6 + $0x230] sm:$0xff] }
 0x7bf   :  { %17518 = vmatprep.subr.mxu0 %v17852_v55  ;;  %17488 = vmatpush3.msra.mxu1 %v14960_v63  ;;  %v15004_v63 = vld [vmem:[%s23889_s6 + $0x208] sm:$0xff]  ;;  %v15003_v44 = vld [vmem:[%s23889_s6 + $0x200] sm:$0xff]  ;;  %v10755_v45 = vadd.f32 %v22778_v35, %v10583_v53  ;;  %v10756_v40 = vadd.f32 %v22802_v5, %v10584_v11 }
 0x7c0   :  { %17519 = vmatpush3.msra.mxu0 %v14976_v26  ;;  %17489 = vmatprep.subr.mxu1 %v17852_v55  ;;  %v22812_v51 = vpop.f32.mrf.mxu0  ;;  %v17398_v31 = vpop.f32.mrf.mxu1  ;;  %v14999_v35 = vld [vmem:[%s23889_s6 + $0x1e8] sm:$0xff] }
 0x7c1   :  { %17520 = vmatprep.subr.mxu0 %v17852_v55  ;;  %17490 = vmatpush3.msra.mxu1 %v14959_v61  ;;  %v15001_v61 = vld [vmem:[%s23889_s6 + $0x1f8] sm:$0xff]  ;;  %v14998_v31 = vld [vmem:[%s23889_s6 + $0x1e0] sm:$0xff]  ;;  %v15009_v5 = vld [vmem:[%s23889_s6 + $0x228] sm:$0xff] }
 0x7c2   :  { %17521 = vmatpush3.msra.mxu0 %v14975_v58  ;;  %17491 = vmatprep.subr.mxu1 %v17852_v55  ;;  %v17330_v22 = vpop.f32.mrf.mxu0  ;;  %v22821_v52 = vpop.f32.mrf.mxu1  ;;  %v15016_v58 = vld [vmem:[%s23889_s6 + $0x258] sm:$0xff] }
 0x7c3   :  { %17522 = vmatprep.subr.mxu0 %v17852_v55  ;;  %17492 = vmatpush3.msra.mxu1 %v14958_v9  ;;  %v15015_v9 = vld [vmem:[%s23889_s6 + $0x250] sm:$0xff]  ;;  %v11948_v22 = vrot.slane %v10754_v0, 4 }
 0x7c4   :  { %17493 = vmatprep.mubr.msk.f32.mxu1 %vm17853_vm2, %v17852_v55  ;;  %17523 = vmatpush3.msra.mxu0 %v14974_v25  ;;  %v22833_v21 = vpop.f32.mrf.mxu0  ;;  %v17401_v29 = vpop.f32.mrf.mxu1  ;;  %v15014_v25 = vld [vmem:[%s23889_s6 + $0x248] sm:$0xff] }
 0x7c5   :  { %17494 = vmatmul.mubr.msk.f32.vlgmr.msra.gmra.mxu1 %vm5995_vm1, %v11316_v30  ;;  %17507 = vmatprep.subr.mxu1 %v17852_v55  ;;  %v15011_v30 = vld [vmem:[%s23889_s6 + $0x238] sm:$0xff]  ;;  %v15025_v29 = vld [vmem:[%s23889_s6 + $0x290] sm:$0xff] }
 0x7c6   :  { %17524 = vmatprep.subr.mxu0 %v17852_v55  ;;  %17508 = vmatpush3.msra.mxu1 %v14971_v34  ;;  %v17333_v47 = vpop.f32.mrf.mxu0  ;;  %v22844_v3 = vpop.f32.mrf.mxu1  ;;  %v15013_v34 = vld [vmem:[%s23889_s6 + $0x240] sm:$0xff] }
 0x7c7   :  { %17525 = vmatpush3.msra.mxu0 %v14973_v59  ;;  %17526 = vmatprep.mubr.msk.f32.mxu0 %vm17853_vm2, %v17852_v55  ;;  %v15026_v59 = vld [vmem:[%s23889_s6 + $0x298] sm:$0xff]  ;;  %v10585_v47 = vadd.f32 %v22812_v51, %v22617_v20  ;;  %v15020_v51 = vld [vmem:[%s23889_s6 + $0x270] sm:$0xff] }
 0x7c8   :  { %17509 = vmatprep.subr.mxu1 %v17852_v55  ;;  %17527 = vmatmul.mubr.msk.f32.vlgmr.msra.gmra.mxu0 %vm5995_vm1, %v22838_v60  ;;  %v10571_v23 = vpop.f32.mrf.mxu0  ;;  %v17404_v24 = vpop.f32.mrf.mxu1  ;;  %v15008_v60 = vld [vmem:[%s23889_s6 + $0x220] sm:$0xff] }
 0x7c9   :  { %17540 = vmatprep.subr.mxu0 %v17852_v55  ;;  %17510 = vmatpush3.msra.mxu1 %v14970_v42  ;;  %v10587_v62 = vadd.f32 %v10571_v23, %v22628_v18  ;;  %v10581_v18 = vadd.f32 %v22724_v39, %v22605_v57  ;;  %v14983_v57 = vld [vmem:[%s23889_s6 + $0x180] sm:$0xff]  ;;  %v15024_v42 = vld [vmem:[%s23889_s6 + $0x288] sm:$0xff]  ;;  %v10757_v20 = vadd.f32 %v22821_v52, %v10585_v47  ;;  %v15036_v24 = vld [vmem:[%s23889_s6 + $0x2d8] sm:$0xff] }
 0x7ca   :  { %17541 = vmatpush3.msra.mxu0 %v14986_v38  ;;  %17511 = vmatprep.subr.mxu1 %v17852_v55  ;;  %v10743_v16 = vpop.f32.mrf.mxu1  ;;  %v17336_v2 = vpop.f32.mrf.mxu0  ;;  %v12106_v38 = vrot.slane %v10755_v45, 4  ;;  %v15023_v23 = vld [vmem:[%s23889_s6 + $0x280] sm:$0xff]  ;;  %v15019_v52 = vld [vmem:[%s23889_s6 + $0x268] sm:$0xff] }
 0x7cb   :  { %17542 = vmatprep.subr.mxu0 %v17852_v55  ;;  %17512 = vmatpush3.msra.mxu1 %v14969_v12  ;;  %v22870_v36 = vadd.f32 %v10743_v16, %v10587_v62  ;;  %v10753_v39 = vadd.f32 %v22734_v17, %v10581_v18  ;;  %v14979_v17 = vld [vmem:[%s23889_s6 + $0x168] sm:$0xff]  ;;  %v15021_v12 = vld [vmem:[%s23889_s6 + $0x278] sm:$0xff]  ;;  %v15018_v62 = vld [vmem:[%s23889_s6 + $0x260] sm:$0xff]  ;;  %v10586_v16 = vadd.f32 %v22833_v21, %v22620_v15  ;;  %v12264_v2 = vrot.slane %v10756_v40, 4 }
 0x7cc   :  { %17543 = vmatpush3.msra.mxu0 %v14985_v10  ;;  %17513 = vmatprep.subr.mxu1 %v17852_v55  ;;  %v17407_v27 = vpop.f32.mrf.mxu1  ;;  %v15035_v10 = vld [vmem:[%s23889_s6 + $0x2d0] sm:$0xff]  ;;  %v15033_v18 = vld [vmem:[%s23889_s6 + $0x2c0] sm:$0xff] }
 0x7cd   :  { %17544 = vmatprep.subr.mxu0 %v17852_v55  ;;  %17514 = vmatpush3.msra.mxu1 %v14968_v6  ;;  %v11790_v26 = vrot.slane %v10753_v39, 4  ;;  %v15034_v6 = vld [vmem:[%s23889_s6 + $0x2c8] sm:$0xff]  ;;  %v10758_v15 = vadd.f32 %v22844_v3, %v10586_v16  ;;  %v15030_v21 = vld [vmem:[%s23889_s6 + $0x2b0] sm:$0xff]  ;;  %v15046_v27 = vld [vmem:[%s23889_s6 + $0x318] sm:$0xff] }
 0x7ce   :  { %17515 = vmatprep.mubr.msk.f32.mxu1 %vm17853_vm2, %v17852_v55  ;;  %17545 = vmatpush3.msra.mxu0 %v14984_v33  ;;  %v15031_v33 = vld [vmem:[%s23889_s6 + $0x2b8] sm:$0xff]  ;;  %v15029_v3 = vld [vmem:[%s23889_s6 + $0x2a8] sm:$0xff] }
 0x7cf   :  { %17516 = vmatmul.mubr.msk.f32.vlgmr.msra.gmra.mxu1 %vm5995_vm1, %v11474_v49  ;;  %17529 = vmatprep.subr.mxu1 %v17852_v55  ;;  %v15045_v49 = vld [vmem:[%s23889_s6 + $0x310] sm:$0xff] }
 0x7d0   :  { %17546 = vmatprep.subr.mxu0 %v17852_v55  ;;  %17530 = vmatpush3.msra.mxu1 %v14981_v50  ;;  %v15028_v50 = vld [vmem:[%s23889_s6 + $0x2a0] sm:$0xff] }
 0x7d1   :  { %17547 = vmatpush3.msra.mxu0 %v14983_v57  ;;  %17548 = vmatprep.mubr.msk.f32.mxu0 %vm17853_vm2, %v17852_v55  ;;  %v15044_v57 = vld [vmem:[%s23889_s6 + $0x308] sm:$0xff] }
 0x7d2   :  { %17531 = vmatprep.subr.mxu1 %v17852_v55  ;;  %17549 = vmatmul.mubr.msk.f32.vlgmr.msra.gmra.mxu0 %vm5995_vm1, %v10753_v39  ;;  %v12422_v39 = vrot.slane %v10757_v20, 4 }
 0x7d3   :  { %17562 = vmatprep.subr.mxu0 %v17852_v55  ;;  %17532 = vmatpush3.msra.mxu1 %v14980_v7  ;;  %v15041_v7 = vld [vmem:[%s23889_s6 + $0x2f8] sm:$0xff] }
 0x7d4   :  { %17563 = vmatpush3.msra.mxu0 %v14996_v19  ;;  %17533 = vmatprep.subr.mxu1 %v17852_v55  ;;  %v15043_v19 = vld [vmem:[%s23889_s6 + $0x300] sm:$0xff] }
 0x7d5   :  { %17564 = vmatprep.subr.mxu0 %v17852_v55  ;;  %17534 = vmatpush3.msra.mxu1 %v14979_v17  ;;  %v15040_v17 = vld [vmem:[%s23889_s6 + $0x2f0] sm:$0xff] }
 0x7d6   :  { %17565 = vmatpush3.msra.mxu0 %v14995_v56  ;;  %17535 = vmatprep.subr.mxu1 %v17852_v55  ;;  %v15039_v56 = vld [vmem:[%s23889_s6 + $0x2e8] sm:$0xff] }
 0x7d7   :  { %17566 = vmatprep.subr.mxu0 %v17852_v55  ;;  %17536 = vmatpush3.msra.mxu1 %v14978_v46  ;;  %v15038_v46 = vld [vmem:[%s23889_s6 + $0x2e0] sm:$0xff] }
 0x7d8   :  { %17537 = vmatprep.mubr.msk.f32.mxu1 %vm17853_vm2, %v17852_v55  ;;  %17567 = vmatpush3.msra.mxu0 %v14994_v32  ;;  %v12748_v32 = vld [vmem:[%s23368_s10 + $0x30] sm:$0x3] }
 0x7d9   :  { %17538 = vmatmul.mubr.msk.f32.vlgmr.msra.gmra.mxu1 %vm5995_vm1, %v11632_v14  ;;  %17551 = vmatprep.subr.mxu1 %v17852_v55  ;;  %v12746_v14 = vld [vmem:[%s23368_s10 + $0x20] sm:$0xff] }
 0x7da   :  { %17568 = vmatprep.subr.mxu0 %v17852_v55  ;;  %17552 = vmatpush3.msra.mxu1 %v14991_v48  ;;  %v12745_v48 = vld [vmem:[%s23368_s10 + $0x18] sm:$0xff] }
 0x7db   :  { %17569 = vmatpush3.msra.mxu0 %v14993_v13  ;;  %17570 = vmatprep.mubr.msk.f32.mxu0 %vm17853_vm2, %v17852_v55  ;;  %v12744_v13 = vld [vmem:[%s23368_s10 + $0x10] sm:$0xff] }
 0x7dc   :  { %17553 = vmatprep.subr.mxu1 %v17852_v55  ;;  %17571 = vmatmul.mubr.msk.f32.vlgmr.msra.gmra.mxu0 %vm5995_vm1, %v10754_v0  ;;  %v12743_v0 = vld [vmem:[%s23368_s10 + $0x8] sm:$0xff] }
 0x7dd   :  { %17584 = vmatprep.subr.mxu0 %v17852_v55  ;;  %17554 = vmatpush3.msra.mxu1 %v14990_v54  ;;  %v12742_v54 = vld [vmem:[%s23368_s10] sm:$0xff] }
 0x7de   :  { %17585 = vmatpush3.msra.mxu0 %v15006_v4  ;;  %17555 = vmatprep.subr.mxu1 %v17852_v55  ;;  %v12841_v4 = vld [vmem:[%s23370_s12 + $0x30] sm:$0x3] }
 0x7df   :  { %17586 = vmatprep.subr.mxu0 %v17852_v55  ;;  %17556 = vmatpush3.msra.mxu1 %v14989_v37  ;;  %v12840_v37 = vld [vmem:[%s23370_s12 + $0x28] sm:$0xff] }
 0x7e0   :  { %17587 = vmatpush3.msra.mxu0 %v15005_v8  ;;  %17557 = vmatprep.subr.mxu1 %v17852_v55 }
 0x7e1   :  { %17588 = vmatprep.subr.mxu0 %v17852_v55  ;;  %17558 = vmatpush3.msra.mxu1 %v14988_v41  ;;  %v12839_v41 = vld [vmem:[%s23370_s12 + $0x20] sm:$0xff] }
 0x7e2   :  { %17559 = vmatprep.mubr.msk.f32.mxu1 %vm17853_vm2, %v17852_v55  ;;  %17589 = vmatpush3.msra.mxu0 %v15004_v63 }
 0x7e3   :  { %17560 = vmatmul.mubr.msk.f32.vlgmr.msra.gmra.mxu1 %vm5995_vm1, %v11790_v26  ;;  %17573 = vmatprep.subr.mxu1 %v17852_v55  ;;  %v12838_v26 = vld [vmem:[%s23370_s12 + $0x18] sm:$0xff] }
 0x7e4   :  { %17590 = vmatprep.subr.mxu0 %v17852_v55  ;;  %17574 = vmatpush3.msra.mxu1 %v15001_v61 }
 0x7e5   :  { %17591 = vmatpush3.msra.mxu0 %v15003_v44  ;;  %17592 = vmatprep.mubr.msk.f32.mxu0 %vm17853_vm2, %v17852_v55 }
 0x7e6   :  { %17575 = vmatprep.subr.mxu1 %v17852_v55  ;;  %17593 = vmatmul.mubr.msk.f32.vlgmr.msra.gmra.mxu0 %vm5995_vm1, %v10755_v45 }
 0x7e7   :  { %17606 = vmatprep.subr.mxu0 %v17852_v55  ;;  %17576 = vmatpush3.msra.mxu1 %v15000_v43 }
 0x7e8   :  { %17607 = vmatpush3.msra.mxu0 %v15016_v58  ;;  %17577 = vmatprep.subr.mxu1 %v17852_v55 }
 0x7e9   :  { %17608 = vmatprep.subr.mxu0 %v17852_v55  ;;  %17578 = vmatpush3.msra.mxu1 %v14999_v35 }
 0x7ea   :  { %17609 = vmatpush3.msra.mxu0 %v15015_v9  ;;  %17579 = vmatprep.subr.mxu1 %v17852_v55 }
 0x7eb   :  { %17610 = vmatprep.subr.mxu0 %v17852_v55  ;;  %17580 = vmatpush3.msra.mxu1 %v14998_v31 }
 0x7ec   :  { %17581 = vmatprep.mubr.msk.f32.mxu1 %vm17853_vm2, %v17852_v55  ;;  %17611 = vmatpush3.msra.mxu0 %v15014_v25 }
 0x7ed   :  { %17582 = vmatmul.mubr.msk.f32.vlgmr.msra.gmra.mxu1 %vm5995_vm1, %v11948_v22  ;;  %17595 = vmatprep.subr.mxu1 %v17852_v55 }
 0x7ee   :  { %17612 = vmatprep.subr.mxu0 %v17852_v55  ;;  %17596 = vmatpush3.msra.mxu1 %v15011_v30 }
 0x7ef   :  { %17613 = vmatpush3.msra.mxu0 %v15013_v34  ;;  %17614 = vmatprep.mubr.msk.f32.mxu0 %vm17853_vm2, %v17852_v55 }
 0x7f0   :  { %17597 = vmatprep.subr.mxu1 %v17852_v55  ;;  %17615 = vmatmul.mubr.msk.f32.vlgmr.msra.gmra.mxu0 %vm5995_vm1, %v10756_v40 }
 0x7f1   :  { %17628 = vmatprep.subr.mxu0 %v17852_v55  ;;  %17598 = vmatpush3.msra.mxu1 %v15010_v28 }
 0x7f2   :  { %17629 = vmatpush3.msra.mxu0 %v15026_v59  ;;  %17599 = vmatprep.subr.mxu1 %v17852_v55 }
 0x7f3   :  { %17630 = vmatprep.subr.mxu0 %v17852_v55  ;;  %17600 = vmatpush3.msra.mxu1 %v15009_v5 }
 0x7f4   :  { %17631 = vmatpush3.msra.mxu0 %v15025_v29  ;;  %17601 = vmatprep.subr.mxu1 %v17852_v55 }
 0x7f5   :  { %17632 = vmatprep.subr.mxu0 %v17852_v55  ;;  %17602 = vmatpush3.msra.mxu1 %v15008_v60 }
 0x7f6   :  { %17603 = vmatprep.mubr.msk.f32.mxu1 %vm17853_vm2, %v17852_v55  ;;  %17633 = vmatpush3.msra.mxu0 %v15024_v42 }
 0x7f7   :  { %17604 = vmatmul.mubr.msk.f32.vlgmr.msra.gmra.mxu1 %vm5995_vm1, %v12106_v38  ;;  %17617 = vmatprep.subr.mxu1 %v17852_v55 }
 0x7f8   :  { %17634 = vmatprep.subr.mxu0 %v17852_v55  ;;  %17618 = vmatpush3.msra.mxu1 %v15021_v12 }
 0x7f9   :  { %17635 = vmatpush3.msra.mxu0 %v15023_v23  ;;  %17636 = vmatprep.mubr.msk.f32.mxu0 %vm17853_vm2, %v17852_v55 }
 0x7fa   :  { %17619 = vmatprep.subr.mxu1 %v17852_v55  ;;  %17637 = vmatmul.mubr.msk.f32.vlgmr.msra.gmra.mxu0 %vm5995_vm1, %v10757_v20 }
 0x7fb   :  { %17650 = vmatprep.subr.mxu0 %v17852_v55  ;;  %17620 = vmatpush3.msra.mxu1 %v15020_v51 }
 0x7fc   :  { %17651 = vmatpush3.msra.mxu0 %v15036_v24  ;;  %17621 = vmatprep.subr.mxu1 %v17852_v55 }
 0x7fd   :  { %17652 = vmatprep.subr.mxu0 %v17852_v55  ;;  %17622 = vmatpush3.msra.mxu1 %v15019_v52 }
 0x7fe   :  { %17653 = vmatpush3.msra.mxu0 %v15035_v10  ;;  %17623 = vmatprep.subr.mxu1 %v17852_v55 }
 0x7ff   :  { %17654 = vmatprep.subr.mxu0 %v17852_v55  ;;  %17624 = vmatpush3.msra.mxu1 %v15018_v62 }
 0x800   :  { %17625 = vmatprep.mubr.msk.f32.mxu1 %vm17853_vm2, %v17852_v55  ;;  %17655 = vmatpush3.msra.mxu0 %v15034_v6 }
 0x801   :  { %17626 = vmatmul.mubr.msk.f32.vlgmr.msra.gmra.mxu1 %vm5995_vm1, %v12264_v2  ;;  %17639 = vmatprep.subr.mxu1 %v17852_v55 }
 0x802   :  { %17656 = vmatprep.subr.mxu0 %v17852_v55  ;;  %17640 = vmatpush3.msra.mxu1 %v15031_v33 }
 0x803   :  { %17657 = vmatpush3.msra.mxu0 %v15033_v18  ;;  %17658 = vmatprep.mubr.msk.f32.mxu0 %vm17853_vm2, %v17852_v55 }
 0x804   :  { %17641 = vmatprep.subr.mxu1 %v17852_v55  ;;  %17659 = vmatmul.mubr.msk.f32.vlgmr.msra.gmra.mxu0 %vm5995_vm1, %v10758_v15 }
 0x805   :  { %17672 = vmatprep.subr.mxu0 %v17852_v55  ;;  %17642 = vmatpush3.msra.mxu1 %v15030_v21 }
 0x806   :  { %17673 = vmatpush3.msra.mxu0 %v15046_v27  ;;  %17643 = vmatprep.subr.mxu1 %v17852_v55 }
 0x807   :  { %17674 = vmatprep.subr.mxu0 %v17852_v55  ;;  %17644 = vmatpush3.msra.mxu1 %v15029_v3 }
 0x808   :  { %17675 = vmatpush3.msra.mxu0 %v15045_v49  ;;  %17645 = vmatprep.subr.mxu1 %v17852_v55 }
 0x809   :  { %17676 = vmatprep.subr.mxu0 %v17852_v55  ;;  %17646 = vmatpush3.msra.mxu1 %v15028_v50 }
 0x80a   :  { %17647 = vmatprep.mubr.msk.f32.mxu1 %vm17853_vm2, %v17852_v55  ;;  %17677 = vmatpush3.msra.mxu0 %v15044_v57 }
 0x80b   :  { %17648 = vmatmul.mubr.msk.f32.vlgmr.msra.gmra.mxu1 %vm5995_vm1, %v12422_v39  ;;  %17661 = vmatprep.subr.mxu1 %v17852_v55 }
 0x80c   :  { %17678 = vmatprep.subr.mxu0 %v17852_v55  ;;  %17662 = vmatpush3.msra.mxu1 %v15041_v7 }
 0x80d   :  { %17679 = vmatpush3.msra.mxu0 %v15043_v19  ;;  %17680 = vmatprep.mubr.msk.f32.mxu0 %vm17853_vm2, %v17852_v55 }
 0x80e   :  { %17663 = vmatprep.subr.mxu1 %v17852_v55  ;;  %17681 = vmatmul.mubr.msk.f32.vlgmr.msra.gmra.mxu0 %vm5995_vm1, %v22870_v36  ;;  %v12580_v36 = vrot.slane %v10758_v15, 4 }
 0x80f   :  { %17664 = vmatpush3.msra.mxu1 %v15040_v17  ;;  %17669 = vmatprep.mubr.msk.f32.mxu1 %vm17853_vm2, %v17852_v55 }
 0x810   :  { %17665 = vmatprep.subr.mxu1 %v17852_v55  ;;  %17700 = vmatprep.subr.mxu0 %v17852_v55 }
 0x811   :  { %17666 = vmatpush3.msra.mxu1 %v15039_v56  ;;  %17714 = vmatprep.mubr.msk.f32.mxu0 %vm17853_vm2, %v17852_v55 }
 0x812   :  { %17667 = vmatprep.subr.mxu1 %v17852_v55  ;;  %17701 = vmatpush3.msk.msra.mxu0 %vm12760_vm3, %v12841_v4 }
 0x813   :  { %17668 = vmatpush3.msra.mxu1 %v15038_v46  ;;  %17702 = vmatprep.subr.mxu0 %v17852_v55 }
 0x814   :  { %17670 = vmatmul.mubr.msk.f32.vlgmr.msra.gmra.mxu1 %vm5995_vm1, %v12580_v36  ;;  %17683 = vmatprep.subr.mxu1 %v17852_v55 }
 0x815   :  { %17697 = vmatprep.mubr.msk.f32.mxu1 %vm17853_vm2, %v17852_v55  ;;  %17684 = vmatpush3.msk.msra.mxu1 %vm12760_vm3, %v12748_v32 }
 0x816   :  { %17685 = vmatprep.subr.mxu1 %v17852_v55  ;;  %17703 = vmatpush3.msra.mxu0 %v12840_v37 }
 0x817   :  { %17686 = vmatpush3.msra.mxu1 %v12747_v1  ;;  %17704 = vmatprep.subr.mxu0 %v17852_v55 }
 0x818   :  { %17687 = vmatprep.subr.mxu1 %v17852_v55  ;;  %17705 = vmatpush3.msra.mxu0 %v12839_v41 }
 0x819   :  { %17688 = vmatpush3.msra.mxu1 %v12746_v14  ;;  %17706 = vmatprep.subr.mxu0 %v17852_v55 }
 0x81a   :  { %17689 = vmatprep.subr.mxu1 %v17852_v55  ;;  %17707 = vmatpush3.msra.mxu0 %v12838_v26 }
 0x81b   :  { %17690 = vmatpush3.msra.mxu1 %v12745_v48  ;;  %17708 = vmatprep.subr.mxu0 %v17852_v55 }
 0x81c   :  { %17691 = vmatprep.subr.mxu1 %v17852_v55 }
 0x81d   :  { %17692 = vmatpush3.msra.mxu1 %v12744_v13 }
 0x81e   :  { %17693 = vmatprep.subr.mxu1 %v17852_v55 }
 0x81f   :  { %17694 = vmatpush3.msra.mxu1 %v12743_v0 }
 0x820   :  { %17695 = vmatprep.subr.mxu1 %v17852_v55 }
 0x821   :  { %17696 = vmatpush3.msra.mxu1 %v12742_v54 }
 0x822   :  { %17717 = vmatprep.subr.mxu1 %v17852_v55 }
 0x85f   :  { %v10840_v8 = vpop.f32.mrf.mxu1 }
 0x861   :  { %v17418_v63 = vpop.f32.mrf.mxu1  ;;  %v10990_v53 = vpop.f32.mrf.mxu0 }
 0x863   :  { %v17440_v61 = vpop.f32.mrf.mxu0 }
 0x867   :  { %v10912_v44 = vpop.f32.mrf.mxu1 }
 0x868   :  { %v10913_v45 = vadd.f32 %v10912_v44, %v10840_v8 }
 0x869   :  { %v17429_v43 = vpop.f32.mrf.mxu1 }
 0x86a   :  { %v11148_v58 = vpop.f32.mrf.mxu0  ;;  %v10994_v35 = vadd.f32 %v10990_v53, %v10913_v45 }
 0x86c   :  { %v17462_v9 = vpop.f32.mrf.mxu0 }
 0x86d   :  { %v15048_v9 = vld [vmem:[%s23367_s9] ss:$0 sm:$0xff] }
 0x871   :  { %v11069_v31 = vpop.f32.mrf.mxu1 }
 0x872   :  { %v11073_v25 = vadd.f32 %v11069_v31, %v10994_v35 }
 0x873   :  { %v17451_v11 = vpop.f32.mrf.mxu1 }
 0x874   :  { %v11306_v22 = vpop.f32.mrf.mxu0  ;;  %v11152_v30 = vadd.f32 %v11148_v58, %v11073_v25 }
 0x876   :  { %v17484_v34 = vpop.f32.mrf.mxu0 }
 0x877   :  { %v12836_v34 = vld [vmem:[%s23370_s12 + $0x8] sm:$0xff] }
 0x87b   :  { %v11227_v40 = vpop.f32.mrf.mxu1 }
 0x87c   :  { %v11231_v62 = vadd.f32 %v11227_v40, %v11152_v30  ;;  %v12837_v30 = vld [vmem:[%s23370_s12 + $0x10] sm:$0xff]  ;;  %v12835_v40 = vld [vmem:[%s23370_s12] sm:$0xff] }
 0x87d   :  { %v17473_v28 = vpop.f32.mrf.mxu1  ;;  %17709 = vmatpush3.msra.mxu0 %v12837_v30 }
 0x87e   :  { %v11464_v59 = vpop.f32.mrf.mxu0  ;;  %v11310_v6 = vadd.f32 %v11306_v22, %v11231_v62  ;;  %17710 = vmatprep.subr.mxu0 %v17852_v55  ;;  %v15049_v28 = vld [vmem:[%s23369_s11] ss:$0 sm:$0xff] }
 0x87f   :  { %17711 = vmatpush3.msra.mxu0 %v12836_v34  ;;  %v12928_v62 = vld [vmem:[%s23372_s14] sm:$0xff] }
 0x880   :  { %v17506_v5 = vpop.f32.mrf.mxu0  ;;  %17712 = vmatprep.subr.mxu0 %v17852_v55 }
 0x881   :  { %17713 = vmatpush3.msra.mxu0 %v12835_v40 }
 0x882   :  { %17731 = vmatprep.subr.mxu0 %v17852_v55 }
 0x885   :  { %v11385_v29 = vpop.f32.mrf.mxu1 }
 0x886   :  { %v11389_v2 = vadd.f32 %v11385_v29, %v11310_v6  ;;  %v13099_v6 = vld [vmem:[%s23375_s17 + $0x28] sm:$0xff] }
 0x887   :  { %v17495_v60 = vpop.f32.mrf.mxu1 }
 0x888   :  { %v11622_v42 = vpop.f32.mrf.mxu0  ;;  %v11468_v21 = vadd.f32 %v11464_v59, %v11389_v2  ;;  %v13097_v2 = vld [vmem:[%s23375_s17 + $0x18] sm:$0xff] }
 0x88a   :  { %v17528_v47 = vpop.f32.mrf.mxu0 }
 0x88b   :  { %v12930_v47 = vld [vmem:[%s23373_s15] sm:$0xff] }
 0x88f   :  { %v11543_v38 = vpop.f32.mrf.mxu1 }
 0x890   :  { %v11547_v27 = vadd.f32 %v11543_v38, %v11468_v21  ;;  %v13100_v38 = vld [vmem:[%s23375_s17 + $0x30] sm:$0x3] }
 0x891   :  { %v17517_v12 = vpop.f32.mrf.mxu1  ;;  %v13191_v21 = vld [vmem:[%s23377_s19 + $0x30] sm:$0x3] }
 0x892   :  { %v11780_v23 = vpop.f32.mrf.mxu0  ;;  %v11626_v49 = vadd.f32 %v11622_v42, %v11547_v27  ;;  %v12931_v42 = vld [vmem:[%s23373_s15 + $0x8] sm:$0x3]  ;;  %v15052_v12 = vld [vmem:[%s23371_s13] ss:$0 sm:$0xff] }
 0x893   :  { %v13190_v27 = vld [vmem:[%s23377_s19 + $0x28] sm:$0xff] }
 0x894   :  { %v17550_v20 = vpop.f32.mrf.mxu0 }
 0x899   :  { %v11701_v51 = vpop.f32.mrf.mxu1 }
 0x89a   :  { %v11705_v39 = vadd.f32 %v11701_v51, %v11626_v49  ;;  %v13188_v49 = vld [vmem:[%s23377_s19 + $0x18] sm:$0xff] }
 0x89b   :  { %v17539_v24 = vpop.f32.mrf.mxu1 }
 0x89c   :  { %v11938_v52 = vpop.f32.mrf.mxu0  ;;  %v11784_v19 = vadd.f32 %v11780_v23, %v11705_v39 }
 0x89e   :  { %v17572_v10 = vpop.f32.mrf.mxu0 }
 0x89f   :  { %v12929_v10 = vld [vmem:[%s23372_s14 + $0x8] sm:$0x3] }
 0x8a3   :  { %v11859_v16 = vpop.f32.mrf.mxu1 }
 0x8a4   :  { %v11863_v17 = vadd.f32 %v11859_v16, %v11784_v19  ;;  %v13098_v16 = vld [vmem:[%s23375_s17 + $0x20] sm:$0xff] }
 0x8a5   :  { %v17561_v33 = vpop.f32.mrf.mxu1 }
 0x8a6   :  { %v12096_v18 = vpop.f32.mrf.mxu0  ;;  %v11942_v32 = vadd.f32 %v11938_v52, %v11863_v17  ;;  %v13096_v33 = vld [vmem:[%s23375_s17 + $0x10] sm:$0xff] }
 0x8a8   :  { %v17594_v15 = vpop.f32.mrf.mxu0 }
 0x8a9   :  { %v13094_v15 = vld [vmem:[%s23375_s17] sm:$0xff] }
 0x8ad   :  { %v12017_v3 = vpop.f32.mrf.mxu1 }
 0x8ae   :  { %v12021_v14 = vadd.f32 %v12017_v3, %v11942_v32  ;;  %v13189_v3 = vld [vmem:[%s23377_s19 + $0x20] sm:$0xff]  ;;  %v13186_v32 = vld [vmem:[%s23377_s19 + $0x8] sm:$0xff] }
 0x8af   :  { %v17583_v50 = vpop.f32.mrf.mxu1 }
 0x8b0   :  { %v12254_v57 = vpop.f32.mrf.mxu0  ;;  %v12100_v48 = vadd.f32 %v12096_v18, %v12021_v14  ;;  %v13095_v18 = vld [vmem:[%s23375_s17 + $0x8] sm:$0xff]  ;;  %v13282_v14 = vld [vmem:[%s23379_s21 + $0x30] sm:$0x3] }
 0x8b2   :  { %v17616_v7 = vpop.f32.mrf.mxu0 }
 0x8b3   :  { %v15059_v7 = vld [vmem:[%s23374_s16] ss:$0 sm:$0xff] }
 0x8b7   :  { %v12175_v56 = vpop.f32.mrf.mxu1 }
 0x8b8   :  { %v12179_v0 = vadd.f32 %v12175_v56, %v12100_v48  ;;  %v13281_v48 = vld [vmem:[%s23379_s21 + $0x28] sm:$0xff] }
 0x8b9   :  { %v17605_v46 = vpop.f32.mrf.mxu1 }
 0x8ba   :  { %v12412_v36 = vpop.f32.mrf.mxu0  ;;  %v12258_v8 = vadd.f32 %v12254_v57, %v12179_v0  ;;  %v13279_v0 = vld [vmem:[%s23379_s21 + $0x18] sm:$0xff] }
 0x8bc   :  { %v17638_v1 = vpop.f32.mrf.mxu0 }
 0x8bd   :  { %v13185_v1 = vld [vmem:[%s23377_s19] sm:$0xff] }
 0x8c1   :  { %v12333_v13 = vpop.f32.mrf.mxu1 }
 0x8c2   :  { %v12337_v41 = vadd.f32 %v12333_v13, %v12258_v8  ;;  %v13280_v13 = vld [vmem:[%s23379_s21 + $0x20] sm:$0xff] }
 0x8c3   :  { %v17627_v54 = vpop.f32.mrf.mxu1 }
 0x8c4   :  { %v12570_v4 = vpop.f32.mrf.mxu0  ;;  %v12416_v53 = vadd.f32 %v12412_v36, %v12337_v41  ;;  %v13187_v36 = vld [vmem:[%s23377_s19 + $0x10] sm:$0xff]  ;;  %v15060_v54 = vld [vmem:[%s23376_s18] ss:$0 sm:$0xff] }
 0x8c6   :  { %v17660_v37 = vpop.f32.mrf.mxu0 }
 0x8cb   :  { %v12491_v63 = vpop.f32.mrf.mxu1 }
 0x8cc   :  { %v12495_v44 = vadd.f32 %v12491_v63, %v12416_v53  ;;  %v13278_v63 = vld [vmem:[%s23379_s21 + $0x10] sm:$0xff]  ;;  %v13277_v53 = vld [vmem:[%s23379_s21 + $0x8] sm:$0xff] }
 0x8cd   :  { %v17649_v26 = vpop.f32.mrf.mxu1 }
 0x8ce   :  { %v12728_v61 = vpop.f32.mrf.mxu0  ;;  %v12574_v43 = vadd.f32 %v12570_v4, %v12495_v44  ;;  %v13276_v26 = vld [vmem:[%s23379_s21] sm:$0xff] }
 0x8d0   :  { %v17682_v45 = vpop.f32.mrf.mxu0 }
 0x8d4   :  { %v12649_v58 = vpop.f32.mrf.mxu1 }
 0x8d5   :  { %v12653_v35 = vadd.f32 %v12649_v58, %v12574_v43 }
 0x8d6   :  { %v17671_v31 = vpop.f32.mrf.mxu1 }
 0x8d7   :  { %v12732_v25 = vadd.f32 %v12728_v61, %v12653_v35  ;;  %v15063_v61 = vld [vmem:[%s23378_s20] ss:$0 sm:$0xff] }
 0x8d8   :  { %v15066_v35 = vld [vmem:[#allocation5] ss:$0 sm:$0xff] }
 0x8d9   :  { %v12740_v11 = vadd.f32 %v15048_v9, %v12732_v25 }
 0x8db   :  { %v12741_v22 = vmax.f32 %v12740_v11, 0.0 }
 0x8dd   :  { %17698 = vmatmul.mubr.msk.f32.vlgmr.msra.gmra.mxu1 %vm12756_vm4, %v12741_v22 }
 0x8de   :  { %17721 = vmatprep.mubr.msk.f32.mxu1 %vm17853_vm2, %v17852_v55  ;;  %17718 = vmatpush3.msk.msra.mxu1 %vm12760_vm3, %v12931_v42 }
 0x8df   :  { %17719 = vmatprep.subr.mxu1 %v17852_v55 }
 0x8e0   :  { %17720 = vmatpush3.msra.mxu1 %v12930_v47 }
 0x8e1   :  { %17724 = vmatprep.subr.mxu1 %v17852_v55 }
 0x99d   :  { %v12830_v59 = vpop.f32.mrf.mxu1 }
 0x99e   :  { %v12831_v5 = vadd.f32 %v15049_v28, %v12830_v59 }
 0x99f   :  { %v17699_v29 = vpop.f32.mrf.mxu1 }
 0x9a0   :  { %v12834_v60 = vmax.f32 %v12831_v5, 0.0 }
 0x9a2   :  { %17715 = vmatmul.mubr.msk.f32.vlgmr.msra.gmra.mxu0 %vm12756_vm4, %v12834_v60 }
 0x9a3   :  { %17745 = vmatprep.mubr.msk.f32.mxu0 %vm17853_vm2, %v17852_v55  ;;  %17732 = vmatpush3.msk.msra.mxu0 %vm12760_vm3, %v13100_v38 }
 0x9a4   :  { %17733 = vmatprep.subr.mxu0 %v17852_v55 }
 0x9a5   :  { %17734 = vmatpush3.msra.mxu0 %v13099_v6 }
 0x9a6   :  { %17735 = vmatprep.subr.mxu0 %v17852_v55 }
 0x9a7   :  { %17736 = vmatpush3.msra.mxu0 %v13098_v16 }
 0x9a8   :  { %17737 = vmatprep.subr.mxu0 %v17852_v55 }
 0x9a9   :  { %17738 = vmatpush3.msra.mxu0 %v13097_v2 }
 0x9aa   :  { %17739 = vmatprep.subr.mxu0 %v17852_v55 }
 0x9ab   :  { %17740 = vmatpush3.msra.mxu0 %v13096_v33 }
 0x9ac   :  { %17741 = vmatprep.subr.mxu0 %v17852_v55 }
 0x9ad   :  { %17742 = vmatpush3.msra.mxu0 %v13095_v18 }
 0x9ae   :  { %17743 = vmatprep.subr.mxu0 %v17852_v55 }
 0x9af   :  { %17744 = vmatpush3.msra.mxu0 %v13094_v15 }
 0x9b0   :  { %17765 = vmatprep.subr.mxu0 %v17852_v55 }
 0xa62   :  { %v12921_v23 = vpop.f32.mrf.mxu0 }
 0xa63   :  { %v12922_v20 = vadd.f32 %v15052_v12, %v12921_v23 }
 0xa64   :  { %v17716_v51 = vpop.f32.mrf.mxu0 }
 0xa65   :  { %12926 = vst.msk [vmem:[%s23382_s24] sm:$0xf] %vm12925_vm5, %v12922_v20  ;;  %v12927_v24 = vmax.f32 %v12922_v20, 0.0 }
 0xa67   :  { %v12933_v52 = vrot.slane %v12927_v24, 2 }
 0xa69   :  { %17722 = vmatmul.mubr.msk.f32.vlgmr.msra.gmra.mxu1 %vm12934_vm6, %v12933_v52 }
 0xa6a   :  { %17725 = vmatpush3.msk.msra.mxu1 %vm12760_vm3, %v12929_v10  ;;  %17728 = vmatprep.mubr.msk.f32.mxu1 %vm17853_vm2, %v17852_v55 }
 0xa6b   :  { %17726 = vmatprep.subr.mxu1 %v17852_v55 }
 0xa6c   :  { %17727 = vmatpush3.msra.mxu1 %v12928_v62 }
 0xa6d   :  { %17729 = vmatmul.mubr.msk.f32.vlgmr.msra.gmra.mxu1 %vm12934_vm6, %v12927_v24  ;;  %17748 = vmatprep.subr.mxu1 %v17852_v55 }
 0xa6e   :  { %17762 = vmatprep.mubr.msk.f32.mxu1 %vm17853_vm2, %v17852_v55  ;;  %17749 = vmatpush3.msk.msra.mxu1 %vm12760_vm3, %v13191_v21 }
 0xa6f   :  { %17750 = vmatprep.subr.mxu1 %v17852_v55 }
 0xa70   :  { %17751 = vmatpush3.msra.mxu1 %v13190_v27 }
 0xa71   :  { %17752 = vmatprep.subr.mxu1 %v17852_v55 }
 0xa72   :  { %17753 = vmatpush3.msra.mxu1 %v13189_v3 }
 0xa73   :  { %17754 = vmatprep.subr.mxu1 %v17852_v55 }
 0xa74   :  { %17755 = vmatpush3.msra.mxu1 %v13188_v49 }
 0xa75   :  { %17756 = vmatprep.subr.mxu1 %v17852_v55 }
 0xa76   :  { %17757 = vmatpush3.msra.mxu1 %v13187_v36 }
 0xa77   :  { %17758 = vmatprep.subr.mxu1 %v17852_v55 }
 0xa78   :  { %17759 = vmatpush3.msra.mxu1 %v13186_v32 }
 0xa79   :  { %17760 = vmatprep.subr.mxu1 %v17852_v55 }
 0xa7a   :  { %17761 = vmatpush3.msra.mxu1 %v13185_v1 }
 0xb29   :  { %v13006_v50 = vpop.f32.mrf.mxu1 }
 0xb2b   :  { %v17723_v57 = vpop.f32.mrf.mxu1 }
 0xb2d   :  { %v13081_v39 = vpop.f32.mrf.mxu1 }
 0xb2e   :  { %v13082_v19 = vadd.f32 %v13081_v39, %v13006_v50 }
 0xb2f   :  { %v17730_v17 = vpop.f32.mrf.mxu1 }
 0xb30   :  { %v13092_v56 = vadd.f32 %v15059_v7, %v13082_v19 }
 0xb32   :  { %v13093_v46 = vmax.f32 %v13092_v56, 0.0 }
 0xb34   :  { %17746 = vmatmul.mubr.msk.f32.vlgmr.msra.gmra.mxu0 %vm12756_vm4, %v13093_v46 }
 0xb35   :  { %17779 = vmatprep.mubr.msk.f32.mxu0 %vm17853_vm2, %v17852_v55  ;;  %17766 = vmatpush3.msk.msra.mxu0 %vm12760_vm3, %v13282_v14 }
 0xb36   :  { %17767 = vmatprep.subr.mxu0 %v17852_v55 }
 0xb37   :  { %17768 = vmatpush3.msra.mxu0 %v13281_v48 }
 0xb38   :  { %17769 = vmatprep.subr.mxu0 %v17852_v55 }
 0xb39   :  { %17770 = vmatpush3.msra.mxu0 %v13280_v13 }
 0xb3a   :  { %17771 = vmatprep.subr.mxu0 %v17852_v55 }
 0xb3b   :  { %17772 = vmatpush3.msra.mxu0 %v13279_v0 }
 0xb3c   :  { %17773 = vmatprep.subr.mxu0 %v17852_v55 }
 0xb3d   :  { %17774 = vmatpush3.msra.mxu0 %v13278_v63 }
 0xb3e   :  { %17775 = vmatprep.subr.mxu0 %v17852_v55 }
 0xb3f   :  { %17776 = vmatpush3.msra.mxu0 %v13277_v53 }
 0xb40   :  { %17777 = vmatprep.subr.mxu0 %v17852_v55 }
 0xb41   :  { %17778 = vmatpush3.msra.mxu0 %v13276_v26 }
 0xbf4   :  { %v13180_v4 = vpop.f32.mrf.mxu0 }
 0xbf5   :  { %v13181_v37 = vadd.f32 %v15060_v54, %v13180_v4 }
 0xbf6   :  { %v17747_v8 = vpop.f32.mrf.mxu0 }
 0xbf7   :  { %v13184_v41 = vmax.f32 %v13181_v37, 0.0 }
 0xbf9   :  { %17763 = vmatmul.mubr.msk.f32.vlgmr.msra.gmra.mxu1 %vm12756_vm4, %v13184_v41 }
 0xcb9   :  { %v13271_v44 = vpop.f32.mrf.mxu1 }
 0xcba   :  { %v13272_v45 = vadd.f32 %v15063_v61, %v13271_v44 }
 0xcbb   :  { %v17764_v43 = vpop.f32.mrf.mxu1 }
 0xcbc   :  { %v13275_v58 = vmax.f32 %v13272_v45, 0.0 }
 0xcbe   :  { %17780 = vmatmul.mubr.msk.f32.vlgmr.msra.gmra.mxu0 %vm12756_vm4, %v13275_v58 }
 0xd7e   :  { %v13362_v9 = vpop.f32.mrf.mxu0 }
 0xd7f   :  { %v13363_v31 = vadd.f32 %v15066_v35, %v13362_v9 }
 0xd80   :  { %v17781_v55 = vpop.f32.mrf.mxu0 }
 0xd81   :  { %13367 = vst.msk [vmem:[%s23381_s23] sm:$0x3] %vm13366_vm7, %v13363_v31 }

</bundles_post_ra>
